<compile_context>
chip_gen: v6e
topology: v6e:2x2x1
jax: 0.10.0
libtpu: 0.0.40
codegen_flags: <defaults>
</compile_context>

<pallas_src>
import functools
import numpy as np
import jax
import jax.numpy as jnp
from jax import lax
from jax.experimental import pallas as pl
from jax.experimental.pallas import tpu as pltpu


# ----------------------------------------------------------------------------
# Column layout shared by the weight packer and the kernel.
# The big matmul's output columns are D-wide "jobs"; zero-padded so every
# chunk is 256 columns (128/256-aligned MXU passes).
# ----------------------------------------------------------------------------
def _column_jobs(dilations, D):
    blocks_per_chunk = max(1, 256 // D)
    jobs = [("conv0", 0, 0, 0), ("pool", 0, 0, 0)]
    for b in range(len(dilations)):
        for ky in range(3):
            for kx in range(3):
                jobs.append(("tap", b, ky, kx))
    while len(jobs) % blocks_per_chunk:
        jobs.append(("pad", 0, 0, 0))
    return jobs, blocks_per_chunk


def _shift_hw(t, dy, dx):
    """s[b,h,w,:] = t[b,h+dy,w+dx,:] where the source is in range, 0 outside.

    Pure register shift: static slice + zero-concat (no masked VMEM RMW stores).
    """
    B, H, W, D = t.shape
    s = t[:, max(dy, 0):H + min(dy, 0), max(dx, 0):W + min(dx, 0), :]
    if dx > 0:
        s = jnp.concatenate([s, jnp.zeros(s.shape[:2] + (dx, D), s.dtype)], axis=2)
    elif dx < 0:
        s = jnp.concatenate([jnp.zeros(s.shape[:2] + (-dx, D), s.dtype), s], axis=2)
    if dy > 0:
        s = jnp.concatenate([s, jnp.zeros((B, dy, W, D), s.dtype)], axis=1)
    elif dy < 0:
        s = jnp.concatenate([jnp.zeros((B, -dy, W, D), s.dtype), s], axis=1)
    return s


# ----------------------------------------------------------------------------
# Fused kernel: all branches + folded BN + ReLU + concat + bottleneck 3x3.
# ----------------------------------------------------------------------------
def _make_aspp_kernel(B, H, W, Cin, D, dilations):
    HW = H * W
    M = B * HW
    nb = len(dilations)
    jobs, bpc = _column_jobs(dilations, D)
    n_chunks = len(jobs) // bpc
    chunk_cols = bpc * D

    def kernel(x_ref, wall_ref, sc4_ref, sh4_ref, scp_ref, shp_ref,
               wbc_ref, wbp_ref, bbot_ref, out_ref):
        x = x_ref[...].reshape(M, Cin)                              # (M, Cin) bf16

        conv1 = None                  # 1x1 branch           (B, H, W, D) f32
        acc = [None] * nb             # dilated branches     (B, H, W, D) f32
        pool_cols = None              # pooled-branch matmul (M, D) f32

        # Chunked main matmul: 256 aligned output columns per MXU dot; each
        # chunk's taps are shifted & accumulated in registers right away so the
        # full (M, 1024) f32 result never has to live at once.
        for c in range(n_chunks):
            y = jnp.dot(x, wall_ref[:, c * chunk_cols:(c + 1) * chunk_cols],
                        preferred_element_type=jnp.float32)         # (M, 256)
            for j in range(bpc):
                kind, b, ky, kx = jobs[c * bpc + j]
                if kind == "pad":
                    continue
                col = y[:, j * D:(j + 1) * D]                       # (M, D)
                if kind == "conv0":
                    conv1 = col.reshape(B, H, W, D)
                elif kind == "pool":
                    pool_cols = col
                else:                                               # dilated tap
                    d = dilations[b]
                    t = _shift_hw(col.reshape(B, H, W, D),
                                  (ky - 1) * d, (kx - 1) * d)
                    acc[b] = t if acc[b] is None else acc[b] + t

        # "image features": spatial mean commutes with the 1x1 conv; BN + ReLU.
        pooled = jnp.mean(pool_cols.reshape(B, HW, D), axis=1)      # (B, D)
        pooled = jnp.maximum(pooled * scp_ref[...] + shp_ref[...], 0.0)

        # 4 conv branches lane-concatenated -> folded BN + ReLU at 128-lane width.
        cat4 = jnp.concatenate([conv1] + acc, axis=-1).reshape(M, (nb + 1) * D)
        cat4 = jnp.maximum(cat4 * sc4_ref[...] + sh4_ref[...], 0.0)

        # Bottleneck 3x3 (pad=1), K split: conv branches on the MXU (K = 4*D),
        # the spatially-constant pooled branch as a tiny (B,D)x(D,9D) dot whose
        # per-tap column is broadcast-added BEFORE the tap shift (the shift
        # zeroes it outside the valid region, reproducing the zero padding).
        yb = jnp.dot(cat4.astype(jnp.bfloat16), wbc_ref[...],
                     preferred_element_type=jnp.float32).reshape(B, H, W, 9 * D)
        yp = jnp.dot(pooled.astype(jnp.bfloat16), wbp_ref[...],
                     preferred_element_type=jnp.float32)            # (B, 9D)
        out = None
        for ky in range(3):
            for kx in range(3):
                t = 3 * ky + kx
                tap = (yb[..., t * D:(t + 1) * D]
                       + yp[:, t * D:(t + 1) * D][:, None, None, :])
                tap = _shift_hw(tap, ky - 1, kx - 1)
                out = tap if out is None else out + tap

        # bias fused into the single full-width store
        out_ref[...] = (out + bbot_ref[...]).reshape(B, HW, D)

    return kernel


# ----------------------------------------------------------------------------
# One-time host-side weight packing into the kernel's lane-concatenated layouts.
# ----------------------------------------------------------------------------
def pack_params(params, dilation_series):
    nb = len(dilation_series)
    Cin, D = params["w0"].shape
    jobs, _ = _column_jobs(dilation_series, D)

    cols = []
    for kind, b, ky, kx in jobs:
        if kind == "conv0":
            cols.append(params["w0"])
        elif kind == "pool":
            cols.append(params["w_pool"])
        elif kind == "tap":
            cols.append(params["w_dil"][b, ky, kx])
        else:                                   # zero padding block (alignment)
            cols.append(jnp.zeros((Cin, D), jnp.float32))
    w_all = jnp.concatenate(cols, axis=1).astype(jnp.bfloat16)      # (Cin, 1024)

    # folded BN scale/shift: rows of params are [pool, b0, b1, b2, b3]
    sc4 = params["scales"][1:].reshape(1, (nb + 1) * D)
    sh4 = params["shifts"][1:].reshape(1, (nb + 1) * D)
    scp = params["scales"][0:1]
    shp = params["shifts"][0:1]

    # bottleneck weights: torch cat order along input channels is
    # [image_features (pool), out_0, out_1, out_2, out_3]; split pool vs conv.
    w_bot = params["w_bot"]                                         # (3,3,5D,D)
    w_bot_pool = jnp.transpose(w_bot[:, :, :D, :], (2, 0, 1, 3)).reshape(D, 9 * D)
    w_bot_conv = jnp.transpose(w_bot[:, :, D:, :], (2, 0, 1, 3)).reshape(
        (nb + 1) * D, 9 * D)

    return {"w_all": w_all, "sc4": sc4, "sh4": sh4, "scp": scp, "shp": shp,
            "w_bot_conv": w_bot_conv.astype(jnp.bfloat16),
            "w_bot_pool": w_bot_pool.astype(jnp.bfloat16),
            "b_bot": params["b_bot"]}


# ----------------------------------------------------------------------------
# Batch block picker: target M >= 256 per step, but keep >= 2 grid steps
# (both v7x TensorCores) when that does not drop M below 128.
# ----------------------------------------------------------------------------
def _pick_batch_block(N, HW, target_m=256, min_m=128):
    divisors = [b for b in range(1, N + 1) if N % b == 0]
    fits = [b for b in divisors if b * HW <= max(target_m, HW)]
    B = max(fits) if fits else 1
    if N // B < 2:
        alt = [b for b in divisors if N // b >= 2 and b * HW >= min_m]
        if alt:
            B = max(alt)
    return B


# ----------------------------------------------------------------------------
# Wrapper: NCHW in, NCHW out.
# ----------------------------------------------------------------------------
def aspp_forward(x_nchw, packed, dilation_series, padding_series, batch_block=None):
    for d, p in zip(dilation_series, padding_series):
        assert p == d, "padding must equal dilation for the 3x3 dilated convs"

    N, Cin, H, W = x_nchw.shape
    D = packed["b_bot"].shape[-1]
    HW = H * W
    nb = len(dilation_series)
    assert packed["w_all"].shape[0] == Cin
    assert max(dilation_series) < min(H, W)

    B = batch_block or _pick_batch_block(N, HW)
    assert N % B == 0

    # TODO(synk): accept NHWC at the API boundary to drop this transpose.
    x_r = jnp.transpose(x_nchw, (0, 2, 3, 1)).reshape(N, HW, Cin).astype(jnp.bfloat16)

    kernel = _make_aspp_kernel(B, H, W, Cin, D, tuple(dilation_series))

    weight_args = (packed["w_all"], packed["sc4"], packed["sh4"], packed["scp"],
                   packed["shp"], packed["w_bot_conv"], packed["w_bot_pool"],
                   packed["b_bot"])
    inv2 = lambda n: (0, 0)                     # grid-invariant weights
    w_specs = [pl.BlockSpec(a.shape, inv2) for a in weight_args]

    out = pl.pallas_call(
        kernel,
        out_shape=jax.ShapeDtypeStruct((N, HW, D), jnp.float32),
        grid=(N // B,),
        in_specs=[pl.BlockSpec((B, HW, Cin), lambda n: (n, 0, 0))] + w_specs,
        out_specs=pl.BlockSpec((B, HW, D), lambda n: (n, 0, 0)),
        compiler_params=pltpu.CompilerParams(
            dimension_semantics=("parallel",),
            vmem_limit_bytes=32 * 1024 * 1024),
    )(x_r, *weight_args)

    # (N, HW, D) -> NCHW; the output is tiny (N*H*W*D*4 bytes).
    return jnp.transpose(out, (0, 2, 1)).reshape(N, D, H, W)


# ----------------------------------------------------------------------------
# Pure-JAX reference (same parameters, f32) for a correctness check.
# ----------------------------------------------------------------------------
def aspp_reference(x_nchw, params, dilation_series, padding_series):
    x = jnp.transpose(x_nchw, (0, 2, 3, 1)).astype(jnp.float32)
    N, H, W, Cin = x.shape
    D = params["w0"].shape[-1]
    dn = ("NHWC", "HWIO", "NHWC")

    sc, sh = params["scales"], params["shifts"]

    mean = jnp.mean(x, axis=(1, 2), keepdims=True)                  # (N,1,1,Cin)
    f = jnp.einsum("nijc,cd->nijd", mean, params["w_pool"])
    f = jnp.maximum(f * sc[0] + sh[0], 0.0)
    f = jnp.broadcast_to(f, (N, H, W, D))

    o0 = jnp.einsum("nhwc,cd->nhwd", x, params["w0"])
    o0 = jnp.maximum(o0 * sc[1] + sh[1], 0.0)

    outs = [f, o0]
    for b in range(3):
        d, p = dilation_series[b], padding_series[b]
        o = lax.conv_general_dilated(
            x, params["w_dil"][b], window_strides=(1, 1),
            padding=[(p, p), (p, p)], rhs_dilation=(d, d),
            dimension_numbers=dn)
        outs.append(jnp.maximum(o * sc[2 + b] + sh[2 + b], 0.0))

    cat = jnp.concatenate(outs, axis=-1)
    bot = lax.conv_general_dilated(
        cat, params["w_bot"], window_strides=(1, 1),
        padding=[(1, 1), (1, 1)], dimension_numbers=dn) + params["b_bot"][0]
    return jnp.transpose(bot, (0, 3, 1, 2))


# ----------------------------------------------------------------------------
# Deterministic parameter construction (module __init__: conv weights ~N(0, .01),
# BN gamma=1 / beta=0; conv biases drawn small & deterministic here).
# ----------------------------------------------------------------------------
def make_params(key, Cin, D):
    ks = jax.random.split(key, 10)
    eps = 1e-5
    s = 1.0 / np.sqrt(1.0 + eps)  # BN scale with default running stats

    w_pool = 0.01 * jax.random.normal(ks[0], (Cin, D), jnp.float32)
    w0 = 0.01 * jax.random.normal(ks[1], (Cin, D), jnp.float32)
    w_dil = 0.01 * jax.random.normal(ks[2], (3, 3, 3, Cin, D), jnp.float32)  # (branch,kh,kw,Cin,D)
    w_bot = 0.01 * jax.random.normal(ks[3], (3, 3, 5 * D, D), jnp.float32)

    b_pool = 0.01 * jax.random.normal(ks[4], (D,), jnp.float32)
    b0 = 0.01 * jax.random.normal(ks[5], (D,), jnp.float32)
    b1 = 0.01 * jax.random.normal(ks[6], (D,), jnp.float32)
    b2 = 0.01 * jax.random.normal(ks[7], (D,), jnp.float32)
    b3 = 0.01 * jax.random.normal(ks[8], (D,), jnp.float32)
    b_bot = 0.01 * jax.random.normal(ks[9], (D,), jnp.float32)

    # fold eval-mode BN + conv bias into per-branch scale/shift:
    #   y = (conv + b - mean)/sqrt(var+eps)*gamma + beta = conv*s + b*s
    scales = jnp.full((5, D), s, jnp.float32)
    shifts = jnp.stack([b_pool, b0, b1, b2, b3], axis=0) * s

    return {
        "w_pool": w_pool, "w0": w0, "w_dil": w_dil,
        "scales": scales, "shifts": shifts,
        "w_bot": w_bot, "b_bot": b_bot.reshape(1, D),
    }


if __name__ == "__main__":
    N, Cin, H, W = 2, 1024, 8, 8        # Cin=1024 is hard-coded in the module
    D = 32                              # "depth"
    dilation_series = [2, 4, 6]
    padding_series = [2, 4, 6]

    key = jax.random.PRNGKey(0)
    kx_, kp_ = jax.random.split(key)
    x = jax.random.normal(kx_, (N, Cin, H, W), jnp.float32)
    params = make_params(kp_, Cin, D)
    packed = pack_params(params, dilation_series)

    fwd = jax.jit(functools.partial(aspp_forward,
                                    dilation_series=tuple(dilation_series),
                                    padding_series=tuple(padding_series)))
    out = fwd(x, packed)
    jax.block_until_ready(out)
    assert out.shape == (N, D, H, W), out.shape

    # Precision contract: kernel runs bf16 matmuls with f32 accumulation
    # (reference is pure f32), hence the 2e-2 tolerances.
    ref = aspp_reference(x, params, dilation_series, padding_series)
    np.testing.assert_allclose(np.asarray(out), np.asarray(ref),
                               rtol=2e-2, atol=2e-2)

    print("KERNEL_OK")
</pallas_src>

<mosaic_0001>
module attributes {stable_mosaic.version = 11 : i64} {
  func.func @kernel(%arg0: i32, %arg1: memref<2x64x1024xbf16, #tpu.memory_space<vmem>>, %arg2: memref<1024x1024xbf16, #tpu.memory_space<vmem>>, %arg3: memref<1x128xf32, #tpu.memory_space<vmem>>, %arg4: memref<1x128xf32, #tpu.memory_space<vmem>>, %arg5: memref<1x32xf32, #tpu.memory_space<vmem>>, %arg6: memref<1x32xf32, #tpu.memory_space<vmem>>, %arg7: memref<128x288xbf16, #tpu.memory_space<vmem>>, %arg8: memref<32x288xbf16, #tpu.memory_space<vmem>>, %arg9: memref<1x32xf32, #tpu.memory_space<vmem>>, %arg10: memref<2x64x32xf32, #tpu.memory_space<vmem>>) attributes {dimension_semantics = [#tpu.dimension_semantics<parallel>], iteration_bounds = array<i64: 1>, scalar_prefetch = 0 : i64, scratch_operands = 0 : i64, tpu.core_type = #tpu.core_type<tc>, window_params = [{transform_indices = @transform_0, window_bounds = array<i64: 2, 64, 1024>}, {pipeline_mode = #tpu.pipeline_mode<synchronous>, transform_indices = @transform_1, window_bounds = array<i64: 1024, 1024>}, {pipeline_mode = #tpu.pipeline_mode<synchronous>, transform_indices = @transform_2, window_bounds = array<i64: 1, 128>}, {pipeline_mode = #tpu.pipeline_mode<synchronous>, transform_indices = @transform_3, window_bounds = array<i64: 1, 128>}, {pipeline_mode = #tpu.pipeline_mode<synchronous>, transform_indices = @transform_4, window_bounds = array<i64: 1, 32>}, {pipeline_mode = #tpu.pipeline_mode<synchronous>, transform_indices = @transform_5, window_bounds = array<i64: 1, 32>}, {pipeline_mode = #tpu.pipeline_mode<synchronous>, transform_indices = @transform_6, window_bounds = array<i64: 128, 288>}, {pipeline_mode = #tpu.pipeline_mode<synchronous>, transform_indices = @transform_7, window_bounds = array<i64: 32, 288>}, {pipeline_mode = #tpu.pipeline_mode<synchronous>, transform_indices = @transform_8, window_bounds = array<i64: 1, 32>}, {transform_indices = @transform_9, window_bounds = array<i64: 2, 64, 32>}]} {
    %c0 = arith.constant 0 : index
    %c0_0 = arith.constant 0 : index
    %c0_1 = arith.constant 0 : index
    %0 = vector.load %arg1[%c0, %c0_0, %c0_1] : memref<2x64x1024xbf16, #tpu.memory_space<vmem>>, vector<2x64x1024xbf16>
    %1 = vector.shape_cast %0 : vector<2x64x1024xbf16> to vector<128x1024xbf16>
    %c0_2 = arith.constant 0 : index
    %c0_3 = arith.constant 0 : index
    %2 = vector.load %arg2[%c0_2, %c0_3] : memref<1024x1024xbf16, #tpu.memory_space<vmem>>, vector<1024x256xbf16>
    %cst = arith.constant dense<0.000000e+00> : vector<128x256xf32>
    %3 = tpu.matmul %1, %2, %cst {dimension_numbers = #tpu.dot_dimension_numbers<[1], [0], [0], [1], [0, 0, 1, 1], [], []>} : vector<128x1024xbf16>, vector<1024x256xbf16>, vector<128x256xf32> -> vector<128x256xf32>
    %4 = vector.extract_strided_slice %3 {offsets = [0, 0], sizes = [128, 32], strides = [1, 1]} : vector<128x256xf32> to vector<128x32xf32>
    %5 = vector.shape_cast %4 : vector<128x32xf32> to vector<2x8x8x32xf32>
    %6 = vector.extract_strided_slice %3 {offsets = [0, 32], sizes = [128, 32], strides = [1, 1]} : vector<128x256xf32> to vector<128x32xf32>
    %7 = vector.extract_strided_slice %3 {offsets = [0, 64], sizes = [128, 32], strides = [1, 1]} : vector<128x256xf32> to vector<128x32xf32>
    %8 = vector.shape_cast %7 : vector<128x32xf32> to vector<2x8x8x32xf32>
    %9 = vector.extract_strided_slice %8 {offsets = [0, 0, 0, 0], sizes = [2, 6, 6, 32], strides = [1, 1, 1, 1]} : vector<2x8x8x32xf32> to vector<2x6x6x32xf32>
    %cst_4 = arith.constant 0.000000e+00 : f32
    %10 = vector.broadcast %cst_4 : f32 to vector<2x6x2x32xf32>
    %11 = tpu.concatenate %10, %9 in 2 : vector<2x6x2x32xf32>, vector<2x6x6x32xf32> -> vector<2x6x8x32xf32>
    %cst_5 = arith.constant 0.000000e+00 : f32
    %12 = vector.broadcast %cst_5 : f32 to vector<2x2x8x32xf32>
    %13 = tpu.concatenate %12, %11 in 1 : vector<2x2x8x32xf32>, vector<2x6x8x32xf32> -> vector<2x8x8x32xf32>
    %14 = vector.extract_strided_slice %3 {offsets = [0, 96], sizes = [128, 32], strides = [1, 1]} : vector<128x256xf32> to vector<128x32xf32>
    %15 = vector.shape_cast %14 : vector<128x32xf32> to vector<2x8x8x32xf32>
    %16 = vector.extract_strided_slice %15 {offsets = [0, 0, 0, 0], sizes = [2, 6, 8, 32], strides = [1, 1, 1, 1]} : vector<2x8x8x32xf32> to vector<2x6x8x32xf32>
    %cst_6 = arith.constant 0.000000e+00 : f32
    %17 = vector.broadcast %cst_6 : f32 to vector<2x2x8x32xf32>
    %18 = tpu.concatenate %17, %16 in 1 : vector<2x2x8x32xf32>, vector<2x6x8x32xf32> -> vector<2x8x8x32xf32>
    %19 = arith.addf %13, %18 : vector<2x8x8x32xf32>
    %20 = vector.extract_strided_slice %3 {offsets = [0, 128], sizes = [128, 32], strides = [1, 1]} : vector<128x256xf32> to vector<128x32xf32>
    %21 = vector.shape_cast %20 : vector<128x32xf32> to vector<2x8x8x32xf32>
    %22 = vector.extract_strided_slice %21 {offsets = [0, 0, 2, 0], sizes = [2, 6, 6, 32], strides = [1, 1, 1, 1]} : vector<2x8x8x32xf32> to vector<2x6x6x32xf32>
    %cst_7 = arith.constant 0.000000e+00 : f32
    %23 = vector.broadcast %cst_7 : f32 to vector<2x6x2x32xf32>
    %24 = tpu.concatenate %22, %23 in 2 : vector<2x6x6x32xf32>, vector<2x6x2x32xf32> -> vector<2x6x8x32xf32>
    %cst_8 = arith.constant 0.000000e+00 : f32
    %25 = vector.broadcast %cst_8 : f32 to vector<2x2x8x32xf32>
    %26 = tpu.concatenate %25, %24 in 1 : vector<2x2x8x32xf32>, vector<2x6x8x32xf32> -> vector<2x8x8x32xf32>
    %27 = arith.addf %19, %26 : vector<2x8x8x32xf32>
    %28 = vector.extract_strided_slice %3 {offsets = [0, 160], sizes = [128, 32], strides = [1, 1]} : vector<128x256xf32> to vector<128x32xf32>
    %29 = vector.shape_cast %28 : vector<128x32xf32> to vector<2x8x8x32xf32>
    %30 = vector.extract_strided_slice %29 {offsets = [0, 0, 0, 0], sizes = [2, 8, 6, 32], strides = [1, 1, 1, 1]} : vector<2x8x8x32xf32> to vector<2x8x6x32xf32>
    %cst_9 = arith.constant 0.000000e+00 : f32
    %31 = vector.broadcast %cst_9 : f32 to vector<2x8x2x32xf32>
    %32 = tpu.concatenate %31, %30 in 2 : vector<2x8x2x32xf32>, vector<2x8x6x32xf32> -> vector<2x8x8x32xf32>
    %33 = arith.addf %27, %32 : vector<2x8x8x32xf32>
    %34 = vector.extract_strided_slice %3 {offsets = [0, 192], sizes = [128, 32], strides = [1, 1]} : vector<128x256xf32> to vector<128x32xf32>
    %35 = vector.shape_cast %34 : vector<128x32xf32> to vector<2x8x8x32xf32>
    %36 = arith.addf %33, %35 : vector<2x8x8x32xf32>
    %37 = vector.extract_strided_slice %3 {offsets = [0, 224], sizes = [128, 32], strides = [1, 1]} : vector<128x256xf32> to vector<128x32xf32>
    %38 = vector.shape_cast %37 : vector<128x32xf32> to vector<2x8x8x32xf32>
    %39 = vector.extract_strided_slice %38 {offsets = [0, 0, 2, 0], sizes = [2, 8, 6, 32], strides = [1, 1, 1, 1]} : vector<2x8x8x32xf32> to vector<2x8x6x32xf32>
    %cst_10 = arith.constant 0.000000e+00 : f32
    %40 = vector.broadcast %cst_10 : f32 to vector<2x8x2x32xf32>
    %41 = tpu.concatenate %39, %40 in 2 : vector<2x8x6x32xf32>, vector<2x8x2x32xf32> -> vector<2x8x8x32xf32>
    %42 = arith.addf %36, %41 : vector<2x8x8x32xf32>
    %c0_11 = arith.constant 0 : index
    %c256 = arith.constant 256 : index
    %43 = vector.load %arg2[%c0_11, %c256] : memref<1024x1024xbf16, #tpu.memory_space<vmem>>, vector<1024x256xbf16>
    %cst_12 = arith.constant dense<0.000000e+00> : vector<128x256xf32>
    %44 = tpu.matmul %1, %43, %cst_12 {dimension_numbers = #tpu.dot_dimension_numbers<[1], [0], [0], [1], [0, 0, 1, 1], [], []>} : vector<128x1024xbf16>, vector<1024x256xbf16>, vector<128x256xf32> -> vector<128x256xf32>
    %45 = vector.extract_strided_slice %44 {offsets = [0, 0], sizes = [128, 32], strides = [1, 1]} : vector<128x256xf32> to vector<128x32xf32>
    %46 = vector.shape_cast %45 : vector<128x32xf32> to vector<2x8x8x32xf32>
    %47 = vector.extract_strided_slice %46 {offsets = [0, 2, 0, 0], sizes = [2, 6, 6, 32], strides = [1, 1, 1, 1]} : vector<2x8x8x32xf32> to vector<2x6x6x32xf32>
    %cst_13 = arith.constant 0.000000e+00 : f32
    %48 = vector.broadcast %cst_13 : f32 to vector<2x6x2x32xf32>
    %49 = tpu.concatenate %48, %47 in 2 : vector<2x6x2x32xf32>, vector<2x6x6x32xf32> -> vector<2x6x8x32xf32>
    %cst_14 = arith.constant 0.000000e+00 : f32
    %50 = vector.broadcast %cst_14 : f32 to vector<2x2x8x32xf32>
    %51 = tpu.concatenate %49, %50 in 1 : vector<2x6x8x32xf32>, vector<2x2x8x32xf32> -> vector<2x8x8x32xf32>
    %52 = arith.addf %42, %51 : vector<2x8x8x32xf32>
    %53 = vector.extract_strided_slice %44 {offsets = [0, 32], sizes = [128, 32], strides = [1, 1]} : vector<128x256xf32> to vector<128x32xf32>
    %54 = vector.shape_cast %53 : vector<128x32xf32> to vector<2x8x8x32xf32>
    %55 = vector.extract_strided_slice %54 {offsets = [0, 2, 0, 0], sizes = [2, 6, 8, 32], strides = [1, 1, 1, 1]} : vector<2x8x8x32xf32> to vector<2x6x8x32xf32>
    %cst_15 = arith.constant 0.000000e+00 : f32
    %56 = vector.broadcast %cst_15 : f32 to vector<2x2x8x32xf32>
    %57 = tpu.concatenate %55, %56 in 1 : vector<2x6x8x32xf32>, vector<2x2x8x32xf32> -> vector<2x8x8x32xf32>
    %58 = arith.addf %52, %57 : vector<2x8x8x32xf32>
    %59 = vector.extract_strided_slice %44 {offsets = [0, 64], sizes = [128, 32], strides = [1, 1]} : vector<128x256xf32> to vector<128x32xf32>
    %60 = vector.shape_cast %59 : vector<128x32xf32> to vector<2x8x8x32xf32>
    %61 = vector.extract_strided_slice %60 {offsets = [0, 2, 2, 0], sizes = [2, 6, 6, 32], strides = [1, 1, 1, 1]} : vector<2x8x8x32xf32> to vector<2x6x6x32xf32>
    %cst_16 = arith.constant 0.000000e+00 : f32
    %62 = vector.broadcast %cst_16 : f32 to vector<2x6x2x32xf32>
    %63 = tpu.concatenate %61, %62 in 2 : vector<2x6x6x32xf32>, vector<2x6x2x32xf32> -> vector<2x6x8x32xf32>
    %cst_17 = arith.constant 0.000000e+00 : f32
    %64 = vector.broadcast %cst_17 : f32 to vector<2x2x8x32xf32>
    %65 = tpu.concatenate %63, %64 in 1 : vector<2x6x8x32xf32>, vector<2x2x8x32xf32> -> vector<2x8x8x32xf32>
    %66 = arith.addf %58, %65 : vector<2x8x8x32xf32>
    %67 = vector.extract_strided_slice %44 {offsets = [0, 96], sizes = [128, 32], strides = [1, 1]} : vector<128x256xf32> to vector<128x32xf32>
    %68 = vector.shape_cast %67 : vector<128x32xf32> to vector<2x8x8x32xf32>
    %69 = vector.extract_strided_slice %68 {offsets = [0, 0, 0, 0], sizes = [2, 4, 4, 32], strides = [1, 1, 1, 1]} : vector<2x8x8x32xf32> to vector<2x4x4x32xf32>
    %cst_18 = arith.constant 0.000000e+00 : f32
    %70 = vector.broadcast %cst_18 : f32 to vector<2x4x4x32xf32>
    %71 = tpu.concatenate %70, %69 in 2 : vector<2x4x4x32xf32>, vector<2x4x4x32xf32> -> vector<2x4x8x32xf32>
    %cst_19 = arith.constant 0.000000e+00 : f32
    %72 = vector.broadcast %cst_19 : f32 to vector<2x4x8x32xf32>
    %73 = tpu.concatenate %72, %71 in 1 : vector<2x4x8x32xf32>, vector<2x4x8x32xf32> -> vector<2x8x8x32xf32>
    %74 = vector.extract_strided_slice %44 {offsets = [0, 128], sizes = [128, 32], strides = [1, 1]} : vector<128x256xf32> to vector<128x32xf32>
    %75 = vector.shape_cast %74 : vector<128x32xf32> to vector<2x8x8x32xf32>
    %76 = vector.extract_strided_slice %75 {offsets = [0, 0, 0, 0], sizes = [2, 4, 8, 32], strides = [1, 1, 1, 1]} : vector<2x8x8x32xf32> to vector<2x4x8x32xf32>
    %cst_20 = arith.constant 0.000000e+00 : f32
    %77 = vector.broadcast %cst_20 : f32 to vector<2x4x8x32xf32>
    %78 = tpu.concatenate %77, %76 in 1 : vector<2x4x8x32xf32>, vector<2x4x8x32xf32> -> vector<2x8x8x32xf32>
    %79 = arith.addf %73, %78 : vector<2x8x8x32xf32>
    %80 = vector.extract_strided_slice %44 {offsets = [0, 160], sizes = [128, 32], strides = [1, 1]} : vector<128x256xf32> to vector<128x32xf32>
    %81 = vector.shape_cast %80 : vector<128x32xf32> to vector<2x8x8x32xf32>
    %82 = vector.extract_strided_slice %81 {offsets = [0, 0, 4, 0], sizes = [2, 4, 4, 32], strides = [1, 1, 1, 1]} : vector<2x8x8x32xf32> to vector<2x4x4x32xf32>
    %cst_21 = arith.constant 0.000000e+00 : f32
    %83 = vector.broadcast %cst_21 : f32 to vector<2x4x4x32xf32>
    %84 = tpu.concatenate %82, %83 in 2 : vector<2x4x4x32xf32>, vector<2x4x4x32xf32> -> vector<2x4x8x32xf32>
    %cst_22 = arith.constant 0.000000e+00 : f32
    %85 = vector.broadcast %cst_22 : f32 to vector<2x4x8x32xf32>
    %86 = tpu.concatenate %85, %84 in 1 : vector<2x4x8x32xf32>, vector<2x4x8x32xf32> -> vector<2x8x8x32xf32>
    %87 = arith.addf %79, %86 : vector<2x8x8x32xf32>
    %88 = vector.extract_strided_slice %44 {offsets = [0, 192], sizes = [128, 32], strides = [1, 1]} : vector<128x256xf32> to vector<128x32xf32>
    %89 = vector.shape_cast %88 : vector<128x32xf32> to vector<2x8x8x32xf32>
    %90 = vector.extract_strided_slice %89 {offsets = [0, 0, 0, 0], sizes = [2, 8, 4, 32], strides = [1, 1, 1, 1]} : vector<2x8x8x32xf32> to vector<2x8x4x32xf32>
    %cst_23 = arith.constant 0.000000e+00 : f32
    %91 = vector.broadcast %cst_23 : f32 to vector<2x8x4x32xf32>
    %92 = tpu.concatenate %91, %90 in 2 : vector<2x8x4x32xf32>, vector<2x8x4x32xf32> -> vector<2x8x8x32xf32>
    %93 = arith.addf %87, %92 : vector<2x8x8x32xf32>
    %94 = vector.extract_strided_slice %44 {offsets = [0, 224], sizes = [128, 32], strides = [1, 1]} : vector<128x256xf32> to vector<128x32xf32>
    %95 = vector.shape_cast %94 : vector<128x32xf32> to vector<2x8x8x32xf32>
    %96 = arith.addf %93, %95 : vector<2x8x8x32xf32>
    %c0_24 = arith.constant 0 : index
    %c512 = arith.constant 512 : index
    %97 = vector.load %arg2[%c0_24, %c512] : memref<1024x1024xbf16, #tpu.memory_space<vmem>>, vector<1024x256xbf16>
    %cst_25 = arith.constant dense<0.000000e+00> : vector<128x256xf32>
    %98 = tpu.matmul %1, %97, %cst_25 {dimension_numbers = #tpu.dot_dimension_numbers<[1], [0], [0], [1], [0, 0, 1, 1], [], []>} : vector<128x1024xbf16>, vector<1024x256xbf16>, vector<128x256xf32> -> vector<128x256xf32>
    %99 = vector.extract_strided_slice %98 {offsets = [0, 0], sizes = [128, 32], strides = [1, 1]} : vector<128x256xf32> to vector<128x32xf32>
    %100 = vector.shape_cast %99 : vector<128x32xf32> to vector<2x8x8x32xf32>
    %101 = vector.extract_strided_slice %100 {offsets = [0, 0, 4, 0], sizes = [2, 8, 4, 32], strides = [1, 1, 1, 1]} : vector<2x8x8x32xf32> to vector<2x8x4x32xf32>
    %cst_26 = arith.constant 0.000000e+00 : f32
    %102 = vector.broadcast %cst_26 : f32 to vector<2x8x4x32xf32>
    %103 = tpu.concatenate %101, %102 in 2 : vector<2x8x4x32xf32>, vector<2x8x4x32xf32> -> vector<2x8x8x32xf32>
    %104 = arith.addf %96, %103 : vector<2x8x8x32xf32>
    %105 = vector.extract_strided_slice %98 {offsets = [0, 32], sizes = [128, 32], strides = [1, 1]} : vector<128x256xf32> to vector<128x32xf32>
    %106 = vector.shape_cast %105 : vector<128x32xf32> to vector<2x8x8x32xf32>
    %107 = vector.extract_strided_slice %106 {offsets = [0, 4, 0, 0], sizes = [2, 4, 4, 32], strides = [1, 1, 1, 1]} : vector<2x8x8x32xf32> to vector<2x4x4x32xf32>
    %cst_27 = arith.constant 0.000000e+00 : f32
    %108 = vector.broadcast %cst_27 : f32 to vector<2x4x4x32xf32>
    %109 = tpu.concatenate %108, %107 in 2 : vector<2x4x4x32xf32>, vector<2x4x4x32xf32> -> vector<2x4x8x32xf32>
    %cst_28 = arith.constant 0.000000e+00 : f32
    %110 = vector.broadcast %cst_28 : f32 to vector<2x4x8x32xf32>
    %111 = tpu.concatenate %109, %110 in 1 : vector<2x4x8x32xf32>, vector<2x4x8x32xf32> -> vector<2x8x8x32xf32>
    %112 = arith.addf %104, %111 : vector<2x8x8x32xf32>
    %113 = vector.extract_strided_slice %98 {offsets = [0, 64], sizes = [128, 32], strides = [1, 1]} : vector<128x256xf32> to vector<128x32xf32>
    %114 = vector.shape_cast %113 : vector<128x32xf32> to vector<2x8x8x32xf32>
    %115 = vector.extract_strided_slice %114 {offsets = [0, 4, 0, 0], sizes = [2, 4, 8, 32], strides = [1, 1, 1, 1]} : vector<2x8x8x32xf32> to vector<2x4x8x32xf32>
    %cst_29 = arith.constant 0.000000e+00 : f32
    %116 = vector.broadcast %cst_29 : f32 to vector<2x4x8x32xf32>
    %117 = tpu.concatenate %115, %116 in 1 : vector<2x4x8x32xf32>, vector<2x4x8x32xf32> -> vector<2x8x8x32xf32>
    %118 = arith.addf %112, %117 : vector<2x8x8x32xf32>
    %119 = vector.extract_strided_slice %98 {offsets = [0, 96], sizes = [128, 32], strides = [1, 1]} : vector<128x256xf32> to vector<128x32xf32>
    %120 = vector.shape_cast %119 : vector<128x32xf32> to vector<2x8x8x32xf32>
    %121 = vector.extract_strided_slice %120 {offsets = [0, 4, 4, 0], sizes = [2, 4, 4, 32], strides = [1, 1, 1, 1]} : vector<2x8x8x32xf32> to vector<2x4x4x32xf32>
    %cst_30 = arith.constant 0.000000e+00 : f32
    %122 = vector.broadcast %cst_30 : f32 to vector<2x4x4x32xf32>
    %123 = tpu.concatenate %121, %122 in 2 : vector<2x4x4x32xf32>, vector<2x4x4x32xf32> -> vector<2x4x8x32xf32>
    %cst_31 = arith.constant 0.000000e+00 : f32
    %124 = vector.broadcast %cst_31 : f32 to vector<2x4x8x32xf32>
    %125 = tpu.concatenate %123, %124 in 1 : vector<2x4x8x32xf32>, vector<2x4x8x32xf32> -> vector<2x8x8x32xf32>
    %126 = arith.addf %118, %125 : vector<2x8x8x32xf32>
    %127 = vector.extract_strided_slice %98 {offsets = [0, 128], sizes = [128, 32], strides = [1, 1]} : vector<128x256xf32> to vector<128x32xf32>
    %128 = vector.shape_cast %127 : vector<128x32xf32> to vector<2x8x8x32xf32>
    %129 = vector.extract_strided_slice %128 {offsets = [0, 0, 0, 0], sizes = [2, 2, 2, 32], strides = [1, 1, 1, 1]} : vector<2x8x8x32xf32> to vector<2x2x2x32xf32>
    %cst_32 = arith.constant 0.000000e+00 : f32
    %130 = vector.broadcast %cst_32 : f32 to vector<2x2x6x32xf32>
    %131 = tpu.concatenate %130, %129 in 2 : vector<2x2x6x32xf32>, vector<2x2x2x32xf32> -> vector<2x2x8x32xf32>
    %cst_33 = arith.constant 0.000000e+00 : f32
    %132 = vector.broadcast %cst_33 : f32 to vector<2x6x8x32xf32>
    %133 = tpu.concatenate %132, %131 in 1 : vector<2x6x8x32xf32>, vector<2x2x8x32xf32> -> vector<2x8x8x32xf32>
    %134 = vector.extract_strided_slice %98 {offsets = [0, 160], sizes = [128, 32], strides = [1, 1]} : vector<128x256xf32> to vector<128x32xf32>
    %135 = vector.shape_cast %134 : vector<128x32xf32> to vector<2x8x8x32xf32>
    %136 = vector.extract_strided_slice %135 {offsets = [0, 0, 0, 0], sizes = [2, 2, 8, 32], strides = [1, 1, 1, 1]} : vector<2x8x8x32xf32> to vector<2x2x8x32xf32>
    %cst_34 = arith.constant 0.000000e+00 : f32
    %137 = vector.broadcast %cst_34 : f32 to vector<2x6x8x32xf32>
    %138 = tpu.concatenate %137, %136 in 1 : vector<2x6x8x32xf32>, vector<2x2x8x32xf32> -> vector<2x8x8x32xf32>
    %139 = arith.addf %133, %138 : vector<2x8x8x32xf32>
    %140 = vector.extract_strided_slice %98 {offsets = [0, 192], sizes = [128, 32], strides = [1, 1]} : vector<128x256xf32> to vector<128x32xf32>
    %141 = vector.shape_cast %140 : vector<128x32xf32> to vector<2x8x8x32xf32>
    %142 = vector.extract_strided_slice %141 {offsets = [0, 0, 6, 0], sizes = [2, 2, 2, 32], strides = [1, 1, 1, 1]} : vector<2x8x8x32xf32> to vector<2x2x2x32xf32>
    %cst_35 = arith.constant 0.000000e+00 : f32
    %143 = vector.broadcast %cst_35 : f32 to vector<2x2x6x32xf32>
    %144 = tpu.concatenate %142, %143 in 2 : vector<2x2x2x32xf32>, vector<2x2x6x32xf32> -> vector<2x2x8x32xf32>
    %cst_36 = arith.constant 0.000000e+00 : f32
    %145 = vector.broadcast %cst_36 : f32 to vector<2x6x8x32xf32>
    %146 = tpu.concatenate %145, %144 in 1 : vector<2x6x8x32xf32>, vector<2x2x8x32xf32> -> vector<2x8x8x32xf32>
    %147 = arith.addf %139, %146 : vector<2x8x8x32xf32>
    %148 = vector.extract_strided_slice %98 {offsets = [0, 224], sizes = [128, 32], strides = [1, 1]} : vector<128x256xf32> to vector<128x32xf32>
    %149 = vector.shape_cast %148 : vector<128x32xf32> to vector<2x8x8x32xf32>
    %150 = vector.extract_strided_slice %149 {offsets = [0, 0, 0, 0], sizes = [2, 8, 2, 32], strides = [1, 1, 1, 1]} : vector<2x8x8x32xf32> to vector<2x8x2x32xf32>
    %cst_37 = arith.constant 0.000000e+00 : f32
    %151 = vector.broadcast %cst_37 : f32 to vector<2x8x6x32xf32>
    %152 = tpu.concatenate %151, %150 in 2 : vector<2x8x6x32xf32>, vector<2x8x2x32xf32> -> vector<2x8x8x32xf32>
    %153 = arith.addf %147, %152 : vector<2x8x8x32xf32>
    %c0_38 = arith.constant 0 : index
    %c768 = arith.constant 768 : index
    %154 = vector.load %arg2[%c0_38, %c768] : memref<1024x1024xbf16, #tpu.memory_space<vmem>>, vector<1024x256xbf16>
    %cst_39 = arith.constant dense<0.000000e+00> : vector<128x256xf32>
    %155 = tpu.matmul %1, %154, %cst_39 {dimension_numbers = #tpu.dot_dimension_numbers<[1], [0], [0], [1], [0, 0, 1, 1], [], []>} : vector<128x1024xbf16>, vector<1024x256xbf16>, vector<128x256xf32> -> vector<128x256xf32>
    %156 = vector.extract_strided_slice %155 {offsets = [0, 0], sizes = [128, 32], strides = [1, 1]} : vector<128x256xf32> to vector<128x32xf32>
    %157 = vector.shape_cast %156 : vector<128x32xf32> to vector<2x8x8x32xf32>
    %158 = arith.addf %153, %157 : vector<2x8x8x32xf32>
    %159 = vector.extract_strided_slice %155 {offsets = [0, 32], sizes = [128, 32], strides = [1, 1]} : vector<128x256xf32> to vector<128x32xf32>
    %160 = vector.shape_cast %159 : vector<128x32xf32> to vector<2x8x8x32xf32>
    %161 = vector.extract_strided_slice %160 {offsets = [0, 0, 6, 0], sizes = [2, 8, 2, 32], strides = [1, 1, 1, 1]} : vector<2x8x8x32xf32> to vector<2x8x2x32xf32>
    %cst_40 = arith.constant 0.000000e+00 : f32
    %162 = vector.broadcast %cst_40 : f32 to vector<2x8x6x32xf32>
    %163 = tpu.concatenate %161, %162 in 2 : vector<2x8x2x32xf32>, vector<2x8x6x32xf32> -> vector<2x8x8x32xf32>
    %164 = arith.addf %158, %163 : vector<2x8x8x32xf32>
    %165 = vector.extract_strided_slice %155 {offsets = [0, 64], sizes = [128, 32], strides = [1, 1]} : vector<128x256xf32> to vector<128x32xf32>
    %166 = vector.shape_cast %165 : vector<128x32xf32> to vector<2x8x8x32xf32>
    %167 = vector.extract_strided_slice %166 {offsets = [0, 6, 0, 0], sizes = [2, 2, 2, 32], strides = [1, 1, 1, 1]} : vector<2x8x8x32xf32> to vector<2x2x2x32xf32>
    %cst_41 = arith.constant 0.000000e+00 : f32
    %168 = vector.broadcast %cst_41 : f32 to vector<2x2x6x32xf32>
    %169 = tpu.concatenate %168, %167 in 2 : vector<2x2x6x32xf32>, vector<2x2x2x32xf32> -> vector<2x2x8x32xf32>
    %cst_42 = arith.constant 0.000000e+00 : f32
    %170 = vector.broadcast %cst_42 : f32 to vector<2x6x8x32xf32>
    %171 = tpu.concatenate %169, %170 in 1 : vector<2x2x8x32xf32>, vector<2x6x8x32xf32> -> vector<2x8x8x32xf32>
    %172 = arith.addf %164, %171 : vector<2x8x8x32xf32>
    %173 = vector.extract_strided_slice %155 {offsets = [0, 96], sizes = [128, 32], strides = [1, 1]} : vector<128x256xf32> to vector<128x32xf32>
    %174 = vector.shape_cast %173 : vector<128x32xf32> to vector<2x8x8x32xf32>
    %175 = vector.extract_strided_slice %174 {offsets = [0, 6, 0, 0], sizes = [2, 2, 8, 32], strides = [1, 1, 1, 1]} : vector<2x8x8x32xf32> to vector<2x2x8x32xf32>
    %cst_43 = arith.constant 0.000000e+00 : f32
    %176 = vector.broadcast %cst_43 : f32 to vector<2x6x8x32xf32>
    %177 = tpu.concatenate %175, %176 in 1 : vector<2x2x8x32xf32>, vector<2x6x8x32xf32> -> vector<2x8x8x32xf32>
    %178 = arith.addf %172, %177 : vector<2x8x8x32xf32>
    %179 = vector.extract_strided_slice %155 {offsets = [0, 128], sizes = [128, 32], strides = [1, 1]} : vector<128x256xf32> to vector<128x32xf32>
    %180 = vector.shape_cast %179 : vector<128x32xf32> to vector<2x8x8x32xf32>
    %181 = vector.extract_strided_slice %180 {offsets = [0, 6, 6, 0], sizes = [2, 2, 2, 32], strides = [1, 1, 1, 1]} : vector<2x8x8x32xf32> to vector<2x2x2x32xf32>
    %cst_44 = arith.constant 0.000000e+00 : f32
    %182 = vector.broadcast %cst_44 : f32 to vector<2x2x6x32xf32>
    %183 = tpu.concatenate %181, %182 in 2 : vector<2x2x2x32xf32>, vector<2x2x6x32xf32> -> vector<2x2x8x32xf32>
    %cst_45 = arith.constant 0.000000e+00 : f32
    %184 = vector.broadcast %cst_45 : f32 to vector<2x6x8x32xf32>
    %185 = tpu.concatenate %183, %184 in 1 : vector<2x2x8x32xf32>, vector<2x6x8x32xf32> -> vector<2x8x8x32xf32>
    %186 = arith.addf %178, %185 : vector<2x8x8x32xf32>
    %187 = vector.shape_cast %6 : vector<128x32xf32> to vector<2x64x32xf32>
    %cst_46 = arith.constant dense<0.000000e+00> : vector<2x32xf32>
    %188 = vector.multi_reduction <add>, %187, %cst_46 [1] : vector<2x64x32xf32> to vector<2x32xf32>
    %cst_47 = arith.constant 6.400000e+01 : f32
    %189 = vector.broadcast %cst_47 : f32 to vector<2x32xf32>
    %190 = arith.divf %188, %189 : vector<2x32xf32>
    %c0_48 = arith.constant 0 : index
    %c0_49 = arith.constant 0 : index
    %191 = vector.load %arg5[%c0_48, %c0_49] : memref<1x32xf32, #tpu.memory_space<vmem>>, vector<1x32xf32>
    %192 = vector.broadcast %191 : vector<1x32xf32> to vector<2x32xf32>
    %193 = arith.mulf %190, %192 : vector<2x32xf32>
    %c0_50 = arith.constant 0 : index
    %c0_51 = arith.constant 0 : index
    %194 = vector.load %arg6[%c0_50, %c0_51] : memref<1x32xf32, #tpu.memory_space<vmem>>, vector<1x32xf32>
    %195 = vector.broadcast %194 : vector<1x32xf32> to vector<2x32xf32>
    %196 = arith.addf %193, %195 : vector<2x32xf32>
    %cst_52 = arith.constant 0.000000e+00 : f32
    %197 = vector.broadcast %cst_52 : f32 to vector<2x32xf32>
    %198 = arith.maximumf %196, %197 : vector<2x32xf32>
    %199 = tpu.concatenate %5, %66, %126, %186 in 3 : vector<2x8x8x32xf32>, vector<2x8x8x32xf32>, vector<2x8x8x32xf32>, vector<2x8x8x32xf32> -> vector<2x8x8x128xf32>
    %200 = vector.shape_cast %199 : vector<2x8x8x128xf32> to vector<128x128xf32>
    %c0_53 = arith.constant 0 : index
    %c0_54 = arith.constant 0 : index
    %201 = vector.load %arg3[%c0_53, %c0_54] : memref<1x128xf32, #tpu.memory_space<vmem>>, vector<1x128xf32>
    %202 = vector.broadcast %201 : vector<1x128xf32> to vector<128x128xf32>
    %203 = arith.mulf %200, %202 : vector<128x128xf32>
    %c0_55 = arith.constant 0 : index
    %c0_56 = arith.constant 0 : index
    %204 = vector.load %arg4[%c0_55, %c0_56] : memref<1x128xf32, #tpu.memory_space<vmem>>, vector<1x128xf32>
    %205 = vector.broadcast %204 : vector<1x128xf32> to vector<128x128xf32>
    %206 = arith.addf %203, %205 : vector<128x128xf32>
    %cst_57 = arith.constant 0.000000e+00 : f32
    %207 = vector.broadcast %cst_57 : f32 to vector<128x128xf32>
    %208 = arith.maximumf %206, %207 : vector<128x128xf32>
    %209 = arith.truncf %208 : vector<128x128xf32> to vector<128x128xbf16>
    %c0_58 = arith.constant 0 : index
    %c0_59 = arith.constant 0 : index
    %210 = vector.load %arg7[%c0_58, %c0_59] : memref<128x288xbf16, #tpu.memory_space<vmem>>, vector<128x288xbf16>
    %cst_60 = arith.constant dense<0.000000e+00> : vector<128x288xf32>
    %211 = tpu.matmul %209, %210, %cst_60 {dimension_numbers = #tpu.dot_dimension_numbers<[1], [0], [0], [1], [0, 0, 1, 1], [], []>} : vector<128x128xbf16>, vector<128x288xbf16>, vector<128x288xf32> -> vector<128x288xf32>
    %212 = vector.shape_cast %211 : vector<128x288xf32> to vector<2x8x8x288xf32>
    %213 = arith.truncf %198 : vector<2x32xf32> to vector<2x32xbf16>
    %c0_61 = arith.constant 0 : index
    %c0_62 = arith.constant 0 : index
    %214 = vector.load %arg8[%c0_61, %c0_62] : memref<32x288xbf16, #tpu.memory_space<vmem>>, vector<32x288xbf16>
    %cst_63 = arith.constant dense<0.000000e+00> : vector<2x288xf32>
    %215 = tpu.matmul %213, %214, %cst_63 {dimension_numbers = #tpu.dot_dimension_numbers<[1], [0], [0], [1], [0, 0, 1, 1], [], []>} : vector<2x32xbf16>, vector<32x288xbf16>, vector<2x288xf32> -> vector<2x288xf32>
    %216 = vector.extract_strided_slice %212 {offsets = [0, 0, 0, 0], sizes = [2, 8, 8, 32], strides = [1, 1, 1, 1]} : vector<2x8x8x288xf32> to vector<2x8x8x32xf32>
    %217 = vector.extract_strided_slice %215 {offsets = [0, 0], sizes = [2, 32], strides = [1, 1]} : vector<2x288xf32> to vector<2x32xf32>
    %218 = vector.shape_cast %217 : vector<2x32xf32> to vector<2x1x1x32xf32>
    %219 = vector.broadcast %218 : vector<2x1x1x32xf32> to vector<2x8x8x32xf32>
    %220 = arith.addf %216, %219 : vector<2x8x8x32xf32>
    %221 = vector.extract_strided_slice %220 {offsets = [0, 0, 0, 0], sizes = [2, 7, 7, 32], strides = [1, 1, 1, 1]} : vector<2x8x8x32xf32> to vector<2x7x7x32xf32>
    %cst_64 = arith.constant 0.000000e+00 : f32
    %222 = vector.broadcast %cst_64 : f32 to vector<2x7x1x32xf32>
    %223 = tpu.concatenate %222, %221 in 2 : vector<2x7x1x32xf32>, vector<2x7x7x32xf32> -> vector<2x7x8x32xf32>
    %cst_65 = arith.constant 0.000000e+00 : f32
    %224 = vector.broadcast %cst_65 : f32 to vector<2x1x8x32xf32>
    %225 = tpu.concatenate %224, %223 in 1 : vector<2x1x8x32xf32>, vector<2x7x8x32xf32> -> vector<2x8x8x32xf32>
    %226 = vector.extract_strided_slice %212 {offsets = [0, 0, 0, 32], sizes = [2, 8, 8, 32], strides = [1, 1, 1, 1]} : vector<2x8x8x288xf32> to vector<2x8x8x32xf32>
    %227 = vector.extract_strided_slice %215 {offsets = [0, 32], sizes = [2, 32], strides = [1, 1]} : vector<2x288xf32> to vector<2x32xf32>
    %228 = vector.shape_cast %227 : vector<2x32xf32> to vector<2x1x1x32xf32>
    %229 = vector.broadcast %228 : vector<2x1x1x32xf32> to vector<2x8x8x32xf32>
    %230 = arith.addf %226, %229 : vector<2x8x8x32xf32>
    %231 = vector.extract_strided_slice %230 {offsets = [0, 0, 0, 0], sizes = [2, 7, 8, 32], strides = [1, 1, 1, 1]} : vector<2x8x8x32xf32> to vector<2x7x8x32xf32>
    %cst_66 = arith.constant 0.000000e+00 : f32
    %232 = vector.broadcast %cst_66 : f32 to vector<2x1x8x32xf32>
    %233 = tpu.concatenate %232, %231 in 1 : vector<2x1x8x32xf32>, vector<2x7x8x32xf32> -> vector<2x8x8x32xf32>
    %234 = arith.addf %225, %233 : vector<2x8x8x32xf32>
    %235 = vector.extract_strided_slice %212 {offsets = [0, 0, 0, 64], sizes = [2, 8, 8, 32], strides = [1, 1, 1, 1]} : vector<2x8x8x288xf32> to vector<2x8x8x32xf32>
    %236 = vector.extract_strided_slice %215 {offsets = [0, 64], sizes = [2, 32], strides = [1, 1]} : vector<2x288xf32> to vector<2x32xf32>
    %237 = vector.shape_cast %236 : vector<2x32xf32> to vector<2x1x1x32xf32>
    %238 = vector.broadcast %237 : vector<2x1x1x32xf32> to vector<2x8x8x32xf32>
    %239 = arith.addf %235, %238 : vector<2x8x8x32xf32>
    %240 = vector.extract_strided_slice %239 {offsets = [0, 0, 1, 0], sizes = [2, 7, 7, 32], strides = [1, 1, 1, 1]} : vector<2x8x8x32xf32> to vector<2x7x7x32xf32>
    %cst_67 = arith.constant 0.000000e+00 : f32
    %241 = vector.broadcast %cst_67 : f32 to vector<2x7x1x32xf32>
    %242 = tpu.concatenate %240, %241 in 2 : vector<2x7x7x32xf32>, vector<2x7x1x32xf32> -> vector<2x7x8x32xf32>
    %cst_68 = arith.constant 0.000000e+00 : f32
    %243 = vector.broadcast %cst_68 : f32 to vector<2x1x8x32xf32>
    %244 = tpu.concatenate %243, %242 in 1 : vector<2x1x8x32xf32>, vector<2x7x8x32xf32> -> vector<2x8x8x32xf32>
    %245 = arith.addf %234, %244 : vector<2x8x8x32xf32>
    %246 = vector.extract_strided_slice %212 {offsets = [0, 0, 0, 96], sizes = [2, 8, 8, 32], strides = [1, 1, 1, 1]} : vector<2x8x8x288xf32> to vector<2x8x8x32xf32>
    %247 = vector.extract_strided_slice %215 {offsets = [0, 96], sizes = [2, 32], strides = [1, 1]} : vector<2x288xf32> to vector<2x32xf32>
    %248 = vector.shape_cast %247 : vector<2x32xf32> to vector<2x1x1x32xf32>
    %249 = vector.broadcast %248 : vector<2x1x1x32xf32> to vector<2x8x8x32xf32>
    %250 = arith.addf %246, %249 : vector<2x8x8x32xf32>
    %251 = vector.extract_strided_slice %250 {offsets = [0, 0, 0, 0], sizes = [2, 8, 7, 32], strides = [1, 1, 1, 1]} : vector<2x8x8x32xf32> to vector<2x8x7x32xf32>
    %cst_69 = arith.constant 0.000000e+00 : f32
    %252 = vector.broadcast %cst_69 : f32 to vector<2x8x1x32xf32>
    %253 = tpu.concatenate %252, %251 in 2 : vector<2x8x1x32xf32>, vector<2x8x7x32xf32> -> vector<2x8x8x32xf32>
    %254 = arith.addf %245, %253 : vector<2x8x8x32xf32>
    %255 = vector.extract_strided_slice %212 {offsets = [0, 0, 0, 128], sizes = [2, 8, 8, 32], strides = [1, 1, 1, 1]} : vector<2x8x8x288xf32> to vector<2x8x8x32xf32>
    %256 = vector.extract_strided_slice %215 {offsets = [0, 128], sizes = [2, 32], strides = [1, 1]} : vector<2x288xf32> to vector<2x32xf32>
    %257 = vector.shape_cast %256 : vector<2x32xf32> to vector<2x1x1x32xf32>
    %258 = vector.broadcast %257 : vector<2x1x1x32xf32> to vector<2x8x8x32xf32>
    %259 = arith.addf %255, %258 : vector<2x8x8x32xf32>
    %260 = arith.addf %254, %259 : vector<2x8x8x32xf32>
    %261 = vector.extract_strided_slice %212 {offsets = [0, 0, 0, 160], sizes = [2, 8, 8, 32], strides = [1, 1, 1, 1]} : vector<2x8x8x288xf32> to vector<2x8x8x32xf32>
    %262 = vector.extract_strided_slice %215 {offsets = [0, 160], sizes = [2, 32], strides = [1, 1]} : vector<2x288xf32> to vector<2x32xf32>
    %263 = vector.shape_cast %262 : vector<2x32xf32> to vector<2x1x1x32xf32>
    %264 = vector.broadcast %263 : vector<2x1x1x32xf32> to vector<2x8x8x32xf32>
    %265 = arith.addf %261, %264 : vector<2x8x8x32xf32>
    %266 = vector.extract_strided_slice %265 {offsets = [0, 0, 1, 0], sizes = [2, 8, 7, 32], strides = [1, 1, 1, 1]} : vector<2x8x8x32xf32> to vector<2x8x7x32xf32>
    %cst_70 = arith.constant 0.000000e+00 : f32
    %267 = vector.broadcast %cst_70 : f32 to vector<2x8x1x32xf32>
    %268 = tpu.concatenate %266, %267 in 2 : vector<2x8x7x32xf32>, vector<2x8x1x32xf32> -> vector<2x8x8x32xf32>
    %269 = arith.addf %260, %268 : vector<2x8x8x32xf32>
    %270 = vector.extract_strided_slice %212 {offsets = [0, 0, 0, 192], sizes = [2, 8, 8, 32], strides = [1, 1, 1, 1]} : vector<2x8x8x288xf32> to vector<2x8x8x32xf32>
    %271 = vector.extract_strided_slice %215 {offsets = [0, 192], sizes = [2, 32], strides = [1, 1]} : vector<2x288xf32> to vector<2x32xf32>
    %272 = vector.shape_cast %271 : vector<2x32xf32> to vector<2x1x1x32xf32>
    %273 = vector.broadcast %272 : vector<2x1x1x32xf32> to vector<2x8x8x32xf32>
    %274 = arith.addf %270, %273 : vector<2x8x8x32xf32>
    %275 = vector.extract_strided_slice %274 {offsets = [0, 1, 0, 0], sizes = [2, 7, 7, 32], strides = [1, 1, 1, 1]} : vector<2x8x8x32xf32> to vector<2x7x7x32xf32>
    %cst_71 = arith.constant 0.000000e+00 : f32
    %276 = vector.broadcast %cst_71 : f32 to vector<2x7x1x32xf32>
    %277 = tpu.concatenate %276, %275 in 2 : vector<2x7x1x32xf32>, vector<2x7x7x32xf32> -> vector<2x7x8x32xf32>
    %cst_72 = arith.constant 0.000000e+00 : f32
    %278 = vector.broadcast %cst_72 : f32 to vector<2x1x8x32xf32>
    %279 = tpu.concatenate %277, %278 in 1 : vector<2x7x8x32xf32>, vector<2x1x8x32xf32> -> vector<2x8x8x32xf32>
    %280 = arith.addf %269, %279 : vector<2x8x8x32xf32>
    %281 = vector.extract_strided_slice %212 {offsets = [0, 0, 0, 224], sizes = [2, 8, 8, 32], strides = [1, 1, 1, 1]} : vector<2x8x8x288xf32> to vector<2x8x8x32xf32>
    %282 = vector.extract_strided_slice %215 {offsets = [0, 224], sizes = [2, 32], strides = [1, 1]} : vector<2x288xf32> to vector<2x32xf32>
    %283 = vector.shape_cast %282 : vector<2x32xf32> to vector<2x1x1x32xf32>
    %284 = vector.broadcast %283 : vector<2x1x1x32xf32> to vector<2x8x8x32xf32>
    %285 = arith.addf %281, %284 : vector<2x8x8x32xf32>
    %286 = vector.extract_strided_slice %285 {offsets = [0, 1, 0, 0], sizes = [2, 7, 8, 32], strides = [1, 1, 1, 1]} : vector<2x8x8x32xf32> to vector<2x7x8x32xf32>
    %cst_73 = arith.constant 0.000000e+00 : f32
    %287 = vector.broadcast %cst_73 : f32 to vector<2x1x8x32xf32>
    %288 = tpu.concatenate %286, %287 in 1 : vector<2x7x8x32xf32>, vector<2x1x8x32xf32> -> vector<2x8x8x32xf32>
    %289 = arith.addf %280, %288 : vector<2x8x8x32xf32>
    %290 = vector.extract_strided_slice %212 {offsets = [0, 0, 0, 256], sizes = [2, 8, 8, 32], strides = [1, 1, 1, 1]} : vector<2x8x8x288xf32> to vector<2x8x8x32xf32>
    %291 = vector.extract_strided_slice %215 {offsets = [0, 256], sizes = [2, 32], strides = [1, 1]} : vector<2x288xf32> to vector<2x32xf32>
    %292 = vector.shape_cast %291 : vector<2x32xf32> to vector<2x1x1x32xf32>
    %293 = vector.broadcast %292 : vector<2x1x1x32xf32> to vector<2x8x8x32xf32>
    %294 = arith.addf %290, %293 : vector<2x8x8x32xf32>
    %295 = vector.extract_strided_slice %294 {offsets = [0, 1, 1, 0], sizes = [2, 7, 7, 32], strides = [1, 1, 1, 1]} : vector<2x8x8x32xf32> to vector<2x7x7x32xf32>
    %cst_74 = arith.constant 0.000000e+00 : f32
    %296 = vector.broadcast %cst_74 : f32 to vector<2x7x1x32xf32>
    %297 = tpu.concatenate %295, %296 in 2 : vector<2x7x7x32xf32>, vector<2x7x1x32xf32> -> vector<2x7x8x32xf32>
    %cst_75 = arith.constant 0.000000e+00 : f32
    %298 = vector.broadcast %cst_75 : f32 to vector<2x1x8x32xf32>
    %299 = tpu.concatenate %297, %298 in 1 : vector<2x7x8x32xf32>, vector<2x1x8x32xf32> -> vector<2x8x8x32xf32>
    %300 = arith.addf %289, %299 : vector<2x8x8x32xf32>
    %c0_76 = arith.constant 0 : index
    %c0_77 = arith.constant 0 : index
    %301 = vector.load %arg9[%c0_76, %c0_77] : memref<1x32xf32, #tpu.memory_space<vmem>>, vector<1x32xf32>
    %302 = vector.shape_cast %301 : vector<1x32xf32> to vector<1x1x1x32xf32>
    %303 = vector.broadcast %302 : vector<1x1x1x32xf32> to vector<2x8x8x32xf32>
    %304 = arith.addf %300, %303 : vector<2x8x8x32xf32>
    %305 = vector.shape_cast %304 : vector<2x8x8x32xf32> to vector<2x64x32xf32>
    %c0_78 = arith.constant 0 : index
    %c0_79 = arith.constant 0 : index
    %c0_80 = arith.constant 0 : index
    %306 = vector.load %arg10[%c0_78, %c0_79, %c0_80] : memref<2x64x32xf32, #tpu.memory_space<vmem>>, vector<2x64x32xf32>
    tpu.vector_store %arg10[%c0_78, %c0_79, %c0_80], %305 {strides = array<i32>} : memref<2x64x32xf32, #tpu.memory_space<vmem>>, vector<2x64x32xf32>,
    return
  }
  func.func @transform_0(%arg0: i32) -> (i32, i32, i32) {
    %c0_i32 = arith.constant 0 : i32
    %c0_i32_0 = arith.constant 0 : i32
    %c0_i32_1 = arith.constant 0 : i32
    return %arg0, %c0_i32, %c0_i32_0 : i32, i32, i32
  }
  func.func @transform_1(%arg0: i32) -> (i32, i32) {
    %c0_i32 = arith.constant 0 : i32
    %c0_i32_0 = arith.constant 0 : i32
    %c0_i32_1 = arith.constant 0 : i32
    return %c0_i32, %c0_i32_0 : i32, i32
  }
  func.func @transform_2(%arg0: i32) -> (i32, i32) {
    %c0_i32 = arith.constant 0 : i32
    %c0_i32_0 = arith.constant 0 : i32
    %c0_i32_1 = arith.constant 0 : i32
    return %c0_i32, %c0_i32_0 : i32, i32
  }
  func.func @transform_3(%arg0: i32) -> (i32, i32) {
    %c0_i32 = arith.constant 0 : i32
    %c0_i32_0 = arith.constant 0 : i32
    %c0_i32_1 = arith.constant 0 : i32
    return %c0_i32, %c0_i32_0 : i32, i32
  }
  func.func @transform_4(%arg0: i32) -> (i32, i32) {
    %c0_i32 = arith.constant 0 : i32
    %c0_i32_0 = arith.constant 0 : i32
    %c0_i32_1 = arith.constant 0 : i32
    return %c0_i32, %c0_i32_0 : i32, i32
  }
  func.func @transform_5(%arg0: i32) -> (i32, i32) {
    %c0_i32 = arith.constant 0 : i32
    %c0_i32_0 = arith.constant 0 : i32
    %c0_i32_1 = arith.constant 0 : i32
    return %c0_i32, %c0_i32_0 : i32, i32
  }
  func.func @transform_6(%arg0: i32) -> (i32, i32) {
    %c0_i32 = arith.constant 0 : i32
    %c0_i32_0 = arith.constant 0 : i32
    %c0_i32_1 = arith.constant 0 : i32
    return %c0_i32, %c0_i32_0 : i32, i32
  }
  func.func @transform_7(%arg0: i32) -> (i32, i32) {
    %c0_i32 = arith.constant 0 : i32
    %c0_i32_0 = arith.constant 0 : i32
    %c0_i32_1 = arith.constant 0 : i32
    return %c0_i32, %c0_i32_0 : i32, i32
  }
  func.func @transform_8(%arg0: i32) -> (i32, i32) {
    %c0_i32 = arith.constant 0 : i32
    %c0_i32_0 = arith.constant 0 : i32
    %c0_i32_1 = arith.constant 0 : i32
    return %c0_i32, %c0_i32_0 : i32, i32
  }
  func.func @transform_9(%arg0: i32) -> (i32, i32, i32) {
    %c0_i32 = arith.constant 0 : i32
    %c0_i32_0 = arith.constant 0 : i32
    %c0_i32_1 = arith.constant 0 : i32
    return %arg0, %c0_i32, %c0_i32_0 : i32, i32, i32
  }
}

</mosaic_0001>

<bundles_post_ra>
// kernel: aspp_forward.1
= control target key start
LH: loop header
LB: loop body
LE: loop exit
PB: predicated region body
PF: predicated region fallthrough
CT: control target
= control target key end

     0   :  { %14 = vsyncpa [#allocation3], 0  ;;  %s13682_s0 = inlined_call_operand.vmem [shape: bf16[2,64,1024], index: 0, kind: input, shape index: {}]   ;;  %s13683_s1 = inlined_call_operand.hbm [shape: bf16[1024,1024], index: 1, kind: input, shape index: {}]   ;;  %s13684_s2 = inlined_call_operand.hbm [shape: f32[1,128], index: 2, kind: input, shape index: {}]   ;;  %s13685_s3 = inlined_call_operand.hbm [shape: f32[1,128], index: 3, kind: input, shape index: {}]   ;;  %s13686_s4 = inlined_call_operand.hbm [shape: f32[1,32], index: 4, kind: input, shape index: {}]   ;;  %s13687_s5 = inlined_call_operand.hbm [shape: f32[1,32], index: 5, kind: input, shape index: {}]   ;;  %s13688_s6 = inlined_call_operand.vmem [shape: bf16[128,288], index: 6, kind: input, shape index: {}]   ;;  %s13689_s7 = inlined_call_operand.hbm [shape: bf16[32,288], index: 7, kind: input, shape index: {}]   ;;  %s13690_s8 = inlined_call_operand.hbm [shape: f32[1,32], index: 8, kind: input, shape index: {}]   ;;  %s13691_s9 = inlined_call_operand.hbm [shape: f32[2,64,32], index: 9, kind: output, shape index: {}]  }
   0x1   :  { %15 = vsyncpa [#allocation6], 0 }
   0x2   :  { %16 = vsyncpa [#allocation9], 0 }
   0x3   :  { %17 = vsyncpa [#allocation12], 0 }
   0x4   :  { %18 = vsyncpa [#allocation4], 0  ;;  %s9603_s30 = smov [#allocation5]   ;;  %s9604_s11 = smov [#allocation8]  }
   0x5   :  { %s39_s10 = sshll.u32 %s9603_s30, 4  ;;  %s59_s12 = sshll.u32 %s9604_s11, 4  ;;  %s40_s10 = int_to_ptr.vmem [resolvable:$true] %s39_s10  ;;  %s60_s12 = int_to_ptr.vmem [resolvable:$true] %s59_s12 }
   0x6   :  { %s9441_s13 = scalar_lea.vmem %s40_s10, 16  ;;  %s9445_s14 = scalar_lea.vmem %s40_s10, 32 }
   0x7   :  { %p9442_p0 = scmp.ne.s32.totalorder %s40_s10, %s9441_s13  ;;  %p9446_p1 = scmp.lt.s32.totalorder %s40_s10, %s40_s10 }
   0x8   :  { %p9447_p2 = scmp.lt.s32.totalorder %s9445_s14, %s9441_s13 }
   0xa   :  { %p9448_p3 = por %p9447_p2, %p9446_p1 }
   0xc   :  { %p9449_p4 = pnand %p9448_p3, %p9442_p0 }
   0xe   :  { %9452 = shalt.err (!%p9449_p4)
}
   0xf   :  { %42 = dma.hbm_to_vmem [thread:$0]  %s13684_s2, 16, %s40_s10, [#allocation6]  }
  0x10   :  { %s9461_s17 = scalar_lea.vmem %s60_s12, 16  ;;  %s9465_s18 = scalar_lea.vmem %s60_s12, 32 }
  0x11   :  { %p9462_p5 = scmp.ne.s32.totalorder %s60_s12, %s9461_s17  ;;  %p9466_p6 = scmp.lt.s32.totalorder %s60_s12, %s60_s12 }
  0x12   :  { %p9467_p7 = scmp.lt.s32.totalorder %s9465_s18, %s9461_s17 }
  0x14   :  { %p9468_p8 = por %p9467_p7, %p9466_p6 }
  0x16   :  { %p9469_p9 = pnand %p9468_p8, %p9462_p5 }
  0x18   :  { %9472 = shalt.err (!%p9469_p9)
}
  0x19   :  { %62 = dma.hbm_to_vmem [thread:$0]  %s13686_s4, 16, %s60_s12, [#allocation9]  }
  0x1a   :  { %s9605_s21 = smov [#allocation11]  }
  0x1b   :  { %s80_s22 = sshll.u32 %s9605_s21, 4  ;;  %s81_s22 = int_to_ptr.vmem [resolvable:$true] %s80_s22 }
  0x1c   :  { %s9481_s23 = scalar_lea.vmem %s81_s22, 768  ;;  %p9486_p11 = scmp.lt.s32.totalorder %s81_s22, %s81_s22 }
  0x1d   :  { %p9482_p10 = scmp.ne.s32.totalorder %s81_s22, %s9481_s23  ;;  %p9487_p12 = scmp.lt.s32.totalorder %s9481_s23, %s9481_s23 }
  0x1f   :  { %p9488_p13 = por %p9487_p12, %p9486_p11 }
  0x21   :  { %p9489_p0 = pnand %p9488_p13, %p9482_p10 }
  0x23   :  { %9492 = shalt.err (!%p9489_p0)
}
  0x24   :  { %s9606_s2 = smov 192   ;;  %s9607_s24 = smov 12  }
  0x25   :  { %86 = dma.hbm_to_vmem [thread:$0]  %s13689_s7, 768, %s81_s22, [#allocation12], %s9606_s2, %s9606_s2, %s9607_s24  }
  0x26   :  { %s9608_s27 = smov [#allocation2]  }
  0x27   :  { %s26_s28 = sshll.u32 %s9608_s27, 4  ;;  %s27_s28 = int_to_ptr.vmem [resolvable:$true] %s26_s28 }
  0x28   :  { %s9501_s4 = scalar_lea.vmem %s27_s28, 65536  ;;  %p9506_p2 = scmp.lt.s32.totalorder %s27_s28, %s27_s28 }
  0x29   :  { %p9502_p1 = scmp.ne.s32.totalorder %s27_s28, %s9501_s4  ;;  %p9507_p3 = scmp.lt.s32.totalorder %s9501_s4, %s9501_s4 }
  0x2b   :  { %p9508_p4 = por %p9507_p3, %p9506_p2 }
  0x2d   :  { %p9509_p5 = pnand %p9508_p4, %p9502_p1 }
  0x2f   :  { %9512 = shalt.err (!%p9509_p5)
}
  0x30   :  { %s9609_s29 = smov 512   ;;  %s9610_s30 = smov 32  }
  0x31   :  { %32 = dma.hbm_to_vmem [thread:$0]  %s13683_s1, 65536, %s27_s28, [#allocation3], %s9609_s29, %s9609_s29, %s9610_s30  }
  0x32   :  { %s9611_s12 = smov [#allocation7]   ;;  %s9612_s7 = smov [#allocation10]  }
  0x33   :  { %s49_s13 = sshll.u32 %s9611_s12, 4  ;;  %s69_s14 = sshll.u32 %s9612_s7, 4  ;;  %s50_s13 = int_to_ptr.vmem [resolvable:$true] %s49_s13  ;;  %s70_s14 = int_to_ptr.vmem [resolvable:$true] %s69_s14 }
  0x34   :  { %s9521_s15 = scalar_lea.vmem %s50_s13, 16  ;;  %s9525_s16 = scalar_lea.vmem %s50_s13, 32 }
  0x35   :  { %p9522_p6 = scmp.ne.s32.totalorder %s50_s13, %s9521_s15  ;;  %p9526_p7 = scmp.lt.s32.totalorder %s50_s13, %s50_s13 }
  0x36   :  { %p9527_p8 = scmp.lt.s32.totalorder %s9525_s16, %s9521_s15 }
  0x38   :  { %p9528_p9 = por %p9527_p8, %p9526_p7 }
  0x3a   :  { %p9529_p10 = pnand %p9528_p9, %p9522_p6 }
  0x3c   :  { %9532 = shalt.err (!%p9529_p10)
}
  0x3d   :  { %52 = dma.hbm_to_vmem [thread:$0]  %s13685_s3, 16, %s50_s13, [#allocation6]  }
  0x3e   :  { %s9541_s19 = scalar_lea.vmem %s70_s14, 16  ;;  %s9545_s1 = scalar_lea.vmem %s70_s14, 32 }
  0x3f   :  { %p9542_p11 = scmp.ne.s32.totalorder %s70_s14, %s9541_s19  ;;  %p9546_p12 = scmp.lt.s32.totalorder %s70_s14, %s70_s14 }
  0x40   :  { %p9547_p13 = scmp.lt.s32.totalorder %s9545_s1, %s9541_s19 }
  0x42   :  { %p9548_p0 = por %p9547_p13, %p9546_p12 }
  0x44   :  { %p9549_p1 = pnand %p9548_p0, %p9542_p11 }
  0x46   :  { %9552 = shalt.err (!%p9549_p1)
}
  0x47   :  { %72 = dma.hbm_to_vmem [thread:$0]  %s13687_s5, 16, %s70_s14, [#allocation9]  }
  0x48   :  { %s9613_s22 = smov [#allocation13]  }
  0x49   :  { %s93_s23 = sshll.u32 %s9613_s22, 4  ;;  %s94_s23 = int_to_ptr.vmem [resolvable:$true] %s93_s23 }
  0x4a   :  { %s9561_s2 = scalar_lea.vmem %s94_s23, 16  ;;  %s9565_s24 = scalar_lea.vmem %s94_s23, 32 }
  0x4b   :  { %p9562_p2 = scmp.ne.s32.totalorder %s94_s23, %s9561_s2  ;;  %p9566_p3 = scmp.lt.s32.totalorder %s94_s23, %s94_s23 }
  0x4c   :  { %p9567_p4 = scmp.lt.s32.totalorder %s9565_s24, %s9561_s2 }
  0x4e   :  { %p9568_p5 = por %p9567_p4, %p9566_p3 }
  0x50   :  { %p9569_p6 = pnand %p9568_p5, %p9562_p2 }
  0x52   :  { %9572 = shalt.err (!%p9569_p6)
}
  0x53   :  { %96 = dma.hbm_to_vmem [thread:$0]  %s13690_s8, 16, %s94_s23, [#allocation12]  }
  0x54   :  { %9593 = dma.done.wait [#allocation3], 65536  }
  0x55   :  { %9594 = vsyncadd [#allocation3], 4294901760 }
  0x56   :  { %9595 = dma.done.wait [#allocation6], 32  }
  0x57   :  { %9596 = vsyncadd [#allocation6], 4294967264 }
  0x58   :  { %9597 = dma.done.wait [#allocation9], 32  }
  0x59   :  { %9598 = vsyncadd [#allocation9], 4294967264 }
  0x5a   :  { %9599 = dma.done.wait [#allocation12], 784  }
  0x5b   :  { %9600 = vsyncadd [#allocation12], 4294966512  ;;  %v197_v0 = vld [vmem:[#allocation2 + $0x1c0] sm:$0xff]  ;;  %v9712_v59 = vld [vmem:[%s13682_s0 + $0x8] sm:$0xff]  ;;  %s9615_s1 = smov 64   ;;  %s9616_s5 = smov 96  }
  0x5c   :  { %v198_v1 = vld [vmem:[#allocation2 + $0x1e0] sm:$0xff]  ;;  %v9717_v60 = vld [vmem:[%s13682_s0 + $0x28] sm:$0xff]  ;;  %vm1880_vm0 = vcmask 1045504   ;;  %vm3640_vm1 = vcmask 1043456   ;;  %vm1783_vm2 = vcmask 1041408   ;;  %vm6924_vm3 = vcmask 523520  }
  0x5d   :  { %v229_v2 = vld [vmem:[#allocation2 + $0x5c0] sm:$0xff]  ;;  %v8780_v3 = vcombine.high %v197_v0, %v198_v1  ;;  %v8779_v5 = vcombine.low %v197_v0, %v198_v1  ;;  %v9721_v63 = vcombine.high %v9712_v59, %v9717_v60  ;;  %vm7690_vm4 = vcmask 1041409  }
  0x5e   :  { %v230_v4 = vld [vmem:[#allocation2 + $0x5e0] sm:$0xff]  ;;  %vm7186_vm5 = vcmask 261120   ;;  %vm7203_vm6 = vcmask 523264   ;;  %vm7220_vm7 = vcmask 785408   ;;  %vm9618_vm8 = vmmov 0  }
  0x5f   :  { %v195_v6 = vld [vmem:[#allocation2 + $0x180] sm:$0xff]  ;;  %v8812_v8 = vcombine.high %v229_v2, %v230_v4  ;;  %v8811_v9 = vcombine.low %v229_v2, %v230_v4  ;;  %1271 = vmatprep.subr.bf16.mxu0 %v8780_v3  ;;  %13899 = vst [vmem:[#allocation21_spill] sm:$0xff] %v9721_v63  ;;  %1416 = vmatprep.mubr.bf16.mxu1 %v9721_v63  ;;  %vm7999_vm9 = vcmask 1046528   ;;  %vm7900_vm10 = vcmask 1040384  }
  0x60   :  { %v196_v7 = vld [vmem:[#allocation2 + $0x1a0] sm:$0xff]  ;;  %1272 = vmatpush1.bf16.msra.mxu0 %v8779_v5 }
  0x61   :  { %v8778_v10 = vcombine.high %v195_v6, %v196_v7  ;;  %v227_v11 = vld [vmem:[#allocation2 + $0x580] sm:$0xff]  ;;  %1384 = vmatprep.subr.bf16.mxu1 %v8812_v8  ;;  %v8777_v18 = vcombine.low %v195_v6, %v196_v7 }
  0x62   :  { %v228_v12 = vld [vmem:[#allocation2 + $0x5a0] sm:$0xff]  ;;  %1385 = vmatpush1.bf16.msra.mxu1 %v8811_v9 }
  0x63   :  { %v193_v13 = vld [vmem:[#allocation2 + $0x140] sm:$0xff]  ;;  %v8810_v14 = vcombine.high %v227_v11, %v228_v12  ;;  %1273 = vmatprep.subr.bf16.mxu0 %v8778_v10  ;;  %v8809_v19 = vcombine.low %v227_v11, %v228_v12 }
  0x64   :  { %v194_v15 = vld [vmem:[#allocation2 + $0x160] sm:$0xff]  ;;  %1274 = vmatpush1.bf16.msra.mxu0 %v8777_v18 }
  0x65   :  { %v225_v16 = vld [vmem:[#allocation2 + $0x540] sm:$0xff]  ;;  %v8776_v20 = vcombine.high %v193_v13, %v194_v15  ;;  %1386 = vmatprep.subr.bf16.mxu1 %v8810_v14  ;;  %v8775_v26 = vcombine.low %v193_v13, %v194_v15 }
  0x66   :  { %v226_v17 = vld [vmem:[#allocation2 + $0x560] sm:$0xff]  ;;  %1387 = vmatpush1.bf16.msra.mxu1 %v8809_v19 }
  0x67   :  { %v8808_v21 = vcombine.high %v225_v16, %v226_v17  ;;  %v191_v22 = vld [vmem:[#allocation2 + $0x100] sm:$0xff]  ;;  %1275 = vmatprep.subr.bf16.mxu0 %v8776_v20  ;;  %v8807_v27 = vcombine.low %v225_v16, %v226_v17 }
  0x68   :  { %v192_v23 = vld [vmem:[#allocation2 + $0x120] sm:$0xff]  ;;  %1276 = vmatpush1.bf16.msra.mxu0 %v8775_v26 }
  0x69   :  { %v223_v24 = vld [vmem:[#allocation2 + $0x500] sm:$0xff]  ;;  %v8774_v28 = vcombine.high %v191_v22, %v192_v23  ;;  %1388 = vmatprep.subr.bf16.mxu1 %v8808_v21  ;;  %v8773_v34 = vcombine.low %v191_v22, %v192_v23 }
  0x6a   :  { %v224_v25 = vld [vmem:[#allocation2 + $0x520] sm:$0xff]  ;;  %1389 = vmatpush1.bf16.msra.mxu1 %v8807_v27 }
  0x6b   :  { %v8806_v29 = vcombine.high %v223_v24, %v224_v25  ;;  %v189_v30 = vld [vmem:[#allocation2 + $0xc0] sm:$0xff]  ;;  %1277 = vmatprep.subr.bf16.mxu0 %v8774_v28  ;;  %v8805_v35 = vcombine.low %v223_v24, %v224_v25 }
  0x6c   :  { %v190_v31 = vld [vmem:[#allocation2 + $0xe0] sm:$0xff]  ;;  %1278 = vmatpush1.bf16.msra.mxu0 %v8773_v34 }
  0x6d   :  { %v221_v32 = vld [vmem:[#allocation2 + $0x4c0] sm:$0xff]  ;;  %v8772_v36 = vcombine.high %v189_v30, %v190_v31  ;;  %1390 = vmatprep.subr.bf16.mxu1 %v8806_v29  ;;  %v8771_v42 = vcombine.low %v189_v30, %v190_v31 }
  0x6e   :  { %v222_v33 = vld [vmem:[#allocation2 + $0x4e0] sm:$0xff]  ;;  %1391 = vmatpush1.bf16.msra.mxu1 %v8805_v35 }
  0x6f   :  { %v8804_v37 = vcombine.high %v221_v32, %v222_v33  ;;  %v187_v38 = vld [vmem:[#allocation2 + $0x80] sm:$0xff]  ;;  %1279 = vmatprep.subr.bf16.mxu0 %v8772_v36  ;;  %v8803_v43 = vcombine.low %v221_v32, %v222_v33 }
  0x70   :  { %v188_v39 = vld [vmem:[#allocation2 + $0xa0] sm:$0xff]  ;;  %1280 = vmatpush1.bf16.msra.mxu0 %v8771_v42 }
  0x71   :  { %v219_v40 = vld [vmem:[#allocation2 + $0x480] sm:$0xff]  ;;  %v8770_v44 = vcombine.high %v187_v38, %v188_v39  ;;  %1392 = vmatprep.subr.bf16.mxu1 %v8804_v37  ;;  %v8769_v50 = vcombine.low %v187_v38, %v188_v39 }
  0x72   :  { %v220_v41 = vld [vmem:[#allocation2 + $0x4a0] sm:$0xff]  ;;  %1393 = vmatpush1.bf16.msra.mxu1 %v8803_v43 }
  0x73   :  { %v8802_v45 = vcombine.high %v219_v40, %v220_v41  ;;  %v185_v46 = vld [vmem:[#allocation2 + $0x40] sm:$0xff]  ;;  %1281 = vmatprep.subr.bf16.mxu0 %v8770_v44  ;;  %v8801_v51 = vcombine.low %v219_v40, %v220_v41 }
  0x74   :  { %v186_v47 = vld [vmem:[#allocation2 + $0x60] sm:$0xff]  ;;  %1282 = vmatpush1.bf16.msra.mxu0 %v8769_v50 }
  0x75   :  { %v217_v48 = vld [vmem:[#allocation2 + $0x440] sm:$0xff]  ;;  %v8768_v52 = vcombine.high %v185_v46, %v186_v47  ;;  %1394 = vmatprep.subr.bf16.mxu1 %v8802_v45  ;;  %v8767_v0 = vcombine.low %v185_v46, %v186_v47 }
  0x76   :  { %v218_v49 = vld [vmem:[#allocation2 + $0x460] sm:$0xff]  ;;  %1395 = vmatpush1.bf16.msra.mxu1 %v8801_v51 }
  0x77   :  { %v183_v53 = vld [vmem:[#allocation2] sm:$0xff]  ;;  %v8800_v56 = vcombine.high %v217_v48, %v218_v49  ;;  %1283 = vmatprep.subr.bf16.mxu0 %v8768_v52  ;;  %v8799_v1 = vcombine.low %v217_v48, %v218_v49 }
  0x78   :  { %v9698_v54 = vld [vmem:[%s13682_s0] sm:$0xff]  ;;  %1284 = vmatpush1.bf16.msra.mxu0 %v8767_v0 }
  0x79   :  { %v9703_v55 = vld [vmem:[%s13682_s0 + $0x20] sm:$0xff]  ;;  %1396 = vmatprep.subr.bf16.mxu1 %v8800_v56 }
  0x7a   :  { %v184_v57 = vld [vmem:[#allocation2 + $0x20] sm:$0xff]  ;;  %v9707_v58 = vcombine.high %v9698_v54, %v9703_v55  ;;  %1397 = vmatpush1.bf16.msra.mxu1 %v8799_v1 }
  0x7b   :  { %v215_v61 = vld [vmem:[#allocation2 + $0x400] sm:$0xff]  ;;  %v8766_v2 = vcombine.high %v183_v53, %v184_v57  ;;  %v8765_v8 = vcombine.low %v183_v53, %v184_v57 }
  0x7c   :  { %13898 = vst [vmem:[#allocation20_spill] sm:$0xff] %v9707_v58  ;;  %v216_v62 = vld [vmem:[#allocation2 + $0x420] sm:$0xff]  ;;  %1303 = vmatprep.mubr.bf16.mxu0 %v9707_v58 }
  0x7d   :  { %v8798_v3 = vcombine.high %v215_v61, %v216_v62  ;;  %v213_v4 = vld [vmem:[#allocation2 + $0x3c0] sm:$0xff]  ;;  %1285 = vmatprep.subr.bf16.mxu0 %v8766_v2  ;;  %v8797_v9 = vcombine.low %v215_v61, %v216_v62 }
  0x7e   :  { %v214_v5 = vld [vmem:[#allocation2 + $0x3e0] sm:$0xff]  ;;  %1286 = vmatpush1.bf16.msra.mxu0 %v8765_v8 }
  0x7f   :  { %v245_v6 = vld [vmem:[#allocation2 + $0x7c0] sm:$0xff]  ;;  %v8796_v10 = vcombine.high %v213_v4, %v214_v5  ;;  %1398 = vmatprep.subr.bf16.mxu1 %v8798_v3  ;;  %v8795_v16 = vcombine.low %v213_v4, %v214_v5 }
  0x80   :  { %v246_v7 = vld [vmem:[#allocation2 + $0x7e0] sm:$0xff]  ;;  %1399 = vmatpush1.bf16.msra.mxu1 %v8797_v9 }
  0x81   :  { %v8828_v11 = vcombine.high %v245_v6, %v246_v7  ;;  %v211_v12 = vld [vmem:[#allocation2 + $0x380] sm:$0xff]  ;;  %1287 = vmatprep.subr.bf16.mxu0 %v8796_v10  ;;  %v8827_v17 = vcombine.low %v245_v6, %v246_v7 }
  0x82   :  { %v212_v13 = vld [vmem:[#allocation2 + $0x3a0] sm:$0xff]  ;;  %1288 = vmatpush2.bf16.msra.mxu0 %v8795_v16 }
  0x83   :  { %v243_v14 = vld [vmem:[#allocation2 + $0x780] sm:$0xff]  ;;  %v8794_v18 = vcombine.high %v211_v12, %v212_v13  ;;  %1400 = vmatprep.subr.bf16.mxu1 %v8828_v11  ;;  %v8793_v24 = vcombine.low %v211_v12, %v212_v13 }
  0x84   :  { %v244_v15 = vld [vmem:[#allocation2 + $0x7a0] sm:$0xff]  ;;  %1401 = vmatpush2.bf16.msra.mxu1 %v8827_v17 }
  0x85   :  { %v8826_v19 = vcombine.high %v243_v14, %v244_v15  ;;  %v209_v20 = vld [vmem:[#allocation2 + $0x340] sm:$0xff]  ;;  %1289 = vmatprep.subr.bf16.mxu0 %v8794_v18  ;;  %v8825_v25 = vcombine.low %v243_v14, %v244_v15 }
  0x86   :  { %v210_v21 = vld [vmem:[#allocation2 + $0x360] sm:$0xff]  ;;  %1290 = vmatpush2.bf16.msra.mxu0 %v8793_v24 }
  0x87   :  { %v241_v22 = vld [vmem:[#allocation2 + $0x740] sm:$0xff]  ;;  %v8792_v26 = vcombine.high %v209_v20, %v210_v21  ;;  %1402 = vmatprep.subr.bf16.mxu1 %v8826_v19  ;;  %v8791_v32 = vcombine.low %v209_v20, %v210_v21  ;;  %v9727_v21 = vcombine.low %v9698_v54, %v9703_v55  ;;  %v128_v54 = vld [vmem:[%s13682_s0 + $0x48] sm:$0xff] }
  0x88   :  { %v242_v23 = vld [vmem:[#allocation2 + $0x760] sm:$0xff]  ;;  %1403 = vmatpush2.bf16.msra.mxu1 %v8825_v25  ;;  %v9737_v25 = vcombine.low %v9712_v59, %v9717_v60  ;;  %v132_v55 = vld [vmem:[%s13682_s0 + $0x68] sm:$0xff] }
  0x89   :  { %v8824_v27 = vcombine.high %v241_v22, %v242_v23  ;;  %v207_v28 = vld [vmem:[#allocation2 + $0x300] sm:$0xff]  ;;  %1291 = vmatprep.subr.bf16.mxu0 %v8792_v26  ;;  %v8823_v33 = vcombine.low %v241_v22, %v242_v23  ;;  %v9748_v60 = vcombine.high %v128_v54, %v132_v55 }
  0x8a   :  { %v208_v29 = vld [vmem:[#allocation2 + $0x320] sm:$0xff]  ;;  %1292 = vmatpush2.bf16.msra.mxu0 %v8791_v32 }
  0x8b   :  { %v239_v30 = vld [vmem:[#allocation2 + $0x700] sm:$0xff]  ;;  %v8790_v34 = vcombine.high %v207_v28, %v208_v29  ;;  %1404 = vmatprep.subr.bf16.mxu1 %v8824_v27  ;;  %v8789_v40 = vcombine.low %v207_v28, %v208_v29 }
  0x8c   :  { %v240_v31 = vld [vmem:[#allocation2 + $0x720] sm:$0xff]  ;;  %1405 = vmatpush2.bf16.msra.mxu1 %v8823_v33 }
  0x8d   :  { %v8822_v35 = vcombine.high %v239_v30, %v240_v31  ;;  %v205_v36 = vld [vmem:[#allocation2 + $0x2c0] sm:$0xff]  ;;  %1293 = vmatprep.subr.bf16.mxu0 %v8790_v34  ;;  %v8821_v41 = vcombine.low %v239_v30, %v240_v31 }
  0x8e   :  { %v206_v37 = vld [vmem:[#allocation2 + $0x2e0] sm:$0xff]  ;;  %1294 = vmatpush2.bf16.msra.mxu0 %v8789_v40 }
  0x8f   :  { %v237_v38 = vld [vmem:[#allocation2 + $0x6c0] sm:$0xff]  ;;  %v8788_v42 = vcombine.high %v205_v36, %v206_v37  ;;  %1406 = vmatprep.subr.bf16.mxu1 %v8822_v35  ;;  %v8787_v48 = vcombine.low %v205_v36, %v206_v37 }
  0x90   :  { %v238_v39 = vld [vmem:[#allocation2 + $0x6e0] sm:$0xff]  ;;  %1407 = vmatpush2.bf16.msra.mxu1 %v8821_v41 }
  0x91   :  { %v8820_v43 = vcombine.high %v237_v38, %v238_v39  ;;  %v203_v44 = vld [vmem:[#allocation2 + $0x280] sm:$0xff]  ;;  %1295 = vmatprep.subr.bf16.mxu0 %v8788_v42  ;;  %v8819_v49 = vcombine.low %v237_v38, %v238_v39 }
  0x92   :  { %v204_v45 = vld [vmem:[#allocation2 + $0x2a0] sm:$0xff]  ;;  %1296 = vmatpush2.bf16.msra.mxu0 %v8787_v48  ;;  %v140_v48 = vld [vmem:[%s13682_s0 + $0xa8] sm:$0xff] }
  0x93   :  { %v235_v46 = vld [vmem:[#allocation2 + $0x680] sm:$0xff]  ;;  %v8786_v50 = vcombine.high %v203_v44, %v204_v45  ;;  %1408 = vmatprep.subr.bf16.mxu1 %v8820_v43  ;;  %v8785_v61 = vcombine.low %v203_v44, %v204_v45  ;;  %v9761_v45 = vcombine.low %v128_v54, %v132_v55 }
  0x94   :  { %v236_v47 = vld [vmem:[#allocation2 + $0x6a0] sm:$0xff]  ;;  %1409 = vmatpush2.bf16.msra.mxu1 %v8819_v49 }
  0x95   :  { %v8818_v51 = vcombine.high %v235_v46, %v236_v47  ;;  %v201_v52 = vld [vmem:[#allocation2 + $0x240] sm:$0xff]  ;;  %1297 = vmatprep.subr.bf16.mxu0 %v8786_v50  ;;  %v8817_v62 = vcombine.low %v235_v46, %v236_v47  ;;  %v136_v47 = vld [vmem:[%s13682_s0 + $0x88] sm:$0xff] }
  0x96   :  { %v202_v53 = vld [vmem:[#allocation2 + $0x260] sm:$0xff]  ;;  %1298 = vmatpush2.bf16.msra.mxu0 %v8785_v61 }
  0x97   :  { %v233_v56 = vld [vmem:[#allocation2 + $0x640] sm:$0xff]  ;;  %v8784_v0 = vcombine.high %v201_v52, %v202_v53  ;;  %1410 = vmatprep.subr.bf16.mxu1 %v8818_v51  ;;  %v8783_v6 = vcombine.low %v201_v52, %v202_v53 }
  0x98   :  { %v234_v57 = vld [vmem:[#allocation2 + $0x660] sm:$0xff]  ;;  %1411 = vmatpush2.bf16.msra.mxu1 %v8817_v62 }
  0x99   :  { %v8816_v1 = vcombine.high %v233_v56, %v234_v57  ;;  %v199_v2 = vld [vmem:[#allocation2 + $0x200] sm:$0xff]  ;;  %1299 = vmatprep.subr.bf16.mxu0 %v8784_v0  ;;  %v8815_v7 = vcombine.low %v233_v56, %v234_v57  ;;  %v9772_v57 = vcombine.high %v136_v47, %v140_v48 }
  0x9a   :  { %v200_v3 = vld [vmem:[#allocation2 + $0x220] sm:$0xff]  ;;  %1300 = vmatpush2.bf16.msra.mxu0 %v8783_v6 }
  0x9b   :  { %v231_v4 = vld [vmem:[#allocation2 + $0x600] sm:$0xff]  ;;  %v8782_v8 = vcombine.high %v199_v2, %v200_v3  ;;  %1412 = vmatprep.subr.bf16.mxu1 %v8816_v1  ;;  %v8781_v14 = vcombine.low %v199_v2, %v200_v3  ;;  %13901 = vst [vmem:[#allocation23_spill] sm:$0xff] %v9772_v57 }
  0x9c   :  { %v232_v5 = vld [vmem:[#allocation2 + $0x620] sm:$0xff]  ;;  %1413 = vmatpush2.bf16.msra.mxu1 %v8815_v7 }
  0x9d   :  { %v8814_v9 = vcombine.high %v231_v4, %v232_v5  ;;  %v261_v10 = vld [vmem:[#allocation2 + $0x9c0] sm:$0xff]  ;;  %1301 = vmatprep.subr.bf16.mxu0 %v8782_v8  ;;  %v8813_v15 = vcombine.low %v231_v4, %v232_v5 }
  0x9e   :  { %v262_v11 = vld [vmem:[#allocation2 + $0x9e0] sm:$0xff]  ;;  %1302 = vmatpush2.bf16.msra.mxu0 %v8781_v14  ;;  %v148_v14 = vld [vmem:[%s13682_s0 + $0xe8] sm:$0xff] }
  0x9f   :  { %v293_v12 = vld [vmem:[#allocation2 + $0xdc0] sm:$0xff]  ;;  %v8844_v16 = vcombine.high %v261_v10, %v262_v11  ;;  %1414 = vmatprep.subr.bf16.mxu1 %v8814_v9  ;;  %v8843_v26 = vcombine.low %v261_v10, %v262_v11  ;;  %v9785_v11 = vcombine.low %v136_v47, %v140_v48 }
  0xa0   :  { %v294_v13 = vld [vmem:[#allocation2 + $0xde0] sm:$0xff]  ;;  %1415 = vmatpush2.bf16.msra.mxu1 %v8813_v15 }
  0xa1   :  { %v8876_v17 = vcombine.high %v293_v12, %v294_v13  ;;  %v259_v18 = vld [vmem:[#allocation2 + $0x980] sm:$0xff]  ;;  %1497 = vmatprep.subr.bf16.mxu0 %v8844_v16  ;;  %v8875_v27 = vcombine.low %v293_v12, %v294_v13  ;;  %1304 = vmatmul.mubr.bf16.vlgmr.msra.gmra.mxu0 %v9727_v21  ;;  %13903 = vst [vmem:[#allocation25_spill] sm:$0xff] %v9785_v11  ;;  %v144_v13 = vld [vmem:[%s13682_s0 + $0xc8] sm:$0xff] }
  0xa2   :  { %v260_v19 = vld [vmem:[#allocation2 + $0x9a0] sm:$0xff]  ;;  %1498 = vmatpush1.bf16.msra.mxu0 %v8843_v26 }
  0xa3   :  { %v291_v20 = vld [vmem:[#allocation2 + $0xd80] sm:$0xff]  ;;  %v8842_v28 = vcombine.high %v259_v18, %v260_v19  ;;  %1610 = vmatprep.subr.bf16.mxu1 %v8876_v17  ;;  %1417 = vmatmul.mubr.bf16.vlgmr.msra.gmra.mxu1 %v9737_v25  ;;  %v8841_v34 = vcombine.low %v259_v18, %v260_v19 }
  0xa4   :  { %v292_v22 = vld [vmem:[#allocation2 + $0xda0] sm:$0xff]  ;;  %1611 = vmatpush1.bf16.msra.mxu1 %v8875_v27  ;;  %1426 = vmatprep.mubr.bf16.mxu1 %v9748_v60 }
  0xa5   :  { %v127_v23 = vld [vmem:[%s13682_s0 + $0x40] sm:$0xff]  ;;  %v8874_v29 = vcombine.high %v291_v20, %v292_v22  ;;  %1499 = vmatprep.subr.bf16.mxu0 %v8842_v28  ;;  %v8873_v35 = vcombine.low %v291_v20, %v292_v22  ;;  %v9796_v22 = vcombine.high %v144_v13, %v148_v14 }
  0xa6   :  { %v131_v24 = vld [vmem:[%s13682_s0 + $0x60] sm:$0xff]  ;;  %1500 = vmatpush1.bf16.msra.mxu0 %v8841_v34 }
  0xa7   :  { %v9745_v30 = vcombine.high %v127_v23, %v131_v24  ;;  %v257_v31 = vld [vmem:[#allocation2 + $0x940] sm:$0xff]  ;;  %1612 = vmatprep.subr.bf16.mxu1 %v8874_v29  ;;  %v9753_v41 = vcombine.low %v127_v23, %v131_v24  ;;  %13905 = vst [vmem:[#allocation27_spill] sm:$0xff] %v9796_v22 }
  0xa8   :  { %v258_v59 = vld [vmem:[#allocation2 + $0x960] sm:$0xff]  ;;  %1613 = vmatpush1.bf16.msra.mxu1 %v8873_v35  ;;  %v9809_v35 = vcombine.low %v144_v13, %v148_v14 }
  0xa9   :  { %v289_v32 = vld [vmem:[#allocation2 + $0xd40] sm:$0xff]  ;;  %v8840_v36 = vcombine.high %v257_v31, %v258_v59  ;;  %1313 = vmatprep.mubr.bf16.mxu0 %v9745_v30  ;;  %v8839_v46 = vcombine.low %v257_v31, %v258_v59 }
  0xaa   :  { %v290_v33 = vld [vmem:[#allocation2 + $0xd60] sm:$0xff]  ;;  %1314 = vmatmul.mubr.bf16.gmra.mxu0 %v9753_v41  ;;  %13907 = vst [vmem:[#allocation29_spill] sm:$0xff] %v9809_v35 }
  0xab   :  { %v8872_v37 = vcombine.high %v289_v32, %v290_v33  ;;  %v255_v38 = vld [vmem:[#allocation2 + $0x900] sm:$0xff]  ;;  %1501 = vmatprep.subr.bf16.mxu0 %v8840_v36  ;;  %v8871_v49 = vcombine.low %v289_v32, %v290_v33  ;;  %1427 = vmatmul.mubr.bf16.gmra.mxu1 %v9761_v45 }
  0xac   :  { %v256_v39 = vld [vmem:[#allocation2 + $0x920] sm:$0xff]  ;;  %1502 = vmatpush1.bf16.msra.mxu0 %v8839_v46  ;;  %1436 = vmatprep.mubr.bf16.mxu1 %v9772_v57 }
  0xad   :  { %v287_v40 = vld [vmem:[#allocation2 + $0xd00] sm:$0xff]  ;;  %v8838_v50 = vcombine.high %v255_v38, %v256_v39  ;;  %1614 = vmatprep.subr.bf16.mxu1 %v8872_v37  ;;  %v8837_v0 = vcombine.low %v255_v38, %v256_v39  ;;  %v152_v37 = vld [vmem:[%s13682_s0 + $0x108] sm:$0xff] }
  0xae   :  { %v288_v42 = vld [vmem:[#allocation2 + $0xd20] sm:$0xff]  ;;  %1615 = vmatpush1.bf16.msra.mxu1 %v8871_v49  ;;  %v156_v38 = vld [vmem:[%s13682_s0 + $0x128] sm:$0xff] }
  0xaf   :  { %v135_v43 = vld [vmem:[%s13682_s0 + $0x80] sm:$0xff]  ;;  %v8870_v51 = vcombine.high %v287_v40, %v288_v42  ;;  %1503 = vmatprep.subr.bf16.mxu0 %v8838_v50  ;;  %v8869_v1 = vcombine.low %v287_v40, %v288_v42  ;;  %v9820_v47 = vcombine.high %v152_v37, %v156_v38 }
  0xb0   :  { %v139_v44 = vld [vmem:[%s13682_s0 + $0xa0] sm:$0xff]  ;;  %1504 = vmatpush1.bf16.msra.mxu0 %v8837_v0 }
  0xb1   :  { %v9769_v52 = vcombine.high %v135_v43, %v139_v44  ;;  %v253_v53 = vld [vmem:[#allocation2 + $0x8c0] sm:$0xff]  ;;  %1616 = vmatprep.subr.bf16.mxu1 %v8870_v51  ;;  %v9777_v7 = vcombine.low %v135_v43, %v139_v44  ;;  %13909 = vst [vmem:[#allocation31_spill] sm:$0xff] %v9820_v47 }
  0xb2   :  { %v254_v56 = vld [vmem:[#allocation2 + $0x8e0] sm:$0xff]  ;;  %1617 = vmatpush1.bf16.msra.mxu1 %v8869_v1 }
  0xb3   :  { %13900 = vst [vmem:[#allocation22_spill] sm:$0xff] %v9769_v52  ;;  %v285_v61 = vld [vmem:[#allocation2 + $0xcc0] sm:$0xff]  ;;  %v8836_v2 = vcombine.high %v253_v53, %v254_v56  ;;  %1323 = vmatprep.mubr.bf16.mxu0 %v9769_v52  ;;  %13902 = vst [vmem:[#allocation24_spill] sm:$0xff] %v9777_v7  ;;  %v8835_v12 = vcombine.low %v253_v53, %v254_v56  ;;  %1437 = vmatmul.mubr.bf16.gmra.mxu1 %v9785_v11 }
  0xb4   :  { %v286_v62 = vld [vmem:[#allocation2 + $0xce0] sm:$0xff]  ;;  %1324 = vmatmul.mubr.bf16.gmra.mxu0 %v9777_v7  ;;  %1446 = vmatprep.mubr.bf16.mxu1 %v9796_v22 }
  0xb5   :  { %v8868_v3 = vcombine.high %v285_v61, %v286_v62  ;;  %v251_v4 = vld [vmem:[#allocation2 + $0x880] sm:$0xff]  ;;  %1505 = vmatprep.subr.bf16.mxu0 %v8836_v2  ;;  %v8867_v15 = vcombine.low %v285_v61, %v286_v62 }
  0xb6   :  { %v252_v5 = vld [vmem:[#allocation2 + $0x8a0] sm:$0xff]  ;;  %1506 = vmatpush1.bf16.msra.mxu0 %v8835_v12 }
  0xb7   :  { %v283_v6 = vld [vmem:[#allocation2 + $0xc80] sm:$0xff]  ;;  %v8834_v16 = vcombine.high %v251_v4, %v252_v5  ;;  %1618 = vmatprep.subr.bf16.mxu1 %v8868_v3  ;;  %v8833_v26 = vcombine.low %v251_v4, %v252_v5  ;;  %v160_v5 = vld [vmem:[%s13682_s0 + $0x148] sm:$0xff] }
  0xb8   :  { %v284_v8 = vld [vmem:[#allocation2 + $0xca0] sm:$0xff]  ;;  %1619 = vmatpush1.bf16.msra.mxu1 %v8867_v15 }
  0xb9   :  { %v143_v9 = vld [vmem:[%s13682_s0 + $0xc0] sm:$0xff]  ;;  %v8866_v17 = vcombine.high %v283_v6, %v284_v8  ;;  %1507 = vmatprep.subr.bf16.mxu0 %v8834_v16  ;;  %v8865_v54 = vcombine.low %v283_v6, %v284_v8  ;;  %v164_v6 = vld [vmem:[%s13682_s0 + $0x168] sm:$0xff]  ;;  %v9839_v8 = vcombine.low %v152_v37, %v156_v38 }
  0xba   :  { %v147_v10 = vld [vmem:[%s13682_s0 + $0xe0] sm:$0xff]  ;;  %1508 = vmatpush1.bf16.msra.mxu0 %v8833_v26  ;;  %v9863_v37 = vcombine.low %v160_v5, %v164_v6 }
  0xbb   :  { %v9793_v18 = vcombine.high %v143_v9, %v147_v10  ;;  %v249_v19 = vld [vmem:[#allocation2 + $0x840] sm:$0xff]  ;;  %1620 = vmatprep.subr.bf16.mxu1 %v8866_v17  ;;  %v9801_v59 = vcombine.low %v143_v9, %v147_v10  ;;  %1447 = vmatmul.mubr.bf16.gmra.mxu1 %v9809_v35  ;;  %13911 = vst [vmem:[#allocation33_spill] sm:$0xff] %v9839_v8 }
  0xbc   :  { %v250_v20 = vld [vmem:[#allocation2 + $0x860] sm:$0xff]  ;;  %1621 = vmatpush1.bf16.msra.mxu1 %v8865_v54  ;;  %1456 = vmatprep.mubr.bf16.mxu1 %v9820_v47  ;;  %v9844_v17 = vcombine.high %v160_v5, %v164_v6  ;;  %13915 = vst [vmem:[#allocation37_spill] sm:$0xff] %v9863_v37 }
  0xbd   :  { %13904 = vst [vmem:[#allocation26_spill] sm:$0xff] %v9793_v18  ;;  %v281_v23 = vld [vmem:[#allocation2 + $0xc40] sm:$0xff]  ;;  %v8832_v55 = vcombine.high %v249_v19, %v250_v20  ;;  %1333 = vmatprep.mubr.bf16.mxu0 %v9793_v18  ;;  %13906 = vst [vmem:[#allocation28_spill] sm:$0xff] %v9801_v59  ;;  %v8831_v36 = vcombine.low %v249_v19, %v250_v20 }
  0xbe   :  { %v282_v24 = vld [vmem:[#allocation2 + $0xc60] sm:$0xff]  ;;  %1334 = vmatmul.mubr.bf16.gmra.mxu0 %v9801_v59  ;;  %13913 = vst [vmem:[#allocation35_spill] sm:$0xff] %v9844_v17 }
  0xbf   :  { %v8864_v27 = vcombine.high %v281_v23, %v282_v24  ;;  %v247_v28 = vld [vmem:[#allocation2 + $0x800] sm:$0xff]  ;;  %1509 = vmatprep.subr.bf16.mxu0 %v8832_v55  ;;  %v8863_v39 = vcombine.low %v281_v23, %v282_v24 }
  0xc0   :  { %v248_v29 = vld [vmem:[#allocation2 + $0x820] sm:$0xff]  ;;  %1510 = vmatpush1.bf16.msra.mxu0 %v8831_v36  ;;  %v172_v36 = vld [vmem:[%s13682_s0 + $0x1a8] sm:$0xff] }
  0xc1   :  { %v279_v31 = vld [vmem:[#allocation2 + $0xc00] sm:$0xff]  ;;  %v8830_v40 = vcombine.high %v247_v28, %v248_v29  ;;  %1622 = vmatprep.subr.bf16.mxu1 %v8864_v27  ;;  %v8829_v50 = vcombine.low %v247_v28, %v248_v29 }
  0xc2   :  { %v280_v32 = vld [vmem:[#allocation2 + $0xc20] sm:$0xff]  ;;  %1623 = vmatpush1.bf16.msra.mxu1 %v8863_v39 }
  0xc3   :  { %v151_v33 = vld [vmem:[%s13682_s0 + $0x100] sm:$0xff]  ;;  %v8862_v42 = vcombine.high %v279_v31, %v280_v32  ;;  %1511 = vmatprep.subr.bf16.mxu0 %v8830_v40  ;;  %v8861_v51 = vcombine.low %v279_v31, %v280_v32  ;;  %1457 = vmatmul.mubr.bf16.gmra.mxu1 %v9839_v8 }
  0xc4   :  { %v155_v34 = vld [vmem:[%s13682_s0 + $0x120] sm:$0xff]  ;;  %1512 = vmatpush1.bf16.msra.mxu0 %v8829_v50  ;;  %1466 = vmatprep.mubr.bf16.mxu1 %v9844_v17 }
  0xc5   :  { %v9817_v43 = vcombine.high %v151_v33, %v155_v34  ;;  %v277_v44 = vld [vmem:[#allocation2 + $0xbc0] sm:$0xff]  ;;  %1624 = vmatprep.subr.bf16.mxu1 %v8862_v42  ;;  %v9828_v3 = vcombine.low %v151_v33, %v155_v34  ;;  %v168_v34 = vld [vmem:[%s13682_s0 + $0x188] sm:$0xff] }
  0xc6   :  { %v278_v46 = vld [vmem:[#allocation2 + $0xbe0] sm:$0xff]  ;;  %1625 = vmatpush1.bf16.msra.mxu1 %v8861_v51 }
  0xc7   :  { %13908 = vst [vmem:[#allocation30_spill] sm:$0xff] %v9817_v43  ;;  %v309_v48 = vld [vmem:[#allocation2 + $0xfc0] sm:$0xff]  ;;  %v8860_v53 = vcombine.high %v277_v44, %v278_v46  ;;  %1343 = vmatprep.mubr.bf16.mxu0 %v9817_v43  ;;  %13910 = vst [vmem:[#allocation32_spill] sm:$0xff] %v9828_v3  ;;  %v8859_v9 = vcombine.low %v277_v44, %v278_v46 }
  0xc8   :  { %v310_v49 = vld [vmem:[#allocation2 + $0xfe0] sm:$0xff]  ;;  %1344 = vmatmul.mubr.bf16.gmra.mxu0 %v9828_v3 }
  0xc9   :  { %v275_v56 = vld [vmem:[#allocation2 + $0xb80] sm:$0xff]  ;;  %v8892_v62 = vcombine.high %v309_v48, %v310_v49  ;;  %1513 = vmatprep.subr.bf16.mxu0 %v8860_v53  ;;  %v8891_v10 = vcombine.low %v309_v48, %v310_v49  ;;  %v9868_v49 = vcombine.high %v168_v34, %v172_v36 }
  0xca   :  { %v276_v61 = vld [vmem:[#allocation2 + $0xba0] sm:$0xff]  ;;  %1514 = vmatpush2.bf16.msra.mxu0 %v8859_v9 }
  0xcb   :  { %v307_v0 = vld [vmem:[#allocation2 + $0xf80] sm:$0xff]  ;;  %v8858_v12 = vcombine.high %v275_v56, %v276_v61  ;;  %1626 = vmatprep.subr.bf16.mxu1 %v8892_v62  ;;  %v8857_v23 = vcombine.low %v275_v56, %v276_v61  ;;  %13917 = vst [vmem:[#allocation39_spill] sm:$0xff] %v9868_v49  ;;  %1467 = vmatmul.mubr.bf16.gmra.mxu1 %v9863_v37 }
  0xcc   :  { %v308_v1 = vld [vmem:[#allocation2 + $0xfa0] sm:$0xff]  ;;  %1627 = vmatpush2.bf16.msra.mxu1 %v8891_v10  ;;  %1476 = vmatprep.mubr.bf16.mxu1 %v9868_v49  ;;  %v176_v10 = vld [vmem:[%s13682_s0 + $0x1c8] sm:$0xff] }
  0xcd   :  { %v159_v2 = vld [vmem:[%s13682_s0 + $0x140] sm:$0xff]  ;;  %v8890_v15 = vcombine.high %v307_v0, %v308_v1  ;;  %1515 = vmatprep.subr.bf16.mxu0 %v8858_v12  ;;  %v8889_v54 = vcombine.low %v307_v0, %v308_v1  ;;  %v180_v12 = vld [vmem:[%s13682_s0 + $0x1e8] sm:$0xff] }
  0xce   :  { %v163_v4 = vld [vmem:[%s13682_s0 + $0x160] sm:$0xff]  ;;  %1516 = vmatpush2.bf16.msra.mxu0 %v8857_v23 }
  0xcf   :  { %v273_v13 = vld [vmem:[#allocation2 + $0xb40] sm:$0xff]  ;;  %v9841_v16 = vcombine.high %v159_v2, %v163_v4  ;;  %1628 = vmatprep.subr.bf16.mxu1 %v8890_v15  ;;  %v9855_v33 = vcombine.low %v159_v2, %v163_v4 }
  0xd0   :  { %v274_v14 = vld [vmem:[#allocation2 + $0xb60] sm:$0xff]  ;;  %1629 = vmatpush2.bf16.msra.mxu1 %v8889_v54  ;;  %v9892_v54 = vcombine.high %v176_v10, %v180_v12 }
  0xd1   :  { %13912 = vst [vmem:[#allocation34_spill] sm:$0xff] %v9841_v16  ;;  %v305_v19 = vld [vmem:[#allocation2 + $0xf40] sm:$0xff]  ;;  %v8856_v55 = vcombine.high %v273_v13, %v274_v14  ;;  %1353 = vmatprep.mubr.bf16.mxu0 %v9841_v16  ;;  %13914 = vst [vmem:[#allocation36_spill] sm:$0xff] %v9855_v33  ;;  %v8855_v38 = vcombine.low %v273_v13, %v274_v14  ;;  %v9887_v13 = vcombine.low %v168_v34, %v172_v36 }
  0xd2   :  { %v306_v20 = vld [vmem:[#allocation2 + $0xf60] sm:$0xff]  ;;  %1354 = vmatmul.mubr.bf16.gmra.mxu0 %v9855_v33  ;;  %13921 = vst [vmem:[#allocation43_spill] sm:$0xff] %v9892_v54 }
  0xd3   :  { %v271_v24 = vld [vmem:[#allocation2 + $0xb00] sm:$0xff]  ;;  %v8888_v32 = vcombine.high %v305_v19, %v306_v20  ;;  %1517 = vmatprep.subr.bf16.mxu0 %v8856_v55  ;;  %v8887_v39 = vcombine.low %v305_v19, %v306_v20  ;;  %13919 = vst [vmem:[#allocation41_spill] sm:$0xff] %v9887_v13  ;;  %1477 = vmatmul.mubr.bf16.gmra.mxu1 %v9887_v13 }
  0xd4   :  { %v272_v26 = vld [vmem:[#allocation2 + $0xb20] sm:$0xff]  ;;  %1518 = vmatpush2.bf16.msra.mxu0 %v8855_v38  ;;  %1486 = vmatprep.mubr.bf16.mxu1 %v9892_v54 }
  0xd5   :  { %v303_v27 = vld [vmem:[#allocation2 + $0xf00] sm:$0xff]  ;;  %v8854_v40 = vcombine.high %v271_v24, %v272_v26  ;;  %1630 = vmatprep.subr.bf16.mxu1 %v8888_v32  ;;  %v8853_v53 = vcombine.low %v271_v24, %v272_v26 }
  0xd6   :  { %v304_v28 = vld [vmem:[#allocation2 + $0xf20] sm:$0xff]  ;;  %1631 = vmatpush2.bf16.msra.mxu1 %v8887_v39 }
  0xd7   :  { %v167_v29 = vld [vmem:[%s13682_s0 + $0x180] sm:$0xff]  ;;  %v8886_v46 = vcombine.high %v303_v27, %v304_v28  ;;  %1519 = vmatprep.subr.bf16.mxu0 %v8854_v40  ;;  %v8885_v62 = vcombine.low %v303_v27, %v304_v28 }
  0xd8   :  { %v171_v31 = vld [vmem:[%s13682_s0 + $0x1a0] sm:$0xff]  ;;  %1520 = vmatpush2.bf16.msra.mxu0 %v8853_v53  ;;  %v126_v53 = vld [vmem:[%s13682_s0 + $0x38] sm:$0xff] }
  0xd9   :  { %v269_v42 = vld [vmem:[#allocation2 + $0xac0] sm:$0xff]  ;;  %v9865_v48 = vcombine.high %v167_v29, %v171_v31  ;;  %1632 = vmatprep.subr.bf16.mxu1 %v8886_v46  ;;  %v9879_v9 = vcombine.low %v167_v29, %v171_v31  ;;  %v9905_v46 = vcombine.low %v176_v10, %v180_v12  ;;  %v2208_v10 = vld [vmem:[#allocation2 + $0x5e8] sm:$0xff] }
  0xda   :  { %v270_v44 = vld [vmem:[#allocation2 + $0xae0] sm:$0xff]  ;;  %1633 = vmatpush2.bf16.msra.mxu1 %v8885_v62 }
  0xdb   :  { %13916 = vst [vmem:[#allocation38_spill] sm:$0xff] %v9865_v48  ;;  %v301_v50 = vld [vmem:[#allocation2 + $0xec0] sm:$0xff]  ;;  %v8852_v0 = vcombine.high %v269_v42, %v270_v44  ;;  %1363 = vmatprep.mubr.bf16.mxu0 %v9865_v48  ;;  %13918 = vst [vmem:[#allocation40_spill] sm:$0xff] %v9879_v9  ;;  %v8851_v14 = vcombine.low %v269_v42, %v270_v44  ;;  %v121_v42 = vld [vmem:[%s13682_s0 + $0x10] sm:$0xff]  ;;  %1487 = vmatmul.mubr.bf16.gmra.mxu1 %v9905_v46 }
  0xdc   :  { %v302_v51 = vld [vmem:[#allocation2 + $0xee0] sm:$0xff]  ;;  %1364 = vmatmul.mubr.bf16.gmra.mxu0 %v9879_v9  ;;  %v125_v44 = vld [vmem:[%s13682_s0 + $0x30] sm:$0xff]  ;;  %13923 = vst [vmem:[#allocation45_spill] sm:$0xff] %v9905_v46 }
  0xdd   :  { %v267_v56 = vld [vmem:[#allocation2 + $0xa80] sm:$0xff]  ;;  %v8884_v6 = vcombine.high %v301_v50, %v302_v51  ;;  %1521 = vmatprep.subr.bf16.mxu0 %v8852_v0  ;;  %v8883_v15 = vcombine.low %v301_v50, %v302_v51  ;;  %v122_v51 = vld [vmem:[%s13682_s0 + $0x18] sm:$0xff]  ;;  %v9913_v0 = vcombine.high %v121_v42, %v125_v44 }
  0xde   :  { %v268_v61 = vld [vmem:[#allocation2 + $0xaa0] sm:$0xff]  ;;  %1522 = vmatpush2.bf16.msra.mxu0 %v8851_v14 }
  0xdf   :  { %v299_v1 = vld [vmem:[#allocation2 + $0xe80] sm:$0xff]  ;;  %v8850_v19 = vcombine.high %v267_v56, %v268_v61  ;;  %1634 = vmatprep.subr.bf16.mxu1 %v8884_v6  ;;  %v8849_v28 = vcombine.low %v267_v56, %v268_v61  ;;  %13924 = vst [vmem:[#allocation46_spill] sm:$0xff] %v9913_v0  ;;  %v2207_v6 = vld [vmem:[#allocation2 + $0x5c8] sm:$0xff] }
  0xe0   :  { %v300_v2 = vld [vmem:[#allocation2 + $0xea0] sm:$0xff]  ;;  %1635 = vmatpush2.bf16.msra.mxu1 %v8883_v15 }
  0xe1   :  { %v175_v4 = vld [vmem:[%s13682_s0 + $0x1c0] sm:$0xff]  ;;  %v8882_v24 = vcombine.high %v299_v1, %v300_v2  ;;  %1523 = vmatprep.subr.bf16.mxu0 %v8850_v19  ;;  %v8881_v29 = vcombine.low %v299_v1, %v300_v2  ;;  %v2175_v1 = vld [vmem:[#allocation2 + $0x1c8] sm:$0xff]  ;;  %v8940_v19 = vcombine.high %v2207_v6, %v2208_v10 }
  0xe2   :  { %v179_v5 = vld [vmem:[%s13682_s0 + $0x1e0] sm:$0xff]  ;;  %1524 = vmatpush2.bf16.msra.mxu0 %v8849_v28  ;;  %v2176_v2 = vld [vmem:[#allocation2 + $0x1e8] sm:$0xff]  ;;  %v129_v28 = vld [vmem:[%s13682_s0 + $0x50] sm:$0xff] }
  0xe3   :  { %v265_v20 = vld [vmem:[#allocation2 + $0xa40] sm:$0xff]  ;;  %v9889_v26 = vcombine.high %v175_v4, %v179_v5  ;;  %1636 = vmatprep.subr.bf16.mxu1 %v8882_v24  ;;  %v9897_v39 = vcombine.low %v175_v4, %v179_v5  ;;  %v13692_v4 = vmov 0.0   ;;  %v9918_v5 = vcombine.high %v122_v51, %v126_v53  ;;  %v2205_v24 = vld [vmem:[#allocation2 + $0x588] sm:$0xff] }
  0xe4   :  { %v266_v23 = vld [vmem:[#allocation2 + $0xa60] sm:$0xff]  ;;  %1637 = vmatpush2.bf16.msra.mxu1 %v8881_v29  ;;  %3561 = vrot.lane.b32.xlu1 %v13692_v4, %s9615_s1  ;;  %v8908_v15 = vcombine.high %v2175_v1, %v2176_v2  ;;  %v133_v29 = vld [vmem:[%s13682_s0 + $0x70] sm:$0xff] }
  0xe5   :  { %13920 = vst [vmem:[#allocation42_spill] sm:$0xff] %v9889_v26  ;;  %v297_v55 = vld [vmem:[#allocation2 + $0xe40] sm:$0xff]  ;;  %v8848_v31 = vcombine.high %v265_v20, %v266_v23  ;;  %1373 = vmatprep.mubr.bf16.mxu0 %v9889_v26  ;;  %13922 = vst [vmem:[#allocation44_spill] sm:$0xff] %v9897_v39  ;;  %v8847_v50 = vcombine.low %v265_v20, %v266_v23  ;;  %v2173_v20 = vld [vmem:[#allocation2 + $0x188] sm:$0xff]  ;;  %1642 = vmatprep.mubr.bf16.mxu1 %v9918_v5 }
  0xe6   :  { %v298_v27 = vld [vmem:[#allocation2 + $0xe60] sm:$0xff]  ;;  %1374 = vmatmul.mubr.bf16.gmra.mxu0 %v9897_v39  ;;  %13925 = vst [vmem:[#allocation47_spill] sm:$0xff] %v9918_v5  ;;  %v2174_v23 = vld [vmem:[#allocation2 + $0x1a8] sm:$0xff]  ;;  %3458 = vrot.lane.b32.xlu0 %v13692_v4, %s9616_s5 }
  0xe7   :  { %v8880_v32 = vcombine.high %v297_v55, %v298_v27  ;;  %v263_v34 = vld [vmem:[#allocation2 + $0xa00] sm:$0xff]  ;;  %1525 = vmatprep.subr.bf16.mxu0 %v8848_v31  ;;  %v8879_v56 = vcombine.low %v297_v55, %v298_v27  ;;  %1529 = vmatprep.mubr.bf16.mxu0 %v9913_v0  ;;  %v9922_v55 = vcombine.low %v121_v42, %v125_v44  ;;  %v2206_v27 = vld [vmem:[#allocation2 + $0x5a8] sm:$0xff] }
  0xe8   :  { %v264_v36 = vld [vmem:[#allocation2 + $0xa20] sm:$0xff]  ;;  %1526 = vmatpush2.bf16.msra.mxu0 %v8847_v50  ;;  %5293 = vrot.lane.b32.xlu1 %v13692_v4, %s9610_s30  ;;  %v9933_v31 = vcombine.low %v122_v51, %v126_v53  ;;  %v8906_v42 = vcombine.high %v2173_v20, %v2174_v23  ;;  %v8938_v44 = vcombine.high %v2205_v24, %v2206_v27  ;;  %v2171_v51 = vld [vmem:[#allocation2 + $0x148] sm:$0xff] }
  0xe9   :  { %v295_v38 = vld [vmem:[#allocation2 + $0xe00] sm:$0xff]  ;;  %v8846_v61 = vcombine.high %v263_v34, %v264_v36  ;;  %1638 = vmatprep.subr.bf16.mxu1 %v8880_v32  ;;  %v8845_v12 = vcombine.low %v263_v34, %v264_v36  ;;  %13926 = vst [vmem:[#allocation48_spill] sm:$0xff] %v9922_v55  ;;  %v8907_v32 = vcombine.low %v2175_v1, %v2176_v2  ;;  %v130_v34 = vld [vmem:[%s13682_s0 + $0x58] sm:$0xff]  ;;  %v2172_v53 = vld [vmem:[#allocation2 + $0x168] sm:$0xff] }
  0xea   :  { %v296_v40 = vld [vmem:[#allocation2 + $0xe20] sm:$0xff]  ;;  %1639 = vmatpush2.bf16.msra.mxu1 %v8879_v56  ;;  %13927 = vst [vmem:[#allocation49_spill] sm:$0xff] %v9933_v31  ;;  %v134_v36 = vld [vmem:[%s13682_s0 + $0x78] sm:$0xff]  ;;  %v9943_v50 = vcombine.high %v129_v28, %v133_v29  ;;  %v8905_v1 = vcombine.low %v2173_v20, %v2174_v23  ;;  %v9951_v4 = vcombine.low %v129_v28, %v133_v29  ;;  %v137_v20 = vld [vmem:[%s13682_s0 + $0x90] sm:$0xff] }
  0xeb   :  { %v8878_v62 = vcombine.high %v295_v38, %v296_v40  ;;  %1527 = vmatprep.subr.bf16.mxu0 %v8846_v61  ;;  %v8877_v14 = vcombine.low %v295_v38, %v296_v40  ;;  %v9277_v38 = vld [vmem:[#allocation8] ss:$0 sm:$0xff]  ;;  %v8939_v40 = vcombine.low %v2207_v6, %v2208_v10  ;;  %v9946_v56 = vcombine.high %v130_v34, %v134_v36  ;;  %v2203_v61 = vld [vmem:[#allocation2 + $0x548] sm:$0xff]  ;;  %v9278_v2 = vld [vmem:[#allocation10] ss:$0 sm:$0xff] }
  0xec   :  { %1528 = vmatpush2.bf16.msra.mxu0 %v8845_v12  ;;  %13928 = vst [vmem:[#allocation50_spill] sm:$0xff] %v9943_v50  ;;  %6976 = vrot.lane.b32.xlu1 %v9277_v38, %s9610_s30  ;;  %v8937_v6 = vcombine.low %v2205_v24, %v2206_v27  ;;  %v8904_v10 = vcombine.high %v2171_v51, %v2172_v53  ;;  %13930 = vst [vmem:[#allocation52_spill] sm:$0xff] %v9951_v4  ;;  %v2202_v38 = vld [vmem:[#allocation2 + $0x528] sm:$0xff]  ;;  %v141_v23 = vld [vmem:[%s13682_s0 + $0xb0] sm:$0xff] }
  0xed   :  { %1640 = vmatprep.subr.bf16.mxu1 %v8878_v62  ;;  %2929 = vmatprep.subr.bf16.mxu0 %v8908_v15  ;;  %13929 = vst [vmem:[#allocation51_spill] sm:$0xff] %v9946_v56  ;;  %v2204_v62 = vld [vmem:[#allocation2 + $0x568] sm:$0xff]  ;;  %v8903_v24 = vcombine.low %v2171_v51, %v2172_v53  ;;  %v9961_v27 = vcombine.low %v130_v34, %v134_v36  ;;  %v138_v28 = vld [vmem:[%s13682_s0 + $0x98] sm:$0xff] }
  0xee   :  { %1641 = vmatpush2.bf16.msra.mxu1 %v8877_v14  ;;  %v8936_v12 = vcombine.high %v2203_v61, %v2204_v62  ;;  %v2169_v14 = vld [vmem:[#allocation2 + $0x108] sm:$0xff]  ;;  %6987 = vrot.lane.b32.xlu0 %v9278_v2, %s9610_s30  ;;  %v142_v29 = vld [vmem:[%s13682_s0 + $0xb8] sm:$0xff] }
  0xef   :  { %3042 = vmatprep.subr.bf16.mxu1 %v8940_v19  ;;  %1530 = vmatmul.mubr.bf16.vlgmr.msra.gmra.mxu0 %v9922_v55  ;;  %v2170_v15 = vld [vmem:[#allocation2 + $0x128] sm:$0xff]  ;;  %13931 = vst [vmem:[#allocation53_spill] sm:$0xff] %v9961_v27  ;;  %v9972_v34 = vcombine.high %v138_v28, %v142_v29 }
  0xf0   :  { %2930 = vmatpush1.bf16.msra.mxu0 %v8907_v32  ;;  %1539 = vmatprep.mubr.bf16.mxu0 %v9943_v50  ;;  %v2201_v19 = vld [vmem:[#allocation2 + $0x508] sm:$0xff]  ;;  %v8935_v32 = vcombine.low %v2203_v61, %v2204_v62  ;;  %v8901_v2 = vcombine.low %v2169_v14, %v2170_v15 }
  0xf1   :  { %1643 = vmatmul.mubr.bf16.vlgmr.msra.gmra.mxu1 %v9933_v31  ;;  %2931 = vmatprep.subr.bf16.mxu0 %v8906_v42  ;;  %v8934_v42 = vcombine.high %v2201_v19, %v2202_v38  ;;  %v2168_v51 = vld [vmem:[#allocation2 + $0xe8] sm:$0xff]  ;;  %13933 = vst [vmem:[#allocation55_spill] sm:$0xff] %v9972_v34  ;;  %v8933_v61 = vcombine.low %v2201_v19, %v2202_v38 }
  0xf2   :  { %3043 = vmatpush1.bf16.msra.mxu1 %v8939_v40  ;;  %1652 = vmatprep.mubr.bf16.mxu1 %v9946_v56  ;;  %v8902_v40 = vcombine.high %v2169_v14, %v2170_v15  ;;  %v2199_v36 = vld [vmem:[#allocation2 + $0x4c8] sm:$0xff]  ;;  %v145_v14 = vld [vmem:[%s13682_s0 + $0xd0] sm:$0xff]  ;;  %v9985_v38 = vcombine.low %v138_v28, %v142_v29 }
  0xf3   :  { %3044 = vmatprep.subr.bf16.mxu1 %v8938_v44  ;;  %v9969_v44 = vcombine.high %v137_v20, %v141_v23  ;;  %v2200_v53 = vld [vmem:[#allocation2 + $0x4e8] sm:$0xff]  ;;  %v149_v15 = vld [vmem:[%s13682_s0 + $0xf0] sm:$0xff] }
  0xf4   :  { %2932 = vmatpush1.bf16.msra.mxu0 %v8905_v1  ;;  %v2167_v1 = vld [vmem:[#allocation2 + $0xc8] sm:$0xff]  ;;  %13935 = vst [vmem:[#allocation57_spill] sm:$0xff] %v9985_v38 }
  0xf5   :  { %2933 = vmatprep.subr.bf16.mxu0 %v8904_v10  ;;  %13932 = vst [vmem:[#allocation54_spill] sm:$0xff] %v9969_v44  ;;  %v8900_v62 = vcombine.high %v2167_v1, %v2168_v51  ;;  %v2165_v10 = vld [vmem:[#allocation2 + $0x88] sm:$0xff]  ;;  %v8899_v19 = vcombine.low %v2167_v1, %v2168_v51 }
  0xf6   :  { %3045 = vmatpush1.bf16.msra.mxu1 %v8937_v6  ;;  %v8932_v6 = vcombine.high %v2199_v36, %v2200_v53  ;;  %v2197_v56 = vld [vmem:[#allocation2 + $0x488] sm:$0xff] }
  0xf7   :  { %3046 = vmatprep.subr.bf16.mxu1 %v8936_v12  ;;  %1540 = vmatmul.mubr.bf16.gmra.mxu0 %v9951_v4  ;;  %v2166_v12 = vld [vmem:[#allocation2 + $0xa8] sm:$0xff]  ;;  %v9976_v4 = vcombine.low %v137_v20, %v141_v23  ;;  %v146_v20 = vld [vmem:[%s13682_s0 + $0xd8] sm:$0xff] }
  0xf8   :  { %2934 = vmatpush1.bf16.msra.mxu0 %v8903_v24  ;;  %1549 = vmatprep.mubr.bf16.mxu0 %v9969_v44  ;;  %v2198_v50 = vld [vmem:[#allocation2 + $0x4a8] sm:$0xff]  ;;  %v150_v23 = vld [vmem:[%s13682_s0 + $0xf8] sm:$0xff]  ;;  %v8931_v24 = vcombine.low %v2199_v36, %v2200_v53 }
  0xf9   :  { %1653 = vmatmul.mubr.bf16.gmra.mxu1 %v9961_v27  ;;  %2935 = vmatprep.subr.bf16.mxu0 %v8902_v40  ;;  %13934 = vst [vmem:[#allocation56_spill] sm:$0xff] %v9976_v4  ;;  %v8930_v40 = vcombine.high %v2197_v56, %v2198_v50  ;;  %v2164_v1 = vld [vmem:[#allocation2 + $0x68] sm:$0xff]  ;;  %v9996_v28 = vcombine.high %v146_v20, %v150_v23 }
  0xfa   :  { %3047 = vmatpush1.bf16.msra.mxu1 %v8935_v32  ;;  %1662 = vmatprep.mubr.bf16.mxu1 %v9972_v34  ;;  %v8898_v32 = vcombine.high %v2165_v10, %v2166_v12  ;;  %v2195_v29 = vld [vmem:[#allocation2 + $0x448] sm:$0xff]  ;;  %v8897_v34 = vcombine.low %v2165_v10, %v2166_v12  ;;  %v8929_v36 = vcombine.low %v2197_v56, %v2198_v50  ;;  %v153_v10 = vld [vmem:[%s13682_s0 + $0x110] sm:$0xff] }
  0xfb   :  { %3048 = vmatprep.subr.bf16.mxu1 %v8934_v42  ;;  %v9993_v42 = vcombine.high %v145_v14, %v149_v15  ;;  %13937 = vst [vmem:[#allocation59_spill] sm:$0xff] %v9996_v28  ;;  %v2196_v51 = vld [vmem:[#allocation2 + $0x468] sm:$0xff]  ;;  %v157_v50 = vld [vmem:[%s13682_s0 + $0x130] sm:$0xff]  ;;  %v10009_v12 = vcombine.low %v146_v20, %v150_v23 }
  0xfc   :  { %2936 = vmatpush1.bf16.msra.mxu0 %v8901_v2  ;;  %v2163_v2 = vld [vmem:[#allocation2 + $0x48] sm:$0xff] }
  0xfd   :  { %2937 = vmatprep.subr.bf16.mxu0 %v8900_v62  ;;  %13936 = vst [vmem:[#allocation58_spill] sm:$0xff] %v9993_v42  ;;  %v8896_v53 = vcombine.high %v2163_v2, %v2164_v1  ;;  %v2161_v62 = vld [vmem:[#allocation2 + $0x8] sm:$0xff]  ;;  %v8895_v56 = vcombine.low %v2163_v2, %v2164_v1  ;;  %13939 = vst [vmem:[#allocation61_spill] sm:$0xff] %v10009_v12 }
  0xfe   :  { %3049 = vmatpush1.bf16.msra.mxu1 %v8933_v61  ;;  %v8928_v61 = vcombine.high %v2195_v29, %v2196_v51  ;;  %v2193_v44 = vld [vmem:[#allocation2 + $0x408] sm:$0xff] }
  0xff   :  { %3050 = vmatprep.subr.bf16.mxu1 %v8932_v6  ;;  %1550 = vmatmul.mubr.bf16.gmra.mxu0 %v9976_v4  ;;  %v2162_v6 = vld [vmem:[#allocation2 + $0x28] sm:$0xff]  ;;  %v10000_v4 = vcombine.low %v145_v14, %v149_v15  ;;  %v154_v14 = vld [vmem:[%s13682_s0 + $0x118] sm:$0xff] }
 0x100   :  { %2938 = vmatpush1.bf16.msra.mxu0 %v8899_v19  ;;  %1559 = vmatprep.mubr.bf16.mxu0 %v9993_v42  ;;  %v2194_v27 = vld [vmem:[#allocation2 + $0x428] sm:$0xff]  ;;  %v158_v15 = vld [vmem:[%s13682_s0 + $0x138] sm:$0xff]  ;;  %v8927_v19 = vcombine.low %v2195_v29, %v2196_v51 }
 0x101   :  { %1663 = vmatmul.mubr.bf16.gmra.mxu1 %v9985_v38  ;;  %2939 = vmatprep.subr.bf16.mxu0 %v8898_v32  ;;  %13938 = vst [vmem:[#allocation60_spill] sm:$0xff] %v10000_v4  ;;  %v8926_v32 = vcombine.high %v2193_v44, %v2194_v27  ;;  %v2192_v2 = vld [vmem:[#allocation2 + $0x3e8] sm:$0xff]  ;;  %v10020_v20 = vcombine.high %v154_v14, %v158_v15 }
 0x102   :  { %3051 = vmatpush1.bf16.msra.mxu1 %v8931_v24  ;;  %1672 = vmatprep.mubr.bf16.mxu1 %v9996_v28  ;;  %v8894_v24 = vcombine.high %v2161_v62, %v2162_v6  ;;  %v2223_v23 = vld [vmem:[#allocation2 + $0x7c8] sm:$0xff]  ;;  %v8893_v28 = vcombine.low %v2161_v62, %v2162_v6  ;;  %v8925_v29 = vcombine.low %v2193_v44, %v2194_v27  ;;  %v161_v62 = vld [vmem:[%s13682_s0 + $0x150] sm:$0xff] }
 0x103   :  { %3052 = vmatprep.subr.bf16.mxu1 %v8930_v40  ;;  %v10017_v40 = vcombine.high %v153_v10, %v157_v50  ;;  %13941 = vst [vmem:[#allocation63_spill] sm:$0xff] %v10020_v20  ;;  %v2224_v1 = vld [vmem:[#allocation2 + $0x7e8] sm:$0xff]  ;;  %v165_v27 = vld [vmem:[%s13682_s0 + $0x170] sm:$0xff]  ;;  %v10033_v6 = vcombine.low %v154_v14, %v158_v15 }
 0x104   :  { %2940 = vmatpush1.bf16.msra.mxu0 %v8897_v34  ;;  %v2191_v34 = vld [vmem:[#allocation2 + $0x3c8] sm:$0xff] }
 0x105   :  { %2941 = vmatprep.subr.bf16.mxu0 %v8896_v53  ;;  %13940 = vst [vmem:[#allocation62_spill] sm:$0xff] %v10017_v40  ;;  %v8924_v51 = vcombine.high %v2191_v34, %v2192_v2  ;;  %v2189_v53 = vld [vmem:[#allocation2 + $0x388] sm:$0xff]  ;;  %v8923_v44 = vcombine.low %v2191_v34, %v2192_v2  ;;  %13943 = vst [vmem:[#allocation65_spill] sm:$0xff] %v10033_v6 }
 0x106   :  { %3053 = vmatpush1.bf16.msra.mxu1 %v8929_v36  ;;  %v8956_v36 = vcombine.high %v2223_v23, %v2224_v1  ;;  %v2221_v42 = vld [vmem:[#allocation2 + $0x788] sm:$0xff] }
 0x107   :  { %3054 = vmatprep.subr.bf16.mxu1 %v8928_v61  ;;  %1560 = vmatmul.mubr.bf16.gmra.mxu0 %v10000_v4  ;;  %v2190_v61 = vld [vmem:[#allocation2 + $0x3a8] sm:$0xff]  ;;  %v10024_v4 = vcombine.low %v153_v10, %v157_v50  ;;  %v162_v10 = vld [vmem:[%s13682_s0 + $0x158] sm:$0xff] }
 0x108   :  { %2942 = vmatpush1.bf16.msra.mxu0 %v8895_v56  ;;  %1569 = vmatprep.mubr.bf16.mxu0 %v10017_v40  ;;  %v2222_v38 = vld [vmem:[#allocation2 + $0x7a8] sm:$0xff]  ;;  %v166_v50 = vld [vmem:[%s13682_s0 + $0x178] sm:$0xff]  ;;  %v8955_v56 = vcombine.low %v2223_v23, %v2224_v1 }
 0x109   :  { %1673 = vmatmul.mubr.bf16.gmra.mxu1 %v10009_v12  ;;  %2943 = vmatprep.subr.bf16.mxu0 %v8894_v24  ;;  %13942 = vst [vmem:[#allocation64_spill] sm:$0xff] %v10024_v4  ;;  %v8954_v24 = vcombine.high %v2221_v42, %v2222_v38  ;;  %v2188_v34 = vld [vmem:[#allocation2 + $0x368] sm:$0xff]  ;;  %v10044_v14 = vcombine.high %v162_v10, %v166_v50 }
 0x10a   :  { %3055 = vmatpush1.bf16.msra.mxu1 %v8927_v19  ;;  %1682 = vmatprep.mubr.bf16.mxu1 %v10020_v20  ;;  %v8922_v19 = vcombine.high %v2189_v53, %v2190_v61  ;;  %v2219_v15 = vld [vmem:[#allocation2 + $0x748] sm:$0xff]  ;;  %v8921_v20 = vcombine.low %v2189_v53, %v2190_v61  ;;  %v8953_v23 = vcombine.low %v2221_v42, %v2222_v38  ;;  %v169_v53 = vld [vmem:[%s13682_s0 + $0x190] sm:$0xff] }
 0x10b   :  { %3056 = vmatprep.subr.bf16.mxu1 %v8926_v32  ;;  %v10041_v32 = vcombine.high %v161_v62, %v165_v27  ;;  %13945 = vst [vmem:[#allocation67_spill] sm:$0xff] %v10044_v14  ;;  %v2220_v2 = vld [vmem:[#allocation2 + $0x768] sm:$0xff]  ;;  %v173_v38 = vld [vmem:[%s13682_s0 + $0x1b0] sm:$0xff]  ;;  %v10057_v61 = vcombine.low %v162_v10, %v166_v50 }
 0x10c   :  { %2944 = vmatpush1.bf16.msra.mxu0 %v8893_v28  ;;  %v2187_v28 = vld [vmem:[#allocation2 + $0x348] sm:$0xff] }
 0x10d   :  { %2945 = vmatprep.subr.bf16.mxu0 %v8924_v51  ;;  %13944 = vst [vmem:[#allocation66_spill] sm:$0xff] %v10041_v32  ;;  %v8920_v1 = vcombine.high %v2187_v28, %v2188_v34  ;;  %v2185_v51 = vld [vmem:[#allocation2 + $0x308] sm:$0xff]  ;;  %v8919_v42 = vcombine.low %v2187_v28, %v2188_v34  ;;  %13947 = vst [vmem:[#allocation69_spill] sm:$0xff] %v10057_v61 }
 0x10e   :  { %3057 = vmatpush1.bf16.msra.mxu1 %v8925_v29  ;;  %v8952_v29 = vcombine.high %v2219_v15, %v2220_v2  ;;  %v2217_v40 = vld [vmem:[#allocation2 + $0x708] sm:$0xff] }
 0x10f   :  { %3058 = vmatprep.subr.bf16.mxu1 %v8956_v36  ;;  %1570 = vmatmul.mubr.bf16.gmra.mxu0 %v10024_v4  ;;  %v2186_v36 = vld [vmem:[#allocation2 + $0x328] sm:$0xff]  ;;  %v10048_v4 = vcombine.low %v161_v62, %v165_v27  ;;  %v170_v62 = vld [vmem:[%s13682_s0 + $0x198] sm:$0xff] }
 0x110   :  { %2946 = vmatpush2.bf16.msra.mxu0 %v8923_v44  ;;  %1579 = vmatprep.mubr.bf16.mxu0 %v10041_v32  ;;  %v2218_v12 = vld [vmem:[#allocation2 + $0x728] sm:$0xff]  ;;  %v174_v27 = vld [vmem:[%s13682_s0 + $0x1b8] sm:$0xff]  ;;  %v8951_v44 = vcombine.low %v2219_v15, %v2220_v2 }
 0x111   :  { %1683 = vmatmul.mubr.bf16.gmra.mxu1 %v10033_v6  ;;  %2947 = vmatprep.subr.bf16.mxu0 %v8922_v19  ;;  %13946 = vst [vmem:[#allocation68_spill] sm:$0xff] %v10048_v4  ;;  %v8950_v19 = vcombine.high %v2217_v40, %v2218_v12  ;;  %v2184_v28 = vld [vmem:[#allocation2 + $0x2e8] sm:$0xff]  ;;  %v10068_v10 = vcombine.high %v170_v62, %v174_v27 }
 0x112   :  { %3059 = vmatpush2.bf16.msra.mxu1 %v8955_v56  ;;  %1692 = vmatprep.mubr.bf16.mxu1 %v10044_v14  ;;  %v8918_v56 = vcombine.high %v2185_v51, %v2186_v36  ;;  %v2215_v50 = vld [vmem:[#allocation2 + $0x6c8] sm:$0xff]  ;;  %v8917_v14 = vcombine.low %v2185_v51, %v2186_v36  ;;  %v8949_v15 = vcombine.low %v2217_v40, %v2218_v12  ;;  %v177_v51 = vld [vmem:[%s13682_s0 + $0x1d0] sm:$0xff] }
 0x113   :  { %3060 = vmatprep.subr.bf16.mxu1 %v8954_v24  ;;  %v10065_v24 = vcombine.high %v169_v53, %v173_v38  ;;  %13949 = vst [vmem:[#allocation71_spill] sm:$0xff] %v10068_v10  ;;  %v2216_v34 = vld [vmem:[#allocation2 + $0x6e8] sm:$0xff]  ;;  %v181_v12 = vld [vmem:[%s13682_s0 + $0x1f0] sm:$0xff]  ;;  %v10081_v36 = vcombine.low %v170_v62, %v174_v27 }
 0x114   :  { %2948 = vmatpush2.bf16.msra.mxu0 %v8921_v20  ;;  %v2183_v20 = vld [vmem:[#allocation2 + $0x2c8] sm:$0xff] }
 0x115   :  { %2949 = vmatprep.subr.bf16.mxu0 %v8920_v1  ;;  %13948 = vst [vmem:[#allocation70_spill] sm:$0xff] %v10065_v24  ;;  %v8916_v2 = vcombine.high %v2183_v20, %v2184_v28  ;;  %v2181_v1 = vld [vmem:[#allocation2 + $0x288] sm:$0xff]  ;;  %v8915_v40 = vcombine.low %v2183_v20, %v2184_v28  ;;  %13951 = vst [vmem:[#allocation73_spill] sm:$0xff] %v10081_v36 }
 0x116   :  { %3061 = vmatpush2.bf16.msra.mxu1 %v8953_v23  ;;  %v8948_v23 = vcombine.high %v2215_v50, %v2216_v34  ;;  %v2213_v32 = vld [vmem:[#allocation2 + $0x688] sm:$0xff] }
 0x117   :  { %3062 = vmatprep.subr.bf16.mxu1 %v8952_v29  ;;  %1580 = vmatmul.mubr.bf16.gmra.mxu0 %v10048_v4  ;;  %v2182_v29 = vld [vmem:[#allocation2 + $0x2a8] sm:$0xff]  ;;  %v10072_v4 = vcombine.low %v169_v53, %v173_v38  ;;  %v178_v53 = vld [vmem:[%s13682_s0 + $0x1d8] sm:$0xff] }
 0x118   :  { %2950 = vmatpush2.bf16.msra.mxu0 %v8919_v42  ;;  %1589 = vmatprep.mubr.bf16.mxu0 %v10065_v24  ;;  %v2214_v6 = vld [vmem:[#allocation2 + $0x6a8] sm:$0xff]  ;;  %v182_v38 = vld [vmem:[%s13682_s0 + $0x1f8] sm:$0xff]  ;;  %v8947_v42 = vcombine.low %v2215_v50, %v2216_v34  ;;  %v10096_v24 = vcombine.low %v177_v51, %v181_v12 }
 0x119   :  { %1693 = vmatmul.mubr.bf16.gmra.mxu1 %v10057_v61  ;;  %2951 = vmatprep.subr.bf16.mxu0 %v8918_v56  ;;  %13950 = vst [vmem:[#allocation72_spill] sm:$0xff] %v10072_v4  ;;  %v8946_v56 = vcombine.high %v2213_v32, %v2214_v6  ;;  %v2180_v20 = vld [vmem:[#allocation2 + $0x268] sm:$0xff]  ;;  %v10092_v62 = vcombine.high %v178_v53, %v182_v38 }
 0x11a   :  { %3063 = vmatpush2.bf16.msra.mxu1 %v8951_v44  ;;  %1702 = vmatprep.mubr.bf16.mxu1 %v10068_v10  ;;  %v8914_v44 = vcombine.high %v2181_v1, %v2182_v29  ;;  %v2211_v27 = vld [vmem:[#allocation2 + $0x648] sm:$0xff]  ;;  %v8913_v10 = vcombine.low %v2181_v1, %v2182_v29  ;;  %v8945_v50 = vcombine.low %v2213_v32, %v2214_v6 }
 0x11b   :  { %3064 = vmatprep.subr.bf16.mxu1 %v8950_v19  ;;  %v10089_v19 = vcombine.high %v177_v51, %v181_v12  ;;  %13953 = vst [vmem:[#allocation75_spill] sm:$0xff] %v10092_v62  ;;  %v2212_v28 = vld [vmem:[#allocation2 + $0x668] sm:$0xff]  ;;  %13954 = vst [vmem:[#allocation76_spill] sm:$0xff] %v10096_v24 }
 0x11c   :  { %2952 = vmatpush2.bf16.msra.mxu0 %v8917_v14  ;;  %v2179_v14 = vld [vmem:[#allocation2 + $0x248] sm:$0xff]  ;;  %v8943_v6 = vcombine.low %v2211_v27, %v2212_v28 }
 0x11d   :  { %2953 = vmatprep.subr.bf16.mxu0 %v8916_v2  ;;  %13952 = vst [vmem:[#allocation74_spill] sm:$0xff] %v10089_v19  ;;  %v8912_v34 = vcombine.high %v2179_v14, %v2180_v20  ;;  %v2177_v2 = vld [vmem:[#allocation2 + $0x208] sm:$0xff] }
 0x11e   :  { %3065 = vmatpush2.bf16.msra.mxu1 %v8949_v15  ;;  %v8944_v15 = vcombine.high %v2211_v27, %v2212_v28  ;;  %v2210_v61 = vld [vmem:[#allocation2 + $0x628] sm:$0xff] }
 0x11f   :  { %3066 = vmatprep.subr.bf16.mxu1 %v8948_v23  ;;  %1590 = vmatmul.mubr.bf16.gmra.mxu0 %v10072_v4  ;;  %v2178_v23 = vld [vmem:[#allocation2 + $0x228] sm:$0xff] }
 0x120   :  { %2954 = vmatpush2.bf16.msra.mxu0 %v8915_v40  ;;  %1599 = vmatprep.mubr.bf16.mxu0 %v10089_v19  ;;  %v2209_v4 = vld [vmem:[#allocation2 + $0x608] sm:$0xff]  ;;  %v8911_v40 = vcombine.low %v2179_v14, %v2180_v20  ;;  %v8910_v32 = vcombine.high %v2177_v2, %v2178_v23 }
 0x121   :  { %1703 = vmatmul.mubr.bf16.gmra.mxu1 %v10081_v36  ;;  %2955 = vmatprep.subr.bf16.mxu0 %v8914_v44  ;;  %v10099_v36 = vcombine.low %v178_v53, %v182_v38  ;;  %v8942_v1 = vcombine.high %v2209_v4, %v2210_v61  ;;  %v2239_v29 = vld [vmem:[#allocation2 + $0x9c8] sm:$0xff]  ;;  %v8909_v44 = vcombine.low %v2177_v2, %v2178_v23 }
 0x122   :  { %3067 = vmatpush2.bf16.msra.mxu1 %v8947_v42  ;;  %1712 = vmatprep.mubr.bf16.mxu1 %v10092_v62  ;;  %v2240_v42 = vld [vmem:[#allocation2 + $0x9e8] sm:$0xff] }
 0x123   :  { %3068 = vmatprep.subr.bf16.mxu1 %v8946_v56  ;;  %13955 = vst [vmem:[#allocation77_spill] sm:$0xff] %v10099_v36  ;;  %v2271_v51 = vld [vmem:[#allocation2 + $0xdc8] sm:$0xff]  ;;  %v8972_v53 = vcombine.high %v2239_v29, %v2240_v42  ;;  %v8971_v28 = vcombine.low %v2239_v29, %v2240_v42 }
 0x124   :  { %2956 = vmatpush2.bf16.msra.mxu0 %v8913_v10  ;;  %v2272_v12 = vld [vmem:[#allocation2 + $0xde8] sm:$0xff]  ;;  %v8941_v10 = vcombine.low %v2209_v4, %v2210_v61 }
 0x125   :  { %2957 = vmatprep.subr.bf16.mxu0 %v8912_v34  ;;  %v9004_v38 = vcombine.high %v2271_v51, %v2272_v12  ;;  %v2237_v56 = vld [vmem:[#allocation2 + $0x988] sm:$0xff] }
 0x126   :  { %3069 = vmatpush2.bf16.msra.mxu1 %v8945_v50  ;;  %v2238_v14 = vld [vmem:[#allocation2 + $0x9a8] sm:$0xff]  ;;  %v9003_v50 = vcombine.low %v2271_v51, %v2272_v12 }
 0x127   :  { %3070 = vmatprep.subr.bf16.mxu1 %v8944_v15  ;;  %1600 = vmatmul.mubr.bf16.gmra.mxu0 %v10096_v24  ;;  %v2269_v20 = vld [vmem:[#allocation2 + $0xd88] sm:$0xff]  ;;  %v8970_v34 = vcombine.high %v2237_v56, %v2238_v14 }
 0x128   :  { %2958 = vmatpush2.bf16.msra.mxu0 %v8911_v40  ;;  %2961 = vmatprep.mubr.bf16.mxu0 %v9707_v58  ;;  %v2270_v27 = vld [vmem:[#allocation2 + $0xda8] sm:$0xff]  ;;  %v8969_v40 = vcombine.low %v2237_v56, %v2238_v14 }
 0x129   :  { %1713 = vmatmul.mubr.bf16.gmra.mxu1 %v10099_v36  ;;  %2959 = vmatprep.subr.bf16.mxu0 %v8910_v32  ;;  %v9002_v15 = vcombine.high %v2269_v20, %v2270_v27  ;;  %v2235_v4 = vld [vmem:[#allocation2 + $0x948] sm:$0xff] }
 0x12a   :  { %3071 = vmatpush2.bf16.msra.mxu1 %v8943_v6  ;;  %3074 = vmatprep.mubr.bf16.mxu1 %v9721_v63  ;;  %v2236_v61 = vld [vmem:[#allocation2 + $0x968] sm:$0xff]  ;;  %v9001_v6 = vcombine.low %v2269_v20, %v2270_v27 }
 0x12b   :  { %3072 = vmatprep.subr.bf16.mxu1 %v8942_v1  ;;  %v2267_v2 = vld [vmem:[#allocation2 + $0xd48] sm:$0xff]  ;;  %v8968_v32 = vcombine.high %v2235_v4, %v2236_v61 }
 0x12c   :  { %2960 = vmatpush2.bf16.msra.mxu0 %v8909_v44  ;;  %v2268_v23 = vld [vmem:[#allocation2 + $0xd68] sm:$0xff]  ;;  %v8967_v44 = vcombine.low %v2235_v4, %v2236_v61 }
 0x12d   :  { %3155 = vmatprep.subr.bf16.mxu0 %v8972_v53  ;;  %v9000_v1 = vcombine.high %v2267_v2, %v2268_v23  ;;  %v2233_v29 = vld [vmem:[#allocation2 + $0x908] sm:$0xff] }
 0x12e   :  { %3073 = vmatpush2.bf16.msra.mxu1 %v8941_v10  ;;  %v2234_v42 = vld [vmem:[#allocation2 + $0x928] sm:$0xff]  ;;  %v8999_v10 = vcombine.low %v2267_v2, %v2268_v23 }
 0x12f   :  { %3268 = vmatprep.subr.bf16.mxu1 %v9004_v38  ;;  %2962 = vmatmul.mubr.bf16.vlgmr.msra.gmra.mxu0 %v9727_v21  ;;  %v2265_v51 = vld [vmem:[#allocation2 + $0xd08] sm:$0xff]  ;;  %v8966_v53 = vcombine.high %v2233_v29, %v2234_v42 }
 0x130   :  { %3156 = vmatpush1.bf16.msra.mxu0 %v8971_v28  ;;  %2971 = vmatprep.mubr.bf16.mxu0 %v9745_v30  ;;  %v2266_v12 = vld [vmem:[#allocation2 + $0xd28] sm:$0xff]  ;;  %v8965_v28 = vcombine.low %v2233_v29, %v2234_v42 }
 0x131   :  { %3075 = vmatmul.mubr.bf16.vlgmr.msra.gmra.mxu1 %v9737_v25  ;;  %3157 = vmatprep.subr.bf16.mxu0 %v8970_v34  ;;  %v8998_v38 = vcombine.high %v2265_v51, %v2266_v12  ;;  %v2231_v56 = vld [vmem:[#allocation2 + $0x8c8] sm:$0xff] }
 0x132   :  { %3269 = vmatpush1.bf16.msra.mxu1 %v9003_v50  ;;  %3084 = vmatprep.mubr.bf16.mxu1 %v9748_v60  ;;  %v2232_v14 = vld [vmem:[#allocation2 + $0x8e8] sm:$0xff]  ;;  %v8997_v50 = vcombine.low %v2265_v51, %v2266_v12 }
 0x133   :  { %3270 = vmatprep.subr.bf16.mxu1 %v9002_v15  ;;  %v2263_v20 = vld [vmem:[#allocation2 + $0xcc8] sm:$0xff]  ;;  %v8964_v34 = vcombine.high %v2231_v56, %v2232_v14 }
 0x134   :  { %3158 = vmatpush1.bf16.msra.mxu0 %v8969_v40  ;;  %v2264_v27 = vld [vmem:[#allocation2 + $0xce8] sm:$0xff]  ;;  %v8963_v40 = vcombine.low %v2231_v56, %v2232_v14 }
 0x135   :  { %3159 = vmatprep.subr.bf16.mxu0 %v8968_v32  ;;  %v8996_v15 = vcombine.high %v2263_v20, %v2264_v27  ;;  %v2229_v4 = vld [vmem:[#allocation2 + $0x888] sm:$0xff] }
 0x136   :  { %3271 = vmatpush1.bf16.msra.mxu1 %v9001_v6  ;;  %v2230_v61 = vld [vmem:[#allocation2 + $0x8a8] sm:$0xff]  ;;  %v8995_v6 = vcombine.low %v2263_v20, %v2264_v27 }
 0x137   :  { %3272 = vmatprep.subr.bf16.mxu1 %v9000_v1  ;;  %2972 = vmatmul.mubr.bf16.gmra.mxu0 %v9753_v41  ;;  %v2261_v2 = vld [vmem:[#allocation2 + $0xc88] sm:$0xff]  ;;  %v8962_v32 = vcombine.high %v2229_v4, %v2230_v61 }
 0x138   :  { %3160 = vmatpush1.bf16.msra.mxu0 %v8967_v44  ;;  %2981 = vmatprep.mubr.bf16.mxu0 %v9769_v52  ;;  %v2262_v23 = vld [vmem:[#allocation2 + $0xca8] sm:$0xff]  ;;  %v8961_v44 = vcombine.low %v2229_v4, %v2230_v61 }
 0x139   :  { %3085 = vmatmul.mubr.bf16.gmra.mxu1 %v9761_v45  ;;  %3161 = vmatprep.subr.bf16.mxu0 %v8966_v53  ;;  %v8994_v1 = vcombine.high %v2261_v2, %v2262_v23  ;;  %v2227_v29 = vld [vmem:[#allocation2 + $0x848] sm:$0xff] }
 0x13a   :  { %3273 = vmatpush1.bf16.msra.mxu1 %v8999_v10  ;;  %3094 = vmatprep.mubr.bf16.mxu1 %v9772_v57  ;;  %v2228_v42 = vld [vmem:[#allocation2 + $0x868] sm:$0xff]  ;;  %v8993_v10 = vcombine.low %v2261_v2, %v2262_v23 }
 0x13b   :  { %3274 = vmatprep.subr.bf16.mxu1 %v8998_v38  ;;  %v2259_v51 = vld [vmem:[#allocation2 + $0xc48] sm:$0xff]  ;;  %v8960_v53 = vcombine.high %v2227_v29, %v2228_v42 }
 0x13c   :  { %3162 = vmatpush1.bf16.msra.mxu0 %v8965_v28  ;;  %v2260_v12 = vld [vmem:[#allocation2 + $0xc68] sm:$0xff]  ;;  %v8959_v28 = vcombine.low %v2227_v29, %v2228_v42 }
 0x13d   :  { %3163 = vmatprep.subr.bf16.mxu0 %v8964_v34  ;;  %v8992_v38 = vcombine.high %v2259_v51, %v2260_v12  ;;  %v2225_v56 = vld [vmem:[#allocation2 + $0x808] sm:$0xff] }
 0x13e   :  { %3275 = vmatpush1.bf16.msra.mxu1 %v8997_v50  ;;  %v2226_v14 = vld [vmem:[#allocation2 + $0x828] sm:$0xff]  ;;  %v8991_v50 = vcombine.low %v2259_v51, %v2260_v12 }
 0x13f   :  { %3276 = vmatprep.subr.bf16.mxu1 %v8996_v15  ;;  %2982 = vmatmul.mubr.bf16.gmra.mxu0 %v9777_v7  ;;  %v2257_v20 = vld [vmem:[#allocation2 + $0xc08] sm:$0xff]  ;;  %v8958_v34 = vcombine.high %v2225_v56, %v2226_v14 }
 0x140   :  { %3164 = vmatpush1.bf16.msra.mxu0 %v8963_v40  ;;  %2991 = vmatprep.mubr.bf16.mxu0 %v9793_v18  ;;  %v2258_v27 = vld [vmem:[#allocation2 + $0xc28] sm:$0xff]  ;;  %v8957_v40 = vcombine.low %v2225_v56, %v2226_v14 }
 0x141   :  { %3095 = vmatmul.mubr.bf16.gmra.mxu1 %v9785_v11  ;;  %3165 = vmatprep.subr.bf16.mxu0 %v8962_v32  ;;  %v8990_v15 = vcombine.high %v2257_v20, %v2258_v27  ;;  %v2255_v4 = vld [vmem:[#allocation2 + $0xbc8] sm:$0xff] }
 0x142   :  { %3277 = vmatpush1.bf16.msra.mxu1 %v8995_v6  ;;  %3104 = vmatprep.mubr.bf16.mxu1 %v9796_v22  ;;  %v2256_v61 = vld [vmem:[#allocation2 + $0xbe8] sm:$0xff]  ;;  %v8989_v6 = vcombine.low %v2257_v20, %v2258_v27 }
 0x143   :  { %3278 = vmatprep.subr.bf16.mxu1 %v8994_v1  ;;  %v2287_v2 = vld [vmem:[#allocation2 + $0xfc8] sm:$0xff]  ;;  %v8988_v32 = vcombine.high %v2255_v4, %v2256_v61 }
 0x144   :  { %3166 = vmatpush1.bf16.msra.mxu0 %v8961_v44  ;;  %v2288_v23 = vld [vmem:[#allocation2 + $0xfe8] sm:$0xff]  ;;  %v8987_v44 = vcombine.low %v2255_v4, %v2256_v61 }
 0x145   :  { %3167 = vmatprep.subr.bf16.mxu0 %v8960_v53  ;;  %v9020_v1 = vcombine.high %v2287_v2, %v2288_v23  ;;  %v2253_v29 = vld [vmem:[#allocation2 + $0xb88] sm:$0xff] }
 0x146   :  { %3279 = vmatpush1.bf16.msra.mxu1 %v8993_v10  ;;  %v2254_v42 = vld [vmem:[#allocation2 + $0xba8] sm:$0xff]  ;;  %v9019_v10 = vcombine.low %v2287_v2, %v2288_v23 }
 0x147   :  { %3280 = vmatprep.subr.bf16.mxu1 %v8992_v38  ;;  %2992 = vmatmul.mubr.bf16.gmra.mxu0 %v9801_v59  ;;  %v2285_v51 = vld [vmem:[#allocation2 + $0xf88] sm:$0xff]  ;;  %v8986_v53 = vcombine.high %v2253_v29, %v2254_v42 }
 0x148   :  { %3168 = vmatpush1.bf16.msra.mxu0 %v8959_v28  ;;  %3001 = vmatprep.mubr.bf16.mxu0 %v9817_v43  ;;  %v2286_v12 = vld [vmem:[#allocation2 + $0xfa8] sm:$0xff]  ;;  %v8985_v28 = vcombine.low %v2253_v29, %v2254_v42 }
 0x149   :  { %3105 = vmatmul.mubr.bf16.gmra.mxu1 %v9809_v35  ;;  %3169 = vmatprep.subr.bf16.mxu0 %v8958_v34  ;;  %v9018_v38 = vcombine.high %v2285_v51, %v2286_v12  ;;  %v2251_v56 = vld [vmem:[#allocation2 + $0xb48] sm:$0xff] }
 0x14a   :  { %3281 = vmatpush1.bf16.msra.mxu1 %v8991_v50  ;;  %3114 = vmatprep.mubr.bf16.mxu1 %v9820_v47  ;;  %v2252_v14 = vld [vmem:[#allocation2 + $0xb68] sm:$0xff]  ;;  %v9017_v50 = vcombine.low %v2285_v51, %v2286_v12 }
 0x14b   :  { %3282 = vmatprep.subr.bf16.mxu1 %v8990_v15  ;;  %v2283_v20 = vld [vmem:[#allocation2 + $0xf48] sm:$0xff]  ;;  %v8984_v34 = vcombine.high %v2251_v56, %v2252_v14 }
 0x14c   :  { %3170 = vmatpush1.bf16.msra.mxu0 %v8957_v40  ;;  %v2284_v27 = vld [vmem:[#allocation2 + $0xf68] sm:$0xff]  ;;  %v8983_v40 = vcombine.low %v2251_v56, %v2252_v14 }
 0x14d   :  { %3171 = vmatprep.subr.bf16.mxu0 %v8988_v32  ;;  %v9016_v15 = vcombine.high %v2283_v20, %v2284_v27  ;;  %v2249_v4 = vld [vmem:[#allocation2 + $0xb08] sm:$0xff] }
 0x14e   :  { %3283 = vmatpush1.bf16.msra.mxu1 %v8989_v6  ;;  %v2250_v61 = vld [vmem:[#allocation2 + $0xb28] sm:$0xff]  ;;  %v9015_v6 = vcombine.low %v2283_v20, %v2284_v27 }
 0x14f   :  { %3284 = vmatprep.subr.bf16.mxu1 %v9020_v1  ;;  %3002 = vmatmul.mubr.bf16.gmra.mxu0 %v9828_v3  ;;  %v2281_v2 = vld [vmem:[#allocation2 + $0xf08] sm:$0xff]  ;;  %v8982_v32 = vcombine.high %v2249_v4, %v2250_v61 }
 0x150   :  { %3172 = vmatpush2.bf16.msra.mxu0 %v8987_v44  ;;  %3011 = vmatprep.mubr.bf16.mxu0 %v9841_v16  ;;  %v2282_v23 = vld [vmem:[#allocation2 + $0xf28] sm:$0xff]  ;;  %v8981_v44 = vcombine.low %v2249_v4, %v2250_v61  ;;  %v13981_v16 = vld [vmem:[#allocation67_spill] sm:$0xff] }
 0x151   :  { %3115 = vmatmul.mubr.bf16.gmra.mxu1 %v9839_v8  ;;  %3173 = vmatprep.subr.bf16.mxu0 %v8986_v53  ;;  %v9014_v1 = vcombine.high %v2281_v2, %v2282_v23  ;;  %v2247_v29 = vld [vmem:[#allocation2 + $0xac8] sm:$0xff] }
 0x152   :  { %3285 = vmatpush2.bf16.msra.mxu1 %v9019_v10  ;;  %3124 = vmatprep.mubr.bf16.mxu1 %v9844_v17  ;;  %v2248_v42 = vld [vmem:[#allocation2 + $0xae8] sm:$0xff]  ;;  %v9013_v10 = vcombine.low %v2281_v2, %v2282_v23  ;;  %v3947_v17 = vld [vmem:[#allocation2 + $0x750] sm:$0xff] }
 0x153   :  { %3286 = vmatprep.subr.bf16.mxu1 %v9018_v38  ;;  %v2279_v51 = vld [vmem:[#allocation2 + $0xec8] sm:$0xff]  ;;  %v8980_v53 = vcombine.high %v2247_v29, %v2248_v42 }
 0x154   :  { %3174 = vmatpush2.bf16.msra.mxu0 %v8985_v28  ;;  %v2280_v12 = vld [vmem:[#allocation2 + $0xee8] sm:$0xff]  ;;  %v8979_v28 = vcombine.low %v2247_v29, %v2248_v42 }
 0x155   :  { %3175 = vmatprep.subr.bf16.mxu0 %v8984_v34  ;;  %v9012_v38 = vcombine.high %v2279_v51, %v2280_v12  ;;  %v2245_v56 = vld [vmem:[#allocation2 + $0xa88] sm:$0xff] }
 0x156   :  { %3287 = vmatpush2.bf16.msra.mxu1 %v9017_v50  ;;  %v2246_v14 = vld [vmem:[#allocation2 + $0xaa8] sm:$0xff]  ;;  %v9011_v50 = vcombine.low %v2279_v51, %v2280_v12 }
 0x157   :  { %3288 = vmatprep.subr.bf16.mxu1 %v9016_v15  ;;  %3012 = vmatmul.mubr.bf16.gmra.mxu0 %v9855_v33  ;;  %v2277_v20 = vld [vmem:[#allocation2 + $0xe88] sm:$0xff]  ;;  %v8978_v34 = vcombine.high %v2245_v56, %v2246_v14  ;;  %v13967_v33 = vld [vmem:[#allocation59_spill] sm:$0xff] }
 0x158   :  { %3176 = vmatpush2.bf16.msra.mxu0 %v8983_v40  ;;  %3021 = vmatprep.mubr.bf16.mxu0 %v9865_v48  ;;  %v2278_v27 = vld [vmem:[#allocation2 + $0xea8] sm:$0xff]  ;;  %v8977_v40 = vcombine.low %v2245_v56, %v2246_v14  ;;  %v3903_v56 = vld [vmem:[#allocation2 + $0x1d0] sm:$0xff] }
 0x159   :  { %3125 = vmatmul.mubr.bf16.gmra.mxu1 %v9863_v37  ;;  %3177 = vmatprep.subr.bf16.mxu0 %v8982_v32  ;;  %v9010_v15 = vcombine.high %v2277_v20, %v2278_v27  ;;  %v2243_v4 = vld [vmem:[#allocation2 + $0xa48] sm:$0xff]  ;;  %v3904_v14 = vld [vmem:[#allocation2 + $0x1f0] sm:$0xff] }
 0x15a   :  { %3289 = vmatpush2.bf16.msra.mxu1 %v9015_v6  ;;  %3134 = vmatprep.mubr.bf16.mxu1 %v9868_v49  ;;  %v2244_v61 = vld [vmem:[#allocation2 + $0xa68] sm:$0xff]  ;;  %v9009_v6 = vcombine.low %v2277_v20, %v2278_v27  ;;  %v3935_v20 = vld [vmem:[#allocation2 + $0x5d0] sm:$0xff]  ;;  %v13962_v49 = vld [vmem:[#allocation56_spill] sm:$0xff] }
 0x15b   :  { %3290 = vmatprep.subr.bf16.mxu1 %v9014_v1  ;;  %v2275_v2 = vld [vmem:[#allocation2 + $0xe48] sm:$0xff]  ;;  %v8976_v32 = vcombine.high %v2243_v4, %v2244_v61  ;;  %v3936_v27 = vld [vmem:[#allocation2 + $0x5f0] sm:$0xff] }
 0x15c   :  { %3178 = vmatpush2.bf16.msra.mxu0 %v8981_v44  ;;  %v2276_v23 = vld [vmem:[#allocation2 + $0xe68] sm:$0xff]  ;;  %v8975_v44 = vcombine.low %v2243_v4, %v2244_v61  ;;  %v3901_v4 = vld [vmem:[#allocation2 + $0x190] sm:$0xff] }
 0x15d   :  { %3179 = vmatprep.subr.bf16.mxu0 %v8980_v53  ;;  %v9008_v1 = vcombine.high %v2275_v2, %v2276_v23  ;;  %v2241_v29 = vld [vmem:[#allocation2 + $0xa08] sm:$0xff]  ;;  %v3902_v61 = vld [vmem:[#allocation2 + $0x1b0] sm:$0xff] }
 0x15e   :  { %3291 = vmatpush2.bf16.msra.mxu1 %v9013_v10  ;;  %v2242_v42 = vld [vmem:[#allocation2 + $0xa28] sm:$0xff]  ;;  %v9007_v10 = vcombine.low %v2275_v2, %v2276_v23  ;;  %v3933_v2 = vld [vmem:[#allocation2 + $0x590] sm:$0xff] }
 0x15f   :  { %3292 = vmatprep.subr.bf16.mxu1 %v9012_v38  ;;  %3022 = vmatmul.mubr.bf16.gmra.mxu0 %v9879_v9  ;;  %v2273_v51 = vld [vmem:[#allocation2 + $0xe08] sm:$0xff]  ;;  %v8974_v53 = vcombine.high %v2241_v29, %v2242_v42  ;;  %v3934_v23 = vld [vmem:[#allocation2 + $0x5b0] sm:$0xff] }
 0x160   :  { %3180 = vmatpush2.bf16.msra.mxu0 %v8979_v28  ;;  %3031 = vmatprep.mubr.bf16.mxu0 %v9889_v26  ;;  %v2274_v12 = vld [vmem:[#allocation2 + $0xe28] sm:$0xff]  ;;  %v8973_v28 = vcombine.low %v2241_v29, %v2242_v42  ;;  %v3899_v29 = vld [vmem:[#allocation2 + $0x150] sm:$0xff] }
 0x161   :  { %3135 = vmatmul.mubr.bf16.gmra.mxu1 %v9887_v13  ;;  %3181 = vmatprep.subr.bf16.mxu0 %v8978_v34  ;;  %v9006_v38 = vcombine.high %v2273_v51, %v2274_v12  ;;  %v9036_v34 = vcombine.high %v3903_v56, %v3904_v14  ;;  %v3900_v42 = vld [vmem:[#allocation2 + $0x170] sm:$0xff] }
 0x162   :  { %3293 = vmatpush2.bf16.msra.mxu1 %v9011_v50  ;;  %3144 = vmatprep.mubr.bf16.mxu1 %v9892_v54  ;;  %v9005_v50 = vcombine.low %v2273_v51, %v2274_v12  ;;  %v10137_v51 = vpop.f32.mrf.mxu0  ;;  %v3931_v12 = vld [vmem:[#allocation2 + $0x550] sm:$0xff] }
 0x163   :  { %3294 = vmatprep.subr.bf16.mxu1 %v9010_v15  ;;  %v9068_v15 = vcombine.high %v3935_v20, %v3936_v27  ;;  %v3894_v26 = vld [vmem:[#allocation2 + $0xb0] sm:$0xff] }
 0x164   :  { %3182 = vmatpush2.bf16.msra.mxu0 %v8977_v40  ;;  %v9035_v40 = vcombine.low %v3903_v56, %v3904_v14  ;;  %v9065_v56 = vcombine.low %v3933_v2, %v3934_v23  ;;  %v9032_v14 = vcombine.high %v3899_v29, %v3900_v42  ;;  %v13961_v9 = vld [vmem:[#allocation55_spill] sm:$0xff] }
 0x165   :  { %3183 = vmatprep.subr.bf16.mxu0 %v8976_v32  ;;  %v9034_v32 = vcombine.high %v3901_v4, %v3902_v61  ;;  %v3923_v48 = vld [vmem:[#allocation2 + $0x450] sm:$0xff] }
 0x166   :  { %3295 = vmatpush2.bf16.msra.mxu1 %v9009_v6  ;;  %v9067_v6 = vcombine.low %v3935_v20, %v3936_v27  ;;  %v13956_v27 = vld [vmem:[#allocation50_spill] sm:$0xff] }
 0x167   :  { %3296 = vmatprep.subr.bf16.mxu1 %v9008_v1  ;;  %3032 = vmatmul.mubr.bf16.gmra.mxu0 %v9897_v39  ;;  %v9066_v1 = vcombine.high %v3933_v2, %v3934_v23  ;;  %v9031_v2 = vcombine.low %v3899_v29, %v3900_v42  ;;  %v13959_v29 = vld [vmem:[#allocation53_spill] sm:$0xff] }
 0x168   :  { %3184 = vmatpush2.bf16.msra.mxu0 %v8975_v44  ;;  %3187 = vmatprep.mubr.bf16.mxu0 %v9913_v0  ;;  %v3932_v44 = vld [vmem:[#allocation2 + $0x570] sm:$0xff] }
 0x169   :  { %3145 = vmatmul.mubr.bf16.gmra.mxu1 %v9905_v46  ;;  %3185 = vmatprep.subr.bf16.mxu0 %v8974_v53  ;;  %v9033_v53 = vcombine.low %v3901_v4, %v3902_v61  ;;  %v3930_v4 = vld [vmem:[#allocation2 + $0x530] sm:$0xff] }
 0x16a   :  { %3297 = vmatpush2.bf16.msra.mxu1 %v9007_v10  ;;  %3300 = vmatprep.mubr.bf16.mxu1 %v9918_v5  ;;  %v10140_v10 = vpop.f32.mrf.mxu1  ;;  %v3927_v0 = vld [vmem:[#allocation2 + $0x4d0] sm:$0xff] }
 0x16b   :  { %3298 = vmatprep.subr.bf16.mxu1 %v9006_v38  ;;  %v1307_v38 = vpop.f32.mrf.mxu0  ;;  %v3928_v46 = vld [vmem:[#allocation2 + $0x4f0] sm:$0xff] }
 0x16c   :  { %3186 = vmatpush2.bf16.msra.mxu0 %v8973_v28  ;;  %v1420_v20 = vpop.f32.mrf.mxu1  ;;  %v9064_v28 = vcombine.high %v3931_v12, %v3932_v44  ;;  %v9060_v54 = vcombine.high %v3927_v0, %v3928_v46 }
 0x16d   :  { %4657 = vmatprep.subr.bf16.mxu0 %v9036_v34  ;;  %v3898_v34 = vld [vmem:[#allocation2 + $0x130] sm:$0xff] }
 0x16e   :  { %3299 = vmatpush2.bf16.msra.mxu1 %v9005_v50  ;;  %v3897_v50 = vld [vmem:[#allocation2 + $0x110] sm:$0xff]  ;;  %v10149_v61 = vpop.f32.mrf.mxu1 }
 0x16f   :  { %4770 = vmatprep.subr.bf16.mxu1 %v9068_v15  ;;  %3188 = vmatmul.mubr.bf16.vlgmr.msra.gmra.mxu0 %v9922_v55  ;;  %v10144_v15 = vadd.f32 %v1420_v20, %v1307_v38  ;;  %v10146_v55 = vpop.f32.mrf.mxu0  ;;  %v3895_v20 = vld [vmem:[#allocation2 + $0xd0] sm:$0xff]  ;;  %v9029_v42 = vcombine.low %v3897_v50, %v3898_v34 }
 0x170   :  { %4658 = vmatpush1.bf16.msra.mxu0 %v9035_v40  ;;  %3197 = vmatprep.mubr.bf16.mxu0 %v13956_v27  ;;  %v13957_v40 = vld [vmem:[#allocation51_spill] sm:$0xff] }
 0x171   :  { %3301 = vmatmul.mubr.bf16.vlgmr.msra.gmra.mxu1 %v9933_v31  ;;  %4659 = vmatprep.subr.bf16.mxu0 %v9034_v32  ;;  %v3929_v31 = vld [vmem:[#allocation2 + $0x510] sm:$0xff]  ;;  %v10151_v23 = vpop.f32.mrf.mxu0  ;;  %v9030_v32 = vcombine.high %v3897_v50, %v3898_v34 }
 0x172   :  { %4771 = vmatpush1.bf16.msra.mxu1 %v9067_v6  ;;  %3310 = vmatprep.mubr.bf16.mxu1 %v13957_v40  ;;  %v9063_v6 = vcombine.low %v3931_v12, %v3932_v44  ;;  %v9062_v38 = vcombine.high %v3929_v31, %v3930_v4  ;;  %v3896_v27 = vld [vmem:[#allocation2 + $0xf0] sm:$0xff]  ;;  %v13958_v40 = vld [vmem:[#allocation52_spill] sm:$0xff]  ;;  %v9061_v44 = vcombine.low %v3929_v31, %v3930_v4 }
 0x173   :  { %4772 = vmatprep.subr.bf16.mxu1 %v9066_v1  ;;  %v10153_v1 = vpop.f32.mrf.mxu1  ;;  %v1315_v5 = vpop.f32.mrf.mxu0  ;;  %v3925_v50 = vld [vmem:[#allocation2 + $0x490] sm:$0xff]  ;;  %v9027_v34 = vcombine.low %v3895_v20, %v3896_v27  ;;  %v9059_v4 = vcombine.low %v3927_v0, %v3928_v46 }
 0x174   :  { %4660 = vmatpush1.bf16.msra.mxu0 %v9033_v53 }
 0x175   :  { %4661 = vmatprep.subr.bf16.mxu0 %v9032_v14  ;;  %v1428_v39 = vpop.f32.mrf.mxu1  ;;  %v1317_v12 = vpop.f32.mrf.mxu0 }
 0x176   :  { %4773 = vmatpush1.bf16.msra.mxu1 %v9065_v56  ;;  %v10157_v53 = vadd.f32 %v1428_v39, %v1315_v5  ;;  %v9028_v56 = vcombine.high %v3895_v20, %v3896_v27  ;;  %v3926_v39 = vld [vmem:[#allocation2 + $0x4b0] sm:$0xff]  ;;  %v13963_v20 = vld [vmem:[#allocation57_spill] sm:$0xff] }
 0x177   :  { %4774 = vmatprep.subr.bf16.mxu1 %v9064_v28  ;;  %3198 = vmatmul.mubr.bf16.gmra.mxu0 %v13958_v40  ;;  %v1430_v14 = vpop.f32.mrf.mxu1  ;;  %v13960_v28 = vld [vmem:[#allocation54_spill] sm:$0xff] }
 0x178   :  { %4662 = vmatpush1.bf16.msra.mxu0 %v9031_v2  ;;  %3207 = vmatprep.mubr.bf16.mxu0 %v13960_v28  ;;  %v3893_v40 = vld [vmem:[#allocation2 + $0x90] sm:$0xff]  ;;  %v10160_v13 = vadd.f32 %v1430_v14, %v1317_v12  ;;  %v1319_v2 = vpop.f32.mrf.mxu0  ;;  %v9058_v28 = vcombine.high %v3925_v50, %v3926_v39 }
 0x179   :  { %3311 = vmatmul.mubr.bf16.gmra.mxu1 %v13959_v29  ;;  %4663 = vmatprep.subr.bf16.mxu0 %v9030_v32  ;;  %v1432_v5 = vpop.f32.mrf.mxu1  ;;  %v9026_v32 = vcombine.high %v3893_v40, %v3894_v26  ;;  %v3891_v12 = vld [vmem:[#allocation2 + $0x50] sm:$0xff] }
 0x17a   :  { %4775 = vmatpush1.bf16.msra.mxu1 %v9063_v6  ;;  %3320 = vmatprep.mubr.bf16.mxu1 %v13961_v9  ;;  %v10163_v6 = vadd.f32 %v1432_v5, %v1319_v2  ;;  %v1321_v31 = vpop.f32.mrf.mxu0  ;;  %v3892_v14 = vld [vmem:[#allocation2 + $0x70] sm:$0xff] }
 0x17b   :  { %4776 = vmatprep.subr.bf16.mxu1 %v9062_v38  ;;  %v1434_v38 = vpop.f32.mrf.mxu1  ;;  %v9024_v0 = vcombine.high %v3891_v12, %v3892_v14  ;;  %v13965_v5 = vld [vmem:[#allocation58_spill] sm:$0xff] }
 0x17c   :  { %4664 = vmatpush1.bf16.msra.mxu0 %v9029_v42  ;;  %v10165_v29 = vadd.f32 %v1434_v38, %v1321_v31  ;;  %v1325_v9 = vpop.f32.mrf.mxu0  ;;  %v3924_v42 = vld [vmem:[#allocation2 + $0x470] sm:$0xff] }
 0x17d   :  { %4665 = vmatprep.subr.bf16.mxu0 %v9028_v56  ;;  %v1438_v27 = vpop.f32.mrf.mxu1  ;;  %v9056_v31 = vcombine.high %v3923_v48, %v3924_v42  ;;  %v3889_v38 = vld [vmem:[#allocation2 + $0x10] sm:$0xff] }
 0x17e   :  { %4777 = vmatpush1.bf16.msra.mxu1 %v9061_v44  ;;  %v9025_v44 = vcombine.low %v3893_v40, %v3894_v26  ;;  %v10169_v56 = vadd.f32 %v1438_v27, %v1325_v9  ;;  %v1327_v46 = vpop.f32.mrf.mxu0  ;;  %v3921_v26 = vld [vmem:[#allocation2 + $0x410] sm:$0xff] }
 0x17f   :  { %4778 = vmatprep.subr.bf16.mxu1 %v9060_v54  ;;  %3208 = vmatmul.mubr.bf16.gmra.mxu0 %v13962_v49  ;;  %v9057_v54 = vcombine.low %v3925_v50, %v3926_v39  ;;  %v1440_v2 = vpop.f32.mrf.mxu1  ;;  %v3890_v49 = vld [vmem:[#allocation2 + $0x30] sm:$0xff] }
 0x180   :  { %4666 = vmatpush1.bf16.msra.mxu0 %v9027_v34  ;;  %13964 = vst [vmem:[#allocation78_spill] sm:$0xff] %v10169_v56  ;;  %3217 = vmatprep.mubr.bf16.mxu0 %v13965_v5  ;;  %v10172_v37 = vadd.f32 %v1440_v2, %v1327_v46  ;;  %v1329_v34 = vpop.f32.mrf.mxu0  ;;  %v3922_v9 = vld [vmem:[#allocation2 + $0x430] sm:$0xff]  ;;  %v9022_v39 = vcombine.high %v3889_v38, %v3890_v49 }
 0x181   :  { %3321 = vmatmul.mubr.bf16.gmra.mxu1 %v13963_v20  ;;  %4667 = vmatprep.subr.bf16.mxu0 %v9026_v32  ;;  %v1442_v40 = vpop.f32.mrf.mxu1  ;;  %v9054_v5 = vcombine.high %v3921_v26, %v3922_v9  ;;  %v3919_v46 = vld [vmem:[#allocation2 + $0x3d0] sm:$0xff] }
 0x182   :  { %4779 = vmatpush1.bf16.msra.mxu1 %v9059_v4  ;;  %13966 = vst [vmem:[#allocation79_spill] sm:$0xff] %v10172_v37  ;;  %3330 = vmatprep.mubr.bf16.mxu1 %v13967_v33  ;;  %v9023_v4 = vcombine.low %v3891_v12, %v3892_v14  ;;  %v10175_v32 = vadd.f32 %v1442_v40, %v1329_v34  ;;  %v1331_v50 = vpop.f32.mrf.mxu0  ;;  %v3920_v2 = vld [vmem:[#allocation2 + $0x3f0] sm:$0xff]  ;;  %v13970_v37 = vld [vmem:[#allocation60_spill] sm:$0xff]  ;;  %v13971_v14 = vld [vmem:[#allocation61_spill] sm:$0xff] }
 0x183   :  { %4780 = vmatprep.subr.bf16.mxu1 %v9058_v28  ;;  %v9055_v28 = vcombine.low %v3923_v48, %v3924_v42  ;;  %v1444_v27 = vpop.f32.mrf.mxu1  ;;  %v3951_v56 = vld [vmem:[#allocation2 + $0x7d0] sm:$0xff]  ;;  %v9053_v42 = vcombine.low %v3921_v26, %v3922_v9 }
 0x184   :  { %4668 = vmatpush1.bf16.msra.mxu0 %v9025_v44  ;;  %13968 = vst [vmem:[#allocation80_spill] sm:$0xff] %v10175_v32  ;;  %v10177_v20 = vadd.f32 %v1444_v27, %v1331_v50  ;;  %v1335_v33 = vpop.f32.mrf.mxu0  ;;  %v3952_v44 = vld [vmem:[#allocation2 + $0x7f0] sm:$0xff] }
 0x185   :  { %4669 = vmatprep.subr.bf16.mxu0 %v9024_v0  ;;  %v1448_v12 = vpop.f32.mrf.mxu1  ;;  %v13972_v40 = vld [vmem:[#allocation62_spill] sm:$0xff]  ;;  %v9084_v50 = vcombine.high %v3951_v56, %v3952_v44  ;;  %v13974_v32 = vld [vmem:[#allocation63_spill] sm:$0xff] }
 0x186   :  { %4781 = vmatpush1.bf16.msra.mxu1 %v9057_v54  ;;  %13969 = vst [vmem:[#allocation81_spill] sm:$0xff] %v10177_v20  ;;  %v9021_v54 = vcombine.low %v3889_v38, %v3890_v49  ;;  %v10181_v0 = vadd.f32 %v1448_v12, %v1335_v33  ;;  %v1337_v48 = vpop.f32.mrf.mxu0  ;;  %v3917_v27 = vld [vmem:[#allocation2 + $0x390] sm:$0xff] }
 0x187   :  { %4782 = vmatprep.subr.bf16.mxu1 %v9056_v31  ;;  %3218 = vmatmul.mubr.bf16.gmra.mxu0 %v13970_v37  ;;  %v9052_v31 = vcombine.high %v3919_v46, %v3920_v2  ;;  %v1450_v34 = vpop.f32.mrf.mxu1  ;;  %v3918_v37 = vld [vmem:[#allocation2 + $0x3b0] sm:$0xff] }
 0x188   :  { %4670 = vmatpush1.bf16.msra.mxu0 %v9023_v4  ;;  %3227 = vmatprep.mubr.bf16.mxu0 %v13972_v40  ;;  %v10184_v20 = vadd.f32 %v1450_v34, %v1337_v48  ;;  %v1339_v4 = vpop.f32.mrf.mxu0  ;;  %v3949_v49 = vld [vmem:[#allocation2 + $0x790] sm:$0xff]  ;;  %v9050_v9 = vcombine.high %v3917_v27, %v3918_v37 }
 0x189   :  { %3331 = vmatmul.mubr.bf16.gmra.mxu1 %v13971_v14  ;;  %4671 = vmatprep.subr.bf16.mxu0 %v9022_v39  ;;  %v3950_v33 = vld [vmem:[#allocation2 + $0x7b0] sm:$0xff]  ;;  %v1452_v38 = vpop.f32.mrf.mxu1 }
 0x18a   :  { %4783 = vmatpush1.bf16.msra.mxu1 %v9055_v28  ;;  %13973 = vst [vmem:[#allocation82_spill] sm:$0xff] %v10184_v20  ;;  %3340 = vmatprep.mubr.bf16.mxu1 %v13974_v32  ;;  %v9051_v28 = vcombine.low %v3919_v46, %v3920_v2  ;;  %v10187_v39 = vadd.f32 %v1452_v38, %v1339_v4  ;;  %v1341_v26 = vpop.f32.mrf.mxu0  ;;  %v3915_v48 = vld [vmem:[#allocation2 + $0x350] sm:$0xff]  ;;  %v13976_v20 = vld [vmem:[#allocation64_spill] sm:$0xff]  ;;  %v13977_v2 = vld [vmem:[#allocation65_spill] sm:$0xff] }
 0x18b   :  { %4784 = vmatprep.subr.bf16.mxu1 %v9054_v5  ;;  %v9083_v5 = vcombine.low %v3951_v56, %v3952_v44  ;;  %v1454_v12 = vpop.f32.mrf.mxu1  ;;  %v9082_v40 = vcombine.high %v3949_v49, %v3950_v33  ;;  %v3916_v34 = vld [vmem:[#allocation2 + $0x370] sm:$0xff]  ;;  %v9081_v44 = vcombine.low %v3949_v49, %v3950_v33 }
 0x18c   :  { %4672 = vmatpush1.bf16.msra.mxu0 %v9021_v54  ;;  %v10189_v14 = vadd.f32 %v1454_v12, %v1341_v26  ;;  %v1345_v32 = vpop.f32.mrf.mxu0  ;;  %v3948_v54 = vld [vmem:[#allocation2 + $0x770] sm:$0xff] }
 0x18d   :  { %4673 = vmatprep.subr.bf16.mxu0 %v9052_v31  ;;  %v1458_v46 = vpop.f32.mrf.mxu1  ;;  %v13979_v38 = vld [vmem:[#allocation66_spill] sm:$0xff]  ;;  %v9080_v26 = vcombine.high %v3947_v17, %v3948_v54 }
 0x18e   :  { %4785 = vmatpush1.bf16.msra.mxu1 %v9053_v42  ;;  %13975 = vst [vmem:[#allocation83_spill] sm:$0xff] %v10189_v14  ;;  %v9049_v42 = vcombine.low %v3917_v27, %v3918_v37  ;;  %v10193_v31 = vadd.f32 %v1458_v46, %v1345_v32  ;;  %v1347_v56 = vpop.f32.mrf.mxu0  ;;  %v3913_v12 = vld [vmem:[#allocation2 + $0x310] sm:$0xff] }
 0x18f   :  { %4786 = vmatprep.subr.bf16.mxu1 %v9084_v50  ;;  %3228 = vmatmul.mubr.bf16.gmra.mxu0 %v13976_v20  ;;  %v9048_v50 = vcombine.high %v3915_v48, %v3916_v34  ;;  %v1460_v4 = vpop.f32.mrf.mxu1  ;;  %v3914_v20 = vld [vmem:[#allocation2 + $0x330] sm:$0xff] }
 0x190   :  { %4674 = vmatpush2.bf16.msra.mxu0 %v9051_v28  ;;  %13978 = vst [vmem:[#allocation84_spill] sm:$0xff] %v10193_v31  ;;  %3237 = vmatprep.mubr.bf16.mxu0 %v13979_v38  ;;  %v10196_v14 = vadd.f32 %v1460_v4, %v1347_v56  ;;  %v1349_v28 = vpop.f32.mrf.mxu0  ;;  %v3945_v37 = vld [vmem:[#allocation2 + $0x710] sm:$0xff]  ;;  %v9046_v33 = vcombine.high %v3913_v12, %v3914_v20 }
 0x191   :  { %3341 = vmatmul.mubr.bf16.gmra.mxu1 %v13977_v2  ;;  %4675 = vmatprep.subr.bf16.mxu0 %v9050_v9  ;;  %v3946_v32 = vld [vmem:[#allocation2 + $0x730] sm:$0xff]  ;;  %v1462_v27 = vpop.f32.mrf.mxu1 }
 0x192   :  { %4787 = vmatpush2.bf16.msra.mxu1 %v9083_v5  ;;  %13980 = vst [vmem:[#allocation85_spill] sm:$0xff] %v10196_v14  ;;  %3350 = vmatprep.mubr.bf16.mxu1 %v13981_v16  ;;  %v9047_v5 = vcombine.low %v3915_v48, %v3916_v34  ;;  %v10199_v9 = vadd.f32 %v1462_v27, %v1349_v28  ;;  %v1351_v49 = vpop.f32.mrf.mxu0  ;;  %v3911_v56 = vld [vmem:[#allocation2 + $0x2d0] sm:$0xff]  ;;  %v13984_v14 = vld [vmem:[#allocation68_spill] sm:$0xff]  ;;  %v13985_v34 = vld [vmem:[#allocation69_spill] sm:$0xff] }
 0x193   :  { %4788 = vmatprep.subr.bf16.mxu1 %v9082_v40  ;;  %v9079_v40 = vcombine.low %v3947_v17, %v3948_v54  ;;  %v1464_v46 = vpop.f32.mrf.mxu1  ;;  %v9078_v38 = vcombine.high %v3945_v37, %v3946_v32  ;;  %v3912_v4 = vld [vmem:[#allocation2 + $0x2f0] sm:$0xff]  ;;  %v9077_v54 = vcombine.low %v3945_v37, %v3946_v32 }
 0x194   :  { %4676 = vmatpush2.bf16.msra.mxu0 %v9049_v42  ;;  %13982 = vst [vmem:[#allocation86_spill] sm:$0xff] %v10199_v9  ;;  %v10201_v2 = vadd.f32 %v1464_v46, %v1351_v49  ;;  %v1355_v16 = vpop.f32.mrf.mxu0  ;;  %v3943_v31 = vld [vmem:[#allocation2 + $0x6d0] sm:$0xff] }
 0x195   :  { %4677 = vmatprep.subr.bf16.mxu0 %v9048_v50  ;;  %v3944_v42 = vld [vmem:[#allocation2 + $0x6f0] sm:$0xff]  ;;  %v1468_v48 = vpop.f32.mrf.mxu1 }
 0x196   :  { %4789 = vmatpush2.bf16.msra.mxu1 %v9081_v44  ;;  %13983 = vst [vmem:[#allocation87_spill] sm:$0xff] %v10201_v2  ;;  %v9045_v44 = vcombine.low %v3913_v12, %v3914_v20  ;;  %v10205_v50 = vadd.f32 %v1468_v48, %v1355_v16  ;;  %v1357_v17 = vpop.f32.mrf.mxu0  ;;  %v13987_v27 = vld [vmem:[#allocation70_spill] sm:$0xff]  ;;  %v9076_v49 = vcombine.high %v3943_v31, %v3944_v42  ;;  %v13989_v9 = vld [vmem:[#allocation71_spill] sm:$0xff] }
 0x197   :  { %4790 = vmatprep.subr.bf16.mxu1 %v9080_v26  ;;  %3238 = vmatmul.mubr.bf16.gmra.mxu0 %v13984_v14  ;;  %v9044_v26 = vcombine.high %v3911_v56, %v3912_v4  ;;  %v1470_v28 = vpop.f32.mrf.mxu1  ;;  %v3909_v46 = vld [vmem:[#allocation2 + $0x290] sm:$0xff] }
 0x198   :  { %4678 = vmatpush2.bf16.msra.mxu0 %v9047_v5  ;;  %13986 = vst [vmem:[#allocation88_spill] sm:$0xff] %v10205_v50  ;;  %3247 = vmatprep.mubr.bf16.mxu0 %v13987_v27  ;;  %v3910_v14 = vld [vmem:[#allocation2 + $0x2b0] sm:$0xff]  ;;  %v10208_v2 = vadd.f32 %v1470_v28, %v1357_v17  ;;  %v1359_v5 = vpop.f32.mrf.mxu0 }
 0x199   :  { %3351 = vmatmul.mubr.bf16.gmra.mxu1 %v13985_v34  ;;  %4679 = vmatprep.subr.bf16.mxu0 %v9046_v33  ;;  %v3941_v20 = vld [vmem:[#allocation2 + $0x690] sm:$0xff]  ;;  %v1472_v12 = vpop.f32.mrf.mxu1  ;;  %v9042_v32 = vcombine.high %v3909_v46, %v3910_v14 }
 0x19a   :  { %4791 = vmatpush2.bf16.msra.mxu1 %v9079_v40  ;;  %13988 = vst [vmem:[#allocation89_spill] sm:$0xff] %v10208_v2  ;;  %3360 = vmatprep.mubr.bf16.mxu1 %v13989_v9  ;;  %v3942_v16 = vld [vmem:[#allocation2 + $0x6b0] sm:$0xff]  ;;  %v9043_v40 = vcombine.low %v3911_v56, %v3912_v4  ;;  %v10211_v33 = vadd.f32 %v1472_v12, %v1359_v5  ;;  %v1361_v37 = vpop.f32.mrf.mxu0  ;;  %v13991_v2 = vld [vmem:[#allocation72_spill] sm:$0xff]  ;;  %v13992_v4 = vld [vmem:[#allocation73_spill] sm:$0xff] }
 0x19b   :  { %4792 = vmatprep.subr.bf16.mxu1 %v9078_v38  ;;  %v9075_v38 = vcombine.low %v3943_v31, %v3944_v42  ;;  %v1474_v48 = vpop.f32.mrf.mxu1  ;;  %v9074_v27 = vcombine.high %v3941_v20, %v3942_v16  ;;  %v3907_v17 = vld [vmem:[#allocation2 + $0x250] sm:$0xff]  ;;  %v9073_v42 = vcombine.low %v3941_v20, %v3942_v16 }
 0x19c   :  { %4680 = vmatpush2.bf16.msra.mxu0 %v9045_v44  ;;  %v3908_v28 = vld [vmem:[#allocation2 + $0x270] sm:$0xff]  ;;  %v10213_v34 = vadd.f32 %v1474_v48, %v1361_v37  ;;  %v1365_v9 = vpop.f32.mrf.mxu0 }
 0x19d   :  { %4681 = vmatprep.subr.bf16.mxu0 %v9044_v26  ;;  %v3939_v50 = vld [vmem:[#allocation2 + $0x650] sm:$0xff]  ;;  %v1478_v56 = vpop.f32.mrf.mxu1 }
 0x19e   :  { %4793 = vmatpush2.bf16.msra.mxu1 %v9077_v54  ;;  %13990 = vst [vmem:[#allocation90_spill] sm:$0xff] %v10213_v34  ;;  %v3940_v44 = vld [vmem:[#allocation2 + $0x670] sm:$0xff]  ;;  %v9041_v54 = vcombine.low %v3909_v46, %v3910_v14  ;;  %v10217_v26 = vadd.f32 %v1478_v56, %v1365_v9  ;;  %v1367_v31 = vpop.f32.mrf.mxu0 }
 0x19f   :  { %4794 = vmatprep.subr.bf16.mxu1 %v9076_v49  ;;  %3248 = vmatmul.mubr.bf16.gmra.mxu0 %v13991_v2  ;;  %v9040_v49 = vcombine.high %v3907_v17, %v3908_v28  ;;  %v1480_v5 = vpop.f32.mrf.mxu1  ;;  %v9072_v12 = vcombine.high %v3939_v50, %v3940_v44  ;;  %v3905_v37 = vld [vmem:[#allocation2 + $0x210] sm:$0xff] }
 0x1a0   :  { %4682 = vmatpush2.bf16.msra.mxu0 %v9043_v40  ;;  %3257 = vmatprep.mubr.bf16.mxu0 %v10089_v19  ;;  %v3906_v48 = vld [vmem:[#allocation2 + $0x230] sm:$0xff]  ;;  %v10220_v2 = vadd.f32 %v1480_v5, %v1367_v31  ;;  %v1369_v40 = vpop.f32.mrf.mxu0 }
 0x1a1   :  { %3361 = vmatmul.mubr.bf16.gmra.mxu1 %v13992_v4  ;;  %4683 = vmatprep.subr.bf16.mxu0 %v9042_v32  ;;  %v3937_v14 = vld [vmem:[#allocation2 + $0x610] sm:$0xff]  ;;  %v1482_v46 = vpop.f32.mrf.mxu1  ;;  %v9038_v16 = vcombine.high %v3905_v37, %v3906_v48 }
 0x1a2   :  { %4795 = vmatpush2.bf16.msra.mxu1 %v9075_v38  ;;  %3370 = vmatprep.mubr.bf16.mxu1 %v10092_v62  ;;  %v3938_v9 = vld [vmem:[#allocation2 + $0x630] sm:$0xff]  ;;  %v9039_v38 = vcombine.low %v3907_v17, %v3908_v28  ;;  %v10223_v32 = vadd.f32 %v1482_v46, %v1369_v40  ;;  %v1371_v20 = vpop.f32.mrf.mxu0  ;;  %v9037_v28 = vcombine.low %v3905_v37, %v3906_v48 }
 0x1a3   :  { %4796 = vmatprep.subr.bf16.mxu1 %v9074_v27  ;;  %v9071_v27 = vcombine.low %v3939_v50, %v3940_v44  ;;  %v1484_v56 = vpop.f32.mrf.mxu1  ;;  %v9070_v19 = vcombine.high %v3937_v14, %v3938_v9  ;;  %v3967_v31 = vld [vmem:[#allocation2 + $0x9d0] sm:$0xff]  ;;  %v9069_v44 = vcombine.low %v3937_v14, %v3938_v9 }
 0x1a4   :  { %4684 = vmatpush2.bf16.msra.mxu0 %v9041_v54  ;;  %v3968_v5 = vld [vmem:[#allocation2 + $0x9f0] sm:$0xff]  ;;  %v10225_v4 = vadd.f32 %v1484_v56, %v1371_v20 }
 0x1a5   :  { %4685 = vmatprep.subr.bf16.mxu0 %v9040_v49  ;;  %v3999_v34 = vld [vmem:[#allocation2 + $0xdd0] sm:$0xff]  ;;  %v1488_v17 = vpop.f32.mrf.mxu1  ;;  %v9100_v49 = vcombine.high %v3967_v31, %v3968_v5 }
 0x1a6   :  { %4797 = vmatpush2.bf16.msra.mxu1 %v9073_v42  ;;  %v1375_v62 = vpop.f32.mrf.mxu0  ;;  %v4000_v54 = vld [vmem:[#allocation2 + $0xdf0] sm:$0xff] }
 0x1a7   :  { %4798 = vmatprep.subr.bf16.mxu1 %v9072_v12  ;;  %3258 = vmatmul.mubr.bf16.gmra.mxu0 %v10096_v24  ;;  %v10229_v42 = vadd.f32 %v1488_v17, %v1375_v62  ;;  %v1490_v12 = vpop.f32.mrf.mxu1  ;;  %v9132_v40 = vcombine.high %v3999_v34, %v4000_v54  ;;  %v3965_v46 = vld [vmem:[#allocation2 + $0x990] sm:$0xff]  ;;  %v1419_v17 = vadd.f32 %v10140_v10, %v10137_v51 }
 0x1a8   :  { %4686 = vmatpush2.bf16.msra.mxu0 %v9039_v38  ;;  %v1377_v50 = vpop.f32.mrf.mxu0  ;;  %4689 = vmatprep.mubr.bf16.mxu0 %v9707_v58  ;;  %v3966_v20 = vld [vmem:[#allocation2 + $0x9b0] sm:$0xff] }
 0x1a9   :  { %3371 = vmatmul.mubr.bf16.gmra.mxu1 %v10099_v36  ;;  %4687 = vmatprep.subr.bf16.mxu0 %v9038_v16  ;;  %v10232_v56 = vadd.f32 %v1490_v12, %v1377_v50  ;;  %v3997_v37 = vld [vmem:[#allocation2 + $0xd90] sm:$0xff]  ;;  %v1492_v48 = vpop.f32.mrf.mxu1  ;;  %v9098_v9 = vcombine.high %v3965_v46, %v3966_v20 }
 0x1aa   :  { %4799 = vmatpush2.bf16.msra.mxu1 %v9071_v27  ;;  %v1379_v38 = vpop.f32.mrf.mxu0  ;;  %4802 = vmatprep.mubr.bf16.mxu1 %v9721_v63  ;;  %v3998_v62 = vld [vmem:[#allocation2 + $0xdb0] sm:$0xff]  ;;  %v9099_v27 = vcombine.low %v3967_v31, %v3968_v5 }
 0x1ab   :  { %4800 = vmatprep.subr.bf16.mxu1 %v9070_v19  ;;  %v10235_v16 = vadd.f32 %v1492_v48, %v1379_v38  ;;  %v9131_v19 = vcombine.low %v3999_v34, %v4000_v54  ;;  %v1494_v50 = vpop.f32.mrf.mxu1  ;;  %v9130_v12 = vcombine.high %v3997_v37, %v3998_v62  ;;  %v3963_v58 = vld [vmem:[#allocation2 + $0x950] sm:$0xff]  ;;  %v9097_v34 = vcombine.low %v3965_v46, %v3966_v20 }
 0x1ac   :  { %4688 = vmatpush2.bf16.msra.mxu0 %v9037_v28  ;;  %v1381_v14 = vpop.f32.mrf.mxu0  ;;  %v3964_v63 = vld [vmem:[#allocation2 + $0x970] sm:$0xff]  ;;  %v9129_v51 = vcombine.low %v3997_v37, %v3998_v62  ;;  %v1425_v20 = vadd.f32 %v10153_v1, %v10151_v23 }
 0x1ad   :  { %4883 = vmatprep.subr.bf16.mxu0 %v9100_v49  ;;  %v10239_v36 = vadd.f32 %v1494_v50, %v1381_v14  ;;  %v3995_v31 = vld [vmem:[#allocation2 + $0xd50] sm:$0xff]  ;;  %v9096_v10 = vcombine.high %v3963_v58, %v3964_v63  ;;  %v1423_v49 = vadd.f32 %v10149_v61, %v10146_v55  ;;  %v9095_v55 = vcombine.low %v3963_v58, %v3964_v63 }
 0x1ae   :  { %4801 = vmatpush2.bf16.msra.mxu1 %v9069_v44  ;;  %v3996_v5 = vld [vmem:[#allocation2 + $0xd70] sm:$0xff] }
 0x1af   :  { %4996 = vmatprep.subr.bf16.mxu1 %v9132_v40  ;;  %v1531_v24 = vpop.f32.mrf.mxu0  ;;  %4690 = vmatmul.mubr.bf16.vlgmr.msra.gmra.mxu0 %v9727_v21  ;;  %v3962_v46 = vld [vmem:[#allocation2 + $0x930] sm:$0xff] }
 0x1b0   :  { %v1532_v28 = vadd.f32 %v1531_v24, %v1419_v17  ;;  %4884 = vmatpush1.bf16.msra.mxu0 %v9099_v27  ;;  %4699 = vmatprep.mubr.bf16.mxu0 %v9745_v30  ;;  %v9128_v24 = vcombine.high %v3995_v31, %v3996_v5  ;;  %v3961_v27 = vld [vmem:[#allocation2 + $0x910] sm:$0xff] }
 0x1b1   :  { %v1644_v44 = vpop.f32.mrf.mxu1  ;;  %4803 = vmatmul.mubr.bf16.vlgmr.msra.gmra.mxu1 %v9737_v25  ;;  %v1533_v54 = vpop.f32.mrf.mxu0  ;;  %4885 = vmatprep.subr.bf16.mxu0 %v9098_v9  ;;  %v3993_v61 = vld [vmem:[#allocation2 + $0xd10] sm:$0xff] }
 0x1b2   :  { %4997 = vmatpush1.bf16.msra.mxu1 %v9131_v19  ;;  %v10245_v40 = vadd.f32 %v1644_v44, %v1532_v28  ;;  %4812 = vmatprep.mubr.bf16.mxu1 %v9748_v60  ;;  %v3994_v14 = vld [vmem:[#allocation2 + $0xd30] sm:$0xff]  ;;  %v9094_v28 = vcombine.high %v3961_v27, %v3962_v46  ;;  %v1534_v44 = vadd.f32 %v1533_v54, %v10144_v15 }
 0x1b3   :  { %v1646_v38 = vpop.f32.mrf.mxu1  ;;  %4998 = vmatprep.subr.bf16.mxu1 %v9130_v12  ;;  %v1535_v48 = vpop.f32.mrf.mxu0  ;;  %v9127_v12 = vcombine.low %v3995_v31, %v3996_v5  ;;  %v3959_v23 = vld [vmem:[#allocation2 + $0x8d0] sm:$0xff]  ;;  %v9126_v63 = vcombine.high %v3993_v61, %v3994_v14 }
 0x1b4   :  { %13993 = vst [vmem:[#allocation91_spill] sm:$0xff] %v10245_v40  ;;  %v1536_v37 = vadd.f32 %v1535_v48, %v1423_v49  ;;  %4886 = vmatpush1.bf16.msra.mxu0 %v9097_v34  ;;  %1796 = vrot.lane.b32.xlu0 %v10245_v40, %s9610_s30  ;;  %v3960_v1 = vld [vmem:[#allocation2 + $0x8f0] sm:$0xff]  ;;  %v1735_v58 = vrot.slane %v10245_v40, 6  ;;  %v9125_v48 = vcombine.low %v3993_v61, %v3994_v14 }
 0x1b5   :  { %v1648_v62 = vpop.f32.mrf.mxu1  ;;  %v1537_v19 = vpop.f32.mrf.mxu0  ;;  %4887 = vmatprep.subr.bf16.mxu0 %v9096_v10  ;;  %v9093_v10 = vcombine.low %v3961_v27, %v3962_v46  ;;  %v3991_v49 = vld [vmem:[#allocation2 + $0xcd0] sm:$0xff]  ;;  %v9092_v15 = vcombine.high %v3959_v23, %v3960_v1 }
 0x1b6   :  { %4999 = vmatpush1.bf16.msra.mxu1 %v9129_v51  ;;  %v10253_v9 = vadd.f32 %v1648_v62, %v1536_v37  ;;  %v1538_v17 = vadd.f32 %v1537_v19, %v1425_v20  ;;  %v3992_v31 = vld [vmem:[#allocation2 + $0xcf0] sm:$0xff]  ;;  %v1647_v20 = vadd.f32 %v1646_v38, %v1534_v44  ;;  %v9091_v19 = vcombine.low %v3959_v23, %v3960_v1 }
 0x1b7   :  { %v1650_v50 = vpop.f32.mrf.mxu1  ;;  %5000 = vmatprep.subr.bf16.mxu1 %v9128_v24  ;;  %v1541_v34 = vpop.f32.mrf.mxu0  ;;  %4700 = vmatmul.mubr.bf16.gmra.mxu0 %v9753_v41  ;;  %v9124_v27 = vcombine.high %v3991_v49, %v3992_v31  ;;  %v3957_v46 = vld [vmem:[#allocation2 + $0x890] sm:$0xff] }
 0x1b8   :  { %13994 = vst [vmem:[#allocation92_spill] sm:$0xff] %v10253_v9  ;;  %4888 = vmatpush1.bf16.msra.mxu0 %v9095_v55  ;;  %1798 = vrot.lane.b32.xlu1 %v10253_v9, %s9610_s30  ;;  %v1651_v54 = vadd.f32 %v1650_v50, %v1538_v17  ;;  %v3958_v62 = vld [vmem:[#allocation2 + $0x8b0] sm:$0xff]  ;;  %v1542_v38 = vadd.f32 %v1541_v34, %v10157_v53  ;;  %v1909_v1 = vrot.slane %v1647_v20, 6 }
 0x1b9   :  { %v1654_v51 = vpop.f32.mrf.mxu1  ;;  %1747 = vrot.lane.b32.xlu0 %v1735_v58, %s9615_s1  ;;  %v10261_v5 = vpop.f32.mrf.mxu0  ;;  %4813 = vmatmul.mubr.bf16.gmra.mxu1 %v9761_v45  ;;  %v3989_v17 = vld [vmem:[#allocation2 + $0xc90] sm:$0xff]  ;;  %v9090_v44 = vcombine.high %v3957_v46, %v3958_v62  ;;  %v9089_v34 = vcombine.low %v3957_v46, %v3958_v62 }
 0x1ba   :  { %5001 = vmatpush1.bf16.msra.mxu1 %v9127_v12  ;;  %4889 = vmatprep.subr.bf16.mxu0 %v9094_v28  ;;  %v3990_v50 = vld [vmem:[#allocation2 + $0xcb0] sm:$0xff]  ;;  %v1910_v12 = vrot.slane %v1651_v54, 6  ;;  %v9123_v28 = vcombine.low %v3991_v49, %v3992_v31 }
 0x1bb   :  { %v10264_v24 = vpop.f32.mrf.mxu1  ;;  %v10266_v37 = vpop.f32.mrf.mxu0  ;;  %5002 = vmatprep.subr.bf16.mxu1 %v9126_v63  ;;  %4709 = vmatprep.mubr.bf16.mxu0 %v9769_v52  ;;  %v3955_v58 = vld [vmem:[#allocation2 + $0x850] sm:$0xff] }
 0x1bc   :  { %4890 = vmatpush1.bf16.msra.mxu0 %v9093_v10  ;;  %2007 = vrot.lane.b32.xlu1 %v1651_v54, %s9615_s1  ;;  %v3956_v63 = vld [vmem:[#allocation2 + $0x870] sm:$0xff]  ;;  %v1857_v10 = vrot.slane %v1651_v54, 2 }
 0x1bd   :  { %v10270_v55 = vpop.f32.mrf.mxu1  ;;  %2005 = vrot.lane.b32.xlu0 %v1647_v20, %s9615_s1  ;;  %v10273_v61 = vpop.f32.mrf.mxu0  ;;  %4891 = vmatprep.subr.bf16.mxu0 %v9092_v15  ;;  %v9122_v15 = vcombine.high %v3989_v17, %v3990_v50  ;;  %v3987_v40 = vld [vmem:[#allocation2 + $0xc50] sm:$0xff] }
 0x1be   :  { %5003 = vmatpush1.bf16.msra.mxu1 %v9125_v48  ;;  %4822 = vmatprep.mubr.bf16.mxu1 %v9772_v57  ;;  %v1856_v48 = vrot.slane %v1647_v20, 2  ;;  %v3988_v49 = vld [vmem:[#allocation2 + $0xc70] sm:$0xff]  ;;  %v10296_v20 = vsel %vm1880_vm0, %v1857_v10, 0.0  ;;  %v1546_v10 = vadd.f32 %v10266_v37, %v10163_v6 }
 0x1bf   :  { %v10276_v14 = vpop.f32.mrf.mxu1  ;;  %v10279_v23 = vpop.f32.mrf.mxu0  ;;  %4710 = vmatmul.mubr.bf16.gmra.mxu0 %v9777_v7  ;;  %5004 = vmatprep.subr.bf16.mxu1 %v9124_v27  ;;  %v9088_v7 = vcombine.high %v3955_v58, %v3956_v63  ;;  %v10289_v27 = vadd.f32 %v1654_v51, %v1542_v38  ;;  %13996 = vst [vmem:[#allocation94_spill] sm:$0xff] %v10296_v20  ;;  %v3953_v62 = vld [vmem:[#allocation2 + $0x810] sm:$0xff] }
 0x1c0   :  { %4892 = vmatpush1.bf16.msra.mxu0 %v9091_v19  ;;  %1927 = vrot.lane.b32.xlu1 %v1910_v12, %s9616_s5  ;;  %v9121_v19 = vcombine.low %v3989_v17, %v3990_v50  ;;  %v9120_v46 = vcombine.high %v3987_v40, %v3988_v49  ;;  %v10302_v51 = vsel %vm1880_vm0, %v1856_v48, 0.0  ;;  %v9087_v17 = vcombine.low %v3955_v58, %v3956_v63  ;;  %v3985_v50 = vld [vmem:[#allocation2 + $0xc10] sm:$0xff] }
 0x1c1   :  { %v10283_v53 = vpop.f32.mrf.mxu1  ;;  %1925 = vrot.lane.b32.xlu0 %v1909_v1, %s9616_s5  ;;  %v10286_v31 = vpop.f32.mrf.mxu0  ;;  %4823 = vmatmul.mubr.bf16.gmra.mxu1 %v9785_v11  ;;  %13995 = vst [vmem:[#allocation93_spill] sm:$0xff] %v10289_v27  ;;  %v3954_v1 = vld [vmem:[#allocation2 + $0x830] sm:$0xff]  ;;  %13997 = vst [vmem:[#allocation95_spill] sm:$0xff] %v10302_v51  ;;  %v9119_v48 = vcombine.low %v3987_v40, %v3988_v49 }
 0x1c2   :  { %5005 = vmatpush1.bf16.msra.mxu1 %v9123_v28  ;;  %4893 = vmatprep.subr.bf16.mxu0 %v9090_v44  ;;  %v3986_v28 = vld [vmem:[#allocation2 + $0xc30] sm:$0xff]  ;;  %v9086_v58 = vcombine.high %v3953_v62, %v3954_v1 }
 0x1c3   :  { %v10291_v54 = vpop.f32.mrf.mxu1  ;;  %v10293_v12 = vpop.f32.mrf.mxu0  ;;  %5006 = vmatprep.subr.bf16.mxu1 %v9122_v15  ;;  %4719 = vmatprep.mubr.bf16.mxu0 %v9793_v18  ;;  %v3983_v63 = vld [vmem:[#allocation2 + $0xbd0] sm:$0xff] }
 0x1c4   :  { %4894 = vmatpush1.bf16.msra.mxu0 %v9089_v34  ;;  %2099 = vrot.lane.b32.xlu1 %v10296_v20, %s9610_s30  ;;  %v1737_v34 = vrot.slane %v10289_v27, 6  ;;  %v3984_v20 = vld [vmem:[#allocation2 + $0xbf0] sm:$0xff] }
 0x1c5   :  { %v10304_v38 = vpop.f32.mrf.mxu1  ;;  %2097 = vrot.lane.b32.xlu0 %v10302_v51, %s9610_s30  ;;  %v10308_v44 = vpop.f32.mrf.mxu0  ;;  %4895 = vmatprep.subr.bf16.mxu0 %v9088_v7  ;;  %v1736_v51 = vrot.slane %v10253_v9, 6  ;;  %v9118_v7 = vcombine.high %v3985_v50, %v3986_v28  ;;  %v4016_v11 = vld [vmem:[#allocation2 + $0xff0] sm:$0xff]  ;;  %v9116_v49 = vcombine.high %v3983_v63, %v3984_v20  ;;  %v10325_v9 = vadd.f32 %v10270_v55, %v1546_v10 }
 0x1c6   :  { %5007 = vmatpush1.bf16.msra.mxu1 %v9121_v19  ;;  %4832 = vmatprep.mubr.bf16.mxu1 %v9796_v22  ;;  %v9085_v19 = vcombine.low %v3953_v62, %v3954_v1  ;;  %v4015_v22 = vld [vmem:[#allocation2 + $0xfd0] sm:$0xff]  ;;  %v1544_v62 = vadd.f32 %v10261_v5, %v10160_v13 }
 0x1c7   :  { %v10312_v15 = vpop.f32.mrf.mxu1  ;;  %v1561_v18 = vpop.f32.mrf.mxu0  ;;  %4720 = vmatmul.mubr.bf16.gmra.mxu0 %v9801_v59  ;;  %5008 = vmatprep.subr.bf16.mxu1 %v9120_v46  ;;  %13998 = vst [vmem:[#allocation96_spill] sm:$0xff] %v10325_v9  ;;  %v9147_v5 = vcombine.low %v4015_v22, %v4016_v11  ;;  %v14014_v59 = vld [vmem:[#allocation40_spill] sm:$0xff]  ;;  %v3970_v52 = vld [vmem:[#allocation2 + $0xa30] sm:$0xff] }
 0x1c8   :  { %v1562_v6 = vadd.f32 %v1561_v18, %v10181_v0  ;;  %4896 = vmatpush1.bf16.msra.mxu0 %v9087_v17  ;;  %1751 = vrot.lane.b32.xlu1 %v1737_v34, %s9615_s1  ;;  %v9117_v0 = vcombine.low %v3985_v50, %v3986_v28  ;;  %v3981_v17 = vld [vmem:[#allocation2 + $0xb90] sm:$0xff]  ;;  %v1548_v28 = vadd.f32 %v10273_v61, %v10165_v29 }
 0x1c9   :  { %v1674_v37 = vpop.f32.mrf.mxu1  ;;  %1749 = vrot.lane.b32.xlu0 %v1736_v51, %s9615_s1  ;;  %v10321_v40 = vpop.f32.mrf.mxu0  ;;  %4833 = vmatmul.mubr.bf16.gmra.mxu1 %v9809_v35  ;;  %v9148_v51 = vcombine.high %v4015_v22, %v4016_v11  ;;  %v3982_v34 = vld [vmem:[#allocation2 + $0xbb0] sm:$0xff] }
 0x1ca   :  { %v10327_v46 = vadd.f32 %v1674_v37, %v1562_v6  ;;  %5009 = vmatpush1.bf16.msra.mxu1 %v9119_v48  ;;  %4897 = vmatprep.subr.bf16.mxu0 %v9086_v58  ;;  %v9115_v48 = vcombine.low %v3983_v63, %v3984_v20  ;;  %v4013_v58 = vld [vmem:[#allocation2 + $0xf90] sm:$0xff]  ;;  %v1738_v20 = vrot.slane %v10325_v9, 6  ;;  %v9114_v63 = vcombine.high %v3981_v17, %v3982_v34 }
 0x1cb   :  { %v10329_v18 = vpop.f32.mrf.mxu1  ;;  %v1565_v1 = vpop.f32.mrf.mxu0  ;;  %5010 = vmatprep.subr.bf16.mxu1 %v9118_v7  ;;  %4729 = vmatprep.mubr.bf16.mxu0 %v9817_v43  ;;  %v4014_v50 = vld [vmem:[#allocation2 + $0xfb0] sm:$0xff]  ;;  %v9113_v29 = vcombine.low %v3981_v17, %v3982_v34 }
 0x1cc   :  { %13999 = vst [vmem:[#allocation97_spill] sm:$0xff] %v10327_v46  ;;  %v1566_v55 = vadd.f32 %v1565_v1, %v10187_v39  ;;  %4898 = vmatpush1.bf16.msra.mxu0 %v9085_v19  ;;  %1802 = vrot.lane.b32.xlu1 %v10325_v9, %s9610_s30  ;;  %v3979_v6 = vld [vmem:[#allocation2 + $0xb50] sm:$0xff]  ;;  %v1657_v19 = vadd.f32 %v10264_v24, %v1544_v62 }
 0x1cd   :  { %v1678_v10 = vpop.f32.mrf.mxu1  ;;  %1800 = vrot.lane.b32.xlu0 %v10289_v27, %s9610_s30  ;;  %v10339_v13 = vpop.f32.mrf.mxu0  ;;  %4899 = vmatprep.subr.bf16.mxu0 %v9116_v49  ;;  %v3980_v37 = vld [vmem:[#allocation2 + $0xb70] sm:$0xff]  ;;  %v9146_v11 = vcombine.high %v4013_v58, %v4014_v50  ;;  %v1661_v62 = vadd.f32 %v10276_v14, %v1548_v28 }
 0x1ce   :  { %v10343_v7 = vadd.f32 %v1678_v10, %v1566_v55  ;;  %5011 = vmatpush1.bf16.msra.mxu1 %v9117_v0  ;;  %4842 = vmatprep.mubr.bf16.mxu1 %v9820_v47  ;;  %v4011_v61 = vld [vmem:[#allocation2 + $0xf50] sm:$0xff]  ;;  %v9112_v24 = vcombine.high %v3979_v6, %v3980_v37  ;;  %v9145_v55 = vcombine.low %v4013_v58, %v4014_v50 }
 0x1cf   :  { %v10345_v39 = vpop.f32.mrf.mxu1  ;;  %v10350_v1 = vpop.f32.mrf.mxu0  ;;  %4730 = vmatmul.mubr.bf16.gmra.mxu0 %v9828_v3  ;;  %5012 = vmatprep.subr.bf16.mxu1 %v9148_v51  ;;  %v4012_v49 = vld [vmem:[#allocation2 + $0xf70] sm:$0xff]  ;;  %v9111_v14 = vcombine.low %v3979_v6, %v3980_v37 }
 0x1d0   :  { %14000 = vst [vmem:[#allocation98_spill] sm:$0xff] %v10343_v7  ;;  %4900 = vmatpush2.bf16.msra.mxu0 %v9115_v48  ;;  %1753 = vrot.lane.b32.xlu1 %v1738_v20, %s9615_s1  ;;  %v1911_v48 = vrot.slane %v1657_v19, 6  ;;  %v14001_v17 = vld [vmem:[#allocation34_spill] sm:$0xff]  ;;  %v9144_v34 = vcombine.high %v4011_v61, %v4012_v49 }
 0x1d1   :  { %v10354_v22 = vpop.f32.mrf.mxu1  ;;  %2009 = vrot.lane.b32.xlu0 %v1657_v19, %s9615_s1  ;;  %v10357_v0 = vpop.f32.mrf.mxu0  ;;  %4843 = vmatmul.mubr.bf16.gmra.mxu1 %v9839_v8  ;;  %v3977_v20 = vld [vmem:[#allocation2 + $0xb10] sm:$0xff] }
 0x1d2   :  { %5013 = vmatpush2.bf16.msra.mxu1 %v9147_v5  ;;  %4901 = vmatprep.subr.bf16.mxu0 %v9114_v63  ;;  %v3978_v7 = vld [vmem:[#allocation2 + $0xb30] sm:$0xff]  ;;  %v1858_v5 = vrot.slane %v1657_v19, 2  ;;  %v14004_v19 = vld [vmem:[#allocation36_spill] sm:$0xff] }
 0x1d3   :  { %v10361_v51 = vpop.f32.mrf.mxu1  ;;  %v10363_v10 = vpop.f32.mrf.mxu0  ;;  %5014 = vmatprep.subr.bf16.mxu1 %v9146_v11  ;;  %4739 = vmatprep.mubr.bf16.mxu0 %v14001_v17  ;;  %v4009_v28 = vld [vmem:[#allocation2 + $0xf10] sm:$0xff]  ;;  %v1912_v11 = vrot.slane %v1661_v62, 6  ;;  %v9110_v27 = vcombine.high %v3977_v20, %v3978_v7 }
 0x1d4   :  { %4902 = vmatpush2.bf16.msra.mxu0 %v9113_v29  ;;  %2011 = vrot.lane.b32.xlu1 %v1661_v62, %s9615_s1  ;;  %v4010_v9 = vld [vmem:[#allocation2 + $0xf30] sm:$0xff]  ;;  %v9143_v29 = vcombine.low %v4011_v61, %v4012_v49  ;;  %v9109_v49 = vcombine.low %v3977_v20, %v3978_v7 }
 0x1d5   :  { %v10367_v46 = vpop.f32.mrf.mxu1  ;;  %1929 = vrot.lane.b32.xlu0 %v1911_v48, %s9616_s5  ;;  %v10370_v58 = vpop.f32.mrf.mxu0  ;;  %4903 = vmatprep.subr.bf16.mxu0 %v9112_v24  ;;  %v14002_v63 = vld [vmem:[#allocation35_spill] sm:$0xff]  ;;  %v14003_v3 = vld [vmem:[#allocation78_spill] sm:$0xff]  ;;  %v1859_v48 = vrot.slane %v1661_v62, 2  ;;  %v9142_v24 = vcombine.high %v4009_v28, %v4010_v9 }
 0x1d6   :  { %5015 = vmatpush2.bf16.msra.mxu1 %v9145_v55  ;;  %4852 = vmatprep.mubr.bf16.mxu1 %v14002_v63  ;;  %v3975_v17 = vld [vmem:[#allocation2 + $0xad0] sm:$0xff]  ;;  %v1552_v6 = vadd.f32 %v10279_v23, %v14003_v3  ;;  %v10382_v55 = vsel %vm1880_vm0, %v1858_v5, 0.0  ;;  %v14006_v23 = vld [vmem:[#allocation37_spill] sm:$0xff]  ;;  %v9141_v5 = vcombine.low %v4009_v28, %v4010_v9 }
 0x1d7   :  { %v10372_v50 = vpop.f32.mrf.mxu1  ;;  %v3976_v8 = vld [vmem:[#allocation2 + $0xaf0] sm:$0xff]  ;;  %v10377_v37 = vpop.f32.mrf.mxu0  ;;  %4740 = vmatmul.mubr.bf16.gmra.mxu0 %v14004_v19  ;;  %5016 = vmatprep.subr.bf16.mxu1 %v9144_v34  ;;  %14005 = vst [vmem:[#allocation78_spill] sm:$0xff] %v10382_v55  ;;  %v14007_v34 = vld [vmem:[#allocation80_spill] sm:$0xff] }
 0x1d8   :  { %4904 = vmatpush2.bf16.msra.mxu0 %v9111_v14  ;;  %1931 = vrot.lane.b32.xlu1 %v1912_v11, %s9616_s5  ;;  %v4007_v63 = vld [vmem:[#allocation2 + $0xed0] sm:$0xff]  ;;  %v9108_v62 = vcombine.high %v3975_v17, %v3976_v8  ;;  %v1556_v14 = vadd.f32 %v10293_v12, %v14007_v34  ;;  %v10396_v7 = vadd.f32 %v10283_v53, %v1552_v6 }
 0x1d9   :  { %v10384_v61 = vpop.f32.mrf.mxu1  ;;  %v4008_v47 = vld [vmem:[#allocation2 + $0xef0] sm:$0xff]  ;;  %2101 = vrot.lane.b32.xlu0 %v10382_v55, %s9610_s30  ;;  %v10388_v3 = vpop.f32.mrf.mxu0  ;;  %4853 = vmatmul.mubr.bf16.gmra.mxu1 %v14006_v23  ;;  %v10401_v55 = vsel %vm1880_vm0, %v1859_v48, 0.0  ;;  %v9107_v9 = vcombine.low %v3975_v17, %v3976_v8 }
 0x1da   :  { %5017 = vmatpush2.bf16.msra.mxu1 %v9143_v29  ;;  %4905 = vmatprep.subr.bf16.mxu0 %v9110_v27  ;;  %14008 = vst [vmem:[#allocation80_spill] sm:$0xff] %v10396_v7  ;;  %14009 = vst [vmem:[#allocation99_spill] sm:$0xff] %v10401_v55  ;;  %v14010_v19 = vld [vmem:[#allocation38_spill] sm:$0xff]  ;;  %v9140_v23 = vcombine.high %v4007_v63, %v4008_v47  ;;  %v10413_v29 = vadd.f32 %v10304_v38, %v1556_v14  ;;  %v14012_v48 = vld [vmem:[#allocation39_spill] sm:$0xff] }
 0x1db   :  { %v10393_v11 = vpop.f32.mrf.mxu1  ;;  %v10398_v20 = vpop.f32.mrf.mxu0  ;;  %5018 = vmatprep.subr.bf16.mxu1 %v9142_v24  ;;  %4749 = vmatprep.mubr.bf16.mxu0 %v14010_v19  ;;  %v3973_v43 = vld [vmem:[#allocation2 + $0xa90] sm:$0xff]  ;;  %v9139_v24 = vcombine.low %v4007_v63, %v4008_v47 }
 0x1dc   :  { %v3974_v35 = vld [vmem:[#allocation2 + $0xab0] sm:$0xff]  ;;  %4906 = vmatpush2.bf16.msra.mxu0 %v9109_v49  ;;  %2103 = vrot.lane.b32.xlu1 %v10401_v55, %s9610_s30  ;;  %14011 = vst [vmem:[#allocation100_spill] sm:$0xff] %v10413_v29 }
 0x1dd   :  { %v10406_v27 = vpop.f32.mrf.mxu1  ;;  %v4005_v53 = vld [vmem:[#allocation2 + $0xe90] sm:$0xff]  ;;  %1804 = vrot.lane.b32.xlu0 %v10396_v7, %s9610_s30  ;;  %v10410_v28 = vpop.f32.mrf.mxu0  ;;  %4907 = vmatprep.subr.bf16.mxu0 %v9108_v62  ;;  %v9106_v49 = vcombine.high %v3973_v43, %v3974_v35  ;;  %v1739_v62 = vrot.slane %v10396_v7, 6  ;;  %v9105_v63 = vcombine.low %v3973_v43, %v3974_v35  ;;  %v14016_v7 = vld [vmem:[#allocation81_spill] sm:$0xff]  ;;  %v1740_v35 = vrot.slane %v10413_v29, 6 }
 0x1de   :  { %v4006_v12 = vld [vmem:[#allocation2 + $0xeb0] sm:$0xff]  ;;  %5019 = vmatpush2.bf16.msra.mxu1 %v9141_v5  ;;  %4862 = vmatprep.mubr.bf16.mxu1 %v14012_v48 }
 0x1df   :  { %v10415_v6 = vpop.f32.mrf.mxu1  ;;  %v3971_v34 = vld [vmem:[#allocation2 + $0xa50] sm:$0xff]  ;;  %v1591_v19 = vpop.f32.mrf.mxu0  ;;  %4750 = vmatmul.mubr.bf16.gmra.mxu0 %v14014_v59  ;;  %5020 = vmatprep.subr.bf16.mxu1 %v9140_v23  ;;  %v9138_v38 = vcombine.high %v4005_v53, %v4006_v12  ;;  %v9137_v59 = vcombine.low %v4005_v53, %v4006_v12  ;;  %v1558_v23 = vadd.f32 %v10308_v44, %v14016_v7 }
 0x1e0   :  { %v3972_v8 = vld [vmem:[#allocation2 + $0xa70] sm:$0xff]  ;;  %v1592_v14 = vadd.f32 %v1591_v19, %v10217_v26  ;;  %4908 = vmatpush2.bf16.msra.mxu0 %v9107_v9  ;;  %1806 = vrot.lane.b32.xlu1 %v10413_v29, %s9610_s30 }
 0x1e1   :  { %v14013_v17 = vld [vmem:[#allocation79_spill] sm:$0xff]  ;;  %v1704_v47 = vpop.f32.mrf.mxu1  ;;  %1755 = vrot.lane.b32.xlu0 %v1739_v62, %s9615_s1  ;;  %v9104_v57 = vcombine.high %v3971_v34, %v3972_v8  ;;  %4909 = vmatprep.subr.bf16.mxu0 %v9106_v49 }
 0x1e2   :  { %v1554_v55 = vadd.f32 %v10286_v31, %v14013_v17  ;;  %v4003_v5 = vld [vmem:[#allocation2 + $0xe50] sm:$0xff]  ;;  %v1593_v31 = vpop.f32.mrf.mxu0  ;;  %v14015_v17 = vld [vmem:[#allocation41_spill] sm:$0xff]  ;;  %v10430_v19 = vadd.f32 %v1704_v47, %v1592_v14  ;;  %5021 = vmatpush2.bf16.msra.mxu1 %v9139_v24  ;;  %v9103_v24 = vcombine.low %v3971_v34, %v3972_v8  ;;  %v10456_v8 = vld [vmem:[#allocation2 + $0x1d8] sm:$0xff] }
 0x1e3   :  { %v4004_v48 = vld [vmem:[#allocation2 + $0xe70] sm:$0xff]  ;;  %4863 = vmatmul.mubr.bf16.gmra.mxu1 %v14015_v17  ;;  %v1594_v26 = vadd.f32 %v1593_v31, %v10220_v2  ;;  %v1706_v9 = vpop.f32.mrf.mxu1  ;;  %5022 = vmatprep.subr.bf16.mxu1 %v9138_v38  ;;  %v10458_v31 = vld [vmem:[#allocation2 + $0x1f8] sm:$0xff] }
 0x1e4   :  { %14017 = vst [vmem:[#allocation79_spill] sm:$0xff] %v10430_v19  ;;  %v10434_v43 = vadd.f32 %v10291_v54, %v1554_v55  ;;  %v1595_v62 = vpop.f32.mrf.mxu0  ;;  %v14018_v17 = vld [vmem:[#allocation42_spill] sm:$0xff]  ;;  %v9136_v53 = vcombine.high %v4003_v5, %v4004_v48  ;;  %4910 = vmatpush2.bf16.msra.mxu0 %v9105_v63  ;;  %1757 = vrot.lane.b32.xlu1 %v1740_v35, %s9615_s1  ;;  %v14019_v63 = vld [vmem:[#allocation43_spill] sm:$0xff] }
 0x1e5   :  { %4759 = vmatprep.mubr.bf16.mxu0 %v14018_v17  ;;  %v3969_v12 = vld [vmem:[#allocation2 + $0xa10] sm:$0xff]  ;;  %v10438_v44 = vadd.f32 %v1595_v62, %v10223_v32  ;;  %v10440_v2 = vadd.f32 %v1706_v9, %v1594_v26  ;;  %v10443_v7 = vpop.f32.mrf.mxu1  ;;  %4911 = vmatprep.subr.bf16.mxu0 %v9104_v57  ;;  %v9135_v38 = vcombine.low %v4003_v5, %v4004_v48  ;;  %v14020_v9 = vld [vmem:[#allocation44_spill] sm:$0xff] }
 0x1e6   :  { %v10445_v54 = vld [vmem:[#allocation2 + $0xe10] sm:$0xff]  ;;  %2013 = vrot.lane.b32.xlu0 %v10434_v43, %s9615_s1  ;;  %v1597_v49 = vpop.f32.mrf.mxu0  ;;  %v10452_v32 = vadd.f32 %v10312_v15, %v1558_v23  ;;  %5023 = vmatpush2.bf16.msra.mxu1 %v9137_v59  ;;  %v9102_v34 = vcombine.high %v3969_v12, %v3970_v52  ;;  %v1913_v57 = vrot.slane %v10434_v43, 6  ;;  %v9101_v5 = vcombine.low %v3969_v12, %v3970_v52  ;;  %v5542_v35 = vld [vmem:[#allocation2 + $0x5d8] sm:$0xff] }
 0x1e7   :  { %v10447_v55 = vld [vmem:[#allocation2 + $0xe30] sm:$0xff]  ;;  %v1598_v14 = vadd.f32 %v1597_v49, %v10225_v4  ;;  %v1710_v47 = vpop.f32.mrf.mxu1  ;;  %4872 = vmatprep.mubr.bf16.mxu1 %v14019_v63  ;;  %4760 = vmatmul.mubr.bf16.gmra.mxu0 %v14020_v9  ;;  %v1860_v23 = vrot.slane %v10434_v43, 2  ;;  %v5543_v62 = vld [vmem:[#allocation2 + $0x5f8] sm:$0xff]  ;;  %v14021_v49 = vld [vmem:[#allocation45_spill] sm:$0xff] }
 0x1e8   :  { %v1601_v26 = vpop.f32.mrf.mxu0  ;;  %5024 = vmatprep.subr.bf16.mxu1 %v9136_v53  ;;  %v9134_v15 = vcombine.high %v10445_v54, %v10447_v55  ;;  %4912 = vmatpush2.bf16.msra.mxu0 %v9103_v24  ;;  %v1914_v52 = vrot.slane %v10452_v32, 6  ;;  %v9133_v43 = vcombine.low %v10445_v54, %v10447_v55  ;;  %v5508_v12 = vld [vmem:[#allocation2 + $0x198] sm:$0xff]  ;;  %v14024_v9 = vld [vmem:[#allocation46_spill] sm:$0xff] }
 0x1e9   :  { %v1602_v4 = vadd.f32 %v1601_v26, %v10229_v42  ;;  %v10465_v59 = vadd.f32 %v1710_v47, %v1598_v14  ;;  %2015 = vrot.lane.b32.xlu1 %v10452_v32, %s9615_s1  ;;  %v1714_v48 = vpop.f32.mrf.mxu1  ;;  %v9164_v42 = vcombine.high %v10456_v8, %v10458_v31  ;;  %4913 = vmatprep.subr.bf16.mxu0 %v9102_v34  ;;  %v5509_v26 = vld [vmem:[#allocation2 + $0x1b8] sm:$0xff]  ;;  %v10489_v54 = vsel %vm1880_vm0, %v1860_v23, 0.0 }
 0x1ea   :  { %1933 = vrot.lane.b32.xlu0 %v1913_v57, %s9616_s5  ;;  %v1603_v53 = vpop.f32.mrf.mxu0  ;;  %5025 = vmatpush2.bf16.msra.mxu1 %v9135_v38  ;;  %v14023_v57 = vld [vmem:[#allocation82_spill] sm:$0xff]  ;;  %14025 = vst [vmem:[#allocation42_spill] sm:$0xff] %v10489_v54 }
 0x1eb   :  { %4873 = vmatmul.mubr.bf16.gmra.mxu1 %v14021_v49  ;;  %v1604_v14 = vadd.f32 %v1603_v53, %v10232_v56  ;;  %v10475_v24 = vadd.f32 %v1714_v48, %v1602_v4  ;;  %v1716_v47 = vpop.f32.mrf.mxu1  ;;  %v1564_v29 = vadd.f32 %v10321_v40, %v14023_v57  ;;  %5026 = vmatprep.subr.bf16.mxu1 %v9134_v15  ;;  %v1861_v56 = vrot.slane %v10452_v32, 2  ;;  %v5540_v15 = vld [vmem:[#allocation2 + $0x598] sm:$0xff] }
 0x1ec   :  { %v1605_v49 = vpop.f32.mrf.mxu0  ;;  %4915 = vmatprep.mubr.bf16.mxu0 %v14024_v9  ;;  %v9196_v4 = vcombine.high %v5542_v35, %v5543_v62  ;;  %4914 = vmatpush2.bf16.msra.mxu0 %v9101_v5  ;;  %v9163_v40 = vcombine.low %v10456_v8, %v10458_v31  ;;  %v5541_v48 = vld [vmem:[#allocation2 + $0x5b8] sm:$0xff]  ;;  %v9162_v53 = vcombine.high %v5508_v12, %v5509_v26 }
 0x1ed   :  { %14022 = vst [vmem:[#allocation81_spill] sm:$0xff] %v10475_v24  ;;  %v1606_v38 = vadd.f32 %v1605_v49, %v10235_v16  ;;  %v10485_v34 = vadd.f32 %v1716_v47, %v1604_v14  ;;  %1935 = vrot.lane.b32.xlu1 %v1914_v52, %s9616_s5  ;;  %v1718_v55 = vpop.f32.mrf.mxu1  ;;  %6264 = vmatprep.subr.bf16.mxu0 %v9164_v42  ;;  %v14026_v49 = vld [vmem:[#allocation83_spill] sm:$0xff] }
 0x1ee   :  { %2105 = vrot.lane.b32.xlu0 %v10489_v54, %s9610_s30  ;;  %v1607_v32 = vpop.f32.mrf.mxu0  ;;  %v9195_v16 = vcombine.low %v5542_v35, %v5543_v62  ;;  %v1568_v5 = vadd.f32 %v10339_v13, %v14026_v49  ;;  %5027 = vmatpush2.bf16.msra.mxu1 %v9133_v43  ;;  %v14028_v52 = vld [vmem:[#allocation47_spill] sm:$0xff]  ;;  %v1677_v57 = vadd.f32 %v10329_v18, %v1564_v29  ;;  %v14029_v54 = vld [vmem:[#allocation48_spill] sm:$0xff]  ;;  %v10504_v35 = vsel %vm1880_vm0, %v1861_v56, 0.0 }
 0x1ef   :  { %v1608_v14 = vadd.f32 %v1607_v32, %v10239_v36  ;;  %v10498_v23 = vadd.f32 %v1718_v55, %v1606_v38  ;;  %v1720_v47 = vpop.f32.mrf.mxu1  ;;  %5028 = vmatprep.mubr.bf16.mxu1 %v14028_v52  ;;  %v5506_v8 = vld [vmem:[#allocation2 + $0x158] sm:$0xff]  ;;  %4916 = vmatmul.mubr.bf16.vlgmr.msra.gmra.mxu0 %v14029_v54  ;;  %14030 = vst [vmem:[#allocation82_spill] sm:$0xff] %v10504_v35  ;;  %v14031_v55 = vld [vmem:[#allocation49_spill] sm:$0xff] }
 0x1f0   :  { %v5507_v31 = vld [vmem:[#allocation2 + $0x178] sm:$0xff]  ;;  %v2963_v24 = vpop.f32.mrf.mxu0  ;;  %6365 = vmatprep.subr.bf16.mxu1 %v9196_v4  ;;  %v9194_v13 = vcombine.high %v5540_v15, %v5541_v48  ;;  %6265 = vmatpush1.bf16.msra.mxu0 %v9163_v40  ;;  %v9161_v42 = vcombine.low %v5508_v12, %v5509_v26  ;;  %v1681_v4 = vadd.f32 %v10345_v39, %v1568_v5  ;;  %v1915_v12 = vrot.slane %v1677_v57, 6  ;;  %v14032_v26 = vld [vmem:[#allocation50_spill] sm:$0xff] }
 0x1f1   :  { %14027 = vst [vmem:[#allocation43_spill] sm:$0xff] %v10498_v23  ;;  %v10506_v62 = vadd.f32 %v1720_v47, %v1608_v14  ;;  %2107 = vrot.lane.b32.xlu1 %v10504_v35, %s9610_s30  ;;  %v3076_v36 = vpop.f32.mrf.mxu1  ;;  %v5538_v43 = vld [vmem:[#allocation2 + $0x558] sm:$0xff]  ;;  %v9160_v56 = vcombine.high %v5506_v8, %v5507_v31  ;;  %6266 = vmatprep.subr.bf16.mxu0 %v9162_v53  ;;  %v2069_v39 = vrot.slane %v1677_v57, 2 }
 0x1f2   :  { %v5539_v38 = vld [vmem:[#allocation2 + $0x578] sm:$0xff]  ;;  %2017 = vrot.lane.b32.xlu0 %v1677_v57, %s9615_s1  ;;  %v2965_v18 = vpop.f32.mrf.mxu0  ;;  %v10511_v29 = vadd.f32 %v3076_v36, %v2963_v24  ;;  %v9193_v40 = vcombine.low %v5540_v15, %v5541_v48  ;;  %4925 = vmatprep.mubr.bf16.mxu0 %v14032_v26  ;;  %v9159_v35 = vcombine.low %v5506_v8, %v5507_v31 }
 0x1f3   :  { %5029 = vmatmul.mubr.bf16.vlgmr.msra.gmra.mxu1 %v14031_v55  ;;  %v3078_v32 = vpop.f32.mrf.mxu1  ;;  %v9192_v47 = vcombine.high %v5538_v43, %v5539_v38  ;;  %v5504_v23 = vld [vmem:[#allocation2 + $0x118] sm:$0xff] }
 0x1f4   :  { %6366 = vmatpush1.bf16.msra.mxu1 %v9195_v16  ;;  %v2967_v49 = vpop.f32.mrf.mxu0  ;;  %v10515_v14 = vadd.f32 %v3078_v32, %v2965_v18  ;;  %v5505_v24 = vld [vmem:[#allocation2 + $0x138] sm:$0xff]  ;;  %6267 = vmatpush1.bf16.msra.mxu0 %v9161_v42  ;;  %v1916_v18 = vrot.slane %v1681_v4, 6  ;;  %v9191_v32 = vcombine.low %v5538_v43, %v5539_v38 }
 0x1f5   :  { %6367 = vmatprep.subr.bf16.mxu1 %v9194_v13  ;;  %2019 = vrot.lane.b32.xlu1 %v1681_v4, %s9615_s1  ;;  %v3080_v36 = vpop.f32.mrf.mxu1  ;;  %v5536_v16 = vld [vmem:[#allocation2 + $0x518] sm:$0xff]  ;;  %v9158_v42 = vcombine.high %v5504_v23, %v5505_v24  ;;  %v9157_v38 = vcombine.low %v5504_v23, %v5505_v24 }
 0x1f6   :  { %v5537_v5 = vld [vmem:[#allocation2 + $0x538] sm:$0xff]  ;;  %1937 = vrot.lane.b32.xlu0 %v1915_v12, %s9616_s5  ;;  %v2969_v15 = vpop.f32.mrf.mxu0  ;;  %v10520_v48 = vadd.f32 %v3080_v36, %v2967_v49  ;;  %6268 = vmatprep.subr.bf16.mxu0 %v9160_v56  ;;  %v2070_v49 = vrot.slane %v1681_v4, 2 }
 0x1f7   :  { %v3082_v53 = vpop.f32.mrf.mxu1  ;;  %v14033_v13 = vld [vmem:[#allocation51_spill] sm:$0xff]  ;;  %v14034_v54 = vld [vmem:[#allocation84_spill] sm:$0xff]  ;;  %v9190_v56 = vcombine.high %v5536_v16, %v5537_v5 }
 0x1f8   :  { %6368 = vmatpush1.bf16.msra.mxu1 %v9193_v40  ;;  %5038 = vmatprep.mubr.bf16.mxu1 %v14033_v13  ;;  %v5502_v55 = vld [vmem:[#allocation2 + $0xd8] sm:$0xff]  ;;  %v1572_v8 = vadd.f32 %v10350_v1, %v14034_v54  ;;  %v2973_v31 = vpop.f32.mrf.mxu0  ;;  %v10525_v57 = vadd.f32 %v3082_v53, %v2969_v15  ;;  %v2077_v40 = vsel %vm1880_vm0, %v2069_v39, 0.0  ;;  %v14036_v15 = vld [vmem:[#allocation53_spill] sm:$0xff] }
 0x1f9   :  { %v5503_v26 = vld [vmem:[#allocation2 + $0xf8] sm:$0xff]  ;;  %6369 = vmatprep.subr.bf16.mxu1 %v9192_v47  ;;  %6269 = vmatpush1.bf16.msra.mxu0 %v9159_v35  ;;  %v3086_v43 = vpop.f32.mrf.mxu1  ;;  %v14037_v47 = vld [vmem:[#allocation86_spill] sm:$0xff] }
 0x1fa   :  { %v14035_v12 = vld [vmem:[#allocation52_spill] sm:$0xff]  ;;  %1939 = vrot.lane.b32.xlu1 %v1916_v18, %s9616_s5  ;;  %2109 = vrot.lane.b32.xlu0 %v2077_v40, %s9610_s30  ;;  %v2975_v1 = vpop.f32.mrf.mxu0  ;;  %v10531_v54 = vadd.f32 %v3086_v43, %v2973_v31  ;;  %v9156_v53 = vcombine.high %v5502_v55, %v5503_v26  ;;  %v1576_v4 = vadd.f32 %v10363_v10, %v14037_v47  ;;  %v2078_v40 = vsel %vm1880_vm0, %v2070_v49, 0.0  ;;  %v14039_v31 = vld [vmem:[#allocation54_spill] sm:$0xff] }
 0x1fb   :  { %4926 = vmatmul.mubr.bf16.gmra.mxu0 %v14035_v12  ;;  %v5534_v36 = vld [vmem:[#allocation2 + $0x4d8] sm:$0xff]  ;;  %5039 = vmatmul.mubr.bf16.gmra.mxu1 %v14036_v15  ;;  %v3088_v35 = vpop.f32.mrf.mxu1  ;;  %v9189_v18 = vcombine.low %v5536_v16, %v5537_v5  ;;  %v10537_v39 = vadd.f32 %v10354_v22, %v1572_v8 }
 0x1fc   :  { %v5535_v13 = vld [vmem:[#allocation2 + $0x4f8] sm:$0xff]  ;;  %6370 = vmatpush1.bf16.msra.mxu1 %v9191_v32  ;;  %6270 = vmatprep.subr.bf16.mxu0 %v9158_v42  ;;  %v2977_v23 = vpop.f32.mrf.mxu0  ;;  %v10539_v24 = vadd.f32 %v3088_v35, %v2975_v1  ;;  %v9155_v32 = vcombine.low %v5502_v55, %v5503_v26  ;;  %v10549_v8 = vadd.f32 %v10367_v46, %v1576_v4  ;;  %v14042_v26 = vld [vmem:[#allocation85_spill] sm:$0xff] }
 0x1fd   :  { %14038 = vst [vmem:[#allocation46_spill] sm:$0xff] %v10537_v39  ;;  %6371 = vmatprep.subr.bf16.mxu1 %v9190_v56  ;;  %4935 = vmatprep.mubr.bf16.mxu0 %v14039_v31  ;;  %v9188_v43 = vcombine.high %v5534_v36, %v5535_v13  ;;  %v5500_v15 = vld [vmem:[#allocation2 + $0x98] sm:$0xff]  ;;  %v3090_v10 = vpop.f32.mrf.mxu1  ;;  %v1574_v35 = vadd.f32 %v10357_v0, %v14042_v26 }
 0x1fe   :  { %v5501_v12 = vld [vmem:[#allocation2 + $0xb8] sm:$0xff]  ;;  %6271 = vmatpush1.bf16.msra.mxu0 %v9157_v38  ;;  %2111 = vrot.lane.b32.xlu1 %v2078_v40, %s9610_s30  ;;  %v2979_v22 = vpop.f32.mrf.mxu0  ;;  %v10546_v42 = vadd.f32 %v3090_v10, %v2977_v23  ;;  %14040 = vst [vmem:[#allocation83_spill] sm:$0xff] %v10549_v8  ;;  %v9187_v38 = vcombine.low %v5534_v36, %v5535_v13 }
 0x1ff   :  { %v5532_v16 = vld [vmem:[#allocation2 + $0x498] sm:$0xff]  ;;  %1808 = vrot.lane.b32.xlu0 %v10537_v39, %s9610_s30  ;;  %6272 = vmatprep.subr.bf16.mxu0 %v9156_v53  ;;  %v3092_v49 = vpop.f32.mrf.mxu1  ;;  %v9154_v1 = vcombine.high %v5500_v15, %v5501_v12  ;;  %v1741_v53 = vrot.slane %v10537_v39, 6  ;;  %v9153_v36 = vcombine.low %v5500_v15, %v5501_v12  ;;  %v1742_v39 = vrot.slane %v10549_v8, 6 }
 0x200   :  { %v5533_v5 = vld [vmem:[#allocation2 + $0x4b8] sm:$0xff]  ;;  %6372 = vmatpush1.bf16.msra.mxu1 %v9189_v18  ;;  %v2983_v40 = vpop.f32.mrf.mxu0  ;;  %v10554_v31 = vadd.f32 %v3092_v49, %v2979_v22  ;;  %v14044_v22 = vld [vmem:[#allocation57_spill] sm:$0xff]  ;;  %v1687_v12 = vadd.f32 %v10361_v51, %v1574_v35 }
 0x201   :  { %v14041_v56 = vld [vmem:[#allocation55_spill] sm:$0xff]  ;;  %v14043_v23 = vld [vmem:[#allocation56_spill] sm:$0xff]  ;;  %6373 = vmatprep.subr.bf16.mxu1 %v9188_v43  ;;  %v9186_v46 = vcombine.high %v5532_v16, %v5533_v5  ;;  %v3096_v13 = vpop.f32.mrf.mxu1 }
 0x202   :  { %5048 = vmatprep.mubr.bf16.mxu1 %v14041_v56  ;;  %v5498_v47 = vld [vmem:[#allocation2 + $0x58] sm:$0xff]  ;;  %6273 = vmatpush1.bf16.msra.mxu0 %v9155_v32  ;;  %v2985_v0 = vpop.f32.mrf.mxu0  ;;  %v10561_v10 = vadd.f32 %v3096_v13, %v2983_v40  ;;  %v14046_v40 = vld [vmem:[#allocation58_spill] sm:$0xff] }
 0x203   :  { %v5499_v55 = vld [vmem:[#allocation2 + $0x78] sm:$0xff]  ;;  %4936 = vmatmul.mubr.bf16.gmra.mxu0 %v14043_v23  ;;  %1810 = vrot.lane.b32.xlu1 %v10549_v8, %s9610_s30  ;;  %v3098_v32 = vpop.f32.mrf.mxu1  ;;  %v9185_v23 = vcombine.low %v5532_v16, %v5533_v5 }
 0x204   :  { %v5530_v4 = vld [vmem:[#allocation2 + $0x458] sm:$0xff]  ;;  %1759 = vrot.lane.b32.xlu0 %v1741_v53, %s9615_s1  ;;  %5049 = vmatmul.mubr.bf16.gmra.mxu1 %v14044_v22  ;;  %v9152_v49 = vcombine.high %v5498_v47, %v5499_v55  ;;  %v2987_v15 = vpop.f32.mrf.mxu0  ;;  %v10568_v56 = vadd.f32 %v3098_v32, %v2985_v0 }
 0x205   :  { %v5531_v18 = vld [vmem:[#allocation2 + $0x478] sm:$0xff]  ;;  %6374 = vmatpush1.bf16.msra.mxu1 %v9187_v38  ;;  %6274 = vmatprep.subr.bf16.mxu0 %v9154_v1  ;;  %v9151_v38 = vcombine.low %v5498_v47, %v5499_v55 }
 0x206   :  { %v14045_v26 = vld [vmem:[#allocation87_spill] sm:$0xff]  ;;  %6375 = vmatprep.subr.bf16.mxu1 %v9186_v46  ;;  %4945 = vmatprep.mubr.bf16.mxu0 %v14046_v40  ;;  %v9184_v53 = vcombine.high %v5530_v4, %v5531_v18  ;;  %v2989_v16 = vpop.f32.mrf.mxu0  ;;  %v14049_v8 = vld [vmem:[#allocation60_spill] sm:$0xff]  ;;  %v1917_v40 = vrot.slane %v1687_v12, 6 }
 0x207   :  { %v1578_v43 = vadd.f32 %v10370_v58, %v14045_v26  ;;  %v5496_v13 = vld [vmem:[#allocation2 + $0x18] sm:$0xff]  ;;  %6275 = vmatpush1.bf16.msra.mxu0 %v9153_v36  ;;  %1761 = vrot.lane.b32.xlu1 %v1742_v39, %s9615_s1  ;;  %v3100_v58 = vpop.f32.mrf.mxu1  ;;  %v9183_v36 = vcombine.low %v5530_v4, %v5531_v18 }
 0x208   :  { %v5497_v22 = vld [vmem:[#allocation2 + $0x38] sm:$0xff]  ;;  %2021 = vrot.lane.b32.xlu0 %v1687_v12, %s9615_s1  ;;  %v10573_v51 = vadd.f32 %v3100_v58, %v2987_v15  ;;  %6276 = vmatprep.subr.bf16.mxu0 %v9152_v49  ;;  %v2993_v47 = vpop.f32.mrf.mxu0  ;;  %v1862_v49 = vrot.slane %v1687_v12, 2 }
 0x209   :  { %v5528_v1 = vld [vmem:[#allocation2 + $0x418] sm:$0xff]  ;;  %v10576_v5 = vadd.f32 %v10372_v50, %v1578_v43  ;;  %6376 = vmatpush1.bf16.msra.mxu1 %v9185_v23  ;;  %v3102_v35 = vpop.f32.mrf.mxu1  ;;  %v9150_v0 = vcombine.high %v5496_v13, %v5497_v22  ;;  %v9149_v23 = vcombine.low %v5496_v13, %v5497_v22 }
 0x20a   :  { %v5529_v26 = vld [vmem:[#allocation2 + $0x438] sm:$0xff]  ;;  %v10579_v55 = vadd.f32 %v3102_v35, %v2989_v16  ;;  %6377 = vmatprep.subr.bf16.mxu1 %v9184_v53  ;;  %v2995_v18 = vpop.f32.mrf.mxu0  ;;  %v14051_v16 = vld [vmem:[#allocation61_spill] sm:$0xff] }
 0x20b   :  { %v14047_v46 = vld [vmem:[#allocation59_spill] sm:$0xff]  ;;  %4946 = vmatmul.mubr.bf16.gmra.mxu0 %v14049_v8  ;;  %v9182_v15 = vcombine.high %v5528_v1, %v5529_v26  ;;  %2023 = vrot.lane.b32.xlu1 %v10576_v5, %s9615_s1  ;;  %v3106_v50 = vpop.f32.mrf.mxu1  ;;  %v9181_v8 = vcombine.low %v5528_v1, %v5529_v26 }
 0x20c   :  { %5058 = vmatprep.mubr.bf16.mxu1 %v14047_v46  ;;  %v5526_v39 = vld [vmem:[#allocation2 + $0x3d8] sm:$0xff]  ;;  %14048 = vst [vmem:[#allocation47_spill] sm:$0xff] %v10579_v55  ;;  %6277 = vmatpush1.bf16.msra.mxu0 %v9151_v38  ;;  %v10585_v58 = vadd.f32 %v3106_v50, %v2993_v47  ;;  %v1918_v38 = vrot.slane %v10576_v5, 6  ;;  %v2997_v12 = vpop.f32.mrf.mxu0  ;;  %v1863_v47 = vrot.slane %v10576_v5, 2  ;;  %v1586_v5 = vadd.f32 %v10398_v20, %v10211_v33  ;;  %v14115_v55 = vld [vmem:[#allocation26_spill] sm:$0xff] }
 0x20d   :  { %v5527_v32 = vld [vmem:[#allocation2 + $0x3f8] sm:$0xff]  ;;  %1941 = vrot.lane.b32.xlu0 %v1917_v40, %s9616_s5  ;;  %5059 = vmatmul.mubr.bf16.gmra.mxu1 %v14051_v16  ;;  %v3108_v53 = vpop.f32.mrf.mxu1  ;;  %v14054_v40 = vld [vmem:[#allocation62_spill] sm:$0xff] }
 0x20e   :  { %v5558_v43 = vld [vmem:[#allocation2 + $0x7d8] sm:$0xff]  ;;  %14050 = vst [vmem:[#allocation84_spill] sm:$0xff] %v10585_v58  ;;  %v9180_v35 = vcombine.high %v5526_v39, %v5527_v32  ;;  %6378 = vmatpush1.bf16.msra.mxu1 %v9183_v36  ;;  %6278 = vmatprep.subr.bf16.mxu0 %v9150_v0  ;;  %v10591_v13 = vadd.f32 %v3108_v53, %v2995_v18  ;;  %v10597_v36 = vsel %vm1880_vm0, %v1862_v49, 0.0  ;;  %v2999_v0 = vpop.f32.mrf.mxu0 }
 0x20f   :  { %v5559_v4 = vld [vmem:[#allocation2 + $0x7f8] sm:$0xff]  ;;  %6379 = vmatprep.subr.bf16.mxu1 %v9182_v15  ;;  %4955 = vmatprep.mubr.bf16.mxu0 %v14054_v40  ;;  %14055 = vst [vmem:[#allocation85_spill] sm:$0xff] %v10597_v36  ;;  %v3110_v1 = vpop.f32.mrf.mxu1  ;;  %v9179_v26 = vcombine.low %v5526_v39, %v5527_v32 }
 0x210   :  { %v14052_v46 = vld [vmem:[#allocation88_spill] sm:$0xff]  ;;  %14053 = vst [vmem:[#allocation86_spill] sm:$0xff] %v10591_v13  ;;  %v9212_v50 = vcombine.high %v5558_v43, %v5559_v4  ;;  %6279 = vmatpush1.bf16.msra.mxu0 %v9149_v23  ;;  %1943 = vrot.lane.b32.xlu1 %v1918_v38, %s9616_s5  ;;  %v10601_v15 = vadd.f32 %v3110_v1, %v2997_v12  ;;  %v14057_v18 = vld [vmem:[#allocation63_spill] sm:$0xff]  ;;  %v3003_v40 = vpop.f32.mrf.mxu0  ;;  %v14063_v1 = vld [vmem:[#allocation65_spill] sm:$0xff] }
 0x211   :  { %v1582_v22 = vadd.f32 %v10377_v37, %v14052_v46  ;;  %v5524_v16 = vld [vmem:[#allocation2 + $0x398] sm:$0xff]  ;;  %2113 = vrot.lane.b32.xlu0 %v10597_v36, %s9610_s30  ;;  %6280 = vmatprep.subr.bf16.mxu0 %v9180_v35  ;;  %v3112_v23 = vpop.f32.mrf.mxu1  ;;  %v9211_v49 = vcombine.low %v5558_v43, %v5559_v4  ;;  %v10613_v35 = vsel %vm1880_vm0, %v1863_v47, 0.0 }
 0x212   :  { %v5525_v58 = vld [vmem:[#allocation2 + $0x3b8] sm:$0xff]  ;;  %14056 = vst [vmem:[#allocation87_spill] sm:$0xff] %v10601_v15  ;;  %6380 = vmatpush1.bf16.msra.mxu1 %v9181_v8  ;;  %5068 = vmatprep.mubr.bf16.mxu1 %v14057_v18  ;;  %v10609_v36 = vadd.f32 %v3112_v23, %v2999_v0  ;;  %14061 = vst [vmem:[#allocation102_spill] sm:$0xff] %v10613_v35  ;;  %v14065_v23 = vld [vmem:[#allocation89_spill] sm:$0xff] }
 0x213   :  { %v5556_v37 = vld [vmem:[#allocation2 + $0x798] sm:$0xff]  ;;  %v9178_v53 = vcombine.high %v5524_v16, %v5525_v58  ;;  %v10607_v32 = vadd.f32 %v10384_v61, %v1582_v22  ;;  %6381 = vmatprep.subr.bf16.mxu1 %v9212_v50  ;;  %v3116_v20 = vpop.f32.mrf.mxu1  ;;  %v9177_v8 = vcombine.low %v5524_v16, %v5525_v58  ;;  %v3005_v61 = vpop.f32.mrf.mxu0  ;;  %v10623_v50 = vadd.f32 %v10406_v27, %v1586_v5 }
 0x214   :  { %v5557_v46 = vld [vmem:[#allocation2 + $0x7b8] sm:$0xff]  ;;  %14059 = vst [vmem:[#allocation101_spill] sm:$0xff] %v10609_v36  ;;  %6281 = vmatpush2.bf16.msra.mxu0 %v9179_v26  ;;  %2115 = vrot.lane.b32.xlu1 %v10613_v35, %s9610_s30  ;;  %v10619_v22 = vadd.f32 %v3116_v20, %v3003_v40  ;;  %v1584_v58 = vadd.f32 %v10388_v3, %v14065_v23  ;;  %v14067_v40 = vld [vmem:[#allocation66_spill] sm:$0xff] }
 0x215   :  { %v5522_v38 = vld [vmem:[#allocation2 + $0x358] sm:$0xff]  ;;  %14058 = vst [vmem:[#allocation88_spill] sm:$0xff] %v10607_v32  ;;  %v9210_v33 = vcombine.high %v5556_v37, %v5557_v46  ;;  %1812 = vrot.lane.b32.xlu0 %v10607_v32, %s9610_s30  ;;  %5069 = vmatmul.mubr.bf16.gmra.mxu1 %v14063_v1  ;;  %14064 = vst [vmem:[#allocation104_spill] sm:$0xff] %v10623_v50  ;;  %v3118_v26 = vpop.f32.mrf.mxu1  ;;  %v9209_v0 = vcombine.low %v5556_v37, %v5557_v46  ;;  %v3007_v16 = vpop.f32.mrf.mxu0 }
 0x216   :  { %v5523_v39 = vld [vmem:[#allocation2 + $0x378] sm:$0xff]  ;;  %14062 = vst [vmem:[#allocation103_spill] sm:$0xff] %v10619_v22  ;;  %6382 = vmatpush2.bf16.msra.mxu1 %v9211_v49  ;;  %6282 = vmatprep.subr.bf16.mxu0 %v9178_v53  ;;  %v10627_v35 = vadd.f32 %v3118_v26, %v3005_v61  ;;  %v14069_v53 = vld [vmem:[#allocation90_spill] sm:$0xff] }
 0x217   :  { %v14060_v12 = vld [vmem:[#allocation64_spill] sm:$0xff]  ;;  %v9176_v47 = vcombine.high %v5522_v38, %v5523_v39  ;;  %6383 = vmatprep.subr.bf16.mxu1 %v9210_v33  ;;  %v3120_v27 = vpop.f32.mrf.mxu1  ;;  %v9175_v37 = vcombine.low %v5522_v38, %v5523_v39  ;;  %v3009_v3 = vpop.f32.mrf.mxu0  ;;  %v1588_v33 = vadd.f32 %v10410_v28, %v14069_v53  ;;  %v14070_v26 = vld [vmem:[#allocation67_spill] sm:$0xff] }
 0x218   :  { %4956 = vmatmul.mubr.bf16.gmra.mxu0 %v14060_v12  ;;  %v5554_v43 = vld [vmem:[#allocation2 + $0x758] sm:$0xff]  ;;  %14066 = vst [vmem:[#allocation89_spill] sm:$0xff] %v10627_v35  ;;  %v1743_v12 = vrot.slane %v10607_v32, 6  ;;  %1814 = vrot.lane.b32.xlu1 %v10623_v50, %s9610_s30  ;;  %v10634_v49 = vadd.f32 %v3120_v27, %v3007_v16 }
 0x219   :  { %v5555_v4 = vld [vmem:[#allocation2 + $0x778] sm:$0xff]  ;;  %4965 = vmatprep.mubr.bf16.mxu0 %v14067_v40  ;;  %6283 = vmatpush2.bf16.msra.mxu0 %v9177_v8  ;;  %v3122_v61 = vpop.f32.mrf.mxu1  ;;  %v1744_v8 = vrot.slane %v10623_v50, 6  ;;  %v1697_v40 = vadd.f32 %v10393_v11, %v1584_v58  ;;  %v14075_v58 = vld [vmem:[#allocation69_spill] sm:$0xff]  ;;  %v14076_v50 = vld [vmem:[#allocation70_spill] sm:$0xff] }
 0x21a   :  { %v9208_v20 = vcombine.high %v5554_v43, %v5555_v4  ;;  %v5520_v1 = vld [vmem:[#allocation2 + $0x318] sm:$0xff]  ;;  %1763 = vrot.lane.b32.xlu0 %v1743_v12, %s9615_s1  ;;  %14068 = vst [vmem:[#allocation105_spill] sm:$0xff] %v10634_v49  ;;  %6284 = vmatprep.subr.bf16.mxu0 %v9176_v47  ;;  %v9207_v23 = vcombine.low %v5554_v43, %v5555_v4  ;;  %v3013_v12 = vpop.f32.mrf.mxu0  ;;  %v10645_v43 = vpop.permute.xlu1 %3561  ;;  %v14106_v49 = vld [vmem:[#allocation22_spill] sm:$0xff] }
 0x21b   :  { %v5521_v18 = vld [vmem:[#allocation2 + $0x338] sm:$0xff]  ;;  %6384 = vmatpush2.bf16.msra.mxu1 %v9209_v0  ;;  %5078 = vmatprep.mubr.bf16.mxu1 %v14070_v26  ;;  %v10641_v35 = vadd.f32 %v3122_v61, %v3009_v3  ;;  %v3126_v28 = vpop.f32.mrf.mxu1  ;;  %14073 = vst [vmem:[#allocation106_spill] sm:$0xff] %v10645_v43 }
 0x21c   :  { %v5552_v46 = vld [vmem:[#allocation2 + $0x718] sm:$0xff]  ;;  %v9174_v32 = vcombine.high %v5520_v1, %v5521_v18  ;;  %6385 = vmatprep.subr.bf16.mxu1 %v9208_v20  ;;  %1765 = vrot.lane.b32.xlu1 %v1744_v8, %s9615_s1  ;;  %v9173_v0 = vcombine.low %v5520_v1, %v5521_v18  ;;  %v3015_v4 = vpop.f32.mrf.mxu0  ;;  %v10648_v11 = vadd.f32 %v3126_v28, %v3013_v12  ;;  %v1919_v1 = vrot.slane %v1697_v40, 6  ;;  %v10655_v28 = vpop.permute.xlu0 %3458 }
 0x21d   :  { %v5553_v5 = vld [vmem:[#allocation2 + $0x738] sm:$0xff]  ;;  %14071 = vst [vmem:[#allocation90_spill] sm:$0xff] %v10641_v35  ;;  %6285 = vmatpush2.bf16.msra.mxu0 %v9175_v37  ;;  %5079 = vmatmul.mubr.bf16.gmra.mxu1 %v14075_v58  ;;  %v1701_v20 = vadd.f32 %v10415_v6, %v1588_v33  ;;  %v3128_v37 = vpop.f32.mrf.mxu1  ;;  %14077 = vst [vmem:[#allocation108_spill] sm:$0xff] %v10655_v28 }
 0x21e   :  { %v5518_v38 = vld [vmem:[#allocation2 + $0x2d8] sm:$0xff]  ;;  %v9206_v47 = vcombine.high %v5552_v46, %v5553_v5  ;;  %2025 = vrot.lane.b32.xlu0 %v1697_v40, %s9615_s1  ;;  %14074 = vst [vmem:[#allocation107_spill] sm:$0xff] %v10648_v11  ;;  %6286 = vmatprep.subr.bf16.mxu0 %v9174_v32  ;;  %v9205_v61 = vcombine.low %v5552_v46, %v5553_v5  ;;  %v3017_v8 = vpop.f32.mrf.mxu0  ;;  %v10662_v11 = vpop.permute.xlu1 %5293 }
 0x21f   :  { %v5519_v39 = vld [vmem:[#allocation2 + $0x2f8] sm:$0xff]  ;;  %6386 = vmatpush2.bf16.msra.mxu1 %v9207_v23  ;;  %v10652_v18 = vadd.f32 %v3128_v37, %v3015_v4  ;;  %v3130_v6 = vpop.f32.mrf.mxu1  ;;  %v1864_v23 = vrot.slane %v1697_v40, 2  ;;  %v1920_v58 = vrot.slane %v1701_v20, 6  ;;  %14079 = vst [vmem:[#allocation109_spill] sm:$0xff] %v10662_v11  ;;  %v14082_v11 = vld [vmem:[#allocation73_spill] sm:$0xff] }
 0x220   :  { %v14072_v16 = vld [vmem:[#allocation68_spill] sm:$0xff]  ;;  %v9172_v3 = vcombine.high %v5518_v38, %v5519_v39  ;;  %6387 = vmatprep.subr.bf16.mxu1 %v9206_v47  ;;  %2027 = vrot.lane.b32.xlu1 %v1701_v20, %s9615_s1  ;;  %v9171_v33 = vcombine.low %v5518_v38, %v5519_v39  ;;  %v3019_v5 = vpop.f32.mrf.mxu0  ;;  %v10659_v4 = vadd.f32 %v3130_v6, %v3017_v8  ;;  %v14078_v37 = vld [vmem:[#allocation71_spill] sm:$0xff]  ;;  %v1865_v8 = vrot.slane %v1701_v20, 2  ;;  %v10676_v20 = vpop.permute.xlu0 %6987 }
 0x221   :  { %4966 = vmatmul.mubr.bf16.gmra.mxu0 %v14072_v16  ;;  %v5550_v27 = vld [vmem:[#allocation2 + $0x6d8] sm:$0xff]  ;;  %v3132_v47 = vpop.f32.mrf.mxu1  ;;  %5088 = vmatprep.mubr.bf16.mxu1 %v14078_v37  ;;  %14083 = vst [vmem:[#allocation111_spill] sm:$0xff] %v10676_v20 }
 0x222   :  { %v5551_v53 = vld [vmem:[#allocation2 + $0x6f8] sm:$0xff]  ;;  %4975 = vmatprep.mubr.bf16.mxu0 %v14076_v50  ;;  %6287 = vmatpush2.bf16.msra.mxu0 %v9173_v0  ;;  %v3023_v40 = vpop.f32.mrf.mxu0  ;;  %v10664_v38 = vadd.f32 %v3132_v47, %v3019_v5 }
 0x223   :  { %v9204_v43 = vcombine.high %v5550_v27, %v5551_v53  ;;  %v5516_v16 = vld [vmem:[#allocation2 + $0x298] sm:$0xff]  ;;  %1945 = vrot.lane.b32.xlu0 %v1919_v1, %s9616_s5  ;;  %6288 = vmatprep.subr.bf16.mxu0 %v9172_v3  ;;  %v9203_v28 = vcombine.low %v5550_v27, %v5551_v53  ;;  %v10669_v3 = vsel %vm1880_vm0, %v1864_v23, 0.0  ;;  %v3136_v27 = vpop.f32.mrf.mxu1 }
 0x224   :  { %v5517_v12 = vld [vmem:[#allocation2 + $0x2b8] sm:$0xff]  ;;  %6388 = vmatpush2.bf16.msra.mxu1 %v9205_v61  ;;  %1947 = vrot.lane.b32.xlu1 %v1920_v58, %s9616_s5  ;;  %14081 = vst [vmem:[#allocation110_spill] sm:$0xff] %v10669_v3  ;;  %v3025_v5 = vpop.f32.mrf.mxu0  ;;  %v10673_v47 = vadd.f32 %v3136_v27, %v3023_v40 }
 0x225   :  { %v5548_v32 = vld [vmem:[#allocation2 + $0x698] sm:$0xff]  ;;  %v9170_v0 = vcombine.high %v5516_v16, %v5517_v12  ;;  %6389 = vmatprep.subr.bf16.mxu1 %v9204_v43  ;;  %v9169_v53 = vcombine.low %v5516_v16, %v5517_v12  ;;  %5089 = vmatmul.mubr.bf16.gmra.mxu1 %v14082_v11  ;;  %v3138_v58 = vpop.f32.mrf.mxu1  ;;  %v10681_v16 = vsel %vm1880_vm0, %v1865_v8, 0.0  ;;  %v14085_v12 = vld [vmem:[#allocation74_spill] sm:$0xff] }
 0x226   :  { %v5549_v46 = vld [vmem:[#allocation2 + $0x6b8] sm:$0xff]  ;;  %6289 = vmatpush2.bf16.msra.mxu0 %v9171_v33  ;;  %v3027_v23 = vpop.f32.mrf.mxu0  ;;  %14084 = vst [vmem:[#allocation112_spill] sm:$0xff] %v10681_v16 }
 0x227   :  { %v5514_v50 = vld [vmem:[#allocation2 + $0x258] sm:$0xff]  ;;  %v9202_v1 = vcombine.high %v5548_v32, %v5549_v46  ;;  %2117 = vrot.lane.b32.xlu0 %v10669_v3, %s9610_s30  ;;  %6290 = vmatprep.subr.bf16.mxu0 %v9170_v0  ;;  %v9201_v33 = vcombine.low %v5548_v32, %v5549_v46  ;;  %v10686_v46 = vpop.permute.xlu1 %6976 }
 0x228   :  { %v5515_v26 = vld [vmem:[#allocation2 + $0x278] sm:$0xff]  ;;  %6390 = vmatpush2.bf16.msra.mxu1 %v9203_v28  ;;  %2119 = vrot.lane.b32.xlu1 %v10681_v16, %s9610_s30  ;;  %v3140_v28 = vpop.f32.mrf.mxu1  ;;  %14086 = vst [vmem:[#allocation113_spill] sm:$0xff] %v10686_v46  ;;  %v3029_v8 = vpop.f32.mrf.mxu0 }
 0x229   :  { %v14080_v39 = vld [vmem:[#allocation72_spill] sm:$0xff]  ;;  %v9168_v43 = vcombine.high %v5514_v50, %v5515_v26  ;;  %6391 = vmatprep.subr.bf16.mxu1 %v9202_v1  ;;  %v9167_v20 = vcombine.low %v5514_v50, %v5515_v26  ;;  %v10690_v1 = vadd.f32 %v3140_v28, %v3027_v23  ;;  %v14089_v50 = vld [vmem:[#allocation75_spill] sm:$0xff] }
 0x22a   :  { %4976 = vmatmul.mubr.bf16.gmra.mxu0 %v14080_v39  ;;  %v5546_v61 = vld [vmem:[#allocation2 + $0x658] sm:$0xff]  ;;  %v10678_v39 = vadd.f32 %v3138_v58, %v3025_v5  ;;  %v10694_v5 = vadd.f32 %v10443_v7, %v10438_v44  ;;  %v3142_v58 = vpop.f32.mrf.mxu1  ;;  %5098 = vmatprep.mubr.bf16.mxu1 %v14089_v50 }
 0x22b   :  { %v5547_v6 = vld [vmem:[#allocation2 + $0x678] sm:$0xff]  ;;  %4985 = vmatprep.mubr.bf16.mxu0 %v14085_v12  ;;  %6291 = vmatpush2.bf16.msra.mxu0 %v9169_v53  ;;  %v10696_v53 = vpop.permute.xlu0 %1796  ;;  %v3033_v12 = vpop.f32.mrf.mxu0  ;;  %v10699_v37 = vadd.f32 %v3142_v58, %v3029_v8  ;;  %v14091_v8 = vld [vmem:[#allocation77_spill] sm:$0xff] }
 0x22c   :  { %v9200_v40 = vcombine.high %v5546_v61, %v5547_v6  ;;  %v5512_v27 = vld [vmem:[#allocation2 + $0x218] sm:$0xff]  ;;  %1816 = vrot.lane.b32.xlu0 %v10430_v19, %s9610_s30  ;;  %6292 = vmatprep.subr.bf16.mxu0 %v9168_v43  ;;  %14087 = vst [vmem:[#allocation114_spill] sm:$0xff] %v10694_v5  ;;  %14088 = vst [vmem:[#allocation115_spill] sm:$0xff] %v10696_v53  ;;  %v9199_v26 = vcombine.low %v5546_v61, %v5547_v6  ;;  %v1745_v43 = vrot.slane %v10430_v19, 6  ;;  %v3146_v7 = vpop.f32.mrf.mxu1  ;;  %v10709_v19 = vpop.permute.xlu1 %1798 }
 0x22d   :  { %v5513_v3 = vld [vmem:[#allocation2 + $0x238] sm:$0xff]  ;;  %6392 = vmatpush2.bf16.msra.mxu1 %v9201_v33  ;;  %1818 = vrot.lane.b32.xlu1 %v10694_v5, %s9610_s30  ;;  %v3035_v6 = vpop.f32.mrf.mxu0  ;;  %v10706_v53 = vadd.f32 %v3146_v7, %v3033_v12  ;;  %14092 = vst [vmem:[#allocation116_spill] sm:$0xff] %v10709_v19 }
 0x22e   :  { %v5544_v0 = vld [vmem:[#allocation2 + $0x618] sm:$0xff]  ;;  %v9166_v16 = vcombine.high %v5512_v27, %v5513_v3  ;;  %6393 = vmatprep.subr.bf16.mxu1 %v9200_v40  ;;  %v9165_v33 = vcombine.low %v5512_v27, %v5513_v3  ;;  %5099 = vmatmul.mubr.bf16.gmra.mxu1 %v14091_v8  ;;  %v3148_v40 = vpop.f32.mrf.mxu1 }
 0x22f   :  { %v5545_v32 = vld [vmem:[#allocation2 + $0x638] sm:$0xff]  ;;  %6293 = vmatpush2.bf16.msra.mxu0 %v9167_v20  ;;  %v1746_v20 = vrot.slane %v10694_v5, 6  ;;  %v10712_v50 = vpop.permute.xlu0 %1747  ;;  %v3037_v3 = vpop.f32.mrf.mxu0  ;;  %v10714_v27 = vadd.f32 %v3148_v40, %v3035_v6  ;;  %v14096_v40 = vld [vmem:[#allocation21_spill] sm:$0xff] }
 0x230   :  { %v5574_v46 = vld [vmem:[#allocation2 + $0x9d8] sm:$0xff]  ;;  %v9198_v44 = vcombine.high %v5544_v0, %v5545_v32  ;;  %1767 = vrot.lane.b32.xlu0 %v1745_v43, %s9615_s1  ;;  %6294 = vmatprep.subr.bf16.mxu0 %v9166_v16  ;;  %14093 = vst [vmem:[#allocation117_spill] sm:$0xff] %v10712_v50 }
 0x231   :  { %v5575_v11 = vld [vmem:[#allocation2 + $0x9f8] sm:$0xff]  ;;  %6394 = vmatpush2.bf16.msra.mxu1 %v9199_v26  ;;  %1769 = vrot.lane.b32.xlu1 %v1746_v20, %s9615_s1  ;;  %v3150_v26 = vpop.f32.mrf.mxu1 }
 0x232   :  { %v14090_v23 = vld [vmem:[#allocation76_spill] sm:$0xff]  ;;  %v9228_v58 = vcombine.high %v5574_v46, %v5575_v11  ;;  %6395 = vmatprep.subr.bf16.mxu1 %v9198_v44  ;;  %v9227_v19 = vcombine.low %v5574_v46, %v5575_v11  ;;  %v10722_v44 = vpop.permute.xlu1 %2007  ;;  %6397 = vmatprep.mubr.bf16.mxu1 %v14096_v40  ;;  %v1922_v40 = vrot.slane %v10465_v59, 6 }
 0x233   :  { %4986 = vmatmul.mubr.bf16.gmra.mxu0 %v14090_v23  ;;  %v5606_v28 = vld [vmem:[#allocation2 + $0xdd8] sm:$0xff]  ;;  %v9197_v23 = vcombine.low %v5544_v0, %v5545_v32  ;;  %v3039_v0 = vpop.f32.mrf.mxu0  ;;  %v10720_v32 = vadd.f32 %v3150_v26, %v3037_v3  ;;  %v3152_v6 = vpop.f32.mrf.mxu1  ;;  %v1866_v3 = vrot.slane %v10440_v2, 2 }
 0x234   :  { %v5607_v61 = vld [vmem:[#allocation2 + $0xdf8] sm:$0xff]  ;;  %6295 = vmatpush2.bf16.msra.mxu0 %v9165_v33  ;;  %2029 = vrot.lane.b32.xlu0 %v10440_v2, %s9615_s1  ;;  %v10725_v11 = vpop.permute.xlu0 %2005  ;;  %v10727_v46 = vadd.f32 %v3152_v6, %v3039_v0 }
 0x235   :  { %v14094_v43 = vld [vmem:[#allocation20_spill] sm:$0xff]  ;;  %v9260_v12 = vcombine.high %v5606_v28, %v5607_v61  ;;  %6466 = vmatprep.subr.bf16.mxu0 %v9228_v58  ;;  %6396 = vmatpush2.bf16.msra.mxu1 %v9197_v23  ;;  %v9259_v33 = vcombine.low %v5606_v28, %v5607_v61  ;;  %14097 = vst [vmem:[#allocation21_spill] sm:$0xff] %v10725_v11  ;;  %v10729_v50 = vpop.f32.mrf.mxu0  ;;  %v1921_v58 = vrot.slane %v10440_v2, 6  ;;  %v10735_v28 = vpop.f32.mrf.mxu1 }
 0x236   :  { %6296 = vmatprep.mubr.bf16.mxu0 %v14094_v43  ;;  %v5572_v7 = vld [vmem:[#allocation2 + $0x998] sm:$0xff]  ;;  %14095 = vst [vmem:[#allocation20_spill] sm:$0xff] %v10722_v44  ;;  %2031 = vrot.lane.b32.xlu1 %v10465_v59, %s9615_s1 }
 0x237   :  { %v5573_v8 = vld [vmem:[#allocation2 + $0x9b8] sm:$0xff]  ;;  %6567 = vmatprep.subr.bf16.mxu1 %v9260_v12  ;;  %v10739_v6 = vpop.f32.mrf.mxu0  ;;  %v10742_v12 = vpop.permute.xlu1 %1927 }
 0x238   :  { %v5604_v16 = vld [vmem:[#allocation2 + $0xd98] sm:$0xff]  ;;  %v9226_v43 = vcombine.high %v5572_v7, %v5573_v8  ;;  %v9225_v61 = vcombine.low %v5572_v7, %v5573_v8  ;;  %1949 = vrot.lane.b32.xlu0 %v1921_v58, %s9616_s5  ;;  %6398 = vmatmul.mubr.bf16.vlgmr.msra.gmra.mxu1 %v9737_v25  ;;  %14098 = vst [vmem:[#allocation118_spill] sm:$0xff] %v10742_v12  ;;  %v10747_v7 = vpop.permute.xlu0 %1925  ;;  %v1867_v58 = vrot.slane %v10465_v59, 2 }
 0x239   :  { %v5605_v35 = vld [vmem:[#allocation2 + $0xdb8] sm:$0xff]  ;;  %6568 = vmatpush1.bf16.msra.mxu1 %v9259_v33  ;;  %14099 = vst [vmem:[#allocation119_spill] sm:$0xff] %v10747_v7  ;;  %v10749_v2 = vpop.f32.mrf.mxu0  ;;  %6405 = vmatprep.mubr.bf16.mxu1 %v9748_v60  ;;  %v3192_v15 = vadd.f32 %v10739_v6, %v10515_v14 }
 0x23a   :  { %v5570_v20 = vld [vmem:[#allocation2 + $0x958] sm:$0xff]  ;;  %v9258_v23 = vcombine.high %v5604_v16, %v5605_v35  ;;  %v9257_v8 = vcombine.low %v5604_v16, %v5605_v35  ;;  %1951 = vrot.lane.b32.xlu1 %v1922_v40, %s9616_s5 }
 0x23b   :  { %v5571_v5 = vld [vmem:[#allocation2 + $0x978] sm:$0xff]  ;;  %6297 = vmatmul.mubr.bf16.vlgmr.msra.gmra.mxu0 %v9727_v21  ;;  %v10763_v59 = vpop.permute.xlu1 %2099 }
 0x23c   :  { %6467 = vmatpush1.bf16.msra.mxu0 %v9227_v19  ;;  %v5602_v26 = vld [vmem:[#allocation2 + $0xd58] sm:$0xff]  ;;  %v9224_v21 = vcombine.high %v5570_v20, %v5571_v5  ;;  %v10744_v19 = vpop.f32.mrf.mxu1  ;;  %6569 = vmatprep.subr.bf16.mxu1 %v9258_v23  ;;  %v9223_v35 = vcombine.low %v5570_v20, %v5571_v5  ;;  %14101 = vst [vmem:[#allocation121_spill] sm:$0xff] %v10763_v59  ;;  %v10768_v5 = vpop.permute.xlu0 %2097 }
 0x23d   :  { %v5603_v0 = vld [vmem:[#allocation2 + $0xd78] sm:$0xff]  ;;  %6468 = vmatprep.subr.bf16.mxu0 %v9226_v43  ;;  %6304 = vmatprep.mubr.bf16.mxu0 %v9745_v30  ;;  %v10755_v43 = vsel %vm1880_vm0, %v1866_v3, 0.0  ;;  %v10761_v30 = vpop.f32.mrf.mxu0  ;;  %14102 = vst [vmem:[#allocation122_spill] sm:$0xff] %v10768_v5  ;;  %v1923_v5 = vrot.slane %v10485_v34, 6 }
 0x23e   :  { %v9256_v25 = vcombine.high %v5602_v26, %v5603_v0  ;;  %v5568_v44 = vld [vmem:[#allocation2 + $0x918] sm:$0xff]  ;;  %14100 = vst [vmem:[#allocation120_spill] sm:$0xff] %v10755_v43  ;;  %v10757_v12 = vpop.f32.mrf.mxu1  ;;  %2121 = vrot.lane.b32.xlu0 %v10755_v43, %s9610_s30  ;;  %6570 = vmatpush1.bf16.msra.mxu1 %v9257_v8  ;;  %v10774_v43 = vsel %vm1880_vm0, %v1867_v58, 0.0 }
 0x23f   :  { %v5569_v33 = vld [vmem:[#allocation2 + $0x938] sm:$0xff]  ;;  %v10770_v20 = vpop.f32.mrf.mxu0  ;;  %14103 = vst [vmem:[#allocation123_spill] sm:$0xff] %v10774_v43  ;;  %2123 = vrot.lane.b32.xlu1 %v10774_v43, %s9610_s30  ;;  %v10785_v58 = vpop.permute.xlu1 %1751 }
 0x240   :  { %6469 = vmatpush1.bf16.msra.mxu0 %v9225_v61  ;;  %v5600_v16 = vld [vmem:[#allocation2 + $0xd18] sm:$0xff]  ;;  %v10765_v23 = vpop.f32.mrf.mxu1  ;;  %v9255_v61 = vcombine.low %v5602_v26, %v5603_v0  ;;  %v9222_v3 = vcombine.high %v5568_v44, %v5569_v33  ;;  %6571 = vmatprep.subr.bf16.mxu1 %v9256_v25  ;;  %v9221_v26 = vcombine.low %v5568_v44, %v5569_v33  ;;  %v10791_v33 = vpop.permute.xlu0 %1749 }
 0x241   :  { %v5601_v11 = vld [vmem:[#allocation2 + $0xd38] sm:$0xff]  ;;  %6470 = vmatprep.subr.bf16.mxu0 %v9224_v21  ;;  %v10782_v59 = vpop.f32.mrf.mxu0  ;;  %6406 = vmatmul.mubr.bf16.gmra.mxu1 %v9761_v45  ;;  %14104 = vst [vmem:[#allocation124_spill] sm:$0xff] %v10785_v58  ;;  %v3190_v44 = vadd.f32 %v10729_v50, %v10511_v29  ;;  %14105 = vst [vmem:[#allocation125_spill] sm:$0xff] %v10791_v33  ;;  %v2071_v29 = vrot.slane %v10485_v34, 2  ;;  %v1924_v33 = vrot.slane %v10506_v62, 6 }
 0x242   :  { %v5566_v40 = vld [vmem:[#allocation2 + $0x8d8] sm:$0xff]  ;;  %v9254_v21 = vcombine.high %v5600_v16, %v5601_v11  ;;  %v10778_v60 = vpop.f32.mrf.mxu1  ;;  %2033 = vrot.lane.b32.xlu0 %v10485_v34, %s9615_s1  ;;  %6572 = vmatpush1.bf16.msra.mxu1 %v9255_v61 }
 0x243   :  { %v5567_v7 = vld [vmem:[#allocation2 + $0x8f8] sm:$0xff]  ;;  %6305 = vmatmul.mubr.bf16.gmra.mxu0 %v9753_v41  ;;  %v10793_v43 = vpop.f32.mrf.mxu0  ;;  %2035 = vrot.lane.b32.xlu1 %v10506_v62, %s9615_s1 }
 0x244   :  { %6471 = vmatpush1.bf16.msra.mxu0 %v9223_v35  ;;  %v5598_v0 = vld [vmem:[#allocation2 + $0xcd8] sm:$0xff]  ;;  %v9220_v41 = vcombine.high %v5566_v40, %v5567_v7  ;;  %v10787_v25 = vpop.f32.mrf.mxu1  ;;  %v9253_v35 = vcombine.low %v5600_v16, %v5601_v11  ;;  %6573 = vmatprep.subr.bf16.mxu1 %v9254_v21  ;;  %v9219_v16 = vcombine.low %v5566_v40, %v5567_v7  ;;  %v10814_v13 = vpop.permute.xlu0 %1800 }
 0x245   :  { %v5599_v8 = vld [vmem:[#allocation2 + $0xcf8] sm:$0xff]  ;;  %6472 = vmatprep.subr.bf16.mxu0 %v9222_v3  ;;  %6312 = vmatprep.mubr.bf16.mxu0 %v14106_v49  ;;  %v10803_v58 = vpop.f32.mrf.mxu0  ;;  %v10805_v49 = vpop.permute.xlu1 %1802 }
 0x246   :  { %v9252_v45 = vcombine.high %v5598_v0, %v5599_v8  ;;  %v5564_v61 = vld [vmem:[#allocation2 + $0x898] sm:$0xff]  ;;  %v10799_v11 = vpop.f32.mrf.mxu1  ;;  %1953 = vrot.lane.b32.xlu0 %v1923_v5, %s9616_s5  ;;  %6574 = vmatpush1.bf16.msra.mxu1 %v9253_v35  ;;  %14107 = vst [vmem:[#allocation22_spill] sm:$0xff] %v10805_v49  ;;  %v9251_v36 = vcombine.low %v5598_v0, %v5599_v8  ;;  %v2079_v0 = vsel %vm1880_vm0, %v2071_v29, 0.0 }
 0x247   :  { %v5565_v22 = vld [vmem:[#allocation2 + $0x8b8] sm:$0xff]  ;;  %v3303_v5 = vadd.f32 %v10735_v28, %v3190_v44  ;;  %1955 = vrot.lane.b32.xlu1 %v1924_v33, %s9616_s5 }
 0x248   :  { %6473 = vmatpush1.bf16.msra.mxu0 %v9221_v26  ;;  %v5596_v50 = vld [vmem:[#allocation2 + $0xc98] sm:$0xff]  ;;  %v10807_v21 = vpop.f32.mrf.mxu1  ;;  %v9218_v7 = vcombine.high %v5564_v61, %v5565_v22  ;;  %6575 = vmatprep.subr.bf16.mxu1 %v9252_v45  ;;  %v9217_v14 = vcombine.low %v5564_v61, %v5565_v22  ;;  %v10835_v61 = vadd.f32 %v10744_v19, %v3192_v15 }
 0x249   :  { %v5597_v3 = vld [vmem:[#allocation2 + $0xcb8] sm:$0xff]  ;;  %6474 = vmatprep.subr.bf16.mxu0 %v9220_v41  ;;  %v10816_v41 = vpop.f32.mrf.mxu0  ;;  %v3608_v22 = vrot.slane %v3303_v5, 4 }
 0x24a   :  { %v14108_v26 = vld [vmem:[#allocation23_spill] sm:$0xff]  ;;  %v14110_v35 = vld [vmem:[#allocation24_spill] sm:$0xff]  ;;  %v9250_v49 = vcombine.high %v5596_v50, %v5597_v3  ;;  %v10822_v8 = vpop.f32.mrf.mxu1  ;;  %2125 = vrot.lane.b32.xlu0 %v2079_v0, %s9610_s30  ;;  %6576 = vmatpush1.bf16.msra.mxu1 %v9251_v36  ;;  %v9249_v33 = vcombine.low %v5596_v50, %v5597_v3 }
 0x24b   :  { %6413 = vmatprep.mubr.bf16.mxu1 %v14108_v26  ;;  %v5562_v40 = vld [vmem:[#allocation2 + $0x858] sm:$0xff]  ;;  %14109 = vst [vmem:[#allocation23_spill] sm:$0xff] %v10814_v13  ;;  %6313 = vmatmul.mubr.bf16.gmra.mxu0 %v14110_v35  ;;  %v2072_v26 = vrot.slane %v10506_v62, 2  ;;  %v10825_v44 = vpop.f32.mrf.mxu0  ;;  %v14111_v13 = vld [vmem:[#allocation25_spill] sm:$0xff]  ;;  %v3194_v62 = vadd.f32 %v10749_v2, %v10520_v48  ;;  %v10837_v35 = vpop.permute.xlu0 %2009 }
 0x24c   :  { %v5563_v34 = vld [vmem:[#allocation2 + $0x878] sm:$0xff]  ;;  %6475 = vmatpush1.bf16.msra.mxu0 %v9219_v16  ;;  %6414 = vmatmul.mubr.bf16.gmra.mxu1 %v14111_v13  ;;  %v10830_v16 = vpop.permute.xlu1 %1753  ;;  %v10832_v29 = vpop.f32.mrf.mxu1  ;;  %14113 = vst [vmem:[#allocation25_spill] sm:$0xff] %v10835_v61  ;;  %14114 = vst [vmem:[#allocation126_spill] sm:$0xff] %v10837_v35 }
 0x24d   :  { %v5594_v6 = vld [vmem:[#allocation2 + $0xc58] sm:$0xff]  ;;  %v9216_v45 = vcombine.high %v5562_v40, %v5563_v34  ;;  %14112 = vst [vmem:[#allocation24_spill] sm:$0xff] %v10830_v16  ;;  %6476 = vmatprep.subr.bf16.mxu0 %v9218_v7  ;;  %v10839_v0 = vpop.f32.mrf.mxu0  ;;  %v2080_v13 = vsel %vm1880_vm0, %v2072_v26, 0.0  ;;  %6577 = vmatprep.subr.bf16.mxu1 %v9250_v49  ;;  %v9215_v3 = vcombine.low %v5562_v40, %v5563_v34 }
 0x24e   :  { %v5595_v28 = vld [vmem:[#allocation2 + $0xc78] sm:$0xff]  ;;  %6320 = vmatprep.mubr.bf16.mxu0 %v14115_v55  ;;  %2127 = vrot.lane.b32.xlu1 %v2080_v13, %s9610_s30  ;;  %v10844_v50 = vpop.f32.mrf.mxu1  ;;  %v3196_v55 = vadd.f32 %v10761_v30, %v10525_v57  ;;  %v3307_v49 = vadd.f32 %v10757_v12, %v3194_v62  ;;  %v3665_v57 = vrot.slane %v10835_v61, 4 }
 0x24f   :  { %v9248_v48 = vcombine.high %v5594_v6, %v5595_v28  ;;  %v5560_v36 = vld [vmem:[#allocation2 + $0x818] sm:$0xff]  ;;  %3616 = vrot.lane.b32.xlu0 %v3608_v22, %s9610_s30  ;;  %v10847_v7 = vpop.f32.mrf.mxu0  ;;  %v9247_v5 = vcombine.low %v5594_v6, %v5595_v28  ;;  %6578 = vmatpush1.bf16.msra.mxu1 %v9249_v33  ;;  %v10857_v22 = vpop.permute.xlu0 %1929 }
 0x250   :  { %v5561_v2 = vld [vmem:[#allocation2 + $0x838] sm:$0xff]  ;;  %6477 = vmatpush1.bf16.msra.mxu0 %v9217_v14  ;;  %v10852_v26 = vpop.permute.xlu1 %2011  ;;  %v10854_v14 = vpop.f32.mrf.mxu1 }
 0x251   :  { %v5592_v15 = vld [vmem:[#allocation2 + $0xc18] sm:$0xff]  ;;  %6478 = vmatprep.subr.bf16.mxu0 %v9216_v45  ;;  %14116 = vst [vmem:[#allocation26_spill] sm:$0xff] %v10852_v26  ;;  %v9214_v40 = vcombine.high %v5560_v36, %v5561_v2  ;;  %v10859_v35 = vpop.f32.mrf.mxu0  ;;  %6579 = vmatprep.subr.bf16.mxu1 %v9248_v48  ;;  %v9213_v28 = vcombine.low %v5560_v36, %v5561_v2  ;;  %v3609_v26 = vrot.slane %v3307_v49, 4 }
 0x252   :  { %v5593_v19 = vld [vmem:[#allocation2 + $0xc38] sm:$0xff]  ;;  %3825 = vrot.lane.b32.xlu1 %v10835_v61, %s9610_s30  ;;  %v10865_v30 = vpop.f32.mrf.mxu1  ;;  %v10872_v48 = vadd.f32 %v10765_v23, %v3196_v55  ;;  %v3681_v23 = vsel %vm3640_vm1, %v3665_v57, 0.0 }
 0x253   :  { %v14117_v13 = vld [vmem:[#allocation27_spill] sm:$0xff]  ;;  %v14119_v6 = vld [vmem:[#allocation28_spill] sm:$0xff]  ;;  %v9246_v12 = vcombine.high %v5592_v15, %v5593_v19  ;;  %3745 = vrot.lane.b32.xlu0 %v3665_v57, %s9615_s1  ;;  %v10868_v33 = vpop.f32.mrf.mxu0  ;;  %6580 = vmatpush1.bf16.msra.mxu1 %v9247_v5  ;;  %v9245_v36 = vcombine.low %v5592_v15, %v5593_v19  ;;  %v10878_v2 = vpop.permute.xlu0 %2101 }
 0x254   :  { %6421 = vmatprep.mubr.bf16.mxu1 %v14117_v13  ;;  %v5590_v34 = vld [vmem:[#allocation2 + $0xbd8] sm:$0xff]  ;;  %14118 = vst [vmem:[#allocation27_spill] sm:$0xff] %v10857_v22  ;;  %6321 = vmatmul.mubr.bf16.gmra.mxu0 %v14119_v6  ;;  %14120 = vst [vmem:[#allocation28_spill] sm:$0xff] %v10865_v30  ;;  %v14122_v13 = vld [vmem:[#allocation29_spill] sm:$0xff]  ;;  %v10876_v61 = vpop.f32.mrf.mxu1  ;;  %v3666_v57 = vrot.slane %v10872_v48, 4 }
 0x255   :  { %v5591_v16 = vld [vmem:[#allocation2 + $0xbf8] sm:$0xff]  ;;  %6479 = vmatpush1.bf16.msra.mxu0 %v9215_v3  ;;  %14121 = vst [vmem:[#allocation127_spill] sm:$0xff] %v10868_v33  ;;  %6422 = vmatmul.mubr.bf16.gmra.mxu1 %v14122_v13  ;;  %14123 = vst [vmem:[#allocation29_spill] sm:$0xff] %v10872_v48  ;;  %v10874_v3 = vpop.permute.xlu1 %1931  ;;  %v10880_v22 = vpop.f32.mrf.mxu0  ;;  %v14126_v33 = vld [vmem:[#allocation30_spill] sm:$0xff] }
 0x256   :  { %v5622_v45 = vld [vmem:[#allocation2 + $0xfd8] sm:$0xff]  ;;  %v9244_v6 = vcombine.high %v5590_v34, %v5591_v16  ;;  %14124 = vst [vmem:[#allocation128_spill] sm:$0xff] %v10874_v3  ;;  %6480 = vmatprep.subr.bf16.mxu0 %v9214_v40  ;;  %14125 = vst [vmem:[#allocation129_spill] sm:$0xff] %v10878_v2  ;;  %6581 = vmatprep.subr.bf16.mxu1 %v9246_v12  ;;  %v10885_v5 = vpop.f32.mrf.mxu1  ;;  %v9243_v55 = vcombine.low %v5590_v34, %v5591_v16 }
 0x257   :  { %v5623_v62 = vld [vmem:[#allocation2 + $0xff8] sm:$0xff]  ;;  %6330 = vmatprep.mubr.bf16.mxu0 %v14126_v33  ;;  %3618 = vrot.lane.b32.xlu1 %v3609_v26, %s9610_s30  ;;  %v10888_v19 = vpop.f32.mrf.mxu0  ;;  %v3200_v34 = vadd.f32 %v10770_v20, %v10531_v54  ;;  %v14134_v20 = vld [vmem:[#allocation33_spill] sm:$0xff] }
 0x258   :  { %v9276_v13 = vcombine.high %v5622_v45, %v5623_v62  ;;  %v5588_v30 = vld [vmem:[#allocation2 + $0xb98] sm:$0xff]  ;;  %3697 = vrot.lane.b32.xlu0 %v3681_v23, %s9616_s5  ;;  %14127 = vst [vmem:[#allocation30_spill] sm:$0xff] %v10888_v19  ;;  %6582 = vmatpush1.bf16.msra.mxu1 %v9245_v36  ;;  %v10892_v33 = vpop.f32.mrf.mxu1  ;;  %v9275_v26 = vcombine.low %v5622_v45, %v5623_v62  ;;  %v10898_v23 = vpop.permute.xlu0 %1804 }
 0x259   :  { %v5589_v49 = vld [vmem:[#allocation2 + $0xbb8] sm:$0xff]  ;;  %6481 = vmatpush1.bf16.msra.mxu0 %v9213_v28  ;;  %v10890_v12 = vpop.permute.xlu1 %2103  ;;  %v10900_v19 = vpop.f32.mrf.mxu0 }
 0x25a   :  { %v5620_v40 = vld [vmem:[#allocation2 + $0xf98] sm:$0xff]  ;;  %6482 = vmatprep.subr.bf16.mxu0 %v9244_v6  ;;  %14128 = vst [vmem:[#allocation130_spill] sm:$0xff] %v10890_v12  ;;  %v9242_v2 = vcombine.high %v5588_v30, %v5589_v49  ;;  %6583 = vmatprep.subr.bf16.mxu1 %v9276_v13  ;;  %v9241_v45 = vcombine.low %v5588_v30, %v5589_v49 }
 0x25b   :  { %v5621_v15 = vld [vmem:[#allocation2 + $0xfb8] sm:$0xff]  ;;  %3747 = vrot.lane.b32.xlu1 %v3666_v57, %s9615_s1  ;;  %v10908_v54 = vpop.f32.mrf.mxu0  ;;  %v3202_v13 = vadd.f32 %v10782_v59, %v10539_v24  ;;  %v10918_v49 = vadd.f32 %v10778_v60, %v3200_v34 }
 0x25c   :  { %v14129_v28 = vld [vmem:[#allocation31_spill] sm:$0xff]  ;;  %v14131_v6 = vld [vmem:[#allocation32_spill] sm:$0xff]  ;;  %v9274_v36 = vcombine.high %v5620_v40, %v5621_v15  ;;  %3827 = vrot.lane.b32.xlu0 %v10872_v48, %s9610_s30  ;;  %14133 = vst [vmem:[#allocation131_spill] sm:$0xff] %v10908_v54  ;;  %6584 = vmatpush2.bf16.msra.mxu1 %v9275_v26  ;;  %v9273_v30 = vcombine.low %v5620_v40, %v5621_v15  ;;  %v14139_v54 = vld [vmem:[#allocation34_spill] sm:$0xff] }
 0x25d   :  { %6431 = vmatprep.mubr.bf16.mxu1 %v14129_v28  ;;  %v5586_v3 = vld [vmem:[#allocation2 + $0xb58] sm:$0xff]  ;;  %14130 = vst [vmem:[#allocation31_spill] sm:$0xff] %v10898_v23  ;;  %6331 = vmatmul.mubr.bf16.gmra.mxu0 %v14131_v6  ;;  %v10904_v28 = vpop.f32.mrf.mxu1  ;;  %14137 = vst [vmem:[#allocation133_spill] sm:$0xff] %v10918_v49  ;;  %v10922_v48 = vpop.f32.mrf.mxu0  ;;  %v10938_v34 = vadd.f32 %v10787_v25, %v3202_v13  ;;  %v3610_v25 = vrot.slane %v10918_v49, 4  ;;  %v3501_v13 = vrot.slane %v10918_v49, 2 }
 0x25e   :  { %v5587_v16 = vld [vmem:[#allocation2 + $0xb78] sm:$0xff]  ;;  %6483 = vmatpush2.bf16.msra.mxu0 %v9243_v55  ;;  %14132 = vst [vmem:[#allocation32_spill] sm:$0xff] %v10904_v28  ;;  %6432 = vmatmul.mubr.bf16.gmra.mxu1 %v14134_v20  ;;  %v10913_v55 = vpop.permute.xlu1 %1806  ;;  %v10920_v28 = vpop.permute.xlu0 %1755  ;;  %v3682_v20 = vsel %vm3640_vm1, %v3666_v57, 0.0 }
 0x25f   :  { %v5618_v62 = vld [vmem:[#allocation2 + $0xf58] sm:$0xff]  ;;  %v9240_v23 = vcombine.high %v5586_v3, %v5587_v16  ;;  %14135 = vst [vmem:[#allocation33_spill] sm:$0xff] %v10913_v55  ;;  %v10915_v6 = vpop.f32.mrf.mxu1  ;;  %6484 = vmatprep.subr.bf16.mxu0 %v9242_v2  ;;  %14138 = vst [vmem:[#allocation134_spill] sm:$0xff] %v10920_v28  ;;  %6585 = vmatprep.subr.bf16.mxu1 %v9274_v36  ;;  %v9239_v40 = vcombine.low %v5586_v3, %v5587_v16  ;;  %v10935_v57 = vpop.f32.mrf.mxu0 }
 0x260   :  { %v5619_v12 = vld [vmem:[#allocation2 + $0xf78] sm:$0xff]  ;;  %14136 = vst [vmem:[#allocation132_spill] sm:$0xff] %v10915_v6  ;;  %6338 = vmatprep.mubr.bf16.mxu0 %v14139_v54  ;;  %3699 = vrot.lane.b32.xlu1 %v3682_v20, %s9616_s5  ;;  %14140 = vst [vmem:[#allocation34_spill] sm:$0xff] %v10935_v57  ;;  %v3667_v57 = vrot.slane %v10938_v34, 4 }
 0x261   :  { %v9272_v24 = vcombine.high %v5618_v62, %v5619_v12  ;;  %v5584_v59 = vld [vmem:[#allocation2 + $0xb18] sm:$0xff]  ;;  %v10927_v2 = vpop.f32.mrf.mxu1  ;;  %3446 = vrot.lane.b32.xlu0 %v10918_v49, %s9616_s5  ;;  %14141 = vst [vmem:[#allocation135_spill] sm:$0xff] %v10938_v34  ;;  %6586 = vmatpush2.bf16.msra.mxu1 %v9273_v30  ;;  %v9271_v3 = vcombine.low %v5618_v62, %v5619_v12  ;;  %v10951_v6 = vpop.f32.mrf.mxu0 }
 0x262   :  { %v5585_v26 = vld [vmem:[#allocation2 + $0xb38] sm:$0xff]  ;;  %6485 = vmatpush2.bf16.msra.mxu0 %v9241_v45  ;;  %v10940_v36 = vpop.permute.xlu1 %1757  ;;  %v10949_v28 = vpop.permute.xlu0 %2013  ;;  %14146 = vst [vmem:[#allocation138_spill] sm:$0xff] %v10951_v6 }
 0x263   :  { %v10929_v60 = vld [vmem:[#allocation2 + $0xf18] sm:$0xff]  ;;  %6486 = vmatprep.subr.bf16.mxu0 %v9240_v23  ;;  %14142 = vst [vmem:[#allocation136_spill] sm:$0xff] %v10940_v36  ;;  %v10942_v45 = vpop.f32.mrf.mxu1  ;;  %v9238_v16 = vcombine.high %v5584_v59, %v5585_v26  ;;  %6587 = vmatprep.subr.bf16.mxu1 %v9272_v24  ;;  %v9237_v62 = vcombine.low %v5584_v59, %v5585_v26  ;;  %v14149_v24 = vld [vmem:[#allocation37_spill] sm:$0xff] }
 0x264   :  { %v10931_v15 = vld [vmem:[#allocation2 + $0xf38] sm:$0xff]  ;;  %14143 = vst [vmem:[#allocation137_spill] sm:$0xff] %v10942_v45  ;;  %3829 = vrot.lane.b32.xlu1 %v10938_v34, %s9610_s30 }
 0x265   :  { %v14144_v54 = vld [vmem:[#allocation35_spill] sm:$0xff]  ;;  %v14147_v23 = vld [vmem:[#allocation36_spill] sm:$0xff]  ;;  %v9270_v30 = vcombine.high %v10929_v60, %v10931_v15  ;;  %v10960_v12 = vpop.f32.mrf.mxu1  ;;  %3620 = vrot.lane.b32.xlu0 %v3610_v25, %s9610_s30  ;;  %6588 = vmatpush2.bf16.msra.mxu1 %v9271_v3  ;;  %v9269_v26 = vcombine.low %v10929_v60, %v10931_v15 }
 0x266   :  { %6439 = vmatprep.mubr.bf16.mxu1 %v14144_v54  ;;  %v10945_v20 = vld [vmem:[#allocation2 + $0xad8] sm:$0xff]  ;;  %14145 = vst [vmem:[#allocation35_spill] sm:$0xff] %v10949_v28  ;;  %6339 = vmatmul.mubr.bf16.gmra.mxu0 %v14147_v23  ;;  %14148 = vst [vmem:[#allocation36_spill] sm:$0xff] %v10960_v12  ;;  %v3241_v23 = vpop.f32.mrf.mxu0  ;;  %v10973_v12 = vpop.permute.xlu1 %2015 }
 0x267   :  { %v10947_v55 = vld [vmem:[#allocation2 + $0xaf8] sm:$0xff]  ;;  %6487 = vmatpush2.bf16.msra.mxu0 %v9239_v40  ;;  %6440 = vmatmul.mubr.bf16.gmra.mxu1 %v14149_v24  ;;  %v3204_v40 = vadd.f32 %v10793_v43, %v10546_v42  ;;  %v3242_v49 = vadd.f32 %v3241_v23, %v10652_v18  ;;  %14150 = vst [vmem:[#allocation37_spill] sm:$0xff] %v10973_v12  ;;  %v3354_v59 = vpop.f32.mrf.mxu1  ;;  %v10981_v24 = vpop.permute.xlu0 %1933  ;;  %v3525_v42 = vsel %vm1880_vm0, %v3501_v13, 0.0  ;;  %v14151_v18 = vld [vmem:[#allocation38_spill] sm:$0xff] }
 0x268   :  { %v10962_v54 = vld [vmem:[#allocation2 + $0xed8] sm:$0xff]  ;;  %v9236_v28 = vcombine.high %v10945_v20, %v10947_v55  ;;  %6488 = vmatprep.subr.bf16.mxu0 %v9238_v16  ;;  %v3243_v6 = vpop.f32.mrf.mxu0  ;;  %6589 = vmatprep.subr.bf16.mxu1 %v9270_v30  ;;  %v9235_v16 = vcombine.low %v10945_v20, %v10947_v55  ;;  %v3206_v30 = vadd.f32 %v10803_v58, %v10554_v31 }
 0x269   :  { %v10964_v36 = vld [vmem:[#allocation2 + $0xef8] sm:$0xff]  ;;  %6346 = vmatprep.mubr.bf16.mxu0 %v14151_v18  ;;  %v3244_v3 = vadd.f32 %v3243_v6, %v10659_v4  ;;  %v10989_v60 = vadd.f32 %v3354_v59, %v3242_v49  ;;  %3549 = vrot.lane.b32.xlu1 %v3525_v42, %s9615_s1  ;;  %v3356_v15 = vpop.f32.mrf.mxu1  ;;  %v11006_v49 = vadd.f32 %v10799_v11, %v3204_v40 }
 0x26a   :  { %v10977_v25 = vld [vmem:[#allocation2 + $0xa98] sm:$0xff]  ;;  %v9268_v43 = vcombine.high %v10962_v54, %v10964_v36  ;;  %3749 = vrot.lane.b32.xlu0 %v3667_v57, %s9615_s1  ;;  %v3245_v18 = vpop.f32.mrf.mxu0  ;;  %v9267_v4 = vcombine.low %v10962_v54, %v10964_v36  ;;  %6590 = vmatpush2.bf16.msra.mxu1 %v9269_v26  ;;  %v3683_v26 = vsel %vm3640_vm1, %v3667_v57, 0.0 }
 0x26b   :  { %v10979_v45 = vld [vmem:[#allocation2 + $0xab8] sm:$0xff]  ;;  %14152 = vst [vmem:[#allocation38_spill] sm:$0xff] %v10989_v60  ;;  %6489 = vmatpush2.bf16.msra.mxu0 %v9237_v62  ;;  %v3246_v55 = vadd.f32 %v3245_v18, %v10664_v38  ;;  %v11009_v20 = vadd.f32 %v3356_v15, %v3244_v3  ;;  %v11011_v62 = vpop.permute.xlu1 %1935  ;;  %v3358_v31 = vpop.f32.mrf.mxu1 }
 0x26c   :  { %v10994_v23 = vld [vmem:[#allocation2 + $0xe98] sm:$0xff]  ;;  %6490 = vmatprep.subr.bf16.mxu0 %v9236_v28  ;;  %v9234_v6 = vcombine.high %v10977_v25, %v10979_v45  ;;  %14154 = vst [vmem:[#allocation140_spill] sm:$0xff] %v11011_v62  ;;  %v11018_v36 = vpop.permute.xlu0 %2105  ;;  %v3249_v54 = vpop.f32.mrf.mxu0  ;;  %6591 = vmatprep.subr.bf16.mxu1 %v9268_v43  ;;  %v9233_v15 = vcombine.low %v10977_v25, %v10979_v45 }
 0x26d   :  { %v10996_v13 = vld [vmem:[#allocation2 + $0xeb8] sm:$0xff]  ;;  %14153 = vst [vmem:[#allocation139_spill] sm:$0xff] %v11009_v20  ;;  %v3250_v11 = vadd.f32 %v3249_v54, %v10673_v47  ;;  %v11024_v40 = vadd.f32 %v3358_v31, %v3246_v55  ;;  %3448 = vrot.lane.b32.xlu1 %v11006_v49, %s9616_s5  ;;  %v3362_v3 = vpop.f32.mrf.mxu1  ;;  %v3611_v54 = vrot.slane %v11006_v49, 4 }
 0x26e   :  { %v14155_v58 = vld [vmem:[#allocation39_spill] sm:$0xff]  ;;  %v14156_v42 = vld [vmem:[#allocation40_spill] sm:$0xff]  ;;  %v9266_v38 = vcombine.high %v10994_v23, %v10996_v13  ;;  %3701 = vrot.lane.b32.xlu0 %v3683_v26, %s9616_s5  ;;  %v3251_v43 = vpop.f32.mrf.mxu0  ;;  %v9265_v47 = vcombine.low %v10994_v23, %v10996_v13  ;;  %6592 = vmatpush2.bf16.msra.mxu1 %v9267_v4  ;;  %v3210_v23 = vadd.f32 %v10816_v41, %v10561_v10  ;;  %v3502_v10 = vrot.slane %v11006_v49, 2 }
 0x26f   :  { %6447 = vmatprep.mubr.bf16.mxu1 %v14155_v58  ;;  %v11014_v28 = vld [vmem:[#allocation2 + $0xa58] sm:$0xff]  ;;  %6347 = vmatmul.mubr.bf16.gmra.mxu0 %v14156_v42  ;;  %14157 = vst [vmem:[#allocation39_spill] sm:$0xff] %v11024_v40  ;;  %v14158_v42 = vld [vmem:[#allocation41_spill] sm:$0xff]  ;;  %v3252_v55 = vadd.f32 %v3251_v43, %v10678_v39  ;;  %v11041_v31 = vadd.f32 %v3362_v3, %v3250_v11  ;;  %v11043_v45 = vpop.permute.xlu1 %2107  ;;  %v3364_v25 = vpop.f32.mrf.mxu1 }
 0x270   :  { %v11016_v59 = vld [vmem:[#allocation2 + $0xa78] sm:$0xff]  ;;  %6491 = vmatpush2.bf16.msra.mxu0 %v9235_v16  ;;  %6448 = vmatmul.mubr.bf16.gmra.mxu1 %v14158_v42  ;;  %v11038_v16 = vadd.f32 %v10807_v21, %v3206_v30  ;;  %14161 = vst [vmem:[#allocation141_spill] sm:$0xff] %v11043_v45  ;;  %v11048_v13 = vpop.permute.xlu0 %2017  ;;  %v3253_v26 = vpop.f32.mrf.mxu0 }
 0x271   :  { %v5610_v18 = vld [vmem:[#allocation2 + $0xe58] sm:$0xff]  ;;  %v9232_v57 = vcombine.high %v11014_v28, %v11016_v59  ;;  %14160 = vst [vmem:[#allocation41_spill] sm:$0xff] %v11041_v31  ;;  %6492 = vmatprep.subr.bf16.mxu0 %v9234_v6  ;;  %14162 = vst [vmem:[#allocation142_spill] sm:$0xff] %v11048_v13  ;;  %6593 = vmatprep.subr.bf16.mxu1 %v9266_v38  ;;  %v3254_v4 = vadd.f32 %v3253_v26, %v10690_v1  ;;  %v3366_v6 = vpop.f32.mrf.mxu1 }
 0x272   :  { %v5611_v58 = vld [vmem:[#allocation2 + $0xe78] sm:$0xff]  ;;  %14159 = vst [vmem:[#allocation40_spill] sm:$0xff] %v11038_v16  ;;  %6354 = vmatprep.mubr.bf16.mxu0 %v14018_v17  ;;  %3622 = vrot.lane.b32.xlu1 %v3611_v54, %s9610_s30  ;;  %v9231_v11 = vcombine.low %v11014_v28, %v11016_v59  ;;  %v11056_v43 = vadd.f32 %v3364_v25, %v3252_v55  ;;  %v3255_v17 = vpop.f32.mrf.mxu0  ;;  %v3668_v59 = vrot.slane %v11038_v16, 4 }
 0x273   :  { %v9264_v21 = vcombine.high %v5610_v18, %v5611_v58  ;;  %v5576_v39 = vld [vmem:[#allocation2 + $0xa18] sm:$0xff]  ;;  %3831 = vrot.lane.b32.xlu0 %v11038_v16, %s9610_s30  ;;  %v9263_v38 = vcombine.low %v5610_v18, %v5611_v58  ;;  %v3256_v1 = vadd.f32 %v3255_v17, %v10699_v37  ;;  %6594 = vmatpush2.bf16.msra.mxu1 %v9265_v47  ;;  %v11063_v42 = vpop.permute.xlu1 %2019  ;;  %v3368_v28 = vpop.f32.mrf.mxu1  ;;  %v3526_v47 = vsel %vm1880_vm0, %v3502_v10, 0.0 }
 0x274   :  { %v5577_v30 = vld [vmem:[#allocation2 + $0xa38] sm:$0xff]  ;;  %6493 = vmatpush2.bf16.msra.mxu0 %v9233_v15  ;;  %v11061_v15 = vadd.f32 %v3366_v6, %v3254_v4  ;;  %14164 = vst [vmem:[#allocation144_spill] sm:$0xff] %v11063_v42  ;;  %6455 = vmatprep.mubr.bf16.mxu1 %v14019_v63  ;;  %v11068_v25 = vadd.f32 %v10822_v8, %v3210_v23  ;;  %v11070_v54 = vpop.permute.xlu0 %1937  ;;  %v14167_v23 = vld [vmem:[#allocation45_spill] sm:$0xff] }
 0x275   :  { %v5608_v41 = vld [vmem:[#allocation2 + $0xe18] sm:$0xff]  ;;  %6494 = vmatprep.subr.bf16.mxu0 %v9232_v57  ;;  %v9230_v55 = vcombine.high %v5576_v39, %v5577_v30  ;;  %14165 = vst [vmem:[#allocation145_spill] sm:$0xff] %v11070_v54  ;;  %v3259_v57 = vpop.f32.mrf.mxu0  ;;  %6595 = vmatprep.subr.bf16.mxu1 %v9264_v21  ;;  %v3372_v63 = vpop.f32.mrf.mxu1  ;;  %v9229_v26 = vcombine.low %v5576_v39, %v5577_v30 }
 0x276   :  { %v5609_v3 = vld [vmem:[#allocation2 + $0xe38] sm:$0xff]  ;;  %14163 = vst [vmem:[#allocation143_spill] sm:$0xff] %v11061_v15  ;;  %v3260_v58 = vadd.f32 %v3259_v57, %v10706_v53  ;;  %3751 = vrot.lane.b32.xlu1 %v3668_v59, %s9615_s1  ;;  %v11076_v4 = vadd.f32 %v3368_v28, %v3256_v1  ;;  %v3212_v39 = vadd.f32 %v10825_v44, %v10568_v56  ;;  %v3503_v30 = vrot.slane %v11068_v25, 2 }
 0x277   :  { %v14166_v18 = vld [vmem:[#allocation44_spill] sm:$0xff]  ;;  %v9262_v37 = vcombine.high %v5608_v41, %v5609_v3  ;;  %3551 = vrot.lane.b32.xlu0 %v3526_v47, %s9615_s1  ;;  %v3261_v8 = vpop.f32.mrf.mxu0  ;;  %6596 = vmatpush2.bf16.msra.mxu1 %v9263_v38  ;;  %v11083_v53 = vpop.permute.xlu1 %1939  ;;  %v9261_v10 = vcombine.low %v5608_v41, %v5609_v3  ;;  %v3684_v28 = vsel %vm3640_vm1, %v3668_v59, 0.0 }
 0x278   :  { %6355 = vmatmul.mubr.bf16.gmra.mxu0 %v14166_v18  ;;  %6456 = vmatmul.mubr.bf16.gmra.mxu1 %v14167_v23  ;;  %v3262_v6 = vadd.f32 %v3261_v8, %v10714_v27  ;;  %v11081_v21 = vadd.f32 %v3372_v63, %v3260_v58  ;;  %14169 = vst [vmem:[#allocation45_spill] sm:$0xff] %v11083_v53  ;;  %v11088_v17 = vpop.permute.xlu0 %2109  ;;  %v14174_v57 = vld [vmem:[#allocation48_spill] sm:$0xff]  ;;  %v3527_v18 = vsel %vm1880_vm0, %v3503_v30, 0.0  ;;  %v14175_v58 = vld [vmem:[#allocation50_spill] sm:$0xff]  ;;  %v14176_v63 = vld [vmem:[#allocation49_spill] sm:$0xff] }
 0x279   :  { %6495 = vmatpush2.bf16.msra.mxu0 %v9231_v11  ;;  %v3374_v11 = vpop.f32.mrf.mxu1  ;;  %14170 = vst [vmem:[#allocation146_spill] sm:$0xff] %v11088_v17  ;;  %v3263_v1 = vpop.f32.mrf.mxu0  ;;  %6597 = vmatprep.subr.bf16.mxu1 %v9262_v37  ;;  %v3214_v27 = vadd.f32 %v10839_v0, %v10573_v51  ;;  %v3325_v0 = vadd.f32 %v10832_v29, %v3212_v39 }
 0x27a   :  { %14168 = vst [vmem:[#allocation44_spill] sm:$0xff] %v11081_v21  ;;  %6496 = vmatprep.subr.bf16.mxu0 %v9230_v55  ;;  %6498 = vmatprep.mubr.bf16.mxu0 %v14024_v9  ;;  %v3264_v38 = vadd.f32 %v3263_v1, %v10720_v32  ;;  %v11096_v56 = vadd.f32 %v3374_v11, %v3262_v6  ;;  %v14179_v6 = vld [vmem:[#allocation51_spill] sm:$0xff] }
 0x27b   :  { %3703 = vrot.lane.b32.xlu1 %v3684_v28, %s9616_s5  ;;  %v3376_v41 = vpop.f32.mrf.mxu1  ;;  %3450 = vrot.lane.b32.xlu0 %v11068_v25, %s9616_s5  ;;  %v3265_v44 = vpop.f32.mrf.mxu0  ;;  %v11112_v37 = vadd.f32 %v10844_v50, %v3214_v27  ;;  %v3737_v11 = vrot.slane %v3325_v0, 4 }
 0x27c   :  { %6599 = vmatprep.mubr.bf16.mxu1 %v14028_v52  ;;  %v3266_v3 = vadd.f32 %v3265_v44, %v10727_v46  ;;  %v11102_v9 = vadd.f32 %v3376_v41, %v3264_v38  ;;  %6598 = vmatpush2.bf16.msra.mxu1 %v9261_v10  ;;  %v11104_v51 = vpop.permute.xlu1 %2111  ;;  %v11107_v59 = vpop.permute.xlu0 %1808  ;;  %v14180_v10 = vld [vmem:[#allocation84_spill] sm:$0xff] }
 0x27d   :  { %6497 = vmatpush2.bf16.msra.mxu0 %v9229_v26  ;;  %14172 = vst [vmem:[#allocation148_spill] sm:$0xff] %v11104_v51  ;;  %v3378_v32 = vpop.f32.mrf.mxu1  ;;  %14173 = vst [vmem:[#allocation149_spill] sm:$0xff] %v11107_v59  ;;  %v4691_v55 = vpop.f32.mrf.mxu0  ;;  %v14177_v26 = vld [vmem:[#allocation47_spill] sm:$0xff]  ;;  %v3220_v39 = vadd.f32 %v10859_v35, %v14180_v10  ;;  %v3504_v27 = vrot.slane %v11112_v37, 2  ;;  %v14190_v10 = vld [vmem:[#allocation86_spill] sm:$0xff] }
 0x27e   :  { %14171 = vst [vmem:[#allocation147_spill] sm:$0xff] %v11102_v9  ;;  %v11114_v52 = vadd.f32 %v3378_v32, %v3266_v3  ;;  %v3216_v8 = vadd.f32 %v10847_v7, %v14177_v26  ;;  %v14183_v32 = vld [vmem:[#allocation28_spill] sm:$0xff]  ;;  %v14187_v26 = vld [vmem:[#allocation53_spill] sm:$0xff] }
 0x27f   :  { %3553 = vrot.lane.b32.xlu1 %v3527_v18, %s9615_s1  ;;  %v4804_v46 = vpop.f32.mrf.mxu1  ;;  %3833 = vrot.lane.b32.xlu0 %v3325_v0, %s9610_s30  ;;  %v4693_v29 = vpop.f32.mrf.mxu0  ;;  %v11143_v0 = vadd.f32 %v14183_v32, %v3220_v39  ;;  %v14191_v39 = vld [vmem:[#allocation127_spill] sm:$0xff] }
 0x280   :  { %6499 = vmatmul.mubr.bf16.vlgmr.msra.gmra.mxu0 %v14174_v57  ;;  %v11119_v47 = vadd.f32 %v4804_v46, %v4691_v55  ;;  %6600 = vmatmul.mubr.bf16.vlgmr.msra.gmra.mxu1 %v14176_v63  ;;  %v11124_v23 = vpop.permute.xlu1 %1810  ;;  %v11129_v30 = vpop.permute.xlu0 %1759  ;;  %v3329_v44 = vadd.f32 %v10854_v14, %v3216_v8  ;;  %v14185_v46 = vld [vmem:[#allocation52_spill] sm:$0xff] }
 0x281   :  { %6506 = vmatprep.mubr.bf16.mxu0 %v14175_v58  ;;  %14178 = vst [vmem:[#allocation48_spill] sm:$0xff] %v11124_v23  ;;  %v4806_v50 = vpop.f32.mrf.mxu1  ;;  %6607 = vmatprep.mubr.bf16.mxu1 %v14179_v6  ;;  %14181 = vst [vmem:[#allocation50_spill] sm:$0xff] %v11129_v30  ;;  %v4695_v1 = vpop.f32.mrf.mxu0  ;;  %v3528_v58 = vsel %vm1880_vm0, %v3504_v27, 0.0  ;;  %v3505_v27 = vrot.slane %v11143_v0, 2 }
 0x282   :  { %v11131_v28 = vadd.f32 %v4806_v50, %v4693_v29  ;;  %v14186_v29 = vld [vmem:[#allocation54_spill] sm:$0xff]  ;;  %v3738_v8 = vrot.slane %v3329_v44, 4 }
 0x283   :  { %3452 = vrot.lane.b32.xlu1 %v11112_v37, %s9616_s5  ;;  %v4808_v7 = vpop.f32.mrf.mxu1  ;;  %3753 = vrot.lane.b32.xlu0 %v3737_v11, %s9615_s1  ;;  %v4697_v38 = vpop.f32.mrf.mxu0  ;;  %v14189_v11 = vld [vmem:[#allocation55_spill] sm:$0xff] }
 0x284   :  { %v11137_v41 = vadd.f32 %v4808_v7, %v4695_v1  ;;  %v11140_v3 = vpop.permute.xlu1 %1761  ;;  %v11145_v55 = vpop.permute.xlu0 %2021  ;;  %v3222_v1 = vadd.f32 %v14191_v39, %v14190_v10 }
 0x285   :  { %14182 = vst [vmem:[#allocation49_spill] sm:$0xff] %v11140_v3  ;;  %v4810_v35 = vpop.f32.mrf.mxu1  ;;  %14184 = vst [vmem:[#allocation47_spill] sm:$0xff] %v11145_v55  ;;  %v4701_v57 = vpop.f32.mrf.mxu0 }
 0x286   :  { %v11147_v18 = vadd.f32 %v4810_v35, %v4697_v38  ;;  %v14193_v35 = vld [vmem:[#allocation87_spill] sm:$0xff] }
 0x287   :  { %3835 = vrot.lane.b32.xlu1 %v3329_v44, %s9610_s30  ;;  %3555 = vrot.lane.b32.xlu0 %v3528_v58, %s9615_s1  ;;  %v4703_v14 = vpop.f32.mrf.mxu0  ;;  %v4814_v63 = vpop.f32.mrf.mxu1  ;;  %v3224_v32 = vadd.f32 %v10880_v22, %v14193_v35  ;;  %v14196_v22 = vld [vmem:[#allocation56_spill] sm:$0xff]  ;;  %v14198_v35 = vld [vmem:[#allocation58_spill] sm:$0xff] }
 0x288   :  { %6507 = vmatmul.mubr.bf16.gmra.mxu0 %v14185_v46  ;;  %6608 = vmatmul.mubr.bf16.gmra.mxu1 %v14187_v26  ;;  %v11155_v50 = vadd.f32 %v4814_v63, %v4701_v57  ;;  %v11157_v6 = vpop.permute.xlu1 %2023  ;;  %v11163_v7 = vpop.permute.xlu0 %1941  ;;  %v3335_v63 = vadd.f32 %v10876_v61, %v3222_v1  ;;  %v14199_v1 = vld [vmem:[#allocation57_spill] sm:$0xff] }
 0x289   :  { %6514 = vmatprep.mubr.bf16.mxu0 %v14186_v29  ;;  %14188 = vst [vmem:[#allocation51_spill] sm:$0xff] %v11157_v6  ;;  %6615 = vmatprep.mubr.bf16.mxu1 %v14189_v11  ;;  %14192 = vst [vmem:[#allocation84_spill] sm:$0xff] %v11163_v7  ;;  %v4705_v38 = vpop.f32.mrf.mxu0  ;;  %v4816_v46 = vpop.f32.mrf.mxu1 }
 0x28a   :  { %v11168_v44 = vadd.f32 %v4816_v46, %v4703_v14  ;;  %v11182_v14 = vadd.f32 %v10885_v5, %v3224_v32  ;;  %v14203_v5 = vld [vmem:[#allocation59_spill] sm:$0xff]  ;;  %v3739_v32 = vrot.slane %v3335_v63, 4 }
 0x28b   :  { %3755 = vrot.lane.b32.xlu1 %v3738_v8, %s9615_s1  ;;  %3454 = vrot.lane.b32.xlu0 %v11143_v0, %s9616_s5  ;;  %v4707_v57 = vpop.f32.mrf.mxu0  ;;  %v4818_v58 = vpop.f32.mrf.mxu1  ;;  %v3529_v8 = vsel %vm1880_vm0, %v3505_v27, 0.0 }
 0x28c   :  { %v11172_v29 = vpop.permute.xlu1 %1943  ;;  %v11175_v26 = vadd.f32 %v4818_v58, %v4705_v38  ;;  %v11177_v11 = vpop.permute.xlu0 %2113  ;;  %14197 = vst [vmem:[#allocation54_spill] sm:$0xff] %v11182_v14  ;;  %v14200_v38 = vld [vmem:[#allocation101_spill] sm:$0xff]  ;;  %v14201_v58 = vld [vmem:[#allocation30_spill] sm:$0xff] }
 0x28d   :  { %14194 = vst [vmem:[#allocation28_spill] sm:$0xff] %v11172_v29  ;;  %14195 = vst [vmem:[#allocation52_spill] sm:$0xff] %v11177_v11  ;;  %v4711_v10 = vpop.f32.mrf.mxu0  ;;  %v4820_v39 = vpop.f32.mrf.mxu1  ;;  %v14204_v11 = vld [vmem:[#allocation103_spill] sm:$0xff]  ;;  %v3506_v29 = vrot.slane %v11182_v14, 2 }
 0x28e   :  { %v11186_v46 = vadd.f32 %v4820_v39, %v4707_v57 }
 0x28f   :  { %3557 = vrot.lane.b32.xlu1 %v3529_v8, %s9615_s1  ;;  %3837 = vrot.lane.b32.xlu0 %v3335_v63, %s9610_s30  ;;  %v4713_v61 = vpop.f32.mrf.mxu0  ;;  %v4824_v6 = vpop.f32.mrf.mxu1  ;;  %v3230_v8 = vadd.f32 %v10900_v19, %v14204_v11 }
 0x290   :  { %6515 = vmatmul.mubr.bf16.gmra.mxu0 %v14196_v22  ;;  %6616 = vmatmul.mubr.bf16.gmra.mxu1 %v14199_v1  ;;  %v3226_v22 = vadd.f32 %v14201_v58, %v14200_v38  ;;  %v11192_v27 = vpop.permute.xlu1 %2115  ;;  %v11199_v57 = vpop.permute.xlu0 %1812 }
 0x291   :  { %6522 = vmatprep.mubr.bf16.mxu0 %v14198_v35  ;;  %14202 = vst [vmem:[#allocation53_spill] sm:$0xff] %v11192_v27  ;;  %6623 = vmatprep.mubr.bf16.mxu1 %v14203_v5  ;;  %v11197_v35 = vadd.f32 %v4824_v6, %v4711_v10  ;;  %14205 = vst [vmem:[#allocation55_spill] sm:$0xff] %v11199_v57  ;;  %v4715_v39 = vpop.f32.mrf.mxu0  ;;  %v4826_v1 = vpop.f32.mrf.mxu1  ;;  %v14206_v5 = vld [vmem:[#allocation105_spill] sm:$0xff]  ;;  %v14208_v10 = vld [vmem:[#allocation32_spill] sm:$0xff] }
 0x292   :  { %v11204_v38 = vadd.f32 %v4826_v1, %v4713_v61  ;;  %v3339_v63 = vadd.f32 %v10892_v33, %v3226_v22  ;;  %v3234_v19 = vadd.f32 %v10922_v48, %v14206_v5  ;;  %v3343_v57 = vadd.f32 %v14208_v10, %v3230_v8  ;;  %v14210_v61 = vld [vmem:[#allocation60_spill] sm:$0xff]  ;;  %v14211_v33 = vld [vmem:[#allocation62_spill] sm:$0xff]  ;;  %v14212_v8 = vld [vmem:[#allocation61_spill] sm:$0xff] }
 0x293   :  { %3456 = vrot.lane.b32.xlu1 %v11182_v14, %s9616_s5  ;;  %3757 = vrot.lane.b32.xlu0 %v3739_v32, %s9615_s1  ;;  %v4717_v58 = vpop.f32.mrf.mxu0  ;;  %v4828_v6 = vpop.f32.mrf.mxu1  ;;  %v3530_v32 = vsel %vm1880_vm0, %v3506_v29, 0.0  ;;  %v14215_v29 = vld [vmem:[#allocation89_spill] sm:$0xff] }
 0x294   :  { %v11210_v11 = vpop.permute.xlu1 %1814  ;;  %v11213_v27 = vadd.f32 %v4828_v6, %v4715_v39  ;;  %v11215_v55 = vpop.permute.xlu0 %1763  ;;  %v3740_v39 = vrot.slane %v3339_v63, 4  ;;  %v3347_v5 = vadd.f32 %v10927_v2, %v3234_v19  ;;  %v3612_v7 = vrot.slane %v3343_v57, 4  ;;  %v14219_v19 = vld [vmem:[#allocation90_spill] sm:$0xff] }
 0x295   :  { %14207 = vst [vmem:[#allocation86_spill] sm:$0xff] %v11210_v11  ;;  %14209 = vst [vmem:[#allocation127_spill] sm:$0xff] %v11215_v55  ;;  %v4721_v23 = vpop.f32.mrf.mxu0  ;;  %v4830_v1 = vpop.f32.mrf.mxu1  ;;  %v14216_v11 = vld [vmem:[#allocation131_spill] sm:$0xff] }
 0x296   :  { %v11221_v48 = vadd.f32 %v4830_v1, %v4717_v58  ;;  %v3232_v55 = vadd.f32 %v14216_v11, %v14215_v29 }
 0x297   :  { %3839 = vrot.lane.b32.xlu1 %v3339_v63, %s9610_s30  ;;  %3559 = vrot.lane.b32.xlu0 %v3530_v32, %s9615_s1  ;;  %v4723_v22 = vpop.f32.mrf.mxu0  ;;  %v4834_v6 = vpop.f32.mrf.mxu1 }
 0x298   :  { %6523 = vmatmul.mubr.bf16.gmra.mxu0 %v14210_v61  ;;  %6624 = vmatmul.mubr.bf16.gmra.mxu1 %v14212_v8  ;;  %v11226_v10 = vpop.permute.xlu1 %1765  ;;  %v14214_v61 = vld [vmem:[#allocation63_spill] sm:$0xff]  ;;  %v11233_v58 = vpop.permute.xlu0 %2025  ;;  %v14220_v8 = vld [vmem:[#allocation34_spill] sm:$0xff] }
 0x299   :  { %6532 = vmatprep.mubr.bf16.mxu0 %v14211_v33  ;;  %14213 = vst [vmem:[#allocation87_spill] sm:$0xff] %v11226_v10  ;;  %6633 = vmatprep.mubr.bf16.mxu1 %v14214_v61  ;;  %v11231_v33 = vadd.f32 %v4834_v6, %v4721_v23  ;;  %14217 = vst [vmem:[#allocation56_spill] sm:$0xff] %v11233_v58  ;;  %v4725_v1 = vpop.f32.mrf.mxu0  ;;  %v4836_v32 = vpop.f32.mrf.mxu1  ;;  %v3236_v61 = vadd.f32 %v14220_v8, %v14219_v19  ;;  %v3613_v10 = vrot.slane %v3347_v5, 4  ;;  %v14222_v23 = vld [vmem:[#allocation132_spill] sm:$0xff] }
 0x29a   :  { %v11236_v63 = vadd.f32 %v4836_v32, %v4723_v22  ;;  %v11244_v57 = vadd.f32 %v14222_v23, %v3232_v55  ;;  %v14226_v22 = vld [vmem:[#allocation64_spill] sm:$0xff]  ;;  %v14229_v55 = vld [vmem:[#allocation65_spill] sm:$0xff] }
 0x29b   :  { %3759 = vrot.lane.b32.xlu1 %v3740_v39, %s9615_s1  ;;  %3624 = vrot.lane.b32.xlu0 %v3612_v7, %s9610_s30  ;;  %v4727_v2 = vpop.f32.mrf.mxu0  ;;  %v4838_v3 = vpop.f32.mrf.mxu1  ;;  %v14227_v7 = vld [vmem:[#allocation66_spill] sm:$0xff]  ;;  %v14232_v23 = vld [vmem:[#allocation137_spill] sm:$0xff] }
 0x29c   :  { %14218 = vst [vmem:[#allocation58_spill] sm:$0xff] %v11236_v63  ;;  %v11241_v11 = vpop.permute.xlu1 %2027  ;;  %14223 = vst [vmem:[#allocation101_spill] sm:$0xff] %v11244_v57  ;;  %v11246_v6 = vadd.f32 %v4838_v3, %v4725_v1  ;;  %v11248_v29 = vpop.permute.xlu0 %1945  ;;  %v14230_v3 = vld [vmem:[#allocation107_spill] sm:$0xff]  ;;  %v14231_v1 = vld [vmem:[#allocation138_spill] sm:$0xff] }
 0x29d   :  { %14221 = vst [vmem:[#allocation57_spill] sm:$0xff] %v11241_v11  ;;  %14225 = vst [vmem:[#allocation59_spill] sm:$0xff] %v11248_v29  ;;  %v4731_v39 = vpop.f32.mrf.mxu0  ;;  %v4840_v32 = vpop.f32.mrf.mxu1  ;;  %v3240_v8 = vadd.f32 %v14231_v1, %v14230_v3  ;;  %v11261_v11 = vadd.f32 %v14232_v23, %v3236_v61  ;;  %v14239_v3 = vld [vmem:[#allocation36_spill] sm:$0xff] }
 0x29e   :  { %14224 = vst [vmem:[#allocation30_spill] sm:$0xff] %v11246_v6  ;;  %v11253_v19 = vadd.f32 %v4840_v32, %v4727_v2  ;;  %v3669_v2 = vrot.slane %v11244_v57, 4 }
 0x29f   :  { %3626 = vrot.lane.b32.xlu1 %v3613_v10, %s9610_s30  ;;  %3841 = vrot.lane.b32.xlu0 %v11244_v57, %s9610_s30  ;;  %v4733_v5 = vpop.f32.mrf.mxu0  ;;  %14233 = vst [vmem:[#allocation105_spill] sm:$0xff] %v11261_v11  ;;  %v14235_v10 = vld [vmem:[#allocation67_spill] sm:$0xff]  ;;  %v11279_v1 = vadd.f32 %v14239_v3, %v3240_v8  ;;  %v14246_v3 = vld [vmem:[#allocation69_spill] sm:$0xff] }
 0x2a0   :  { %6533 = vmatmul.mubr.bf16.gmra.mxu0 %v14226_v22  ;;  %14228 = vst [vmem:[#allocation103_spill] sm:$0xff] %v11253_v19  ;;  %6634 = vmatmul.mubr.bf16.gmra.mxu1 %v14229_v55  ;;  %v4844_v22 = vpop.f32.mrf.mxu1  ;;  %v11263_v58 = vpop.permute.xlu1 %1947 }
 0x2a1   :  { %6540 = vmatprep.mubr.bf16.mxu0 %v14227_v7  ;;  %14234 = vst [vmem:[#allocation32_spill] sm:$0xff] %v11263_v58  ;;  %6641 = vmatprep.mubr.bf16.mxu1 %v14235_v10  ;;  %v11267_v32 = vadd.f32 %v4844_v22, %v4731_v39  ;;  %v11269_v7 = vpop.permute.xlu0 %2117  ;;  %v4735_v29 = vpop.f32.mrf.mxu0  ;;  %14240 = vst [vmem:[#allocation63_spill] sm:$0xff] %v11279_v1  ;;  %v3614_v59 = vrot.slane %v11279_v1, 4 }
 0x2a2   :  { %14236 = vst [vmem:[#allocation60_spill] sm:$0xff] %v11269_v7  ;;  %v4846_v51 = vpop.f32.mrf.mxu1  ;;  %v14243_v7 = vld [vmem:[#allocation68_spill] sm:$0xff] }
 0x2a3   :  { %3843 = vrot.lane.b32.xlu1 %v11261_v11, %s9610_s30  ;;  %v11273_v55 = vadd.f32 %v4846_v51, %v4733_v5  ;;  %3761 = vrot.lane.b32.xlu0 %v3669_v2, %s9615_s1  ;;  %v11276_v61 = vpop.f32.mrf.mxu0  ;;  %v3685_v51 = vsel %vm3640_vm1, %v3669_v2, 0.0  ;;  %v14245_v5 = vld [vmem:[#allocation70_spill] sm:$0xff] }
 0x2a4   :  { %14238 = vst [vmem:[#allocation61_spill] sm:$0xff] %v11276_v61  ;;  %v4848_v23 = vpop.f32.mrf.mxu1  ;;  %v11281_v10 = vpop.permute.xlu1 %2119 }
 0x2a5   :  { %14237 = vst [vmem:[#allocation62_spill] sm:$0xff] %v11273_v55  ;;  %14241 = vst [vmem:[#allocation89_spill] sm:$0xff] %v11281_v10  ;;  %v11283_v39 = vadd.f32 %v4848_v23, %v4735_v29  ;;  %v11285_v22 = vpop.permute.xlu0 %1816  ;;  %v4741_v57 = vpop.f32.mrf.mxu0  ;;  %v3670_v29 = vrot.slane %v11261_v11, 4 }
 0x2a6   :  { %14242 = vst [vmem:[#allocation131_spill] sm:$0xff] %v11285_v22  ;;  %v11288_v58 = vpop.f32.mrf.mxu1 }
 0x2a7   :  { %14244 = vst [vmem:[#allocation90_spill] sm:$0xff] %v11288_v58  ;;  %3460 = vrot.lane.b32.xlu1 %v11279_v1, %s9616_s5  ;;  %3705 = vrot.lane.b32.xlu0 %v3685_v51, %s9616_s5  ;;  %v4743_v8 = vpop.f32.mrf.mxu0  ;;  %v3686_v30 = vsel %vm3640_vm1, %v3670_v29, 0.0 }
 0x2a8   :  { %6541 = vmatmul.mubr.bf16.gmra.mxu0 %v14243_v7  ;;  %6642 = vmatmul.mubr.bf16.gmra.mxu1 %v14246_v3  ;;  %v4854_v23 = vpop.f32.mrf.mxu1  ;;  %v11297_v22 = vpop.permute.xlu1 %1818  ;;  %v14248_v7 = vld [vmem:[#allocation71_spill] sm:$0xff] }
 0x2a9   :  { %6548 = vmatprep.mubr.bf16.mxu0 %v14245_v5  ;;  %14247 = vst [vmem:[#allocation34_spill] sm:$0xff] %v11297_v22  ;;  %6649 = vmatprep.mubr.bf16.mxu1 %v14248_v7  ;;  %v11300_v10 = vadd.f32 %v4854_v23, %v4741_v57  ;;  %v11302_v2 = vpop.permute.xlu0 %1767  ;;  %v4745_v17 = vpop.f32.mrf.mxu0 }
 0x2aa   :  { %14249 = vst [vmem:[#allocation132_spill] sm:$0xff] %v11302_v2  ;;  %v4856_v5 = vpop.f32.mrf.mxu1  ;;  %v14253_v2 = vld [vmem:[#allocation72_spill] sm:$0xff] }
 0x2ab   :  { %3763 = vrot.lane.b32.xlu1 %v3670_v29, %s9615_s1  ;;  %v11306_v51 = vadd.f32 %v4856_v5, %v4743_v8  ;;  %3628 = vrot.lane.b32.xlu0 %v3614_v59, %s9610_s30  ;;  %v11309_v3 = vpop.f32.mrf.mxu0  ;;  %v3507_v59 = vrot.slane %v11279_v1, 2  ;;  %v14255_v8 = vld [vmem:[#allocation74_spill] sm:$0xff]  ;;  %v14258_v29 = vld [vmem:[#allocation75_spill] sm:$0xff] }
 0x2ac   :  { %14250 = vst [vmem:[#allocation64_spill] sm:$0xff] %v11309_v3  ;;  %v4858_v11 = vpop.f32.mrf.mxu1  ;;  %v11311_v22 = vpop.permute.xlu1 %1769  ;;  %v14287_v3 = vld [vmem:[#allocation21_spill] sm:$0xff] }
 0x2ad   :  { %14251 = vst [vmem:[#allocation66_spill] sm:$0xff] %v11311_v22  ;;  %v11313_v7 = vadd.f32 %v4858_v11, %v4745_v17  ;;  %v11315_v57 = vpop.permute.xlu0 %2029  ;;  %v4751_v23 = vpop.f32.mrf.mxu0  ;;  %v14256_v11 = vld [vmem:[#allocation73_spill] sm:$0xff] }
 0x2ae   :  { %14252 = vst [vmem:[#allocation65_spill] sm:$0xff] %v11315_v57  ;;  %v11319_v42 = vpop.f32.mrf.mxu1 }
 0x2af   :  { %14254 = vst [vmem:[#allocation107_spill] sm:$0xff] %v11319_v42  ;;  %3707 = vrot.lane.b32.xlu1 %v3686_v30, %s9616_s5  ;;  %3845 = vrot.lane.b32.xlu0 %v10989_v60, %s9610_s30  ;;  %v4753_v17 = vpop.f32.mrf.mxu0 }
 0x2b0   :  { %6549 = vmatmul.mubr.bf16.gmra.mxu0 %v14253_v2  ;;  %6650 = vmatmul.mubr.bf16.gmra.mxu1 %v14256_v11  ;;  %v4864_v5 = vpop.f32.mrf.mxu1  ;;  %v11327_v57 = vpop.permute.xlu1 %2031  ;;  %v3615_v2 = vrot.slane %v11009_v20, 4 }
 0x2b1   :  { %6556 = vmatprep.mubr.bf16.mxu0 %v14255_v8  ;;  %14257 = vst [vmem:[#allocation138_spill] sm:$0xff] %v11327_v57  ;;  %6657 = vmatprep.mubr.bf16.mxu1 %v14258_v29  ;;  %v11331_v22 = vadd.f32 %v4864_v5, %v4751_v23  ;;  %v11333_v30 = vpop.permute.xlu0 %1949  ;;  %v4755_v1 = vpop.f32.mrf.mxu0  ;;  %v3531_v8 = vsel %vm1880_vm0, %v3507_v59, 0.0  ;;  %v3508_v59 = vrot.slane %v11009_v20, 2 }
 0x2b2   :  { %14260 = vst [vmem:[#allocation67_spill] sm:$0xff] %v11333_v30  ;;  %v4866_v13 = vpop.f32.mrf.mxu1  ;;  %v14263_v30 = vld [vmem:[#allocation76_spill] sm:$0xff] }
 0x2b3   :  { %14259 = vst [vmem:[#allocation137_spill] sm:$0xff] %v11331_v22  ;;  %3630 = vrot.lane.b32.xlu1 %v3615_v2, %s9610_s30  ;;  %v11337_v16 = vadd.f32 %v4866_v13, %v4753_v17  ;;  %3563 = vrot.lane.b32.xlu0 %v3531_v8, %s9615_s1  ;;  %v11340_v11 = vpop.f32.mrf.mxu0  ;;  %v14264_v17 = vld [vmem:[#allocation77_spill] sm:$0xff]  ;;  %v3671_v2 = vrot.slane %v10989_v60, 4 }
 0x2b4   :  { %v4868_v57 = vpop.f32.mrf.mxu1  ;;  %v11342_v34 = vpop.permute.xlu1 %1951 }
 0x2b5   :  { %14261 = vst [vmem:[#allocation36_spill] sm:$0xff] %v11342_v34  ;;  %v11344_v29 = vadd.f32 %v4868_v57, %v4755_v1  ;;  %v11346_v23 = vpop.permute.xlu0 %2121  ;;  %v4761_v5 = vpop.f32.mrf.mxu0  ;;  %v3532_v34 = vsel %vm1880_vm0, %v3508_v59, 0.0 }
 0x2b6   :  { %14262 = vst [vmem:[#allocation68_spill] sm:$0xff] %v11346_v23  ;;  %v11350_v53 = vpop.f32.mrf.mxu1 }
 0x2b7   :  { %3847 = vrot.lane.b32.xlu1 %v11024_v40, %s9610_s30  ;;  %3462 = vrot.lane.b32.xlu0 %v11009_v20, %s9616_s5  ;;  %v4763_v13 = vpop.f32.mrf.mxu0 }
 0x2b8   :  { %6557 = vmatmul.mubr.bf16.gmra.mxu0 %v14263_v30  ;;  %6658 = vmatmul.mubr.bf16.gmra.mxu1 %v14264_v17  ;;  %v4874_v1 = vpop.f32.mrf.mxu1  ;;  %v11357_v57 = vpop.permute.xlu1 %2123 }
 0x2b9   :  { %14265 = vst [vmem:[#allocation70_spill] sm:$0xff] %v11357_v57  ;;  %v11360_v8 = vadd.f32 %v4874_v1, %v4761_v5  ;;  %v11362_v30 = vpop.permute.xlu0 %2033  ;;  %v4765_v23 = vpop.f32.mrf.mxu0 }
 0x2ba   :  { %14266 = vst [vmem:[#allocation69_spill] sm:$0xff] %v11362_v30  ;;  %v4876_v54 = vpop.f32.mrf.mxu1  ;;  %v3509_v30 = vrot.slane %v11041_v31, 2 }
 0x2bb   :  { %3565 = vrot.lane.b32.xlu1 %v3532_v34, %s9615_s1  ;;  %v11366_v45 = vadd.f32 %v4876_v54, %v4763_v13  ;;  %3765 = vrot.lane.b32.xlu0 %v3671_v2, %s9615_s1  ;;  %v11369_v17 = vpop.f32.mrf.mxu0  ;;  %v3687_v54 = vsel %vm3640_vm1, %v3671_v2, 0.0 }
 0x2bc   :  { %v4878_v20 = vpop.f32.mrf.mxu1  ;;  %v11371_v57 = vpop.permute.xlu1 %2035 }
 0x2bd   :  { %14267 = vst [vmem:[#allocation71_spill] sm:$0xff] %v11371_v57  ;;  %v11373_v60 = vadd.f32 %v4878_v20, %v4765_v23  ;;  %v11375_v5 = vpop.permute.xlu0 %1953  ;;  %v4917_v1 = vpop.f32.mrf.mxu0  ;;  %v3672_v20 = vrot.slane %v11024_v40, 4 }
 0x2be   :  { %14268 = vst [vmem:[#allocation72_spill] sm:$0xff] %v11375_v5  ;;  %v11378_v59 = vpop.f32.mrf.mxu1  ;;  %v4918_v34 = vadd.f32 %v4917_v1, %v11119_v47  ;;  %v3533_v1 = vsel %vm1880_vm0, %v3509_v30, 0.0 }
 0x2bf   :  { %3464 = vrot.lane.b32.xlu1 %v11041_v31, %s9616_s5  ;;  %3709 = vrot.lane.b32.xlu0 %v3687_v54, %s9616_s5  ;;  %v11385_v13 = vpop.f32.mrf.mxu0 }
 0x2c0   :  { %v5030_v23 = vpop.f32.mrf.mxu1  ;;  %v11388_v57 = vpop.permute.xlu1 %1955 }
 0x2c1   :  { %14269 = vst [vmem:[#allocation74_spill] sm:$0xff] %v11388_v57  ;;  %v11390_v5 = vadd.f32 %v5030_v23, %v4918_v34  ;;  %v11392_v14 = vpop.permute.xlu0 %2125  ;;  %v4921_v12 = vpop.f32.mrf.mxu0 }
 0x2c2   :  { %14271 = vst [vmem:[#allocation75_spill] sm:$0xff] %v11392_v14  ;;  %v4922_v47 = vadd.f32 %v4921_v12, %v11137_v41  ;;  %v11395_v2 = vpop.f32.mrf.mxu1  ;;  %v3688_v12 = vsel %vm3640_vm1, %v3672_v20, 0.0 }
 0x2c3   :  { %14270 = vst [vmem:[#allocation73_spill] sm:$0xff] %v11390_v5  ;;  %3767 = vrot.lane.b32.xlu1 %v3672_v20, %s9615_s1  ;;  %3567 = vrot.lane.b32.xlu0 %v3533_v1, %s9615_s1  ;;  %v11400_v54 = vpop.f32.mrf.mxu0  ;;  %v14285_v5 = vld [vmem:[#allocation133_spill] sm:$0xff] }
 0x2c4   :  { %v5034_v40 = vpop.f32.mrf.mxu1  ;;  %v11402_v31 = vpop.permute.xlu1 %2127 }
 0x2c5   :  { %14272 = vst [vmem:[#allocation76_spill] sm:$0xff] %v11402_v31  ;;  %v11404_v34 = vadd.f32 %v5034_v40, %v4922_v47  ;;  %v11406_v23 = vpop.permute.xlu0 %3616  ;;  %v4927_v14 = vpop.f32.mrf.mxu0  ;;  %v3741_v40 = vrot.slane %v11056_v43, 4  ;;  %v3510_v47 = vrot.slane %v11061_v15, 2 }
 0x2c6   :  { %14274 = vst [vmem:[#allocation150_spill] sm:$0xff] %v11406_v23  ;;  %v4928_v41 = vadd.f32 %v4927_v14, %v11155_v50  ;;  %v11410_v57 = vpop.f32.mrf.mxu1 }
 0x2c7   :  { %14273 = vst [vmem:[#allocation77_spill] sm:$0xff] %v11404_v34  ;;  %3711 = vrot.lane.b32.xlu1 %v3688_v12, %s9616_s5  ;;  %3466 = vrot.lane.b32.xlu0 %v11061_v15, %s9616_s5  ;;  %v11415_v30 = vpop.f32.mrf.mxu0 }
 0x2c8   :  { %v5040_v1 = vpop.f32.mrf.mxu1  ;;  %v11417_v31 = vpop.permute.xlu1 %3825 }
 0x2c9   :  { %14275 = vst [vmem:[#allocation151_spill] sm:$0xff] %v11417_v31  ;;  %v11421_v23 = vadd.f32 %v5040_v1, %v4928_v41  ;;  %v11423_v20 = vpop.permute.xlu0 %3745  ;;  %v4931_v50 = vpop.f32.mrf.mxu0 }
 0x2ca   :  { %14277 = vst [vmem:[#allocation153_spill] sm:$0xff] %v11423_v20  ;;  %v4932_v14 = vadd.f32 %v4931_v50, %v11175_v26  ;;  %v11426_v12 = vpop.f32.mrf.mxu1  ;;  %v3534_v26 = vsel %vm1880_vm0, %v3510_v47, 0.0  ;;  %v3511_v47 = vrot.slane %v11081_v21, 2  ;;  %v3393_v20 = vrot.slane %v14285_v5, 6 }
 0x2cb   :  { %14276 = vst [vmem:[#allocation152_spill] sm:$0xff] %v11421_v23  ;;  %3849 = vrot.lane.b32.xlu1 %v11056_v43, %s9610_s30  ;;  %3769 = vrot.lane.b32.xlu0 %v3741_v40, %s9615_s1  ;;  %v11431_v62 = vpop.f32.mrf.mxu0  ;;  %v3743_v5 = vrot.slane %v11096_v56, 4 }
 0x2cc   :  { %v5044_v34 = vpop.f32.mrf.mxu1  ;;  %v11433_v31 = vpop.permute.xlu1 %3618 }
 0x2cd   :  { %14278 = vst [vmem:[#allocation154_spill] sm:$0xff] %v11433_v31  ;;  %v11435_v15 = vadd.f32 %v5044_v34, %v4932_v14  ;;  %v11437_v41 = vpop.permute.xlu0 %3697  ;;  %v11439_v1 = vpop.f32.mrf.mxu0  ;;  %v3742_v34 = vrot.slane %v11076_v4, 4 }
 0x2ce   :  { %14280 = vst [vmem:[#allocation156_spill] sm:$0xff] %v11437_v41  ;;  %v11442_v50 = vpop.f32.mrf.mxu1 }
 0x2cf   :  { %14279 = vst [vmem:[#allocation155_spill] sm:$0xff] %v11435_v15  ;;  %3569 = vrot.lane.b32.xlu1 %v3534_v26, %s9615_s1  ;;  %3851 = vrot.lane.b32.xlu0 %v11076_v4, %s9610_s30  ;;  %v11447_v43 = vpop.f32.mrf.mxu0  ;;  %v14283_v26 = vld [vmem:[#allocation119_spill] sm:$0xff] }
 0x2d0   :  { %v11449_v40 = vpop.f32.mrf.mxu1  ;;  %v11451_v31 = vpop.permute.xlu1 %3747  ;;  %v1973_v23 = vsel %vm1783_vm2, 0.0, %v14283_v26  ;;  %v14290_v26 = vld [vmem:[#allocation117_spill] sm:$0xff] }
 0x2d1   :  { %14281 = vst [vmem:[#allocation157_spill] sm:$0xff] %v11451_v31  ;;  %v11454_v14 = vpop.permute.xlu0 %3827  ;;  %v11456_v41 = vpop.f32.mrf.mxu0  ;;  %v2053_v58 = vadd.f32 %v14287_v3, %v1973_v23  ;;  %v3512_v3 = vrot.slane %v11102_v9, 2  ;;  %v3417_v23 = vsel %vm1783_vm2, 0.0, %v3393_v20  ;;  %v4920_v20 = vadd.f32 %v11385_v13, %v11131_v28  ;;  %v14303_v28 = vld [vmem:[#allocation95_spill] sm:$0xff] }
 0x2d2   :  { %14282 = vst [vmem:[#allocation158_spill] sm:$0xff] %v11454_v14  ;;  %v11459_v15 = vpop.f32.mrf.mxu1  ;;  %v3394_v13 = vrot.slane %v11006_v49, 6 }
 0x2d3   :  { %3468 = vrot.lane.b32.xlu1 %v11081_v21, %s9616_s5  ;;  %3771 = vrot.lane.b32.xlu0 %v3742_v34, %s9615_s1  ;;  %v11466_v31 = vpop.f32.mrf.mxu0  ;;  %v3535_v21 = vsel %vm1880_vm0, %v3511_v47, 0.0 }
 0x2d4   :  { %v11468_v4 = vpop.f32.mrf.mxu1  ;;  %v11470_v14 = vpop.permute.xlu1 %3699 }
 0x2d5   :  { %14284 = vst [vmem:[#allocation119_spill] sm:$0xff] %v11470_v14  ;;  %v3447_v22 = vpop.permute.xlu0 %3446  ;;  %v11473_v42 = vpop.f32.mrf.mxu0  ;;  %v1784_v14 = vsel %vm1783_vm2, 0.0, %v14290_v26  ;;  %v14297_v26 = vld [vmem:[#allocation115_spill] sm:$0xff] }
 0x2d6   :  { %14286 = vst [vmem:[#allocation133_spill] sm:$0xff] %v11473_v42  ;;  %v11476_v61 = vpop.f32.mrf.mxu1 }
 0x2d7   :  { %14288 = vst [vmem:[#allocation21_spill] sm:$0xff] %v11476_v61  ;;  %3853 = vrot.lane.b32.xlu1 %v11096_v56, %s9610_s30  ;;  %3571 = vrot.lane.b32.xlu0 %v3535_v21, %s9615_s1  ;;  %v11482_v34 = vpop.f32.mrf.mxu0  ;;  %v14295_v21 = vld [vmem:[#allocation122_spill] sm:$0xff]  ;;  %v1832_v56 = vadd.f32 %v14297_v26, %v1784_v14  ;;  %v3536_v14 = vsel %vm1880_vm0, %v3512_v3, 0.0  ;;  %v14301_v26 = vld [vmem:[#allocation27_spill] sm:$0xff]  ;;  %v14305_v3 = vld [vmem:[#allocation20_spill] sm:$0xff] }
 0x2d8   :  { %14289 = vst [vmem:[#allocation159_spill] sm:$0xff] %v11482_v34  ;;  %v11487_v55 = vpop.f32.mrf.mxu1  ;;  %v11489_v19 = vpop.permute.xlu1 %3829  ;;  %v2145_v63 = vadd.f32 %v14295_v21, %v2053_v58  ;;  %v14299_v61 = vld [vmem:[#allocation118_spill] sm:$0xff] }
 0x2d9   :  { %14291 = vst [vmem:[#allocation117_spill] sm:$0xff] %v11487_v55  ;;  %14292 = vst [vmem:[#allocation160_spill] sm:$0xff] %v11489_v19  ;;  %v11493_v47 = vpop.permute.xlu0 %3620  ;;  %v11495_v6 = vpop.f32.mrf.mxu0  ;;  %v1974_v58 = vsel %vm1783_vm2, 0.0, %v14299_v61 }
 0x2da   :  { %14293 = vst [vmem:[#allocation161_spill] sm:$0xff] %v11493_v47  ;;  %14294 = vst [vmem:[#allocation162_spill] sm:$0xff] %v11495_v6  ;;  %v11498_v34 = vpop.f32.mrf.mxu1  ;;  %v3429_v55 = vadd.f32 %v3417_v23, %v2145_v63  ;;  %v1893_v63 = vadd.f32 %v14303_v28, %v1832_v56  ;;  %v2054_v23 = vadd.f32 %v14305_v3, %v1974_v58  ;;  %v3744_v56 = vrot.slane %v11114_v52, 4 }
 0x2db   :  { %14296 = vst [vmem:[#allocation122_spill] sm:$0xff] %v11498_v34  ;;  %3773 = vrot.lane.b32.xlu1 %v3743_v5, %s9615_s1  ;;  %3470 = vrot.lane.b32.xlu0 %v11102_v9, %s9616_s5  ;;  %v11504_v19 = vpop.f32.mrf.mxu0  ;;  %v1975_v9 = vsel %vm1783_vm2, 0.0, %v14301_v26 }
 0x2dc   :  { %14298 = vst [vmem:[#allocation115_spill] sm:$0xff] %v11504_v19  ;;  %v11508_v47 = vpop.f32.mrf.mxu1  ;;  %v3550_v6 = vpop.permute.xlu1 %3549  ;;  %v3485_v34 = vadd.f32 %v3447_v22, %v3429_v55  ;;  %v1991_v26 = vadd.f32 %v1975_v9, %v1893_v63 }
 0x2dd   :  { %v11512_v21 = vpop.permute.xlu0 %3749  ;;  %v4957_v5 = vpop.f32.mrf.mxu0 }
 0x2de   :  { %14300 = vst [vmem:[#allocation118_spill] sm:$0xff] %v11512_v21  ;;  %v4958_v19 = vadd.f32 %v4957_v5, %v11267_v32  ;;  %v11518_v42 = vpop.f32.mrf.mxu1  ;;  %v14306_v21 = vld [vmem:[#allocation125_spill] sm:$0xff]  ;;  %v11531_v32 = vadd.f32 %v11395_v2, %v4920_v20  ;;  %v3588_v22 = vadd.f32 %v3550_v6, %v3485_v34  ;;  %v3418_v6 = vsel %vm1783_vm2, 0.0, %v3394_v13 }
 0x2df   :  { %14302 = vst [vmem:[#allocation27_spill] sm:$0xff] %v11518_v42  ;;  %3573 = vrot.lane.b32.xlu1 %v3536_v14, %s9615_s1  ;;  %3855 = vrot.lane.b32.xlu0 %v11114_v52, %s9610_s30  ;;  %v11524_v61 = vpop.f32.mrf.mxu0  ;;  %v1785_v55 = vsel %vm1783_vm2, 0.0, %v14306_v21  ;;  %v14309_v21 = vld [vmem:[#allocation116_spill] sm:$0xff]  ;;  %v14310_v52 = vld [vmem:[#allocation121_spill] sm:$0xff]  ;;  %v4924_v34 = vadd.f32 %v11400_v54, %v11147_v18  ;;  %v14314_v18 = vld [vmem:[#allocation94_spill] sm:$0xff] }
 0x2e0   :  { %14304 = vst [vmem:[#allocation95_spill] sm:$0xff] %v11524_v61  ;;  %v5070_v5 = vpop.f32.mrf.mxu1  ;;  %v3449_v14 = vpop.permute.xlu1 %3448  ;;  %v1833_v2 = vadd.f32 %v14309_v21, %v1785_v55 }
 0x2e1   :  { %v11534_v28 = vadd.f32 %v5070_v5, %v4958_v19  ;;  %v11536_v42 = vpop.permute.xlu0 %3701  ;;  %v4961_v61 = vpop.f32.mrf.mxu0  ;;  %v2146_v19 = vadd.f32 %v14310_v52, %v2054_v23  ;;  %v14313_v5 = vld [vmem:[#allocation128_spill] sm:$0xff] }
 0x2e2   :  { %14308 = vst [vmem:[#allocation125_spill] sm:$0xff] %v11536_v42  ;;  %v4962_v49 = vadd.f32 %v4961_v61, %v11283_v39  ;;  %v11539_v58 = vpop.f32.mrf.mxu1  ;;  %v13858_v39 = vrot.slane %v11531_v32, 2  ;;  %v14311_v61 = vld [vmem:[#allocation126_spill] sm:$0xff]  ;;  %v1894_v54 = vadd.f32 %v14314_v18, %v1833_v2 }
 0x2e3   :  { %14307 = vst [vmem:[#allocation20_spill] sm:$0xff] %v11534_v28  ;;  %7010 = vrot.lane.b32.xlu1 %v3588_v22, %s9610_s30  ;;  %3775 = vrot.lane.b32.xlu0 %v3744_v56, %s9615_s1  ;;  %v11545_v9 = vpop.f32.mrf.mxu0  ;;  %v2055_v3 = vadd.f32 %v14311_v61, %v1991_v26  ;;  %v1976_v56 = vsel %vm1783_vm2, 0.0, %v14313_v5  ;;  %v3430_v21 = vadd.f32 %v3418_v6, %v2146_v19  ;;  %v14315_v5 = vld [vmem:[#allocation129_spill] sm:$0xff]  ;;  %v14317_v28 = vld [vmem:[#allocation124_spill] sm:$0xff] }
 0x2e4   :  { %v5074_v20 = vpop.f32.mrf.mxu1  ;;  %v11550_v63 = vpop.permute.xlu1 %3622  ;;  %v1786_v42 = vsel %vm1783_vm2, 0.0, %v14317_v28 }
 0x2e5   :  { %v11554_v22 = vadd.f32 %v5074_v20, %v4962_v49  ;;  %v11556_v55 = vpop.permute.xlu0 %3831  ;;  %v4967_v13 = vpop.f32.mrf.mxu0  ;;  %v3395_v49 = vrot.slane %v11068_v25, 6  ;;  %v11571_v20 = vadd.f32 %v11410_v57, %v4924_v34  ;;  %v3486_v6 = vadd.f32 %v3449_v14, %v3430_v21 }
 0x2e6   :  { %v4968_v23 = vadd.f32 %v4967_v13, %v11300_v10  ;;  %v11561_v52 = vpop.f32.mrf.mxu1  ;;  %v1992_v13 = vadd.f32 %v1976_v56, %v1894_v54  ;;  %v5360_v56 = vrot.slane %v11531_v32, 6 }
 0x2e7   :  { %14312 = vst [vmem:[#allocation116_spill] sm:$0xff] %v11554_v22  ;;  %5416 = vrot.lane.b32.xlu1 %v13858_v39, %s9610_s30  ;;  %5344 = vrot.lane.b32.xlu0 %v11531_v32, %s9616_s5  ;;  %v4969_v26 = vpop.f32.mrf.mxu0  ;;  %v2147_v39 = vadd.f32 %v14315_v5, %v2055_v3  ;;  %v3419_v28 = vsel %vm1783_vm2, 0.0, %v3395_v49 }
 0x2e8   :  { %v4970_v10 = vadd.f32 %v4969_v26, %v11306_v51  ;;  %v5080_v19 = vpop.f32.mrf.mxu1  ;;  %v11574_v61 = vpop.permute.xlu1 %3751  ;;  %v14318_v51 = vld [vmem:[#allocation23_spill] sm:$0xff]  ;;  %v5368_v49 = vsel %vm1783_vm2, %v5360_v56, 0.0 }
 0x2e9   :  { %v11577_v22 = vadd.f32 %v5080_v19, %v4968_v23  ;;  %v3552_v2 = vpop.permute.xlu0 %3551  ;;  %v4971_v18 = vpop.f32.mrf.mxu0  ;;  %v1834_v14 = vadd.f32 %v14318_v51, %v1786_v42  ;;  %v3431_v19 = vadd.f32 %v3419_v28, %v2147_v39 }
 0x2ea   :  { %v3589_v25 = vadd.f32 %v3552_v2, %v3486_v6  ;;  %v4972_v57 = vadd.f32 %v4971_v18, %v11313_v7  ;;  %v5082_v34 = vpop.f32.mrf.mxu1  ;;  %v14320_v7 = vld [vmem:[#allocation26_spill] sm:$0xff] }
 0x2eb   :  { %14316 = vst [vmem:[#allocation121_spill] sm:$0xff] %v11577_v22  ;;  %5346 = vrot.lane.b32.xlu1 %v11571_v20, %s9616_s5  ;;  %v11586_v21 = vadd.f32 %v5082_v34, %v4970_v10  ;;  %v11588_v3 = vpop.f32.mrf.mxu0  ;;  %v2056_v26 = vadd.f32 %v14320_v7, %v1992_v13  ;;  %v1977_v10 = vsel %vm1783_vm2, 0.0, %v10981_v24  ;;  %v14322_v18 = vld [vmem:[#allocation78_spill] sm:$0xff]  ;;  %v3396_v22 = vrot.slane %v11112_v37, 6 }
 0x2ec   :  { %v5084_v23 = vpop.f32.mrf.mxu1  ;;  %7012 = vrot.lane.b32.xlu0 %v3589_v25, %s9610_s30  ;;  %v1895_v34 = vadd.f32 %v14322_v18, %v1834_v14  ;;  %v4930_v7 = vadd.f32 %v11415_v30, %v11168_v44  ;;  %v4871_v37 = vadd.f32 %v11350_v53, %v11340_v11  ;;  %v13859_v18 = vrot.slane %v11571_v20, 2  ;;  %v14325_v53 = vld [vmem:[#allocation35_spill] sm:$0xff] }
 0x2ed   :  { %v11592_v54 = vpop.permute.xlu1 %3703  ;;  %v11595_v6 = vadd.f32 %v5084_v23, %v4972_v57  ;;  %v3451_v5 = vpop.permute.xlu0 %3450  ;;  %v14323_v23 = vld [vmem:[#allocation130_spill] sm:$0xff] }
 0x2ee   :  { %14319 = vst [vmem:[#allocation126_spill] sm:$0xff] %v11592_v54  ;;  %v11597_v42 = vpop.f32.mrf.mxu0  ;;  %v11601_v2 = vpop.f32.mrf.mxu1  ;;  %v3487_v25 = vadd.f32 %v3451_v5, %v3431_v19  ;;  %v2148_v28 = vadd.f32 %v14323_v23, %v2056_v26  ;;  %v1993_v24 = vadd.f32 %v1977_v10, %v1895_v34  ;;  %v4934_v23 = vadd.f32 %v11431_v62, %v11186_v46 }
 0x2ef   :  { %14321 = vst [vmem:[#allocation128_spill] sm:$0xff] %v11595_v6 }
 0x2f0   :  { %v4979_v51 = vpop.f32.mrf.mxu0  ;;  %v11607_v57 = vpop.f32.mrf.mxu1  ;;  %5376 = vrot.lane.b32.xlu0 %v5368_v49, %s9615_s1  ;;  %v2057_v11 = vadd.f32 %v14325_v53, %v1993_v24  ;;  %v4881_v53 = vadd.f32 %v11378_v59, %v11369_v17 }
 0x2f1   :  { %v4980_v13 = vadd.f32 %v4979_v51, %v11337_v16  ;;  %v3554_v39 = vpop.permute.xlu1 %3553  ;;  %v11613_v14 = vpop.permute.xlu0 %3833  ;;  %v5361_v51 = vrot.slane %v11571_v20, 6 }
 0x2f2   :  { %14324 = vst [vmem:[#allocation94_spill] sm:$0xff] %v11613_v14  ;;  %v3590_v19 = vadd.f32 %v3554_v39, %v3487_v25  ;;  %v4981_v5 = vpop.f32.mrf.mxu0  ;;  %v5092_v56 = vpop.f32.mrf.mxu1  ;;  %v2149_v62 = vadd.f32 %v11018_v36, %v2057_v11 }
 0x2f3   :  { %v4982_v16 = vadd.f32 %v4981_v5, %v11344_v29  ;;  %v11620_v49 = vadd.f32 %v5092_v56, %v4980_v13  ;;  %v5043_v29 = vadd.f32 %v11426_v12, %v4930_v7  ;;  %v3420_v13 = vsel %vm1783_vm2, 0.0, %v3396_v22 }
 0x2f4   :  { %v4983_v26 = vpop.f32.mrf.mxu0  ;;  %7014 = vrot.lane.b32.xlu1 %v3590_v19, %s9610_s30  ;;  %v5094_v30 = vpop.f32.mrf.mxu1  ;;  %5418 = vrot.lane.b32.xlu0 %v13859_v18, %s9610_s30  ;;  %v3432_v19 = vadd.f32 %v3420_v13, %v2148_v28  ;;  %v5369_v56 = vsel %vm1783_vm2, %v5361_v51, 0.0  ;;  %v3397_v12 = vrot.slane %v11143_v0, 6  ;;  %v5047_v0 = vadd.f32 %v11442_v50, %v4934_v23 }
 0x2f5   :  { %v4984_v44 = vadd.f32 %v4983_v26, %v4871_v37  ;;  %v3453_v10 = vpop.permute.xlu1 %3452  ;;  %v11628_v34 = vadd.f32 %v5094_v30, %v4982_v16  ;;  %v11630_v25 = vpop.permute.xlu0 %3753  ;;  %v5404_v46 = vrot.slane %v5043_v29, 2 }
 0x2f6   :  { %v4987_v39 = vpop.f32.mrf.mxu0  ;;  %v5096_v37 = vpop.f32.mrf.mxu1  ;;  %v3488_v7 = vadd.f32 %v3453_v10, %v3432_v19  ;;  %v5405_v19 = vrot.slane %v5047_v0, 2 }
 0x2f7   :  { %v4988_v5 = vadd.f32 %v4987_v39, %v11360_v8  ;;  %v11637_v26 = vadd.f32 %v5096_v37, %v4984_v44  ;;  %v4938_v8 = vadd.f32 %v11439_v1, %v11197_v35  ;;  %v3421_v1 = vsel %vm1783_vm2, 0.0, %v3397_v12 }
 0x2f8   :  { %v4989_v24 = vpop.f32.mrf.mxu0  ;;  %5378 = vrot.lane.b32.xlu1 %v5369_v56, %s9615_s1  ;;  %v5100_v16 = vpop.f32.mrf.mxu1  ;;  %v3433_v50 = vadd.f32 %v3421_v1, %v2149_v62  ;;  %v4942_v37 = vadd.f32 %v11456_v41, %v11213_v27  ;;  %v14330_v1 = vld [vmem:[#allocation133_spill] sm:$0xff] }
 0x2f9   :  { %v4990_v22 = vadd.f32 %v4989_v24, %v11366_v45  ;;  %v11642_v30 = vpop.permute.xlu1 %3835  ;;  %v11647_v28 = vadd.f32 %v5100_v16, %v4988_v5  ;;  %v3556_v51 = vpop.permute.xlu0 %3555  ;;  %v5051_v17 = vadd.f32 %v11449_v40, %v4938_v8  ;;  %v4940_v5 = vadd.f32 %v11447_v43, %v11204_v38 }
 0x2fa   :  { %14326 = vst [vmem:[#allocation129_spill] sm:$0xff] %v11642_v30  ;;  %v4991_v44 = vpop.f32.mrf.mxu0  ;;  %v3591_v10 = vadd.f32 %v3556_v51, %v3488_v7  ;;  %v5102_v13 = vpop.f32.mrf.mxu1  ;;  %v5055_v27 = vadd.f32 %v11468_v4, %v4942_v37 }
 0x2fb   :  { %v4992_v45 = vadd.f32 %v4991_v44, %v11373_v60  ;;  %v11653_v39 = vadd.f32 %v5102_v13, %v4990_v22  ;;  %v5053_v43 = vadd.f32 %v11459_v15, %v4940_v5 }
 0x2fc   :  { %v4993_v36 = vpop.f32.mrf.mxu0  ;;  %5420 = vrot.lane.b32.xlu1 %v5404_v46, %s9610_s30  ;;  %v5104_v35 = vpop.f32.mrf.mxu1  ;;  %7016 = vrot.lane.b32.xlu0 %v3591_v10, %s9610_s30 }
 0x2fd   :  { %v4994_v11 = vadd.f32 %v4993_v36, %v4881_v53  ;;  %v11658_v29 = vpop.permute.xlu1 %3755  ;;  %v11661_v59 = vadd.f32 %v5104_v35, %v4992_v45  ;;  %v3455_v60 = vpop.permute.xlu0 %3454  ;;  %v5129_v53 = vrot.slane %v5051_v17, 4  ;;  %v5406_v13 = vrot.slane %v5053_v43, 2  ;;  %v14336_v43 = vld [vmem:[#allocation58_spill] sm:$0xff] }
 0x2fe   :  { %v6298_v23 = vpop.f32.mrf.mxu0  ;;  %v5106_v56 = vpop.f32.mrf.mxu1  ;;  %v3489_v24 = vadd.f32 %v3455_v60, %v3433_v50  ;;  %v4944_v35 = vadd.f32 %v11466_v31, %v11221_v48  ;;  %v14333_v48 = vld [vmem:[#allocation21_spill] sm:$0xff] }
 0x2ff   :  { %v11667_v7 = vadd.f32 %v5106_v56, %v4994_v11  ;;  %v11698_v37 = vsel %vm3640_vm1, %v5129_v53, 0.0 }
 0x300   :  { %v6300_v12 = vpop.f32.mrf.mxu0  ;;  %5237 = vrot.lane.b32.xlu1 %v5051_v17, %s9615_s1  ;;  %v6399_v40 = vpop.f32.mrf.mxu1  ;;  %5422 = vrot.lane.b32.xlu0 %v5405_v19, %s9610_s30  ;;  %v4948_v17 = vadd.f32 %v14330_v1, %v11231_v33  ;;  %v5130_v19 = vrot.slane %v5055_v27, 4  ;;  %14331 = vst [vmem:[#allocation78_spill] sm:$0xff] %v11698_v37  ;;  %v5057_v33 = vadd.f32 %v14333_v48, %v4944_v35 }
 0x301   :  { %v3558_v22 = vpop.permute.xlu1 %3557  ;;  %v11671_v16 = vadd.f32 %v6399_v40, %v6298_v23  ;;  %v11673_v62 = vpop.permute.xlu0 %3837  ;;  %v14334_v12 = vld [vmem:[#allocation117_spill] sm:$0xff] }
 0x302   :  { %14327 = vst [vmem:[#allocation124_spill] sm:$0xff] %v11673_v62  ;;  %v3592_v46 = vadd.f32 %v3558_v22, %v3489_v24  ;;  %v6301_v38 = vpop.f32.mrf.mxu0  ;;  %v6401_v41 = vpop.f32.mrf.mxu1  ;;  %v5061_v40 = vadd.f32 %v14334_v12, %v4948_v17  ;;  %v5407_v35 = vrot.slane %v5057_v33, 2  ;;  %v14345_v33 = vld [vmem:[#allocation103_spill] sm:$0xff] }
 0x304   :  { %v6303_v8 = vpop.f32.mrf.mxu0  ;;  %7018 = vrot.lane.b32.xlu1 %v3592_v46, %s9610_s30  ;;  %v6402_v51 = vpop.f32.mrf.mxu1  ;;  %5239 = vrot.lane.b32.xlu0 %v5055_v27, %s9615_s1  ;;  %v14337_v27 = vld [vmem:[#allocation159_spill] sm:$0xff] }
 0x305   :  { %v11679_v44 = vpop.permute.xlu1 %3456  ;;  %v11681_v0 = vadd.f32 %v6402_v51, %v6301_v38  ;;  %v11683_v10 = vpop.permute.xlu0 %3757  ;;  %v4950_v41 = vadd.f32 %v14337_v27, %v14336_v43  ;;  %v14338_v8 = vld [vmem:[#allocation30_spill] sm:$0xff]  ;;  %v5131_v27 = vrot.slane %v5061_v40, 4 }
 0x306   :  { %14328 = vst [vmem:[#allocation23_spill] sm:$0xff] %v11683_v10  ;;  %v6306_v45 = vpop.f32.mrf.mxu0  ;;  %v6404_v36 = vpop.f32.mrf.mxu1  ;;  %v14339_v51 = vld [vmem:[#allocation162_spill] sm:$0xff] }
 0x307   :  { %v11716_v36 = vsel %vm3640_vm1, %v5130_v19, 0.0  ;;  %v11751_v18 = vsel %vm3640_vm1, %v5131_v27, 0.0 }
 0x308   :  { %v6308_v15 = vpop.f32.mrf.mxu0  ;;  %5189 = vrot.lane.b32.xlu1 %v5129_v53, %s9616_s5  ;;  %v6407_v4 = vpop.f32.mrf.mxu1  ;;  %5424 = vrot.lane.b32.xlu0 %v5406_v13, %s9610_s30  ;;  %v4952_v53 = vadd.f32 %v14339_v51, %v14338_v8  ;;  %14340 = vst [vmem:[#allocation133_spill] sm:$0xff] %v11716_v36 }
 0x309   :  { %v11687_v11 = vpop.permute.xlu1 %3839  ;;  %v11693_v50 = vadd.f32 %v6407_v4, %v6306_v45  ;;  %v11695_v60 = vpop.permute.xlu0 %3559 }
 0x30a   :  { %14329 = vst [vmem:[#allocation26_spill] sm:$0xff] %v11687_v11  ;;  %v6309_v23 = vpop.f32.mrf.mxu0  ;;  %v6409_v5 = vpop.f32.mrf.mxu1 }
 0x30b   :  { %v14343_v5 = vld [vmem:[#allocation122_spill] sm:$0xff] }
 0x30c   :  { %v6311_v56 = vpop.f32.mrf.mxu0  ;;  %5285 = vrot.lane.b32.xlu1 %v11698_v37, %s9610_s30  ;;  %v6410_v24 = vpop.f32.mrf.mxu1  ;;  %5191 = vrot.lane.b32.xlu0 %v5130_v19, %s9616_s5  ;;  %14353 = vst [vmem:[#allocation122_spill] sm:$0xff] %v11751_v18 }
 0x30d   :  { %v11703_v31 = vpop.permute.xlu1 %3759  ;;  %v11707_v22 = vadd.f32 %v6410_v24, %v6309_v23  ;;  %v11709_v46 = vpop.permute.xlu0 %3624  ;;  %v5063_v56 = vadd.f32 %v14343_v5, %v4950_v41  ;;  %v5065_v24 = vadd.f32 %v11508_v47, %v4952_v53  ;;  %v14349_v5 = vld [vmem:[#allocation27_spill] sm:$0xff] }
 0x30e   :  { %14332 = vst [vmem:[#allocation130_spill] sm:$0xff] %v11703_v31  ;;  %14335 = vst [vmem:[#allocation35_spill] sm:$0xff] %v11709_v46  ;;  %v6314_v38 = vpop.f32.mrf.mxu0  ;;  %v6412_v45 = vpop.f32.mrf.mxu1 }
 0x310   :  { %v6316_v13 = vpop.f32.mrf.mxu0  ;;  %5241 = vrot.lane.b32.xlu1 %v5061_v40, %s9615_s1  ;;  %v6415_v15 = vpop.f32.mrf.mxu1  ;;  %5287 = vrot.lane.b32.xlu0 %v11716_v36, %s9610_s30  ;;  %v14415_v36 = vld [vmem:[#allocation157_spill] sm:$0xff] }
 0x311   :  { %v11721_v4 = vpop.permute.xlu1 %3626  ;;  %v11723_v1 = vadd.f32 %v6415_v15, %v6314_v38  ;;  %v11725_v17 = vpop.permute.xlu0 %3841  ;;  %v14346_v38 = vld [vmem:[#allocation115_spill] sm:$0xff]  ;;  %v5408_v13 = vrot.slane %v5063_v56, 2  ;;  %v3794_v37 = vsel %vm3640_vm1, 0.0, %v14415_v36 }
 0x312   :  { %14341 = vst [vmem:[#allocation21_spill] sm:$0xff] %v11721_v4  ;;  %14342 = vst [vmem:[#allocation117_spill] sm:$0xff] %v11725_v17  ;;  %v6317_v23 = vpop.f32.mrf.mxu0  ;;  %v6417_v19 = vpop.f32.mrf.mxu1  ;;  %v4954_v8 = vadd.f32 %v14346_v38, %v14345_v33  ;;  %v14351_v33 = vld [vmem:[#allocation62_spill] sm:$0xff]  ;;  %v14352_v38 = vld [vmem:[#allocation95_spill] sm:$0xff] }
 0x313   :  { %v4960_v56 = vadd.f32 %v14352_v38, %v14351_v33 }
 0x314   :  { %v6319_v48 = vpop.f32.mrf.mxu0  ;;  %5426 = vrot.lane.b32.xlu1 %v5407_v35, %s9610_s30  ;;  %v6418_v12 = vpop.f32.mrf.mxu1  ;;  %5243 = vrot.lane.b32.xlu0 %v5065_v24, %s9615_s1  ;;  %v5067_v40 = vadd.f32 %v14349_v5, %v4954_v8 }
 0x315   :  { %v11731_v43 = vpop.permute.xlu1 %3843  ;;  %v11735_v51 = vadd.f32 %v6418_v12, %v6317_v23  ;;  %v11737_v45 = vpop.permute.xlu0 %3761  ;;  %v5132_v12 = vrot.slane %v5065_v24, 4  ;;  %v14356_v24 = vld [vmem:[#allocation90_spill] sm:$0xff] }
 0x316   :  { %14344 = vst [vmem:[#allocation58_spill] sm:$0xff] %v11731_v43  ;;  %14347 = vst [vmem:[#allocation159_spill] sm:$0xff] %v11737_v45  ;;  %v6322_v41 = vpop.f32.mrf.mxu0  ;;  %v6420_v47 = vpop.f32.mrf.mxu1 }
 0x318   :  { %v6324_v53 = vpop.f32.mrf.mxu0  ;;  %5193 = vrot.lane.b32.xlu1 %v5131_v27, %s9616_s5  ;;  %v6423_v15 = vpop.f32.mrf.mxu1  ;;  %5428 = vrot.lane.b32.xlu0 %v5408_v13, %s9610_s30 }
 0x319   :  { %v11741_v35 = vpop.permute.xlu1 %3460  ;;  %v11744_v19 = vadd.f32 %v6423_v15, %v6322_v41  ;;  %v11746_v48 = vpop.permute.xlu0 %3705  ;;  %v14355_v15 = vld [vmem:[#allocation61_spill] sm:$0xff] }
 0x31a   :  { %14348 = vst [vmem:[#allocation30_spill] sm:$0xff] %v11741_v35  ;;  %14350 = vst [vmem:[#allocation162_spill] sm:$0xff] %v11746_v48  ;;  %v6326_v23 = vpop.f32.mrf.mxu0  ;;  %v6425_v47 = vpop.f32.mrf.mxu1  ;;  %v4851_v5 = vadd.f32 %v14356_v24, %v14355_v15  ;;  %v5409_v48 = vrot.slane %v5067_v40, 2  ;;  %v14363_v15 = vld [vmem:[#allocation107_spill] sm:$0xff]  ;;  %v14412_v35 = vld [vmem:[#allocation73_spill] sm:$0xff] }
 0x31b   :  { %v11753_v4 = vadd.f32 %v6425_v47, %v6324_v53  ;;  %v11767_v53 = vadd.f32 %v11539_v58, %v4960_v56 }
 0x31c   :  { %v6328_v13 = vpop.f32.mrf.mxu0  ;;  %5289 = vrot.lane.b32.xlu1 %v11751_v18, %s9610_s30  ;;  %v6427_v8 = vpop.f32.mrf.mxu1  ;;  %5195 = vrot.lane.b32.xlu0 %v5132_v12, %s9616_s5  ;;  %v4964_v6 = vadd.f32 %v11545_v9, %v4851_v5 }
 0x31d   :  { %v11758_v41 = vpop.permute.xlu1 %3763  ;;  %v11762_v33 = vadd.f32 %v6427_v8, %v6326_v23  ;;  %v11764_v38 = vpop.permute.xlu0 %3628  ;;  %14358 = vst [vmem:[#allocation27_spill] sm:$0xff] %v11767_v53  ;;  %v5362_v9 = vrot.slane %v11767_v53, 6 }
 0x31e   :  { %14354 = vst [vmem:[#allocation103_spill] sm:$0xff] %v11758_v41  ;;  %14357 = vst [vmem:[#allocation115_spill] sm:$0xff] %v11764_v38  ;;  %v6332_v27 = vpop.f32.mrf.mxu0  ;;  %v6429_v47 = vpop.f32.mrf.mxu1  ;;  %v11773_v41 = vsel %vm3640_vm1, %v5132_v12, 0.0  ;;  %v14362_v12 = vld [vmem:[#allocation64_spill] sm:$0xff] }
 0x31f   :  { %v11770_v43 = vadd.f32 %v6429_v47, %v6328_v13  ;;  %14359 = vst [vmem:[#allocation62_spill] sm:$0xff] %v11773_v41  ;;  %v4861_v24 = vadd.f32 %v14363_v15, %v14362_v12 }
 0x320   :  { %v6334_v17 = vpop.f32.mrf.mxu0  ;;  %5430 = vrot.lane.b32.xlu1 %v5409_v48, %s9610_s30  ;;  %v6433_v40 = vpop.f32.mrf.mxu1  ;;  %5291 = vrot.lane.b32.xlu0 %v11773_v41, %s9610_s30  ;;  %v11789_v48 = vadd.f32 %v11561_v52, %v4964_v6  ;;  %v14367_v52 = vld [vmem:[#allocation137_spill] sm:$0xff]  ;;  %v5125_v41 = vrot.slane %v14412_v35, 4 }
 0x321   :  { %v11778_v23 = vpop.permute.xlu1 %3707  ;;  %v11780_v8 = vadd.f32 %v6433_v40, %v6332_v27  ;;  %v11782_v58 = vpop.permute.xlu0 %3845  ;;  %v13860_v17 = vrot.slane %v11767_v53, 2  ;;  %v4974_v40 = vadd.f32 %v11588_v3, %v4861_v24  ;;  %v4978_v6 = vadd.f32 %v11597_v42, %v14367_v52  ;;  %v14416_v35 = vld [vmem:[#allocation77_spill] sm:$0xff] }
 0x322   :  { %14360 = vst [vmem:[#allocation95_spill] sm:$0xff] %v11778_v23  ;;  %14361 = vst [vmem:[#allocation61_spill] sm:$0xff] %v11782_v58  ;;  %v6335_v56 = vpop.f32.mrf.mxu0  ;;  %v6435_v13 = vpop.f32.mrf.mxu1  ;;  %v5363_v23 = vrot.slane %v11789_v48, 6  ;;  %v5126_v54 = vrot.slane %v14416_v35, 4 }
 0x323   :  { %14364 = vst [vmem:[#allocation90_spill] sm:$0xff] %v11789_v48  ;;  %v5091_v52 = vadd.f32 %v11607_v57, %v4978_v6  ;;  %v5410_v57 = vrot.slane %v11586_v21, 2 }
 0x324   :  { %v6337_v5 = vpop.f32.mrf.mxu0  ;;  %5348 = vrot.lane.b32.xlu1 %v11767_v53, %s9616_s5  ;;  %v6436_v27 = vpop.f32.mrf.mxu1  ;;  %5432 = vrot.lane.b32.xlu0 %v13860_v17, %s9610_s30 }
 0x325   :  { %v11796_v47 = vpop.permute.xlu1 %3630  ;;  %v11799_v13 = vadd.f32 %v6436_v27, %v6335_v56  ;;  %v11801_v38 = vpop.permute.xlu0 %3563  ;;  %v5370_v5 = vsel %vm1783_vm2, %v5362_v9, 0.0  ;;  %v5087_v56 = vadd.f32 %v11601_v2, %v4974_v40  ;;  %v13862_v9 = vrot.slane %v11789_v48, 2 }
 0x326   :  { %14365 = vst [vmem:[#allocation64_spill] sm:$0xff] %v11796_v47  ;;  %14366 = vst [vmem:[#allocation107_spill] sm:$0xff] %v11801_v38  ;;  %v6340_v12 = vpop.f32.mrf.mxu0  ;;  %v6438_v15 = vpop.f32.mrf.mxu1  ;;  %v5137_v6 = vrot.slane %v5091_v52, 4 }
 0x328   :  { %v6342_v58 = vpop.f32.mrf.mxu0  ;;  %5380 = vrot.lane.b32.xlu1 %v5370_v5, %s9615_s1  ;;  %v6441_v17 = vpop.f32.mrf.mxu1  ;;  %5350 = vrot.lane.b32.xlu0 %v11789_v48, %s9616_s5  ;;  %v5371_v5 = vsel %vm1783_vm2, %v5363_v23, 0.0  ;;  %v11840_v48 = vsel %vm3640_vm1, %v5137_v6, 0.0 }
 0x329   :  { %v11810_v3 = vpop.permute.xlu1 %3847  ;;  %v11813_v24 = vadd.f32 %v6441_v17, %v6340_v12  ;;  %v11815_v27 = vpop.permute.xlu0 %3462  ;;  %v5411_v17 = vrot.slane %v5087_v56, 2  ;;  %14374 = vst [vmem:[#allocation168_spill] sm:$0xff] %v11840_v48 }
 0x32a   :  { %14368 = vst [vmem:[#allocation137_spill] sm:$0xff] %v11810_v3  ;;  %14369 = vst [vmem:[#allocation163_spill] sm:$0xff] %v11815_v27  ;;  %v6343_v42 = vpop.f32.mrf.mxu0  ;;  %v6443_v58 = vpop.f32.mrf.mxu1 }
 0x32c   :  { %v6345_v15 = vpop.f32.mrf.mxu0  ;;  %5434 = vrot.lane.b32.xlu1 %v13862_v9, %s9610_s30  ;;  %v6444_v53 = vpop.f32.mrf.mxu1  ;;  %5382 = vrot.lane.b32.xlu0 %v5371_v5, %s9615_s1 }
 0x32d   :  { %v11824_v2 = vpop.permute.xlu1 %3565  ;;  %v11826_v40 = vadd.f32 %v6444_v53, %v6343_v42  ;;  %v11828_v12 = vpop.permute.xlu0 %3765 }
 0x32e   :  { %14370 = vst [vmem:[#allocation164_spill] sm:$0xff] %v11824_v2  ;;  %14371 = vst [vmem:[#allocation165_spill] sm:$0xff] %v11828_v12  ;;  %v6446_v58 = vpop.f32.mrf.mxu1 }
 0x32f   :  { %v6348_v47 = vpop.f32.mrf.mxu0 }
 0x330   :  { %5438 = vrot.lane.b32.xlu1 %v5411_v17, %s9610_s30  ;;  %v6449_v15 = vpop.f32.mrf.mxu1  ;;  %5436 = vrot.lane.b32.xlu0 %v5410_v57, %s9610_s30 }
 0x331   :  { %v6350_v23 = vpop.f32.mrf.mxu0  ;;  %v11833_v9 = vpop.permute.xlu1 %3464  ;;  %v11835_v5 = vadd.f32 %v6449_v15, %v6348_v47 }
 0x332   :  { %14372 = vst [vmem:[#allocation166_spill] sm:$0xff] %v11833_v9  ;;  %v11837_v56 = vpop.permute.xlu0 %3709  ;;  %v6451_v42 = vpop.f32.mrf.mxu1  ;;  %v14410_v9 = vld [vmem:[#allocation153_spill] sm:$0xff] }
 0x333   :  { %14373 = vst [vmem:[#allocation167_spill] sm:$0xff] %v11837_v56  ;;  %v6351_v53 = vpop.f32.mrf.mxu0  ;;  %v5138_v42 = vrot.slane %v11628_v34, 4 }
 0x334   :  { %5295 = vrot.lane.b32.xlu1 %v11840_v48, %s9610_s30  ;;  %v6452_v58 = vpop.f32.mrf.mxu1  ;;  %5245 = vrot.lane.b32.xlu0 %v5091_v52, %s9615_s1  ;;  %v5412_v52 = vrot.slane %v11620_v49, 2 }
 0x335   :  { %v6353_v21 = vpop.f32.mrf.mxu0  ;;  %v11845_v17 = vpop.permute.xlu1 %3767  ;;  %v11847_v57 = vadd.f32 %v6452_v58, %v6351_v53  ;;  %v11865_v46 = vsel %vm3640_vm1, %v5138_v42, 0.0 }
 0x336   :  { %14375 = vst [vmem:[#allocation169_spill] sm:$0xff] %v11845_v17  ;;  %v11849_v47 = vpop.permute.xlu0 %3567  ;;  %v6454_v15 = vpop.f32.mrf.mxu1  ;;  %14379 = vst [vmem:[#allocation173_spill] sm:$0xff] %v11865_v46 }
 0x337   :  { %14376 = vst [vmem:[#allocation170_spill] sm:$0xff] %v11849_v47 }
 0x338   :  { %v6356_v23 = vpop.f32.mrf.mxu0  ;;  %5247 = vrot.lane.b32.xlu1 %v11628_v34, %s9615_s1  ;;  %v6457_v21 = vpop.f32.mrf.mxu1  ;;  %5197 = vrot.lane.b32.xlu0 %v5137_v6, %s9616_s5 }
 0x339   :  { %v11855_v48 = vpop.permute.xlu1 %3711  ;;  %v11858_v3 = vadd.f32 %v6457_v21, %v6356_v23 }
 0x33a   :  { %v6358_v56 = vpop.f32.mrf.mxu0  ;;  %14377 = vst [vmem:[#allocation171_spill] sm:$0xff] %v11855_v48  ;;  %v11860_v53 = vpop.permute.xlu0 %3466 }
 0x33b   :  { %14378 = vst [vmem:[#allocation172_spill] sm:$0xff] %v11860_v53  ;;  %v6459_v17 = vpop.f32.mrf.mxu1 }
 0x33c   :  { %v6360_v58 = vpop.f32.mrf.mxu0  ;;  %v11862_v15 = vadd.f32 %v6459_v17, %v6358_v56  ;;  %5440 = vrot.lane.b32.xlu1 %v5412_v52, %s9610_s30  ;;  %5297 = vrot.lane.b32.xlu0 %v11865_v46, %s9610_s30  ;;  %v5413_v56 = vrot.slane %v11637_v26, 2 }
 0x33d   :  { %v6461_v34 = vpop.f32.mrf.mxu1  ;;  %v11870_v6 = vpop.permute.xlu1 %3849 }
 0x33e   :  { %v6362_v12 = vpop.f32.mrf.mxu0  ;;  %14380 = vst [vmem:[#allocation174_spill] sm:$0xff] %v11870_v6  ;;  %v11872_v49 = vadd.f32 %v6461_v34, %v6360_v58  ;;  %v11874_v23 = vpop.permute.xlu0 %3769  ;;  %v5139_v34 = vrot.slane %v11647_v28, 4 }
 0x33f   :  { %14382 = vst [vmem:[#allocation176_spill] sm:$0xff] %v11874_v23  ;;  %v6463_v17 = vpop.f32.mrf.mxu1 }
 0x340   :  { %14381 = vst [vmem:[#allocation175_spill] sm:$0xff] %v11872_v49  ;;  %v6500_v21 = vpop.f32.mrf.mxu0  ;;  %v11877_v48 = vadd.f32 %v6463_v17, %v6362_v12  ;;  %5199 = vrot.lane.b32.xlu1 %v5138_v42, %s9616_s5  ;;  %5442 = vrot.lane.b32.xlu0 %v5413_v56, %s9610_s30 }
 0x341   :  { %v6601_v52 = vpop.f32.mrf.mxu1  ;;  %v11881_v53 = vpop.permute.xlu1 %3569  ;;  %v6501_v56 = vadd.f32 %v6500_v21, %v11671_v16  ;;  %v5414_v16 = vrot.slane %v11653_v39, 2 }
 0x342   :  { %14383 = vst [vmem:[#allocation177_spill] sm:$0xff] %v11877_v48  ;;  %v6502_v45 = vpop.f32.mrf.mxu0  ;;  %14384 = vst [vmem:[#allocation178_spill] sm:$0xff] %v11881_v53  ;;  %v11883_v46 = vpop.permute.xlu0 %3851  ;;  %v11895_v48 = vsel %vm3640_vm1, %v5139_v34, 0.0 }
 0x343   :  { %14385 = vst [vmem:[#allocation179_spill] sm:$0xff] %v11883_v46  ;;  %v6603_v6 = vpop.f32.mrf.mxu1  ;;  %14388 = vst [vmem:[#allocation182_spill] sm:$0xff] %v11895_v48 }
 0x344   :  { %v6503_v58 = vpop.f32.mrf.mxu0  ;;  %5249 = vrot.lane.b32.xlu1 %v11647_v28, %s9615_s1  ;;  %5201 = vrot.lane.b32.xlu0 %v5139_v34, %s9616_s5  ;;  %v5140_v6 = vrot.slane %v11661_v59, 4 }
 0x345   :  { %v6604_v26 = vpop.f32.mrf.mxu1  ;;  %v11889_v45 = vpop.permute.xlu1 %3468 }
 0x346   :  { %v6505_v23 = vpop.f32.mrf.mxu0  ;;  %14386 = vst [vmem:[#allocation180_spill] sm:$0xff] %v11889_v45  ;;  %v11891_v12 = vpop.permute.xlu0 %3771  ;;  %v11915_v53 = vsel %vm3640_vm1, %v5140_v6, 0.0 }
 0x347   :  { %14387 = vst [vmem:[#allocation181_spill] sm:$0xff] %v11891_v12  ;;  %v6606_v17 = vpop.f32.mrf.mxu1  ;;  %v6504_v23 = vadd.f32 %v6503_v58, %v11681_v0  ;;  %14393 = vst [vmem:[#allocation187_spill] sm:$0xff] %v11915_v53 }
 0x348   :  { %v6508_v42 = vpop.f32.mrf.mxu0  ;;  %5299 = vrot.lane.b32.xlu1 %v11895_v48, %s9610_s30  ;;  %5251 = vrot.lane.b32.xlu0 %v11661_v59, %s9615_s1  ;;  %v11908_v17 = vadd.f32 %v6601_v52, %v6501_v56 }
 0x349   :  { %v6609_v28 = vpop.f32.mrf.mxu1  ;;  %v11903_v45 = vpop.permute.xlu1 %3853  ;;  %v6509_v12 = vadd.f32 %v6508_v42, %v11693_v50 }
 0x34a   :  { %v6510_v46 = vpop.f32.mrf.mxu0  ;;  %14389 = vst [vmem:[#allocation183_spill] sm:$0xff] %v11903_v45  ;;  %v11906_v21 = vpop.permute.xlu0 %3571  ;;  %14391 = vst [vmem:[#allocation185_spill] sm:$0xff] %v11908_v17 }
 0x34b   :  { %14390 = vst [vmem:[#allocation184_spill] sm:$0xff] %v11906_v21  ;;  %v6611_v0 = vpop.f32.mrf.mxu1  ;;  %v11911_v46 = vadd.f32 %v6604_v26, %v6504_v23  ;;  %v5415_v26 = vrot.slane %v11667_v7, 2 }
 0x34c   :  { %v6511_v34 = vpop.f32.mrf.mxu0  ;;  %5444 = vrot.lane.b32.xlu1 %v5414_v16, %s9610_s30  ;;  %5301 = vrot.lane.b32.xlu0 %v11915_v53, %s9610_s30 }
 0x34d   :  { %14392 = vst [vmem:[#allocation186_spill] sm:$0xff] %v11911_v46  ;;  %v6512_v58 = vadd.f32 %v6511_v34, %v11707_v22  ;;  %v6612_v59 = vpop.f32.mrf.mxu1  ;;  %v11920_v39 = vpop.permute.xlu1 %3773  ;;  %v6700_v22 = vrot.slane %v11908_v17, 6  ;;  %v6701_v56 = vrot.slane %v11911_v46, 6 }
 0x34e   :  { %v6513_v48 = vpop.f32.mrf.mxu0  ;;  %14394 = vst [vmem:[#allocation188_spill] sm:$0xff] %v11920_v39  ;;  %v11922_v52 = vpop.permute.xlu0 %3470 }
 0x34f   :  { %14395 = vst [vmem:[#allocation189_spill] sm:$0xff] %v11922_v52  ;;  %v11928_v48 = vadd.f32 %v6609_v28, %v6509_v12  ;;  %v6614_v42 = vpop.f32.mrf.mxu1  ;;  %v11931_v23 = vadd.f32 %v6612_v59, %v6512_v58 }
 0x350   :  { %v11924_v50 = vpop.f32.mrf.mxu0  ;;  %5203 = vrot.lane.b32.xlu1 %v5140_v6, %s9616_s5  ;;  %5446 = vrot.lane.b32.xlu0 %v5415_v26, %s9610_s30  ;;  %v6732_v42 = vsel %vm1783_vm2, %v6700_v22, 0.0  ;;  %v6733_v6 = vsel %vm1783_vm2, %v6701_v56, 0.0 }
 0x351   :  { %14396 = vst [vmem:[#allocation190_spill] sm:$0xff] %v11928_v48  ;;  %14397 = vst [vmem:[#allocation191_spill] sm:$0xff] %v11931_v23  ;;  %v11934_v34 = vpop.f32.mrf.mxu1  ;;  %v11937_v0 = vpop.permute.xlu1 %3573  ;;  %v6702_v12 = vrot.slane %v11928_v48, 6  ;;  %v6703_v58 = vrot.slane %v11931_v23, 6 }
 0x352   :  { %v6518_v16 = vpop.f32.mrf.mxu0  ;;  %14398 = vst [vmem:[#allocation192_spill] sm:$0xff] %v11937_v0  ;;  %v11939_v53 = vpop.permute.xlu0 %3855 }
 0x353   :  { %14399 = vst [vmem:[#allocation193_spill] sm:$0xff] %v11939_v53  ;;  %v6619_v28 = vpop.f32.mrf.mxu1  ;;  %v6734_v22 = vsel %vm1783_vm2, %v6702_v12, 0.0 }
 0x354   :  { %v11941_v7 = vpop.f32.mrf.mxu0  ;;  %6764 = vrot.lane.b32.xlu1 %v6732_v42, %s9616_s5  ;;  %6766 = vrot.lane.b32.xlu0 %v6733_v6, %s9616_s5 }
 0x355   :  { %v11948_v16 = vpop.f32.mrf.mxu1  ;;  %v11951_v26 = vpop.permute.xlu1 %7010 }
 0x356   :  { %v6521_v59 = vpop.f32.mrf.mxu0  ;;  %14400 = vst [vmem:[#allocation194_spill] sm:$0xff] %v11951_v26  ;;  %v11953_v53 = vpop.permute.xlu0 %3775 }
 0x357   :  { %14401 = vst [vmem:[#allocation195_spill] sm:$0xff] %v11953_v53  ;;  %v6622_v28 = vpop.f32.mrf.mxu1  ;;  %v6735_v59 = vsel %vm1783_vm2, %v6703_v58, 0.0 }
 0x358   :  { %v11955_v45 = vpop.f32.mrf.mxu0  ;;  %6768 = vrot.lane.b32.xlu1 %v6734_v22, %s9616_s5  ;;  %6770 = vrot.lane.b32.xlu0 %v6735_v59, %s9616_s5 }
 0x359   :  { %v11961_v42 = vpop.f32.mrf.mxu1  ;;  %v11969_v52 = vpop.permute.xlu1 %5416 }
 0x35a   :  { %v6526_v0 = vpop.f32.mrf.mxu0  ;;  %v11964_v6 = vpop.permute.xlu0 %5344  ;;  %14402 = vst [vmem:[#allocation196_spill] sm:$0xff] %v11969_v52 }
 0x35b   :  { %v6527_v56 = vadd.f32 %v6526_v0, %v11753_v4  ;;  %v6627_v28 = vpop.f32.mrf.mxu1 }
 0x35c   :  { %v6528_v26 = vpop.f32.mrf.mxu0 }
 0x35d   :  { %v11967_v53 = vadd.f32 %v6528_v26, %v11762_v33  ;;  %v11971_v12 = vadd.f32 %v6627_v28, %v6527_v56  ;;  %v11974_v39 = vpop.f32.mrf.mxu1  ;;  %v11981_v17 = vpop.permute.xlu1 %5346 }
 0x35e   :  { %v6530_v58 = vpop.f32.mrf.mxu0  ;;  %v11977_v21 = vpop.permute.xlu0 %7012 }
 0x35f   :  { %14403 = vst [vmem:[#allocation197_spill] sm:$0xff] %v11971_v12  ;;  %v6531_v22 = vadd.f32 %v6530_v58, %v11770_v43  ;;  %v6631_v59 = vpop.f32.mrf.mxu1  ;;  %14404 = vst [vmem:[#allocation198_spill] sm:$0xff] %v11977_v21 }
 0x360   :  { %v6534_v4 = vpop.f32.mrf.mxu0 }
 0x361   :  { %v6535_v0 = vadd.f32 %v6534_v4, %v11780_v8  ;;  %v11979_v46 = vadd.f32 %v6631_v59, %v6531_v22  ;;  %v6635_v26 = vpop.f32.mrf.mxu1 }
 0x362   :  { %v6536_v33 = vpop.f32.mrf.mxu0  ;;  %v11987_v58 = vpop.permute.xlu0 %5376 }
 0x363   :  { %14405 = vst [vmem:[#allocation199_spill] sm:$0xff] %v11979_v46  ;;  %v11983_v52 = vadd.f32 %v6635_v26, %v6535_v0  ;;  %v6637_v28 = vpop.f32.mrf.mxu1 }
 0x364   :  { %v11985_v56 = vpop.f32.mrf.mxu0 }
 0x365   :  { %v11989_v12 = vpop.f32.mrf.mxu1 }
 0x366   :  { %v6539_v43 = vpop.f32.mrf.mxu0  ;;  %v11993_v4 = vpop.permute.xlu1 %7014 }
 0x367   :  { %14406 = vst [vmem:[#allocation200_spill] sm:$0xff] %v11993_v4  ;;  %v6640_v22 = vpop.f32.mrf.mxu1  ;;  %v12001_v26 = vpop.permute.xlu0 %5418 }
 0x368   :  { %v11991_v8 = vpop.f32.mrf.mxu0  ;;  %14407 = vst [vmem:[#allocation201_spill] sm:$0xff] %v12001_v26  ;;  %v3793_v26 = vsel %vm3640_vm1, 0.0, %v14410_v9 }
 0x369   :  { %v11995_v33 = vpop.f32.mrf.mxu1 }
 0x36a   :  { %v6544_v59 = vpop.f32.mrf.mxu0  ;;  %v11999_v0 = vpop.permute.xlu1 %5378 }
 0x36b   :  { %v6645_v28 = vpop.f32.mrf.mxu1 }
 0x36c   :  { %v11997_v21 = vpop.f32.mrf.mxu0 }
 0x36d   :  { %v12003_v46 = vpop.f32.mrf.mxu1 }
 0x36e   :  { %v6547_v43 = vpop.f32.mrf.mxu0  ;;  %v12007_v2 = vpop.permute.xlu1 %5420 }
 0x36f   :  { %14408 = vst [vmem:[#allocation202_spill] sm:$0xff] %v12007_v2  ;;  %v6648_v47 = vpop.f32.mrf.mxu1  ;;  %v12009_v4 = vpop.permute.xlu0 %7016 }
 0x370   :  { %v12005_v23 = vpop.f32.mrf.mxu0  ;;  %14409 = vst [vmem:[#allocation203_spill] sm:$0xff] %v12009_v4  ;;  %v14413_v47 = vld [vmem:[#allocation151_spill] sm:$0xff] }
 0x371   :  { %v12011_v59 = vpop.f32.mrf.mxu1  ;;  %v3873_v2 = vadd.f32 %v14413_v47, %v3793_v26  ;;  %v14417_v47 = vld [vmem:[#allocation158_spill] sm:$0xff] }
 0x372   :  { %v6552_v22 = vpop.f32.mrf.mxu0  ;;  %v5238_v48 = vpop.permute.xlu1 %5237  ;;  %v3874_v30 = vadd.f32 %v14417_v47, %v3794_v37 }
 0x373   :  { %v6653_v28 = vpop.f32.mrf.mxu1  ;;  %v12017_v43 = vpop.permute.xlu0 %5422 }
 0x374   :  { %v12013_v27 = vpop.f32.mrf.mxu0  ;;  %14411 = vst [vmem:[#allocation153_spill] sm:$0xff] %v12017_v43  ;;  %v5157_v28 = vsel %vm3640_vm1, %v5125_v41, 0.0  ;;  %v5158_v41 = vsel %vm3640_vm1, %v5126_v54, 0.0 }
 0x375   :  { %v12020_v18 = vpop.f32.mrf.mxu1  ;;  %v5173_v31 = vadd.f32 %v5157_v28, %v3873_v2  ;;  %v5174_v35 = vadd.f32 %v5158_v41, %v3874_v30  ;;  %v14421_v30 = vld [vmem:[#allocation160_spill] sm:$0xff]  ;;  %v3796_v41 = vsel %vm3640_vm1, 0.0, %v11574_v61 }
 0x376   :  { %v6555_v38 = vpop.f32.mrf.mxu0  ;;  %v12025_v22 = vpop.permute.xlu1 %7018 }
 0x377   :  { %14414 = vst [vmem:[#allocation73_spill] sm:$0xff] %v12025_v22  ;;  %v6656_v11 = vpop.f32.mrf.mxu1  ;;  %v5240_v62 = vpop.permute.xlu0 %5239 }
 0x378   :  { %v12023_v4 = vpop.f32.mrf.mxu0 }
 0x379   :  { %v12031_v43 = vpop.f32.mrf.mxu1 }
 0x37a   :  { %v6560_v9 = vpop.f32.mrf.mxu0  ;;  %v5190_v26 = vpop.permute.xlu1 %5189 }
 0x37b   :  { %v6561_v38 = vadd.f32 %v6560_v9, %v11862_v15  ;;  %v6661_v10 = vpop.f32.mrf.mxu1  ;;  %v12035_v22 = vpop.permute.xlu0 %5424  ;;  %v5213_v11 = vsel %vm3640_vm1, 0.0, %v5190_v26  ;;  %v6517_v15 = vadd.f32 %v11924_v50, %v11723_v1  ;;  %v14420_v1 = vld [vmem:[#allocation152_spill] sm:$0xff] }
 0x37c   :  { %14418 = vst [vmem:[#allocation151_spill] sm:$0xff] %v12035_v22  ;;  %v5221_v36 = vadd.f32 %v5213_v11, %v5173_v31  ;;  %v14419_v31 = vld [vmem:[#allocation118_spill] sm:$0xff]  ;;  %v5127_v50 = vrot.slane %v14420_v1, 4 }
 0x37d   :  { %v12038_v49 = vadd.f32 %v6661_v10, %v6561_v38  ;;  %v12045_v22 = vadd.f32 %v11934_v34, %v6517_v15  ;;  %v3795_v54 = vsel %vm3640_vm1, 0.0, %v14419_v31  ;;  %v14422_v15 = vrot.slane %v11531_v32, 2 }
 0x37e   :  { %v5261_v9 = vadd.f32 %v5238_v48, %v5221_v36  ;;  %v5286_v14 = vpop.permute.xlu1 %5285  ;;  %v3875_v11 = vadd.f32 %v14421_v30, %v3795_v54  ;;  %v14425_v30 = vld [vmem:[#allocation22_spill] sm:$0xff] }
 0x37f   :  { %v5192_v2 = vpop.permute.xlu0 %5191  ;;  %v6704_v36 = vrot.slane %v12045_v22, 6 }
 0x380   :  { %v5214_v28 = vsel %vm3640_vm1, 0.0, %v5192_v2  ;;  %v5312_v37 = vadd.f32 %v5286_v14, %v5261_v9  ;;  %v5159_v9 = vsel %vm3640_vm1, %v5127_v50, 0.0  ;;  %v6525_v2 = vadd.f32 %v11955_v45, %v11744_v19 }
 0x381   :  { %v5222_v47 = vadd.f32 %v5214_v28, %v5174_v35  ;;  %v6520_v35 = vadd.f32 %v11941_v7, %v11735_v51  ;;  %v6736_v31 = vsel %vm1783_vm2, %v6704_v36, 0.0  ;;  %v5175_v54 = vadd.f32 %v5159_v9, %v3875_v11 }
 0x382   :  { %7074 = vrot.lane.b32.xlu1 %v5312_v37, %s9615_s1  ;;  %v5242_v10 = vpop.permute.xlu1 %5241  ;;  %v14423_v37 = vld [vmem:[#allocation155_spill] sm:$0xff]  ;;  %v6626_v50 = vadd.f32 %v11961_v42, %v6525_v2  ;;  %v14427_v2 = vld [vmem:[#allocation140_spill] sm:$0xff] }
 0x383   :  { %v5262_v38 = vadd.f32 %v5240_v62, %v5222_v47  ;;  %v5288_v26 = vpop.permute.xlu0 %5287  ;;  %v5340_v62 = vsel %vm1880_vm0, 0.0, %v14422_v15  ;;  %v5128_v47 = vrot.slane %v14423_v37, 4  ;;  %v1978_v37 = vsel %vm1783_vm2, 0.0, %v14427_v2 }
 0x384   :  { %v5356_v28 = vadd.f32 %v11964_v6, %v5340_v62  ;;  %v12077_v6 = vadd.f32 %v11948_v16, %v6520_v35 }
 0x385   :  { %v5313_v48 = vadd.f32 %v5288_v26, %v5262_v38  ;;  %v14424_v38 = vld [vmem:[#allocation24_spill] sm:$0xff]  ;;  %v3876_v26 = vadd.f32 %v11556_v55, %v3796_v41  ;;  %v5160_v55 = vsel %vm3640_vm1, %v5128_v47, 0.0  ;;  %v14426_v41 = vrot.slane %v11571_v20, 2 }
 0x386   :  { %v12053_v14 = vpop.permute.xlu1 %5426  ;;  %v1787_v32 = vsel %vm1783_vm2, 0.0, %v14424_v38  ;;  %v5388_v1 = vadd.f32 %v11987_v58, %v5356_v28  ;;  %v6705_v47 = vrot.slane %v12077_v6, 6 }
 0x387   :  { %7076 = vrot.lane.b32.xlu0 %v5313_v48, %s9615_s1  ;;  %v5244_v34 = vpop.permute.xlu0 %5243  ;;  %v1835_v11 = vadd.f32 %v14425_v30, %v1787_v32  ;;  %v5341_v15 = vsel %vm1880_vm0, 0.0, %v14426_v41  ;;  %v5176_v62 = vadd.f32 %v5160_v55, %v3876_v26  ;;  %v14429_v30 = vld [vmem:[#allocation37_spill] sm:$0xff] }
 0x388   :  { %v5357_v16 = vadd.f32 %v11981_v17, %v5341_v15  ;;  %v14433_v15 = vld [vmem:[#allocation141_spill] sm:$0xff] }
 0x38a   :  { %v5194_v61 = vpop.permute.xlu1 %5193  ;;  %v5389_v20 = vadd.f32 %v11999_v0, %v5357_v16  ;;  %v6706_v0 = vrot.slane %v6626_v50, 6 }
 0x38b   :  { %6772 = vrot.lane.b32.xlu0 %v6736_v31, %s9616_s5  ;;  %v5429_v51 = vpop.permute.xlu0 %5428  ;;  %v5215_v19 = vsel %vm3640_vm1, 0.0, %v5194_v61  ;;  %v14428_v31 = vld [vmem:[#allocation99_spill] sm:$0xff] }
 0x38c   :  { %v5470_v45 = vsel %vm1880_vm0, 0.0, %v5429_v51  ;;  %v5223_v7 = vadd.f32 %v5215_v19, %v5175_v54  ;;  %v1896_v54 = vadd.f32 %v14428_v31, %v1835_v11 }
 0x38d   :  { %v5486_v48 = vadd.f32 %v5470_v45, %v5388_v1  ;;  %v6630_v1 = vadd.f32 %v11974_v39, %v11967_v53  ;;  %v6737_v45 = vsel %vm1783_vm2, %v6705_v47, 0.0  ;;  %v6538_v53 = vadd.f32 %v11985_v56, %v11799_v13 }
 0x38e   :  { %v5263_v36 = vadd.f32 %v5242_v10, %v5223_v7  ;;  %v5290_v58 = vpop.permute.xlu1 %5289  ;;  %v1994_v26 = vadd.f32 %v1978_v37, %v1896_v54  ;;  %v6738_v39 = vsel %vm1783_vm2, %v6706_v0, 0.0  ;;  %v6543_v13 = vadd.f32 %v11991_v8, %v11813_v24  ;;  %v14435_v54 = vld [vmem:[#allocation150_spill] sm:$0xff] }
 0x38f   :  { %v5196_v9 = vpop.permute.xlu0 %5195  ;;  %v12085_v28 = vadd.f32 %v6626_v50, %v5486_v48  ;;  %v12120_v16 = vadd.f32 %v11989_v12, %v6538_v53  ;;  %v6707_v56 = vrot.slane %v6630_v1, 6  ;;  %v6829_v47 = vrot.slane %v6630_v1, 2 }
 0x390   :  { %v5216_v35 = vsel %vm3640_vm1, 0.0, %v5196_v9  ;;  %v5314_v42 = vadd.f32 %v5290_v58, %v5263_v36  ;;  %v2058_v11 = vadd.f32 %v14429_v30, %v1994_v26  ;;  %v14431_v36 = vld [vmem:[#allocation54_spill] sm:$0xff]  ;;  %v6828_v9 = vrot.slane %v6626_v50, 2 }
 0x391   :  { %v5224_v10 = vadd.f32 %v5216_v35, %v5176_v62  ;;  %v3398_v58 = vrot.slane %v14431_v36, 6  ;;  %v12133_v12 = vadd.f32 %v11995_v33, %v6543_v13  ;;  %v6551_v24 = vadd.f32 %v12005_v23, %v11835_v5  ;;  %v14437_v23 = vld [vmem:[#allocation136_spill] sm:$0xff] }
 0x392   :  { %7078 = vrot.lane.b32.xlu1 %v5314_v42, %s9615_s1  ;;  %v5431_v61 = vpop.permute.xlu1 %5430  ;;  %v2150_v62 = vadd.f32 %v14433_v15, %v2058_v11  ;;  %v6739_v8 = vsel %vm1783_vm2, %v6707_v56, 0.0  ;;  %v6554_v30 = vadd.f32 %v12013_v27, %v11847_v57  ;;  %v14441_v11 = vld [vmem:[#allocation31_spill] sm:$0xff]  ;;  %v6559_v57 = vadd.f32 %v12023_v4, %v11858_v3 }
 0x393   :  { %v5264_v38 = vadd.f32 %v5244_v34, %v5224_v10  ;;  %v5292_v32 = vpop.permute.xlu0 %5291  ;;  %v5471_v17 = vsel %vm1880_vm0, 0.0, %v5431_v61  ;;  %v3422_v42 = vsel %vm1783_vm2, 0.0, %v3398_v58  ;;  %v6546_v10 = vadd.f32 %v11997_v21, %v11826_v40  ;;  %v14438_v40 = vld [vmem:[#allocation154_spill] sm:$0xff]  ;;  %v14443_v58 = vld [vmem:[#allocation156_spill] sm:$0xff] }
 0x394   :  { %v5487_v51 = vadd.f32 %v5471_v17, %v5389_v20  ;;  %v3434_v37 = vadd.f32 %v3422_v42, %v2150_v62  ;;  %v3641_v20 = vsel %vm3640_vm1, 0.0, %v14435_v54  ;;  %v3642_v21 = vsel %vm3640_vm1, 0.0, %v14438_v40  ;;  %v14444_v62 = vld [vmem:[#allocation29_spill] sm:$0xff]  ;;  %v14449_v54 = vld [vmem:[#allocation82_spill] sm:$0xff] }
 0x395   :  { %v5315_v19 = vadd.f32 %v5292_v32, %v5264_v38  ;;  %v14436_v38 = vld [vmem:[#allocation134_spill] sm:$0xff]  ;;  %v1789_v32 = vsel %vm1783_vm2, 0.0, %v14437_v23  ;;  %v6710_v26 = vrot.slane %v12133_v12, 6  ;;  %v12164_v0 = vadd.f32 %v12003_v46, %v6546_v10 }
 0x396   :  { %6774 = vrot.lane.b32.xlu1 %v6737_v45, %s9616_s5  ;;  %v12100_v7 = vpop.permute.xlu1 %5348  ;;  %v12102_v48 = vadd.f32 %v6630_v1, %v5487_v51  ;;  %v3490_v61 = vadd.f32 %v11679_v44, %v3434_v37  ;;  %v1788_v5 = vsel %vm1783_vm2, 0.0, %v14436_v38  ;;  %v14440_v51 = vld [vmem:[#allocation25_spill] sm:$0xff]  ;;  %v6708_v45 = vrot.slane %v11983_v52, 6 }
 0x397   :  { %7080 = vrot.lane.b32.xlu0 %v5315_v19, %s9615_s1  ;;  %v12105_v34 = vpop.permute.xlu0 %5432  ;;  %v3649_v19 = vadd.f32 %v3641_v20, %v14440_v51  ;;  %v1836_v53 = vadd.f32 %v14441_v11, %v1788_v5  ;;  %v3650_v46 = vadd.f32 %v3642_v21, %v14444_v62  ;;  %v6742_v13 = vsel %vm1783_vm2, %v6710_v26, 0.0  ;;  %v14450_v20 = vld [vmem:[#allocation45_spill] sm:$0xff]  ;;  %v6562_v21 = vpop.f32.mrf.mxu0 }
 0x398   :  { %v3593_v17 = vadd.f32 %v11695_v60, %v3490_v61  ;;  %v3798_v56 = vsel %vm3640_vm1, 0.0, %v11658_v29  ;;  %v6711_v42 = vrot.slane %v12164_v0, 6  ;;  %v12188_v37 = vadd.f32 %v12020_v18, %v6554_v30  ;;  %v14448_v29 = vld [vmem:[#allocation145_spill] sm:$0xff] }
 0x399   :  { %v3721_v15 = vadd.f32 %v14443_v58, %v3649_v19  ;;  %v1979_v10 = vsel %vm1783_vm2, 0.0, %v14448_v29  ;;  %v1980_v61 = vsel %vm1783_vm2, 0.0, %v14450_v20  ;;  %v14451_v5 = vld [vmem:[#allocation161_spill] sm:$0xff]  ;;  %v12207_v40 = vadd.f32 %v12031_v43, %v6559_v57  ;;  %v14453_v43 = vld [vmem:[#allocation135_spill] sm:$0xff]  ;;  %v14461_v29 = vld [vmem:[#allocation142_spill] sm:$0xff] }
 0x39a   :  { %6864 = vrot.lane.b32.xlu1 %v6626_v50, %s9610_s30  ;;  %v12112_v55 = vpop.permute.xlu1 %5380  ;;  %v6709_v50 = vrot.slane %v12120_v16, 6  ;;  %14445 = vst [vmem:[#allocation152_spill] sm:$0xff] %v12188_v37  ;;  %v3643_v23 = vsel %vm3640_vm1, 0.0, %v14451_v5  ;;  %v3644_v26 = vsel %vm3640_vm1, 0.0, %v11550_v63  ;;  %v6743_v51 = vsel %vm1783_vm2, %v6711_v42, 0.0  ;;  %v14455_v58 = vld [vmem:[#allocation175_spill] sm:$0xff] }
 0x39b   :  { %14430 = vst [vmem:[#allocation157_spill] sm:$0xff] %v12112_v55  ;;  %6776 = vrot.lane.b32.xlu0 %v6738_v39, %s9616_s5  ;;  %v12116_v41 = vpop.permute.xlu0 %5350  ;;  %v14442_v39 = vld [vmem:[#allocation33_spill] sm:$0xff]  ;;  %14452 = vst [vmem:[#allocation160_spill] sm:$0xff] %v12207_v40  ;;  %v6563_v63 = vadd.f32 %v6562_v21, %v14455_v58  ;;  %v14463_v20 = vld [vmem:[#allocation50_spill] sm:$0xff] }
 0x39c   :  { %14432 = vst [vmem:[#allocation77_spill] sm:$0xff] %v12116_v41  ;;  %v6741_v44 = vsel %vm1783_vm2, %v6709_v50, 0.0  ;;  %v1837_v36 = vadd.f32 %v14442_v39, %v1789_v32  ;;  %v14446_v50 = vld [vmem:[#allocation42_spill] sm:$0xff]  ;;  %v14459_v42 = vld [vmem:[#allocation125_spill] sm:$0xff] }
 0x39d   :  { %v14454_v39 = vld [vmem:[#allocation94_spill] sm:$0xff]  ;;  %v14565_v41 = vld [vmem:[#allocation61_spill] sm:$0xff] }
 0x39e   :  { %6832 = vrot.lane.b32.xlu1 %v6828_v9, %s9615_s1  ;;  %v12125_v35 = vpop.permute.xlu1 %5434  ;;  %v3797_v9 = vsel %vm3640_vm1, 0.0, %v11630_v25  ;;  %v1898_v18 = vadd.f32 %v14449_v54, %v1837_v36  ;;  %v14462_v54 = vld [vmem:[#allocation144_spill] sm:$0xff]  ;;  %v14466_v21 = vld [vmem:[#allocation78_spill] sm:$0xff] }
 0x39f   :  { %6866 = vrot.lane.b32.xlu0 %v6630_v1, %s9610_s30  ;;  %v12129_v2 = vpop.permute.xlu0 %5382  ;;  %v12158_v1 = vadd.f32 %v12011_v59, %v6551_v24  ;;  %v1897_v24 = vadd.f32 %v14446_v50, %v1836_v53  ;;  %v3813_v38 = vadd.f32 %v3797_v9, %v3721_v15  ;;  %v3651_v53 = vadd.f32 %v3643_v23, %v14453_v43  ;;  %v14456_v15 = vld [vmem:[#allocation40_spill] sm:$0xff]  ;;  %v14460_v50 = vld [vmem:[#allocation130_spill] sm:$0xff] }
 0x3a0   :  { %14434 = vst [vmem:[#allocation158_spill] sm:$0xff] %v12129_v2  ;;  %v1996_v30 = vadd.f32 %v1980_v61, %v1898_v18  ;;  %v3652_v62 = vadd.f32 %v3644_v26, %v14456_v15  ;;  %v1790_v61 = vsel %vm1783_vm2, 0.0, %v14463_v20  ;;  %v14470_v15 = vld [vmem:[#allocation146_spill] sm:$0xff]  ;;  %v14478_v20 = vld [vmem:[#allocation85_spill] sm:$0xff] }
 0x3a1   :  { %14439 = vst [vmem:[#allocation118_spill] sm:$0xff] %v12158_v1  ;;  %v6712_v27 = vrot.slane %v12158_v1, 6  ;;  %v3877_v36 = vadd.f32 %v14454_v39, %v3813_v38  ;;  %v14464_v38 = vld [vmem:[#allocation126_spill] sm:$0xff] }
 0x3a2   :  { %6778 = vrot.lane.b32.xlu1 %v6739_v8, %s9616_s5  ;;  %v12141_v31 = vpop.permute.xlu1 %5438  ;;  %v14447_v8 = vld [vmem:[#allocation119_spill] sm:$0xff]  ;;  %v2060_v18 = vadd.f32 %v14462_v54, %v1996_v30  ;;  %v3724_v5 = vadd.f32 %v14464_v38, %v3652_v62  ;;  %v14477_v54 = vld [vmem:[#allocation26_spill] sm:$0xff] }
 0x3a3   :  { %6834 = vrot.lane.b32.xlu0 %v6829_v47, %s9615_s1  ;;  %v12147_v33 = vpop.permute.xlu0 %5436  ;;  %v6740_v47 = vsel %vm1783_vm2, %v6708_v45, 0.0  ;;  %v3722_v3 = vadd.f32 %v14447_v8, %v3650_v46  ;;  %v1995_v45 = vadd.f32 %v1979_v10, %v1897_v24  ;;  %v14457_v46 = vld [vmem:[#allocation23_spill] sm:$0xff]  ;;  %v3800_v24 = vsel %vm3640_vm1, 0.0, %v14460_v50  ;;  %v14475_v50 = vld [vmem:[#allocation84_spill] sm:$0xff] }
 0x3a4   :  { %v3799_v9 = vsel %vm3640_vm1, 0.0, %v14457_v46  ;;  %v14471_v46 = vld [vmem:[#allocation148_spill] sm:$0xff] }
 0x3a5   :  { %v3814_v32 = vadd.f32 %v3798_v56, %v3722_v3  ;;  %v6714_v56 = vrot.slane %v12207_v40, 6  ;;  %v2059_v10 = vadd.f32 %v14461_v29, %v1995_v45  ;;  %v6830_v45 = vrot.slane %v12207_v40, 2 }
 0x3a6   :  { %6782 = vrot.lane.b32.xlu1 %v6741_v44, %s9616_s5  ;;  %v12169_v60 = vpop.permute.xlu1 %5295  ;;  %v6713_v44 = vrot.slane %v12188_v37, 6 }
 0x3a7   :  { %v12172_v59 = vpop.permute.xlu0 %5245  ;;  %7020 = vrot.lane.b32.xlu0 %v3593_v17, %s9610_s30  ;;  %v6744_v17 = vsel %vm1783_vm2, %v6712_v27, 0.0  ;;  %v14458_v27 = vld [vmem:[#allocation129_spill] sm:$0xff]  ;;  %v6746_v30 = vsel %vm1783_vm2, %v6714_v56, 0.0  ;;  %v2151_v62 = vadd.f32 %v14470_v15, %v2059_v10  ;;  %v14474_v56 = vld [vmem:[#allocation124_spill] sm:$0xff]  ;;  %v14483_v15 = vld [vmem:[#allocation122_spill] sm:$0xff] }
 0x3a8   :  { %v3878_v57 = vadd.f32 %v14458_v27, %v3814_v32  ;;  %v6745_v8 = vsel %vm1783_vm2, %v6713_v44, 0.0  ;;  %v3816_v44 = vadd.f32 %v3800_v24, %v3724_v5  ;;  %v1981_v24 = vsel %vm1783_vm2, 0.0, %v14475_v50  ;;  %v14479_v5 = vld [vmem:[#allocation108_spill] sm:$0xff] }
 0x3a9   :  { %v14486_v50 = vld [vmem:[#allocation32_spill] sm:$0xff] }
 0x3aa   :  { %6784 = vrot.lane.b32.xlu1 %v6742_v13, %s9616_s5  ;;  %v12192_v25 = vpop.permute.xlu1 %5247  ;;  %v6663_v13 = vpop.f32.mrf.mxu1 }
 0x3ab   :  { %v12196_v4 = vpop.permute.xlu0 %5197  ;;  %6780 = vrot.lane.b32.xlu0 %v6740_v47, %s9616_s5  ;;  %v3723_v47 = vadd.f32 %v14459_v42, %v3651_v53  ;;  %v12245_v26 = vadd.f32 %v6663_v13, %v6563_v63  ;;  %v14469_v53 = vld [vmem:[#allocation149_spill] sm:$0xff] }
 0x3ac   :  { %v1838_v39 = vadd.f32 %v14469_v53, %v1790_v61  ;;  %v14472_v63 = vld [vmem:[#allocation49_spill] sm:$0xff] }
 0x3ad   :  { %v3815_v32 = vadd.f32 %v3799_v9, %v3723_v47  ;;  %14467 = vst [vmem:[#allocation24_spill] sm:$0xff] %v12245_v26  ;;  %v2152_v9 = vadd.f32 %v14471_v46, %v2060_v18  ;;  %v1791_v27 = vsel %vm1783_vm2, 0.0, %v14472_v63  ;;  %v6831_v47 = vrot.slane %v12245_v26, 2  ;;  %v14482_v53 = vld [vmem:[#allocation109_spill] sm:$0xff] }
 0x3ae   :  { %6788 = vrot.lane.b32.xlu1 %v6744_v17, %s9616_s5  ;;  %v12215_v19 = vpop.permute.xlu1 %5440  ;;  %v5177_v17 = vadd.f32 %v14466_v21, %v3877_v36  ;;  %v3880_v18 = vadd.f32 %v14477_v54, %v3816_v44  ;;  %v1899_v61 = vadd.f32 %v14478_v20, %v1838_v39  ;;  %v14480_v21 = vld [vmem:[#allocation48_spill] sm:$0xff]  ;;  %v14488_v54 = vld [vmem:[#allocation63_spill] sm:$0xff] }
 0x3af   :  { %v12217_v11 = vpop.permute.xlu0 %5297  ;;  %6786 = vrot.lane.b32.xlu0 %v6743_v51, %s9616_s5  ;;  %v14468_v51 = vld [vmem:[#allocation133_spill] sm:$0xff]  ;;  %v3879_v42 = vadd.f32 %v14474_v56, %v3815_v32  ;;  %v3491_v32 = vadd.f32 %v14479_v5, %v2151_v62  ;;  %v3492_v46 = vadd.f32 %v14479_v5, %v2152_v9  ;;  %v14484_v56 = vld [vmem:[#allocation62_spill] sm:$0xff]  ;;  %v14489_v9 = vld [vmem:[#allocation52_spill] sm:$0xff] }
 0x3b0   :  { %v5178_v43 = vadd.f32 %v14468_v51, %v3878_v57  ;;  %v14473_v57 = vld [vmem:[#allocation106_spill] sm:$0xff]  ;;  %v5180_v62 = vadd.f32 %v14484_v56, %v3880_v18  ;;  %v14490_v18 = vld [vmem:[#allocation56_spill] sm:$0xff] }
 0x3b1   :  { %v5265_v13 = vadd.f32 %v5177_v17, %v14473_v57  ;;  %v1839_v17 = vadd.f32 %v14480_v21, %v1791_v27  ;;  %v5179_v39 = vadd.f32 %v14483_v15, %v3879_v42  ;;  %v3399_v42 = vrot.slane %v14488_v54, 6  ;;  %v14491_v15 = vld [vmem:[#allocation51_spill] sm:$0xff] }
 0x3b2   :  { %6868 = vrot.lane.b32.xlu1 %v12207_v40, %s9610_s30  ;;  %v12234_v3 = vpop.permute.xlu1 %5199  ;;  %v5266_v10 = vadd.f32 %v5178_v43, %v14473_v57 }
 0x3b3   :  { %v12241_v23 = vpop.permute.xlu0 %5442  ;;  %6790 = vrot.lane.b32.xlu0 %v6745_v8, %s9616_s5  ;;  %v14476_v8 = vld [vmem:[#allocation59_spill] sm:$0xff]  ;;  %v5316_v44 = vadd.f32 %v14482_v53, %v5265_v13  ;;  %v5267_v21 = vadd.f32 %v5179_v39, %v14473_v57 }
 0x3b4   :  { %14465 = vst [vmem:[#allocation155_spill] sm:$0xff] %v12241_v23  ;;  %v1983_v29 = vsel %vm1783_vm2, 0.0, %v14476_v8  ;;  %v5317_v63 = vadd.f32 %v14482_v53, %v5266_v10  ;;  %v1984_v8 = vsel %vm1783_vm2, 0.0, %v14486_v50 }
 0x3b5   :  { %v1999_v43 = vadd.f32 %v1983_v29, %v1899_v61  ;;  %v14487_v29 = vld [vmem:[#allocation102_spill] sm:$0xff] }
 0x3b6   :  { %6792 = vrot.lane.b32.xlu1 %v6746_v30, %s9616_s5  ;;  %v12252_v58 = vpop.permute.xlu1 %5249  ;;  %v1900_v13 = vadd.f32 %v14487_v29, %v1839_v17  ;;  %v3595_v17 = vadd.f32 %v14473_v57, %v3492_v46  ;;  %v14496_v46 = vld [vmem:[#allocation53_spill] sm:$0xff] }
 0x3b7   :  { %v12256_v36 = vpop.permute.xlu0 %5201  ;;  %6836 = vrot.lane.b32.xlu0 %v6830_v45, %s9615_s1  ;;  %v14481_v45 = vld [vmem:[#allocation47_spill] sm:$0xff]  ;;  %v2063_v61 = vadd.f32 %v14490_v18, %v1999_v43 }
 0x3b8   :  { %v2061_v30 = vadd.f32 %v14481_v45, %v1981_v24  ;;  %v3594_v45 = vadd.f32 %v14473_v57, %v3491_v32  ;;  %v2000_v56 = vadd.f32 %v1984_v8, %v1900_v13  ;;  %v14494_v32 = vld [vmem:[#allocation60_spill] sm:$0xff]  ;;  %v5318_v8 = vadd.f32 %v14482_v53, %v5267_v21 }
 0x3b9   :  { %v2155_v39 = vadd.f32 %v14494_v32, %v2063_v61  ;;  %v14499_v61 = vld [vmem:[#allocation202_spill] sm:$0xff] }
 0x3ba   :  { %6838 = vrot.lane.b32.xlu1 %v6831_v47, %s9615_s1  ;;  %v12272_v38 = vpop.permute.xlu1 %5299  ;;  %v14485_v47 = vld [vmem:[#allocation28_spill] sm:$0xff]  ;;  %v2153_v10 = vadd.f32 %v14489_v9, %v2061_v30  ;;  %v3423_v30 = vsel %vm1783_vm2, 0.0, %v3399_v42  ;;  %v14497_v9 = vld [vmem:[#allocation57_spill] sm:$0xff]  ;;  %v5466_v21 = vsel %vm1880_vm0, 0.0, %v14499_v61 }
 0x3bb   :  { %v12276_v51 = vpop.permute.xlu0 %5251  ;;  %6870 = vrot.lane.b32.xlu0 %v12245_v26, %s9610_s30  ;;  %v1982_v27 = vsel %vm1783_vm2, 0.0, %v14485_v47  ;;  %v5268_v47 = vadd.f32 %v5180_v62, %v14473_v57  ;;  %v14495_v62 = vld [vmem:[#allocation139_spill] sm:$0xff]  ;;  %v2064_v18 = vadd.f32 %v14497_v9, %v2000_v56 }
 0x3bc   :  { %v3400_v13 = vrot.slane %v14495_v62, 6  ;;  %v14501_v56 = vld [vmem:[#allocation107_spill] sm:$0xff] }
 0x3be   :  { %7082 = vrot.lane.b32.xlu1 %v5316_v44, %s9615_s1  ;;  %v12291_v24 = vpop.permute.xlu1 %5444  ;;  %v2062_v44 = vadd.f32 %v14491_v15, %v1982_v27  ;;  %v3437_v27 = vadd.f32 %v3423_v30, %v2153_v10  ;;  %v14498_v15 = vld [vmem:[#allocation30_spill] sm:$0xff] }
 0x3bf   :  { %v12295_v20 = vpop.permute.xlu0 %5301  ;;  %7084 = vrot.lane.b32.xlu0 %v5317_v63, %s9615_s1  ;;  %v14492_v63 = vld [vmem:[#allocation41_spill] sm:$0xff] }
 0x3c0   :  { %v3401_v29 = vrot.slane %v14492_v63, 6  ;;  %v2154_v54 = vadd.f32 %v14496_v46, %v2062_v44  ;;  %v3493_v63 = vadd.f32 %v14498_v15, %v3437_v27  ;;  %v14500_v44 = vld [vmem:[#allocation143_spill] sm:$0xff]  ;;  %v14503_v15 = vld [vmem:[#allocation166_spill] sm:$0xff] }
 0x3c1   :  { %v3402_v30 = vrot.slane %v14500_v44, 6  ;;  %v14505_v44 = vld [vmem:[#allocation163_spill] sm:$0xff] }
 0x3c2   :  { %7022 = vrot.lane.b32.xlu1 %v3594_v45, %s9610_s30  ;;  %v12306_v50 = vpop.permute.xlu1 %5203  ;;  %v5319_v45 = vadd.f32 %v14482_v53, %v5268_v47  ;;  %v3425_v10 = vsel %vm1783_vm2, 0.0, %v3401_v29  ;;  %v3596_v32 = vadd.f32 %v14501_v56, %v3493_v63  ;;  %v3424_v47 = vsel %vm1783_vm2, 0.0, %v3400_v13  ;;  %v14504_v29 = vld [vmem:[#allocation190_spill] sm:$0xff]  ;;  %v14508_v56 = vld [vmem:[#allocation164_spill] sm:$0xff] }
 0x3c3   :  { %v12310_v43 = vpop.permute.xlu0 %5446  ;;  %7024 = vrot.lane.b32.xlu0 %v3595_v17, %s9610_s30  ;;  %v6715_v17 = vrot.slane %v12245_v26, 6  ;;  %v3439_v27 = vadd.f32 %v3425_v10, %v2155_v39  ;;  %v3438_v9 = vadd.f32 %v3424_v47, %v2154_v54  ;;  %v6670_v37 = vadd.f32 %v14504_v29, %v5466_v21  ;;  %v14506_v13 = vld [vmem:[#allocation170_spill] sm:$0xff]  ;;  %v14507_v10 = vld [vmem:[#allocation153_spill] sm:$0xff] }
 0x3c4   :  { %14493 = vst [vmem:[#allocation22_spill] sm:$0xff] %v12310_v43  ;;  %v3426_v63 = vsel %vm1783_vm2, 0.0, %v3402_v30  ;;  %v5467_v54 = vsel %vm1880_vm0, 0.0, %v14507_v10  ;;  %v14514_v10 = vld [vmem:[#allocation88_spill] sm:$0xff]  ;;  %v14558_v43 = vld [vmem:[#allocation165_spill] sm:$0xff] }
 0x3c5   :  { %v3495_v26 = vadd.f32 %v14503_v15, %v3439_v27  ;;  %v6747_v61 = vsel %vm1783_vm2, %v6715_v17, 0.0  ;;  %v3494_v40 = vadd.f32 %v14505_v44, %v3438_v9  ;;  %v14509_v17 = vld [vmem:[#allocation172_spill] sm:$0xff]  ;;  %v14511_v15 = vld [vmem:[#allocation178_spill] sm:$0xff]  ;;  %v14512_v44 = vld [vmem:[#allocation83_spill] sm:$0xff] }
 0x3c6   :  { %7086 = vrot.lane.b32.xlu1 %v5318_v8, %s9615_s1  ;;  %v12321_v42 = vpop.permute.xlu1 %6764  ;;  %v14502_v8 = vld [vmem:[#allocation89_spill] sm:$0xff] }
 0x3c7   :  { %7088 = vrot.lane.b32.xlu0 %v5319_v45, %s9615_s1  ;;  %v12331_v62 = vpop.permute.xlu0 %6766  ;;  %v2156_v46 = vadd.f32 %v14502_v8, %v2064_v18  ;;  %v3598_v39 = vadd.f32 %v14506_v13, %v3495_v26  ;;  %v3597_v47 = vadd.f32 %v14508_v56, %v3494_v40  ;;  %v14510_v8 = vld [vmem:[#allocation191_spill] sm:$0xff]  ;;  %v6947_v13 = vsel %vm6924_vm3, %v14512_v44, 0.0  ;;  %v14515_v56 = vld [vmem:[#allocation104_spill] sm:$0xff] }
 0x3c8   :  { %v6671_v9 = vadd.f32 %v14510_v8, %v5467_v54  ;;  %v9394_v40 = vld [vmem:[%s13688_s6 + $0xa8] ss:$12 sps:$4 sm:$0xff]   ;;  %v6949_v54 = vsel %vm6924_vm3, %v14514_v10, 0.0 }
 0x3c9   :  { %v3440_v21 = vadd.f32 %v3426_v63, %v2156_v46  ;;  %v9396_v46 = vld [vmem:[%s13688_s6 + $0xac] ss:$12 sps:$4 sm:$0xff]  }
 0x3ca   :  { %7026 = vrot.lane.b32.xlu1 %v3596_v32, %s9610_s30  ;;  %v6769_v45 = vpop.permute.xlu1 %6768  ;;  %7467 = vmatprep.subr.bf16.mxu0 %v9396_v46  ;;  %v14524_v44 = vld [vmem:[#allocation43_spill] sm:$0xff] }
 0x3cb   :  { %6794 = vrot.lane.b32.xlu0 %v6747_v61, %s9616_s5  ;;  %v6814_v18 = vadd.f32 %v6769_v45, %v6670_v37  ;;  %v6771_v27 = vpop.permute.xlu0 %6770  ;;  %v3496_v32 = vadd.f32 %v14509_v17, %v3440_v21  ;;  %v9393_v37 = vld [vmem:[%s13688_s6 + $0xb0] ss:$12 sps:$4 sm:$0xff]   ;;  %v9397_v61 = vld [vmem:[%s13688_s6 + $0x98] ss:$12 sps:$4 sm:$0xff]   ;;  %7468 = vmatpush1.bf16.msra.mxu0 %v9394_v40 }
 0x3cc   :  { %v6815_v29 = vadd.f32 %v6771_v27, %v6671_v9  ;;  %9333 = vmatprep.subr.bf16.mxu1 %v9393_v37  ;;  %v14516_v27 = vld [vmem:[#allocation92_spill] sm:$0xff] }
 0x3cd   :  { %v6878_v26 = vadd.f32 %v6814_v18, %v14482_v53  ;;  %v3599_v30 = vadd.f32 %v14511_v15, %v3496_v32  ;;  %9334 = vmatpush3.bf16.msra.mxu1 %v9393_v37  ;;  %v6926_v17 = vsel %vm6924_vm3, %v14516_v27, 0.0  ;;  %v14517_v32 = vld [vmem:[#allocation79_spill] sm:$0xff]  ;;  %v14520_v37 = vld [vmem:[#allocation114_spill] sm:$0xff]  ;;  %v14525_v27 = vld [vmem:[#allocation100_spill] sm:$0xff] }
 0x3ce   :  { %7030 = vrot.lane.b32.xlu1 %v3598_v39, %s9610_s30  ;;  %v6879_v45 = vadd.f32 %v6815_v29, %v14482_v53  ;;  %9335 = vmatprep.subr.bf16.mxu1 %v9397_v61  ;;  %v14513_v39 = vld [vmem:[#allocation46_spill] sm:$0xff]  ;;  %v6953_v8 = vsel %vm6924_vm3, %v14517_v32, 0.0  ;;  %v6955_v40 = vsel %vm6924_vm3, %v14520_v37, 0.0 }
 0x3cf   :  { %7028 = vrot.lane.b32.xlu0 %v3597_v47, %s9610_s30  ;;  %v6946_v63 = vsel %vm6924_vm3, %v14513_v39, 0.0  ;;  %v6951_v47 = vsel %vm6924_vm3, %v14515_v56, 0.0  ;;  %v6959_v56 = vsel %vm6924_vm3, %v14524_v44, 0.0 }
 0x3d0   :  { %v6948_v18 = vadd.f32 %v6947_v13, %v6946_v63  ;;  %v14522_v63 = vld [vmem:[#allocation81_spill] sm:$0xff] }
 0x3d1   :  { %9336 = vmatpush3.bf16.msra.mxu1 %v9397_v61 }
 0x3d2   :  { %7142 = vrot.lane.b32.xlu1 %v6878_v26, %s9616_s5  ;;  %v6950_v21 = vadd.f32 %v6949_v54, %v6948_v18  ;;  %v14518_v26 = vld [vmem:[#allocation91_spill] sm:$0xff]  ;;  %v6957_v54 = vsel %vm6924_vm3, %v14522_v63, 0.0  ;;  %v14527_v63 = vld [vmem:[#allocation98_spill] sm:$0xff] }
 0x3d3   :  { %7032 = vrot.lane.b32.xlu0 %v3599_v30, %s9610_s30  ;;  %v6925_v15 = vsel %vm6924_vm3, %v14518_v26, 0.0  ;;  %v14519_v30 = vld [vmem:[#allocation93_spill] sm:$0xff] }
 0x3d4   :  { %v6952_v9 = vadd.f32 %v6951_v47, %v6950_v21  ;;  %v6928_v29 = vsel %vm6924_vm3, %v14519_v30, 0.0  ;;  %v6927_v46 = vadd.f32 %v6926_v17, %v6925_v15  ;;  %v14523_v47 = vld [vmem:[#allocation80_spill] sm:$0xff]  ;;  %v6934_v17 = vsel %vm6924_vm3, %v14525_v27, 0.0  ;;  %v14526_v15 = vld [vmem:[#allocation97_spill] sm:$0xff] }
 0x3d5   :  { %v6932_v21 = vsel %vm6924_vm3, %v14523_v47, 0.0  ;;  %v6936_v37 = vsel %vm6924_vm3, %v14526_v15, 0.0  ;;  %v14528_v47 = vld [vmem:[#allocation127_spill] sm:$0xff] }
 0x3d6   :  { %v6954_v61 = vadd.f32 %v6953_v8, %v6952_v9  ;;  %v6929_v18 = vadd.f32 %v6928_v29, %v6927_v46  ;;  %v6938_v29 = vsel %vm6924_vm3, %v14527_v63, 0.0  ;;  %v1792_v44 = vsel %vm1783_vm2, 0.0, %v14528_v47  ;;  %v14533_v63 = vld [vmem:[#allocation67_spill] sm:$0xff] }
 0x3d7   :  { %7144 = vrot.lane.b32.xlu0 %v6879_v45, %s9616_s5  ;;  %v14521_v45 = vld [vmem:[#allocation96_spill] sm:$0xff] }
 0x3d8   :  { %v6930_v13 = vsel %vm6924_vm3, %v14521_v45, 0.0  ;;  %v6956_v32 = vadd.f32 %v6955_v40, %v6954_v61  ;;  %v14547_v45 = vld [vmem:[#allocation159_spill] sm:$0xff] }
 0x3d9   :  { %v6931_v10 = vadd.f32 %v6930_v13, %v6929_v18  ;;  %v14529_v13 = vld [vmem:[#allocation151_spill] sm:$0xff] }
 0x3da   :  { %v6958_v39 = vadd.f32 %v6957_v54, %v6956_v32  ;;  %v5468_v32 = vsel %vm1880_vm0, 0.0, %v14529_v13 }
 0x3db   :  { %v6933_v8 = vadd.f32 %v6932_v21, %v6931_v10  ;;  %v6672_v47 = vadd.f32 %v12045_v22, %v5468_v32  ;;  %v14531_v21 = vld [vmem:[#allocation55_spill] sm:$0xff]  ;;  %v1985_v22 = vsel %vm1783_vm2, 0.0, %v14533_v63 }
 0x3dc   :  { %v6960_v9 = vadd.f32 %v6959_v56, %v6958_v39  ;;  %v9398_v39 = vld [vmem:[%s13688_s6 + $0x90] ss:$12 sps:$4 sm:$0xff]   ;;  %v9400_v56 = vld [vmem:[%s13688_s6 + $0x94] ss:$12 sps:$4 sm:$0xff]  }
 0x3dd   :  { %v6935_v30 = vadd.f32 %v6934_v17, %v6933_v8  ;;  %7469 = vmatprep.subr.bf16.mxu0 %v9400_v56  ;;  %v1840_v17 = vadd.f32 %v14531_v21, %v1792_v44  ;;  %v14536_v21 = vld [vmem:[#allocation86_spill] sm:$0xff] }
 0x3de   :  { %v6961_v46 = vrot.slane %v6960_v9, 4  ;;  %7470 = vmatpush1.bf16.msra.mxu0 %v9398_v39  ;;  %v14535_v39 = vld [vmem:[#allocation110_spill] sm:$0xff] }
 0x3df   :  { %v6937_v40 = vadd.f32 %v6936_v37, %v6935_v30  ;;  %v9401_v30 = vld [vmem:[%s13688_s6 + $0x80] ss:$12 sps:$4 sm:$0xff]   ;;  %v9404_v37 = vld [vmem:[%s13688_s6 + $0x7c] ss:$12 sps:$4 sm:$0xff]   ;;  %v1901_v56 = vadd.f32 %v14535_v39, %v1840_v17  ;;  %v9408_v17 = vld [vmem:[%s13688_s6 + $0x64] ss:$12 sps:$4 sm:$0xff]  }
 0x3e0   :  { %v6962_v10 = vadd.f32 %v6961_v46, %v6960_v9  ;;  %9337 = vmatprep.subr.bf16.mxu1 %v9401_v30  ;;  %v9402_v9 = vld [vmem:[%s13688_s6 + $0x78] ss:$12 sps:$4 sm:$0xff]   ;;  %7471 = vmatprep.subr.bf16.mxu0 %v9404_v37 }
 0x3e1   :  { %v6939_v61 = vadd.f32 %v6938_v29, %v6937_v40  ;;  %9338 = vmatpush3.bf16.msra.mxu1 %v9401_v30  ;;  %v14532_v46 = vld [vmem:[#allocation87_spill] sm:$0xff]  ;;  %v14537_v37 = vld [vmem:[#allocation132_spill] sm:$0xff] }
 0x3e2   :  { %v6963_v29 = vrot.slane %v6962_v10, 2  ;;  %v1793_v13 = vsel %vm1783_vm2, 0.0, %v14532_v46  ;;  %7472 = vmatpush1.bf16.msra.mxu0 %v9402_v9  ;;  %v5469_v46 = vsel %vm1880_vm0, 0.0, %v12053_v14  ;;  %v14542_v39 = vld [vmem:[#allocation36_spill] sm:$0xff] }
 0x3e3   :  { %v6940_v18 = vrot.slane %v6939_v61, 4  ;;  %v9406_v14 = vld [vmem:[%s13688_s6 + $0x60] ss:$12 sps:$4 sm:$0xff]   ;;  %7473 = vmatprep.subr.bf16.mxu0 %v9408_v17 }
 0x3e4   :  { %v6964_v30 = vadd.f32 %v6963_v29, %v6962_v10  ;;  %v9405_v10 = vld [vmem:[%s13688_s6 + $0x68] ss:$12 sps:$4 sm:$0xff]  }
 0x3e5   :  { %v6941_v15 = vadd.f32 %v6940_v18, %v6939_v61  ;;  %v14538_v18 = vld [vmem:[#allocation66_spill] sm:$0xff]  ;;  %v14540_v29 = vld [vmem:[#allocation131_spill] sm:$0xff]  ;;  %9339 = vmatprep.subr.bf16.mxu1 %v9405_v10 }
 0x3e6   :  { %v1795_v63 = vsel %vm1783_vm2, 0.0, %v14538_v18  ;;  %v6965_v9 = vrot.slane %v6964_v30, 1  ;;  %v14544_v18 = vld [vmem:[#allocation65_spill] sm:$0xff]  ;;  %9340 = vmatpush3.bf16.msra.mxu1 %v9405_v10  ;;  %7474 = vmatpush1.bf16.msra.mxu0 %v9406_v14  ;;  %v14550_v10 = vld [vmem:[#allocation20_spill] sm:$0xff] }
 0x3e7   :  { %v6942_v61 = vrot.slane %v6941_v15, 2  ;;  %v5133_v17 = vrot.slane %v14550_v10, 4  ;;  %v9409_v14 = vld [vmem:[%s13688_s6 + $0x48] ss:$12 sps:$4 sm:$0xff]  }
 0x3e9   :  { %v12456_v26 = vadd.f32 %v6942_v61, %v6941_v15  ;;  %v12468_v15 = vadd.f32 %v6965_v9, %v6964_v30  ;;  %v14549_v61 = vld [vmem:[#allocation120_spill] sm:$0xff] }
 0x3ea   :  { %v14554_v9 = vld [vmem:[#allocation196_spill] sm:$0xff] }
 0x3f4   :  { %v12426_v32 = vpop.permute.xlu1 %7074 }
 0x3f5   :  { %14534 = vst [vmem:[#allocation99_spill] sm:$0xff] %v12426_v32  ;;  %v6673_v32 = vadd.f32 %v12077_v6, %v5469_v46  ;;  %v9411_v6 = vld [vmem:[%s13688_s6 + $0x4c] ss:$12 sps:$4 sm:$0xff]  }
 0x3f6   :  { %7475 = vmatprep.subr.bf16.mxu0 %v9411_v6 }
 0x3f7   :  { %7476 = vmatpush1.bf16.msra.mxu0 %v9409_v14 }
 0x3f9   :  { %v12403_v54 = vpop.permute.xlu0 %7076 }
 0x3fa   :  { %14530 = vst [vmem:[#allocation140_spill] sm:$0xff] %v12403_v54  ;;  %v1841_v54 = vadd.f32 %v14536_v21, %v1793_v13  ;;  %v14543_v21 = vld [vmem:[#allocation34_spill] sm:$0xff] }
 0x3fd   :  { %v6773_v8 = vpop.permute.xlu0 %6772 }
 0x3fe   :  { %v6816_v40 = vadd.f32 %v6773_v8, %v6672_v47  ;;  %v1794_v47 = vsel %vm1783_vm2, 0.0, %v14537_v37  ;;  %v2001_v8 = vadd.f32 %v1985_v22, %v1901_v56  ;;  %v14541_v22 = vld [vmem:[#allocation112_spill] sm:$0xff]  ;;  %v1986_v56 = vsel %vm1783_vm2, 0.0, %v14542_v39 }
 0x3ff   :  { %v1842_v13 = vadd.f32 %v14540_v29, %v1794_v47  ;;  %v1843_v37 = vadd.f32 %v14543_v21, %v1795_v63  ;;  %v14545_v47 = vld [vmem:[#allocation44_spill] sm:$0xff]  ;;  %v3801_v63 = vsel %vm3640_vm1, 0.0, %v14547_v45 }
 0x400   :  { %v6880_v44 = vadd.f32 %v6816_v40, %v14482_v53  ;;  %v14546_v39 = vld [vmem:[#allocation72_spill] sm:$0xff] }
 0x401   :  { %v1987_v27 = vsel %vm1783_vm2, 0.0, %v14546_v39  ;;  %v1903_v46 = vadd.f32 %v14549_v61, %v1842_v13  ;;  %v9412_v45 = vld [vmem:[%s13688_s6 + $0x50] ss:$12 sps:$4 sm:$0xff]   ;;  %v5464_v13 = vsel %vm1880_vm0, 0.0, %v14554_v9 }
 0x402   :  { %7146 = vrot.lane.b32.xlu1 %v6880_v44, %s9616_s5  ;;  %v1902_v44 = vadd.f32 %v14541_v22, %v1841_v54  ;;  %v14555_v61 = vld [vmem:[#allocation35_spill] sm:$0xff]  ;;  %9341 = vmatprep.subr.bf16.mxu1 %v9412_v45 }
 0x403   :  { %v3645_v10 = vsel %vm3640_vm1, 0.0, %v14555_v61  ;;  %v12498_v9 = vadd.f32 %v1987_v27, %v1903_v46  ;;  %v14561_v61 = vld [vmem:[#allocation121_spill] sm:$0xff]  ;;  %9342 = vmatpush3.bf16.msra.mxu1 %v9412_v45 }
 0x404   :  { %v12438_v40 = vpop.permute.xlu1 %7078  ;;  %v2002_v22 = vadd.f32 %v1986_v56, %v1902_v44  ;;  %v14551_v44 = vld [vmem:[#allocation116_spill] sm:$0xff]  ;;  %v14562_v27 = vld [vmem:[#allocation185_spill] sm:$0xff] }
 0x405   :  { %14539 = vst [vmem:[#allocation37_spill] sm:$0xff] %v12438_v40  ;;  %v2065_v40 = vadd.f32 %v14544_v18, %v2001_v8  ;;  %v5134_v56 = vrot.slane %v14551_v44, 4  ;;  %v14556_v44 = vld [vmem:[#allocation117_spill] sm:$0xff]  ;;  %v6668_v46 = vadd.f32 %v14562_v27, %v5464_v13 }
 0x406   :  { %v3881_v29 = vadd.f32 %v14556_v44, %v3801_v63  ;;  %v5135_v63 = vrot.slane %v14561_v61, 4  ;;  %v9416_v45 = vld [vmem:[%s13688_s6 + $0x38] ss:$12 sps:$4 sm:$0xff]   ;;  %v14564_v61 = vld [vmem:[#allocation58_spill] sm:$0xff] }
 0x407   :  { %v14566_v13 = vld [vmem:[#allocation201_spill] sm:$0xff]  ;;  %v6812_v27 = vadd.f32 %v12321_v42, %v6668_v46  ;;  %9343 = vmatprep.subr.bf16.mxu1 %v9416_v45  ;;  %v14570_v46 = vld [vmem:[#allocation162_spill] sm:$0xff] }
 0x408   :  { %v6775_v54 = vpop.permute.xlu1 %6774  ;;  %9344 = vmatpush3.bf16.msra.mxu1 %v9416_v45  ;;  %v9419_v42 = vld [vmem:[%s13688_s6 + $0x1c] ss:$12 sps:$4 sm:$0xff]  }
 0x409   :  { %v12463_v21 = vpop.permute.xlu0 %7080  ;;  %v6817_v8 = vadd.f32 %v6775_v54, %v6673_v32  ;;  %v14552_v32 = vld [vmem:[#allocation68_spill] sm:$0xff]  ;;  %v14553_v54 = vld [vmem:[#allocation123_spill] sm:$0xff]  ;;  %v14571_v45 = vld [vmem:[#allocation186_spill] sm:$0xff] }
 0x40a   :  { %14548 = vst [vmem:[#allocation54_spill] sm:$0xff] %v12463_v21  ;;  %v12480_v18 = vadd.f32 %v14552_v32, %v2065_v40  ;;  %v12483_v30 = vadd.f32 %v14553_v54, %v1843_v37  ;;  %v14557_v21 = vld [vmem:[#allocation103_spill] sm:$0xff]  ;;  %v3803_v40 = vsel %vm3640_vm1, 0.0, %v14558_v43  ;;  %v14559_v37 = vld [vmem:[#allocation138_spill] sm:$0xff] }
 0x40b   :  { %v6881_v39 = vadd.f32 %v6817_v8, %v14482_v53  ;;  %v3802_v2 = vsel %vm3640_vm1, 0.0, %v14557_v21  ;;  %v12496_v54 = vadd.f32 %v14559_v37, %v2002_v22  ;;  %v14560_v8 = vld [vmem:[#allocation74_spill] sm:$0xff]  ;;  %v9415_v43 = vld [vmem:[%s13688_s6 + $0x34] ss:$12 sps:$4 sm:$0xff]   ;;  %v5165_v21 = vsel %vm3640_vm1, %v5133_v17, 0.0 }
 0x40c   :  { %v6865_v32 = vpop.permute.xlu1 %6864  ;;  %v12502_v6 = vsel %vm1783_vm2, 0.0, %v14560_v8  ;;  %v5166_v22 = vsel %vm3640_vm1, %v5134_v56, 0.0  ;;  %v9413_v37 = vld [vmem:[%s13688_s6 + $0x30] ss:$12 sps:$4 sm:$0xff]   ;;  %v3882_v23 = vadd.f32 %v14564_v61, %v3802_v2  ;;  %v3883_v17 = vadd.f32 %v14565_v41, %v3803_v40  ;;  %7477 = vmatprep.subr.bf16.mxu0 %v9415_v43  ;;  %v14567_v2 = vld [vmem:[#allocation169_spill] sm:$0xff] }
 0x40d   :  { %v6777_v44 = vpop.permute.xlu0 %6776  ;;  %7148 = vrot.lane.b32.xlu0 %v6881_v39, %s9616_s5  ;;  %v14563_v39 = vld [vmem:[#allocation101_spill] sm:$0xff]  ;;  %v5217_v56 = vsel %vm3640_vm1, 0.0, %v12196_v4  ;;  %7478 = vmatpush1.bf16.msra.mxu0 %v9413_v37  ;;  %v3804_v41 = vsel %vm3640_vm1, 0.0, %v14567_v2 }
 0x40e   :  { %v6818_v14 = vadd.f32 %v6777_v44, %v12085_v28  ;;  %v3653_v8 = vadd.f32 %v3645_v10, %v14563_v39  ;;  %v5465_v28 = vsel %vm1880_vm0, 0.0, %v14566_v13  ;;  %v5181_v44 = vadd.f32 %v5165_v21, %v3881_v29  ;;  %v14568_v40 = vld [vmem:[#allocation197_spill] sm:$0xff]  ;;  %v14569_v29 = vld [vmem:[#allocation128_spill] sm:$0xff]  ;;  %7479 = vmatprep.subr.bf16.mxu0 %v9419_v42 }
 0x40f   :  { %v5167_v10 = vsel %vm3640_vm1, %v5135_v63, 0.0  ;;  %v6896_v39 = vrot.slane %v14568_v40, 6  ;;  %v5136_v21 = vrot.slane %v14569_v29, 4  ;;  %v9417_v63 = vld [vmem:[%s13688_s6 + $0x18] ss:$12 sps:$4 sm:$0xff]   ;;  %v6669_v13 = vadd.f32 %v14571_v45, %v5465_v28 }
 0x410   :  { %v6882_v1 = vadd.f32 %v6818_v14, %v14482_v53  ;;  %v6833_v55 = vpop.permute.xlu1 %6832  ;;  %v3725_v14 = vadd.f32 %v14570_v46, %v3653_v8  ;;  %v5229_v37 = vadd.f32 %v5217_v56, %v5181_v44  ;;  %v5182_v2 = vadd.f32 %v5166_v22, %v3882_v23  ;;  %v14572_v8 = vld [vmem:[#allocation137_spill] sm:$0xff]  ;;  %v14573_v44 = vld [vmem:[#allocation176_spill] sm:$0xff]  ;;  %v14574_v23 = vld [vmem:[#allocation199_spill] sm:$0xff] }
 0x411   :  { %v6867_v4 = vpop.permute.xlu0 %6866  ;;  %v6844_v43 = vsel %vm1880_vm0, 0.0, %v6833_v55  ;;  %v9420_v55 = vld [vmem:[%s13688_s6 + $0x20] ss:$12 sps:$4 sm:$0xff]   ;;  %v5183_v40 = vadd.f32 %v5167_v10, %v3883_v17  ;;  %v5219_v29 = vsel %vm3640_vm1, 0.0, %v12256_v36  ;;  %v3884_v56 = vadd.f32 %v14572_v8, %v3804_v41  ;;  %7480 = vmatpush1.bf16.msra.mxu0 %v9417_v63  ;;  %v9423_v41 = vld [vmem:[%s13688_s6 + $0x4] ss:$12 sps:$4 sm:$0xff]  }
 0x412   :  { %v6848_v61 = vadd.f32 %v6844_v43, %v6812_v27  ;;  %7150 = vrot.lane.b32.xlu1 %v6882_v1, %s9616_s5  ;;  %v3805_v1 = vsel %vm3640_vm1, 0.0, %v14573_v44  ;;  %v5218_v27 = vsel %vm3640_vm1, 0.0, %v12234_v3  ;;  %9345 = vmatprep.subr.bf16.mxu1 %v9420_v55  ;;  %v6904_v28 = vsel %vm1783_vm2, %v6896_v39, 0.0  ;;  %v9421_v39 = vld [vmem:[%s13688_s6] ss:$12 sps:$4 sm:$0xff]  }
 0x413   :  { %v6897_v22 = vrot.slane %v14574_v23, 6  ;;  %v6813_v17 = vadd.f32 %v12331_v62, %v6669_v13  ;;  %9346 = vmatpush3.bf16.msra.mxu1 %v9420_v55  ;;  %v5269_v3 = vadd.f32 %v12172_v59, %v5229_v37  ;;  %v9424_v62 = vld [vmem:[%s13688_s6 + $0x8] ss:$12 sps:$4 sm:$0xff]   ;;  %v5230_v63 = vadd.f32 %v5218_v27, %v5182_v2  ;;  %7481 = vmatprep.subr.bf16.mxu0 %v9423_v41  ;;  %s9620_s6 = smov [#allocation14]  }
 0x414   :  { %v6876_v43 = vadd.f32 %v6865_v32, %v6848_v61  ;;  %v6779_v46 = vpop.permute.xlu1 %6778  ;;  %v5231_v32 = vadd.f32 %v5219_v29, %v5183_v40  ;;  %v14575_v59 = vld [vmem:[#allocation21_spill] sm:$0xff]  ;;  %v3821_v13 = vadd.f32 %v3805_v1, %v3725_v14  ;;  %v5220_v40 = vsel %vm3640_vm1, 0.0, %v12306_v50  ;;  %9347 = vmatprep.subr.bf16.mxu1 %v9424_v62  ;;  %v14579_v41 = vld [vmem:[#allocation174_spill] sm:$0xff] }
 0x415   :  { %v6835_v36 = vpop.permute.xlu0 %6834  ;;  %v6819_v10 = vadd.f32 %v6779_v46, %v12102_v48  ;;  %v5168_v48 = vsel %vm3640_vm1, %v5136_v21, 0.0  ;;  %v3646_v37 = vsel %vm3640_vm1, 0.0, %v14575_v59  ;;  %7482 = vmatpush1.bf16.msra.mxu0 %v9421_v39  ;;  %v6944_v8 = vrot.slane %v12456_v26, 1  ;;  %v14576_v21 = vld [vmem:[#allocation69_spill] sm:$0xff]  ;;  %v14586_v59 = vld [vmem:[#allocation115_spill] sm:$0xff] }
 0x416   :  { %v6908_v42 = vadd.f32 %v6904_v28, %v6876_v43  ;;  %v6845_v61 = vsel %vm1880_vm0, 0.0, %v6835_v36  ;;  %v2067_v2 = vadd.f32 %v14576_v21, %v12498_v9  ;;  %v5184_v44 = vadd.f32 %v5168_v48, %v3884_v56  ;;  %v14577_v9 = vld [vmem:[#allocation105_spill] sm:$0xff]  ;;  %v14578_v36 = vld [vmem:[#allocation147_spill] sm:$0xff] }
 0x417   :  { %v6849_v55 = vadd.f32 %v6845_v61, %v6813_v17  ;;  %v6883_v45 = vadd.f32 %v6819_v10, %v14482_v53  ;;  %v2004_v50 = vadd.f32 %v12502_v6, %v12483_v30  ;;  %v6905_v14 = vsel %vm1783_vm2, %v6897_v22, 0.0  ;;  %9348 = vmatpush3.bf16.msra.mxu1 %v9424_v62  ;;  %v14580_v6 = vld [vmem:[#allocation181_spill] sm:$0xff]  ;;  %v14583_v61 = vld [vmem:[#allocation95_spill] sm:$0xff] }
 0x418   :  { %7138 = vrot.lane.b32.xlu1 %v6908_v42, %s9616_s5  ;;  %v12575_v29 = vpop.permute.xlu1 %6782  ;;  %v5320_v1 = vadd.f32 %v12169_v60, %v5269_v3  ;;  %v5271_v46 = vadd.f32 %v12252_v58, %v5231_v32  ;;  %v9617_v28 = vmov 0   ;;  %v5270_v56 = vadd.f32 %v12192_v25, %v5230_v63  ;;  %v14582_v25 = vld [vmem:[#allocation70_spill] sm:$0xff]  ;;  %v14584_v63 = vld [vmem:[#allocation75_spill] sm:$0xff] }
 0x419   :  { %v6877_v27 = vadd.f32 %v6867_v4, %v6849_v55  ;;  %v12580_v43 = vpop.permute.xlu0 %7020  ;;  %7152 = vrot.lane.b32.xlu0 %v6883_v45, %s9616_s5  ;;  %7499 = vmatprep.mubr.bf16.mxu0 %v9617_v28  ;;  %v3654_v4 = vadd.f32 %v3646_v37, %v14577_v9  ;;  %v5232_v23 = vadd.f32 %v5220_v40, %v5184_v44  ;;  %v3404_v10 = vrot.slane %v14578_v36, 6  ;;  %v14585_v55 = vld [vmem:[#allocation71_spill] sm:$0xff] }
 0x41a   :  { %v3885_v30 = vadd.f32 %v14579_v41, %v3821_v13  ;;  %v3806_v22 = vsel %vm3640_vm1, 0.0, %v14580_v6  ;;  %v14581_v60 = vrot.slane %v14545_v47, 6  ;;  %v6969_v32 = vmul.f32 0.015625, %v12468_v15  ;;  %v14594_v41 = vld [vmem:[#allocation64_spill] sm:$0xff]  ;;  %v14595_v6 = vld [vmem:[#allocation167_spill] sm:$0xff] }
 0x41b   :  { %v6909_v17 = vadd.f32 %v6905_v14, %v6877_v27  ;;  %v2158_v42 = vadd.f32 %v14582_v25, %v12496_v54  ;;  %v3726_v39 = vadd.f32 %v14583_v61, %v3654_v4  ;;  %v2159_v47 = vadd.f32 %v14584_v63, %v2067_v2  ;;  %v14588_v27 = vld [vmem:[#allocation180_spill] sm:$0xff] }
 0x41c   :  { %v3427_v58 = vsel %vm1783_vm2, 0.0, %v14581_v60  ;;  %7090 = vrot.lane.b32.xlu1 %v5320_v1, %s9615_s1  ;;  %v12599_v3 = vpop.permute.xlu1 %6784  ;;  %v2068_v45 = vadd.f32 %v14585_v55, %v2004_v50  ;;  %v3647_v37 = vsel %vm3640_vm1, 0.0, %v14586_v59  ;;  %v5322_v13 = vadd.f32 %v12272_v38, %v5271_v46  ;;  %v14589_v1 = vld [vmem:[#allocation113_spill] sm:$0xff]  ;;  %v14590_v38 = vld [vmem:[#allocation38_spill] sm:$0xff]  ;;  %v14596_v60 = vld [vmem:[#allocation179_spill] sm:$0xff] }
 0x41d   :  { %v3441_v62 = vadd.f32 %v3427_v58, %v12480_v18  ;;  %v6781_v48 = vpop.permute.xlu0 %6780  ;;  %7140 = vrot.lane.b32.xlu0 %v6909_v17, %s9616_s5  ;;  %v3822_v15 = vadd.f32 %v3806_v22, %v3726_v39  ;;  %v5321_v40 = vadd.f32 %v12217_v11, %v5270_v56  ;;  %v5272_v54 = vadd.f32 %v12276_v51, %v5232_v23  ;;  %v14587_v18 = vld [vmem:[#allocation168_spill] sm:$0xff]  ;;  %v14598_v55 = vld [vmem:[#allocation177_spill] sm:$0xff] }
 0x41e   :  { %v6945_v21 = vadd.f32 %v6944_v8, %v12456_v26  ;;  %v5185_v44 = vadd.f32 %v14587_v18, %v3885_v30  ;;  %v3428_v2 = vsel %vm1783_vm2, 0.0, %v3404_v10  ;;  %v6980_v9 = vmul.f32 %v14589_v1, %v6969_v32  ;;  %v14591_v26 = vld [vmem:[#allocation76_spill] sm:$0xff]  ;;  %v6564_v10 = vpop.f32.mrf.mxu0  ;;  %v14601_v18 = vld [vmem:[#allocation173_spill] sm:$0xff] }
 0x41f   :  { %v3497_v14 = vadd.f32 %v14588_v27, %v3441_v62  ;;  %v3655_v46 = vadd.f32 %v3647_v37, %v14590_v38  ;;  %v3442_v4 = vadd.f32 %v3428_v2, %v2158_v42  ;;  %v3499_v51 = vadd.f32 %v14479_v5, %v2159_v47  ;;  %v14592_v56 = vld [vmem:[#allocation184_spill] sm:$0xff]  ;;  %v14597_v62 = vld [vmem:[#allocation189_spill] sm:$0xff]  ;;  %v14603_v38 = vld [vmem:[#allocation171_spill] sm:$0xff] }
 0x420   :  { %7094 = vrot.lane.b32.xlu1 %v5322_v13, %s9615_s1  ;;  %v12619_v50 = vpop.permute.xlu1 %6788  ;;  %v2160_v8 = vadd.f32 %v14591_v26, %v2068_v45  ;;  %v14593_v17 = vld [vmem:[#allocation188_spill] sm:$0xff]  ;;  %v3648_v30 = vsel %vm3640_vm1, 0.0, %v14594_v41  ;;  %v3886_v58 = vadd.f32 %v14596_v60, %v3822_v15  ;;  %v5323_v32 = vadd.f32 %v12295_v20, %v5272_v54  ;;  %v14599_v20 = vld [vmem:[#allocation111_spill] sm:$0xff]  ;;  %v6665_v54 = vpop.f32.mrf.mxu1 }
 0x421   :  { %v12623_v11 = vpop.permute.xlu0 %6786  ;;  %7092 = vrot.lane.b32.xlu0 %v5321_v40, %s9615_s1  ;;  %v3600_v23 = vadd.f32 %v14592_v56, %v3497_v14  ;;  %v3807_v36 = vsel %vm3640_vm1, 0.0, %v14593_v17  ;;  %v3727_v22 = vadd.f32 %v14595_v6, %v3655_v46  ;;  %v6968_v25 = vmul.f32 0.015625, %v6945_v21  ;;  %v14600_v15 = vld [vmem:[#allocation39_spill] sm:$0xff]  ;;  %v14602_v27 = vld [vmem:[#allocation192_spill] sm:$0xff] }
 0x422   :  { %v5273_v42 = vadd.f32 %v5185_v44, %v14473_v57  ;;  %v5472_v61 = vsel %vm1880_vm0, 0.0, %v12105_v34  ;;  %v3498_v63 = vadd.f32 %v14597_v62, %v3442_v4  ;;  %v6565_v45 = vadd.f32 %v6564_v10, %v14598_v55  ;;  %v14606_v60 = vld [vmem:[#allocation27_spill] sm:$0xff] }
 0x423   :  { %v3823_v47 = vadd.f32 %v3807_v36, %v3727_v22  ;;  %v5474_v59 = vsel %vm1880_vm0, 0.0, %v12147_v33  ;;  %v12648_v13 = vadd.f32 %v14599_v20, %v6980_v9  ;;  %v3500_v34 = vadd.f32 %v14479_v5, %v2160_v8  ;;  %v14604_v9 = vld [vmem:[#allocation195_spill] sm:$0xff] }
 0x424   :  { %7034 = vrot.lane.b32.xlu1 %v3600_v23, %s9610_s30  ;;  %v6869_v39 = vpop.permute.xlu1 %6868  ;;  %v3656_v40 = vadd.f32 %v3648_v30, %v14600_v15  ;;  %v3602_v21 = vadd.f32 %v14473_v57, %v3499_v51  ;;  %v5186_v44 = vadd.f32 %v14601_v18, %v3886_v58  ;;  %v3601_v14 = vadd.f32 %v14602_v27, %v3498_v63  ;;  %v14605_v8 = vld [vmem:[#allocation183_spill] sm:$0xff] }
 0x425   :  { %v12644_v37 = vpop.permute.xlu0 %6790  ;;  %7096 = vrot.lane.b32.xlu0 %v5323_v32, %s9615_s1  ;;  %v6676_v33 = vadd.f32 %v11983_v52, %v5472_v61  ;;  %v5473_v2 = vsel %vm1880_vm0, 0.0, %v12125_v35  ;;  %v3808_v4 = vsel %vm3640_vm1, 0.0, %v14604_v9  ;;  %v6678_v5 = vadd.f32 %v12133_v12, %v5474_v59  ;;  %v14609_v59 = vld [vmem:[#allocation193_spill] sm:$0xff] }
 0x426   :  { %v3728_v46 = vadd.f32 %v14603_v38, %v3656_v40  ;;  %v5324_v51 = vadd.f32 %v14482_v53, %v5273_v42  ;;  %v3887_v56 = vadd.f32 %v14605_v8, %v3823_v47  ;;  %v6898_v52 = vrot.slane %v12038_v49, 6  ;;  %v14611_v38 = vld [vmem:[#allocation187_spill] sm:$0xff] }
 0x427   :  { %v6666_v23 = vadd.f32 %v6665_v54, %v6565_v45  ;;  %v6820_v17 = vadd.f32 %v6781_v48, %v6676_v33  ;;  %v6677_v36 = vadd.f32 %v12120_v16, %v5473_v2  ;;  %v5475_v12 = vsel %vm1880_vm0, 0.0, %v12141_v31 }
 0x428   :  { %7038 = vrot.lane.b32.xlu1 %v3602_v21, %s9610_s30  ;;  %v12663_v26 = vpop.permute.xlu1 %6792  ;;  %v6822_v10 = vadd.f32 %v12599_v3, %v6678_v5  ;;  %v5274_v30 = vadd.f32 %v5186_v44, %v14473_v57  ;;  %v3824_v6 = vadd.f32 %v3808_v4, %v3728_v46  ;;  %v3603_v49 = vadd.f32 %v14473_v57, %v3500_v34  ;;  %v14612_v4 = vld [vmem:[#allocation90_spill] sm:$0xff] }
 0x429   :  { %v6837_v35 = vpop.permute.xlu0 %6836  ;;  %7036 = vrot.lane.b32.xlu0 %v3601_v14, %s9610_s30  ;;  %v6979_v48 = vmul.f32 %v14589_v1, %v6968_v25  ;;  %v14607_v58 = vrot.slane %v14606_v60, 2  ;;  %v6821_v16 = vadd.f32 %v12575_v29, %v6677_v36  ;;  %v6993_v3 = vmax.f32 %v12648_v13, 0.0  ;;  %v14608_v1 = vld [vmem:[#allocation182_spill] sm:$0xff]  ;;  %v14610_v14 = vld [vmem:[#allocation157_spill] sm:$0xff]  ;;  %v14619_v60 = vld [vmem:[#allocation160_spill] sm:$0xff] }
 0x42a   :  { %v6846_v41 = vsel %vm1880_vm0, 0.0, %v6837_v35  ;;  %v6899_v42 = vrot.slane %v6666_v23, 6  ;;  %v6679_v61 = vadd.f32 %v12164_v0, %v5475_v12  ;;  %v5187_v25 = vadd.f32 %v14608_v1, %v3887_v56  ;;  %v14616_v35 = vld [vmem:[#allocation155_spill] sm:$0xff]  ;;  %v14617_v12 = vld [vmem:[#allocation22_spill] sm:$0xff]  ;;  %v14621_v1 = vld [vmem:[#allocation24_spill] sm:$0xff] }
 0x42b   :  { %v6856_v22 = vadd.f32 %v6846_v41, %v6820_v17  ;;  %v5342_v32 = vsel %vm1880_vm0, 0.0, %v14607_v58  ;;  %v6906_v55 = vsel %vm1783_vm2, %v6898_v52, 0.0  ;;  %v6886_v29 = vadd.f32 %v6822_v10, %v14482_v53  ;;  %v14615_v52 = vld [vmem:[#allocation77_spill] sm:$0xff] }
 0x42c   :  { %7098 = vrot.lane.b32.xlu1 %v5324_v51, %s9615_s1  ;;  %v6839_v31 = vpop.permute.xlu1 %6838  ;;  %v3888_v34 = vadd.f32 %v14609_v59, %v3824_v6  ;;  %v6823_v13 = vadd.f32 %v12623_v11, %v6679_v61  ;;  %v5325_v0 = vadd.f32 %v14482_v53, %v5274_v30  ;;  %v5358_v40 = vadd.f32 %v12100_v7, %v5342_v32 }
 0x42d   :  { %v6884_v62 = vadd.f32 %v6869_v39, %v6856_v22  ;;  %v6871_v63 = vpop.permute.xlu0 %6870  ;;  %v6847_v47 = vsel %vm1880_vm0, 0.0, %v6839_v31  ;;  %7040 = vrot.lane.b32.xlu0 %v3603_v49, %s9610_s30  ;;  %v9427_v39 = vld [vmem:[#allocation11 + $0x1c] ss:$12 sps:$4 sm:$0xff]   ;;  %v6990_v21 = vadd.f32 %v14599_v20, %v6979_v48  ;;  %v6907_v18 = vsel %vm1783_vm2, %v6899_v42, 0.0 }
 0x42e   :  { %v6857_v45 = vadd.f32 %v6847_v47, %v6821_v16  ;;  %v5476_v44 = vsel %vm1880_vm0, 0.0, %v12215_v19  ;;  %v5478_v27 = vsel %vm1880_vm0, 0.0, %v12291_v24  ;;  %7742 = vmatprep.subr.bf16.mxu1 %v9427_v39  ;;  %v5275_v7 = vadd.f32 %v5187_v25, %v14473_v57  ;;  %v14614_v24 = vld [vmem:[#allocation118_spill] sm:$0xff]  ;;  %v14620_v16 = vld [vmem:[#allocation152_spill] sm:$0xff] }
 0x42f   :  { %v6916_v15 = vadd.f32 %v6906_v55, %v6884_v62  ;;  %v5390_v33 = vadd.f32 %v14610_v14, %v5358_v40  ;;  %v5188_v20 = vadd.f32 %v14611_v38, %v3888_v34  ;;  %v6887_v46 = vadd.f32 %v6823_v13, %v14482_v53  ;;  %v14618_v22 = vld [vmem:[#allocation158_spill] sm:$0xff]  ;;  %v14622_v14 = vld [vmem:[#allocation203_spill] sm:$0xff] }
 0x430   :  { %v6885_v54 = vadd.f32 %v6871_v63, %v6857_v45  ;;  %7158 = vrot.lane.b32.xlu1 %v6886_v29, %s9616_s5  ;;  %v7676_v9 = vpack.c.bf16 %v6993_v3, %v6993_v3  ;;  %v14613_v19 = vrot.slane %v14612_v4, 2  ;;  %v6680_v51 = vadd.f32 %v14614_v24, %v5476_v44  ;;  %v7083_v13 = vpop.permute.xlu1 %7082 }
 0x431   :  { %v12700_v11 = vpop.permute.xlu0 %7084  ;;  %7100 = vrot.lane.b32.xlu0 %v5325_v0, %s9615_s1  ;;  %v5494_v8 = vadd.f32 %v5478_v27, %v5390_v33  ;;  %v6992_v56 = vmax.f32 %v6990_v21, 0.0  ;;  %v5477_v36 = vsel %vm1880_vm0, 0.0, %v14616_v35  ;;  %v5479_v10 = vsel %vm1880_vm0, 0.0, %v14617_v12  ;;  %v14623_v33 = vld [vmem:[#allocation96_spill] sm:$0xff]  ;;  %v14630_v35 = vld [vmem:[#allocation73_spill] sm:$0xff] }
 0x432   :  { %v6917_v2 = vadd.f32 %v6907_v18, %v6885_v54  ;;  %v5343_v5 = vsel %vm1880_vm0, 0.0, %v14613_v19  ;;  %v6824_v41 = vadd.f32 %v12619_v50, %v6680_v51  ;;  %v5326_v30 = vadd.f32 %v14482_v53, %v5275_v7  ;;  %v14626_v19 = vld [vmem:[#allocation194_spill] sm:$0xff]  ;;  %v14628_v51 = vld [vmem:[#allocation200_spill] sm:$0xff] }
 0x433   :  { %v5359_v23 = vadd.f32 %v14615_v52, %v5343_v5  ;;  %v5276_v6 = vadd.f32 %v5188_v20, %v14473_v57  ;;  %v7688_v48 = vunpack.c.l.b16 %v7676_v9  ;;  %v6682_v58 = vadd.f32 %v14619_v60, %v5494_v8  ;;  %v14624_v20 = vld [vmem:[#allocation54_spill] sm:$0xff]  ;;  %v14625_v9 = vld [vmem:[#allocation100_spill] sm:$0xff]  ;;  %v14627_v5 = vld [vmem:[#allocation91_spill] sm:$0xff] }
 0x434   :  { %7154 = vrot.lane.b32.xlu1 %v6916_v15, %s9616_s5  ;;  %v7675_v32 = vpack.c.bf16 %v6992_v56, %v6992_v56  ;;  %v6681_v31 = vadd.f32 %v14620_v16, %v5477_v36  ;;  %v6888_v50 = vadd.f32 %v6824_v41, %v14482_v53  ;;  %v7023_v15 = vpop.permute.xlu1 %7022  ;;  %v7192_v4 = vsel %vm7186_vm5, %v14625_v9, %v12580_v43  ;;  %v14629_v8 = vld [vmem:[#allocation93_spill] sm:$0xff]  ;;  %v14631_v36 = vld [vmem:[#allocation80_spill] sm:$0xff] }
 0x435   :  { %v12713_v17 = vpop.permute.xlu0 %7024  ;;  %7160 = vrot.lane.b32.xlu0 %v6887_v46, %s9616_s5  ;;  %v5391_v49 = vadd.f32 %v14618_v22, %v5359_v23  ;;  %v6826_v61 = vadd.f32 %v12663_v26, %v6682_v58  ;;  %v5327_v62 = vadd.f32 %v14482_v53, %v5276_v6  ;;  %v7689_v63 = vrot.slane %v7688_v48, 7  ;;  %v14633_v41 = vld [vmem:[#allocation37_spill] sm:$0xff]  ;;  %v12778_v48 = vld [vmem:[#allocation5] ss:$0 sm:$0xff] }
 0x436   :  { %v6825_v57 = vadd.f32 %v12644_v37, %v6681_v31  ;;  %v7687_v47 = vunpack.c.l.b16 %v7675_v32  ;;  %v7187_v24 = vsel %vm7186_vm5, %v14627_v5, %v14626_v19  ;;  %v7189_v56 = vsel %vm7186_vm5, %v14629_v8, %v14628_v51 }
 0x437   :  { %v5495_v3 = vadd.f32 %v5479_v10, %v5391_v49  ;;  %v6890_v29 = vadd.f32 %v6826_v61, %v14482_v53  ;;  %v7209_v52 = vsel %vm7203_vm6, %v7192_v4, %v12700_v11  ;;  %v7191_v12 = vsel %vm7186_vm5, %v14631_v36, %v14630_v35  ;;  %v14632_v10 = vld [vmem:[#allocation99_spill] sm:$0xff]  ;;  %v14635_v61 = vld [vmem:[#allocation92_spill] sm:$0xff] }
 0x438   :  { %7102 = vrot.lane.b32.xlu1 %v5326_v30, %s9615_s1  ;;  %v6889_v45 = vadd.f32 %v6825_v57, %v14482_v53  ;;  %v7691_v26 = vsel %vm7690_vm4, %v7689_v63, %v7687_v47  ;;  %v7087_v0 = vpop.permute.xlu1 %7086  ;;  %v7204_v43 = vsel %vm7203_vm6, %v7187_v24, %v14632_v10  ;;  %v7206_v30 = vsel %vm7203_vm6, %v7189_v56, %v14633_v41  ;;  %v14636_v47 = vld [vmem:[#allocation140_spill] sm:$0xff] }
 0x439   :  { %v12727_v42 = vpop.permute.xlu0 %7088  ;;  %7156 = vrot.lane.b32.xlu0 %v6917_v2, %s9616_s5  ;;  %v6683_v25 = vadd.f32 %v14621_v1, %v5495_v3  ;;  %v7692_v37 = vpack.c.b16 %v7691_v26, %v7691_v26  ;;  %v7190_v2 = vsel %vm7186_vm5, %v14623_v33, %v14622_v14  ;;  %v7208_v49 = vsel %vm7203_vm6, %v7191_v12, %v7083_v13  ;;  %v14638_v26 = vld [vmem:[#allocation97_spill] sm:$0xff]  ;;  %v9430_v12 = vld [vmem:[#allocation11 + $0x4] ss:$12 sps:$4 sm:$0xff]  }
 0x43a   :  { %v7207_v46 = vsel %vm7203_vm6, %v7190_v2, %v14624_v20  ;;  %v9425_v35 = vld [vmem:[#allocation11 + $0x18] ss:$12 sps:$4 sm:$0xff]  }
 0x43c   :  { %7162 = vrot.lane.b32.xlu1 %v6888_v50, %s9616_s5  ;;  %v12744_v39 = vpop.permute.xlu1 %7026  ;;  %v14634_v50 = vld [vmem:[#allocation198_spill] sm:$0xff] }
 0x43d   :  { %v6795_v55 = vpop.permute.xlu0 %6794  ;;  %7104 = vrot.lane.b32.xlu0 %v5327_v62, %s9615_s1  ;;  %v7188_v57 = vsel %vm7186_vm5, %v14635_v61, %v14634_v50  ;;  %v14641_v61 = vld [vmem:[#allocation88_spill] sm:$0xff] }
 0x43e   :  { %v6827_v59 = vadd.f32 %v6795_v55, %v6683_v25  ;;  %v7205_v1 = vsel %vm7203_vm6, %v7188_v57, %v14636_v47  ;;  %v14637_v25 = vld [vmem:[#allocation98_spill] sm:$0xff] }
 0x43f   :  { %v7194_v55 = vsel %vm7186_vm5, %v14637_v25, %v12713_v17 }
 0x440   :  { %7166 = vrot.lane.b32.xlu1 %v6890_v29, %s9616_s5  ;;  %v6891_v34 = vadd.f32 %v6827_v59, %v14482_v53  ;;  %v12748_v54 = vpop.permute.xlu1 %7030  ;;  %v12797_v29 = vld [vmem:[#allocation7] ss:$0 sm:$0xff] }
 0x441   :  { %7164 = vrot.lane.b32.xlu0 %v6889_v45, %s9616_s5  ;;  %v12746_v40 = vpop.permute.xlu0 %7028  ;;  %v7197_v57 = vsel %vm7186_vm5, %v14641_v61, %v12748_v54 }
 0x444   :  { %7693 = vrot.lane.b32.xlu1 %v7692_v37, %s9616_s5  ;;  %v7143_v18 = vpop.permute.xlu1 %7142  ;;  %v7193_v37 = vsel %vm7186_vm5, %v14638_v26, %v7023_v15 }
 0x445   :  { %7168 = vrot.lane.b32.xlu0 %v6891_v34, %s9616_s5  ;;  %v12750_v21 = vpop.permute.xlu0 %7032  ;;  %v7223_v11 = vsel %vm7220_vm7, %v7206_v30, %v7143_v18  ;;  %v7211_v34 = vsel %vm7203_vm6, %v7194_v55, %v12727_v42  ;;  %v7210_v33 = vsel %vm7203_vm6, %v7193_v37, %v7087_v0 }
 0x446   :  { %v7246_v62 = vmul.f32 %v12778_v48, %v7223_v11 }
 0x448   :  { %v7269_v2 = vadd.f32 %v12797_v29, %v7246_v62  ;;  %v14642_v62 = vld [vmem:[#allocation104_spill] sm:$0xff] }
 0x449   :  { %v7145_v27 = vpop.permute.xlu0 %7144  ;;  %v7198_v47 = vsel %vm7186_vm5, %v14642_v62, %v12750_v21  ;;  %v14643_v21 = vld [vmem:[#allocation83_spill] sm:$0xff] }
 0x44a   :  { %v7224_v23 = vsel %vm7220_vm7, %v7207_v46, %v7145_v27  ;;  %v7285_v51 = vmax.f32 %v7269_v2, 0.0 }
 0x44b   :  { %v7247_v32 = vmul.f32 %v12778_v48, %v7224_v23 }
 0x44d   :  { %v7270_v13 = vadd.f32 %v12797_v29, %v7247_v32  ;;  %v14639_v32 = vmov 0.0  }
 0x44f   :  { %v7286_v9 = vmax.f32 %v7270_v13, 0.0 }
 0x451   :  { %v7300_v36 = vpack.c.bf16 %v7286_v9, %v7285_v51 }
 0x474   :  { %v7147_v44 = vpop.permute.xlu1 %7146 }
 0x475   :  { %v7225_v16 = vsel %vm7220_vm7, %v7208_v49, %v7147_v44 }
 0x476   :  { %v7248_v45 = vmul.f32 %v12778_v48, %v7225_v16 }
 0x47f   :  { %v7149_v38 = vpop.permute.xlu0 %7148 }
 0x480   :  { %v7226_v6 = vsel %vm7220_vm7, %v7209_v52, %v7149_v38  ;;  %v7271_v38 = vadd.f32 %v12797_v29, %v7248_v45 }
 0x481   :  { %v7249_v31 = vmul.f32 %v12778_v48, %v7226_v6  ;;  %v9428_v6 = vld [vmem:[#allocation11] ss:$12 sps:$4 sm:$0xff]  }
 0x482   :  { %v7287_v56 = vmax.f32 %v7271_v38, 0.0 }
 0x483   :  { %v7272_v44 = vadd.f32 %v12797_v29, %v7249_v31 }
 0x484   :  { %v7151_v7 = vpop.permute.xlu1 %7150 }
 0x485   :  { %v7227_v42 = vsel %vm7220_vm7, %v7210_v33, %v7151_v7  ;;  %v7288_v19 = vmax.f32 %v7272_v44, 0.0  ;;  %v14644_v33 = vld [vmem:[#allocation79_spill] sm:$0xff] }
 0x486   :  { %v7250_v8 = vmul.f32 %v12778_v48, %v7227_v42 }
 0x487   :  { %v7301_v10 = vpack.c.bf16 %v7288_v19, %v7287_v56  ;;  %v14646_v56 = vld [vmem:[#allocation114_spill] sm:$0xff] }
 0x48a   :  { %v7139_v22 = vpop.permute.xlu1 %7138 }
 0x48b   :  { %v7221_v60 = vsel %vm7220_vm7, %v7204_v43, %v7139_v22  ;;  %v7153_v58 = vpop.permute.xlu0 %7152  ;;  %v7273_v43 = vadd.f32 %v12797_v29, %v7250_v8 }
 0x48c   :  { %v7244_v3 = vmul.f32 %v12778_v48, %v7221_v60  ;;  %v7228_v17 = vsel %vm7220_vm7, %v7211_v34, %v7153_v58 }
 0x48d   :  { %v7251_v4 = vmul.f32 %v12778_v48, %v7228_v17  ;;  %v7289_v49 = vmax.f32 %v7273_v43, 0.0 }
 0x48e   :  { %v12790_v63 = vpop.permute.xlu1 %7090  ;;  %v7267_v27 = vadd.f32 %v12797_v29, %v7244_v3  ;;  %v14640_v3 = vld [vmem:[#allocation46_spill] sm:$0xff] }
 0x48f   :  { %v7141_v59 = vpop.permute.xlu0 %7140  ;;  %v7274_v7 = vadd.f32 %v12797_v29, %v7251_v4  ;;  %v7195_v50 = vsel %vm7186_vm5, %v14640_v3, %v12744_v39 }
 0x490   :  { %v7222_v18 = vsel %vm7220_vm7, %v7205_v1, %v7141_v59  ;;  %v7283_v5 = vmax.f32 %v7267_v27, 0.0  ;;  %v7212_v1 = vsel %vm7203_vm6, %v7195_v50, %v12790_v63  ;;  %v7196_v63 = vsel %vm7186_vm5, %v14643_v21, %v12746_v40 }
 0x491   :  { %v7245_v14 = vmul.f32 %v12778_v48, %v7222_v18  ;;  %v7290_v22 = vmax.f32 %v7274_v7, 0.0 }
 0x492   :  { %v7095_v15 = vpop.permute.xlu1 %7094 }
 0x493   :  { %v7268_v20 = vadd.f32 %v12797_v29, %v7245_v14  ;;  %v7093_v46 = vpop.permute.xlu0 %7092  ;;  %v7302_v58 = vpack.c.bf16 %v7290_v22, %v7289_v49  ;;  %v7214_v25 = vsel %vm7203_vm6, %v7197_v57, %v7095_v15 }
 0x494   :  { %v7213_v44 = vsel %vm7203_vm6, %v7196_v63, %v7093_v46 }
 0x495   :  { %v7284_v24 = vmax.f32 %v7268_v20, 0.0 }
 0x496   :  { %v7035_v0 = vpop.permute.xlu1 %7034 }
 0x497   :  { %v7299_v52 = vpack.c.bf16 %v7284_v24, %v7283_v5  ;;  %v7097_v23 = vpop.permute.xlu0 %7096  ;;  %v7199_v2 = vsel %vm7186_vm5, %v14644_v33, %v7035_v0  ;;  %v14645_v5 = vld [vmem:[#allocation81_spill] sm:$0xff] }
 0x498   :  { %v7215_v45 = vsel %vm7203_vm6, %v7198_v47, %v7097_v23 }
 0x499   :  { %7500 = vmatmul.mubr.bf16.vlgmr.msra.gmra.mxu0 %v7299_v52  ;;  %9349 = vmatprep.mubr.bf16.mxu1 %v7299_v52 }
 0x49a   :  { %9350 = vmatmul.mubr.bf16.vlgmr.msra.gmra.mxu1 %v7300_v36  ;;  %v7039_v41 = vpop.permute.xlu1 %7038  ;;  %7509 = vmatprep.mubr.bf16.mxu0 %v9617_v28 }
 0x49b   :  { %v7037_v30 = vpop.permute.xlu0 %7036  ;;  %9353 = vmatprep.mubr.bf16.mxu1 %v7301_v10  ;;  %7743 = vmatpush1.bf16.msra.mxu1 %v9425_v35  ;;  %v7201_v24 = vsel %vm7186_vm5, %v14645_v5, %v7039_v41 }
 0x49c   :  { %7744 = vmatprep.subr.bf16.mxu1 %v9430_v12  ;;  %v7200_v52 = vsel %vm7186_vm5, %v14646_v56, %v7037_v30 }
 0x49e   :  { %v7099_v11 = vpop.permute.xlu1 %7098 }
 0x49f   :  { %v7041_v60 = vpop.permute.xlu0 %7040  ;;  %7745 = vmatpush1.bf16.msra.mxu1 %v9428_v6  ;;  %v7216_v40 = vsel %vm7203_vm6, %v7199_v2, %v7099_v11  ;;  %v14647_v11 = vld [vmem:[#allocation43_spill] sm:$0xff] }
 0x4a0   :  { %9365 = vmatprep.subr.bf16.mxu1 %v14639_v32 }
 0x4a1   :  { %7510 = vmatmul.mubr.bf16.gmra.mxu0 %v7300_v36 }
 0x4a2   :  { %9354 = vmatmul.mubr.bf16.gmra.mxu1 %v7302_v58  ;;  %v7159_v16 = vpop.permute.xlu1 %7158  ;;  %7519 = vmatprep.mubr.bf16.mxu0 %v9617_v28 }
 0x4a3   :  { %v7101_v31 = vpop.permute.xlu0 %7100  ;;  %v7231_v59 = vsel %vm7220_vm7, %v7214_v25, %v7159_v16 }
 0x4a4   :  { %v7254_v13 = vmul.f32 %v12778_v48, %v7231_v59  ;;  %v7217_v7 = vsel %vm7203_vm6, %v7200_v52, %v7101_v31  ;;  %v9431_v59 = vld [vmem:[#allocation11 + $0x20] ss:$12 sps:$4 sm:$0xff]   ;;  %v7815_v52 = vlaneseq }
 0x4a6   :  { %v7155_v55 = vpop.permute.xlu1 %7154  ;;  %v7277_v42 = vadd.f32 %v12797_v29, %v7254_v13 }
 0x4a7   :  { %v7229_v39 = vsel %vm7220_vm7, %v7212_v1, %v7155_v55  ;;  %v7161_v26 = vpop.permute.xlu0 %7160 }
 0x4a8   :  { %v7232_v37 = vsel %vm7220_vm7, %v7215_v45, %v7161_v26  ;;  %v7252_v54 = vmul.f32 %v12778_v48, %v7229_v39  ;;  %v7293_v23 = vmax.f32 %v7277_v42, 0.0 }
 0x4a9   :  { %v7255_v34 = vmul.f32 %v12778_v48, %v7232_v37  ;;  %7520 = vmatmul.mubr.bf16.gmra.mxu0 %v7301_v10 }
 0x4aa   :  { %v7103_v18 = vpop.permute.xlu1 %7102  ;;  %7529 = vmatprep.mubr.bf16.mxu0 %v9617_v28  ;;  %v7275_v15 = vadd.f32 %v12797_v29, %v7252_v54 }
 0x4ab   :  { %v7157_v27 = vpop.permute.xlu0 %7156  ;;  %v7278_v17 = vadd.f32 %v12797_v29, %v7255_v34  ;;  %v7218_v35 = vsel %vm7203_vm6, %v7201_v24, %v7103_v18 }
 0x4ac   :  { %v7230_v14 = vsel %vm7220_vm7, %v7213_v44, %v7157_v27  ;;  %v7291_v51 = vmax.f32 %v7275_v15, 0.0 }
 0x4ad   :  { %v7253_v38 = vmul.f32 %v12778_v48, %v7230_v14  ;;  %v7294_v19 = vmax.f32 %v7278_v17, 0.0 }
 0x4ae   :  { %v7163_v20 = vpop.permute.xlu1 %7162 }
 0x4af   :  { %v7276_v9 = vadd.f32 %v12797_v29, %v7253_v38  ;;  %v7233_v46 = vsel %vm7220_vm7, %v7216_v40, %v7163_v20  ;;  %v7105_v4 = vpop.permute.xlu0 %7104  ;;  %v7304_v41 = vpack.c.bf16 %v7294_v19, %v7293_v23 }
 0x4b0   :  { %v7256_v0 = vmul.f32 %v12778_v48, %v7233_v46 }
 0x4b1   :  { %v7292_v8 = vmax.f32 %v7276_v9, 0.0  ;;  %7530 = vmatmul.mubr.bf16.gmra.mxu0 %v7302_v58  ;;  %v7202_v58 = vsel %vm7186_vm5, %v14647_v11, %v7041_v60 }
 0x4b2   :  { %v7167_v36 = vpop.permute.xlu1 %7166  ;;  %7539 = vmatprep.mubr.bf16.mxu0 %v9617_v28  ;;  %v7279_v22 = vadd.f32 %v12797_v29, %v7256_v0  ;;  %v7219_v16 = vsel %vm7203_vm6, %v7202_v58, %v7105_v4  ;;  %v9619_v0 = vmov 1966171168  }
 0x4b3   :  { %v7235_v12 = vsel %vm7220_vm7, %v7218_v35, %v7167_v36  ;;  %v7165_v10 = vpop.permute.xlu0 %7164  ;;  %v7303_v43 = vpack.c.bf16 %v7292_v8, %v7291_v51  ;;  %v7813_v56 = vunpack.c.l.s4 %v9619_v0 }
 0x4b4   :  { %v7234_v6 = vsel %vm7220_vm7, %v7217_v7, %v7165_v10  ;;  %v7258_v49 = vmul.f32 %v12778_v48, %v7235_v12  ;;  %v7295_v61 = vmax.f32 %v7279_v22, 0.0  ;;  %v7816_v10 = vshrl.u32 %v7815_v52, 7 }
 0x4b5   :  { %v7257_v30 = vmul.f32 %v12778_v48, %v7234_v6  ;;  %9357 = vmatprep.mubr.bf16.mxu1 %v7303_v43  ;;  %v7814_v12 = vunpack.c.0.s8 %v7813_v56 }
 0x4b6   :  { %9358 = vmatmul.mubr.bf16.gmra.mxu1 %v7304_v41  ;;  %v7281_v57 = vadd.f32 %v12797_v29, %v7258_v49  ;;  %v7694_v39 = vpop.permute.xlu1 %7693 }
 0x4b7   :  { %v7280_v31 = vadd.f32 %v12797_v29, %v7257_v30  ;;  %v7169_v3 = vpop.permute.xlu0 %7168  ;;  %v12953_v49 = vsub.s32 %v7814_v12, %v7816_v10 }
 0x4b8   :  { %v7236_v50 = vsel %vm7220_vm7, %v7219_v16, %v7169_v3  ;;  %v7297_v25 = vmax.f32 %v7281_v57, 0.0  ;;  %v12958_v3 = vsub.s32 0, %v7816_v10 }
 0x4b9   :  { %v7296_v62 = vmax.f32 %v7280_v31, 0.0  ;;  %v7259_v47 = vmul.f32 %v12778_v48, %v7236_v50  ;;  %7540 = vmatmul.mubr.bf16.gmra.mxu0 %v7303_v43  ;;  %v9432_v48 = vld [vmem:[#allocation11 + $0x8] ss:$12 sps:$4 sm:$0xff]  }
 0x4ba   :  { %7549 = vmatprep.mubr.bf16.mxu0 %v9617_v28 }
 0x4bb   :  { %v7282_v1 = vadd.f32 %v12797_v29, %v7259_v47  ;;  %v7305_v60 = vpack.c.bf16 %v7296_v62, %v7295_v61 }
 0x4bd   :  { %v7298_v55 = vmax.f32 %v7282_v1, 0.0  ;;  %9361 = vmatprep.mubr.bf16.mxu1 %v7305_v60 }
 0x4bf   :  { %v7306_v45 = vpack.c.bf16 %v7298_v55, %v7297_v25 }
 0x4c1   :  { %7550 = vmatmul.mubr.bf16.gmra.mxu0 %v7304_v41  ;;  %9362 = vmatmul.mubr.bf16.gmra.mxu1 %v7306_v45 }
 0x4c2   :  { %7559 = vmatprep.mubr.bf16.mxu0 %v9617_v28  ;;  %7762 = vmatprep.mubr.bf16.mxu1 %v9617_v28 }
 0x4c9   :  { %7560 = vmatmul.mubr.bf16.gmra.mxu0 %v7305_v60  ;;  %9311 = vmatmul.mubr.msk.bf16.vlgmr.msra.gmra.mxu1 %vm7186_vm5, %v7694_v39 }
 0x4ca   :  { %9366 = vmatpush3.bf16.msra.mxu1 %v9431_v59  ;;  %7569 = vmatprep.mubr.bf16.mxu0 %v9617_v28 }
 0x4cb   :  { %9367 = vmatprep.subr.bf16.mxu1 %v14639_v32  ;;  %9369 = vmatprep.mubr.msk.bf16.mxu1 %vm9618_vm8, %v14639_v32 }
 0x4ce   :  { %9368 = vmatpush3.bf16.msra.mxu1 %v9432_v48 }
 0x4d1   :  { %7570 = vmatmul.mubr.bf16.gmra.mxu0 %v7306_v45  ;;  %9370 = vmatmul.mubr.msk.bf16.vlgmr.msra.gmra.mxu1 %vm7186_vm5, %v7694_v39 }
 0x559   :  { %v12885_v29 = vpop.f32.mrf.mxu0 }
 0x55a   :  { %v12887_v26 = vpop.f32.mrf.mxu1 }
 0x55b   :  { %v12889_v37 = vpop.f32.mrf.mxu0 }
 0x55c   :  { %v7614_v54 = vpop.f32.mrf.mxu1 }
 0x55d   :  { %v7505_v34 = vpop.f32.mrf.mxu0 }
 0x55e   :  { %v12893_v28 = vpop.f32.mrf.mxu1 }
 0x55f   :  { %v12891_v21 = vpop.f32.mrf.mxu0 }
 0x560   :  { %v12899_v32 = vpop.f32.mrf.mxu1 }
 0x561   :  { %v12895_v63 = vpop.f32.mrf.mxu0 }
 0x562   :  { %v12905_v27 = vpop.f32.mrf.mxu1 }
 0x563   :  { %v12897_v13 = vpop.f32.mrf.mxu0 }
 0x564   :  { %v12911_v33 = vpop.f32.mrf.mxu1 }
 0x565   :  { %v12901_v18 = vpop.f32.mrf.mxu0 }
 0x566   :  { %v12917_v38 = vpop.f32.mrf.mxu1 }
 0x567   :  { %v12903_v44 = vpop.f32.mrf.mxu0 }
 0x568   :  { %v12923_v20 = vpop.f32.mrf.mxu1 }
 0x569   :  { %v12907_v17 = vpop.f32.mrf.mxu0 }
 0x56b   :  { %v12909_v14 = vpop.f32.mrf.mxu0 }
 0x56d   :  { %v12913_v2 = vpop.f32.mrf.mxu0 }
 0x56f   :  { %v12915_v15 = vpop.f32.mrf.mxu0 }
 0x571   :  { %v12919_v40 = vpop.f32.mrf.mxu0 }
 0x573   :  { %v12921_v42 = vpop.f32.mrf.mxu0 }
 0x575   :  { %v12925_v9 = vpop.f32.mrf.mxu0 }
 0x576   :  { %v12927_v46 = vpop.f32.mrf.mxu1 }
 0x577   :  { %v12929_v4 = vpop.f32.mrf.mxu0 }
 0x578   :  { %v7645_v19 = vpop.f32.mrf.mxu1 }
 0x579   :  { %v12931_v5 = vpop.f32.mrf.mxu0 }
 0x57a   :  { %v12933_v24 = vpop.f32.mrf.mxu1 }
 0x57b   :  { %v12935_v51 = vpop.f32.mrf.mxu0 }
 0x57c   :  { %v12939_v23 = vpop.f32.mrf.mxu1 }
 0x57d   :  { %v12937_v8 = vpop.f32.mrf.mxu0 }
 0x57f   :  { %v12941_v35 = vpop.f32.mrf.mxu0 }
 0x581   :  { %v7551_v36 = vpop.f32.mrf.mxu0  ;;  %v12943_v7 = vpop.f32.mrf.mxu1 }
 0x583   :  { %v12945_v43 = vpop.f32.mrf.mxu0  ;;  %v12947_v41 = vpop.f32.mrf.mxu1 }
 0x585   :  { %v12949_v6 = vpop.f32.mrf.mxu0  ;;  %v12951_v22 = vpop.f32.mrf.mxu1 }
 0x587   :  { %v7557_v30 = vpop.f32.mrf.mxu0  ;;  %v12955_v11 = vpop.f32.mrf.mxu1 }
 0x589   :  { %v7561_v58 = vpop.f32.mrf.mxu0  ;;  %v7764_v16 = vpop.f32.mrf.mxu1 }
 0x58a   :  { %v7818_v31 = vrot.slane %v7764_v16, %v12953_v49 }
 0x58b   :  { %v7563_v50 = vpop.f32.mrf.mxu0  ;;  %v7766_v61 = vpop.f32.mrf.mxu1 }
 0x58c   :  { %v7826_v57 = vrot.slane %v7818_v31, %v12953_v49  ;;  %v12962_v62 = vrot.slane %v7766_v61, %v12953_v49  ;;  %v7819_v45 = vcombine.high %v7818_v31, %v7818_v31 }
 0x58d   :  { %v7768_v47 = vpop.f32.mrf.mxu1  ;;  %v7565_v25 = vpop.f32.mrf.mxu0 }
 0x58e   :  { %v12965_v1 = vrot.slane %v7826_v57, %v12958_v3  ;;  %v8178_v60 = vcombine.high %v12962_v62, %v12962_v62 }
 0x58f   :  { %v7769_v55 = vpop.f32.mrf.mxu1  ;;  %v7567_v56 = vpop.f32.mrf.mxu0 }
 0x590   :  { %v8192_v59 = vrot.slane %v8178_v60, %v12953_v49  ;;  %v12971_v39 = vadd.f32 %v12965_v1, %v7505_v34  ;;  %v12975_v54 = vadd.f32 %v12965_v1, %v12885_v29  ;;  %v7833_v34 = vrot.slane %v7819_v45, %v12953_v49 }
 0x591   :  { %v7805_v48 = vpop.f32.mrf.mxu1  ;;  %v12991_v10 = vadd.f32 %v12965_v1, %v12901_v18  ;;  %v12996_v61 = vadd.f32 %v12965_v1, %v12895_v63  ;;  %v13012_v63 = vadd.f32 %v12965_v1, %v12913_v2  ;;  %v13016_v45 = vadd.f32 %v12965_v1, %v12907_v17 }
 0x592   :  { %v12978_v19 = vrot.slane %v8192_v59, %v12958_v3  ;;  %v8530_v0 = vrot.slane %v7805_v48, %v12953_v49  ;;  %7917 = vrot.lane.b32.xlu1 %v12971_v39, %s9616_s5  ;;  %7915 = vrot.lane.b32.xlu0 %v12975_v54, %s9616_s5  ;;  %v13005_v18 = vrot.slane %v7833_v34, %v12958_v3  ;;  %v7571_v59 = vpop.f32.mrf.mxu0 }
 0x593   :  { %v9371_v52 = vpop.f32.mrf.mxu1 }
 0x594   :  { %v12987_v12 = vadd.f32 %v12978_v19, %v7567_v56  ;;  %v8531_v29 = vcombine.high %v8530_v0, %v8530_v0  ;;  %v8538_v16 = vrot.slane %v8530_v0, %v12953_v49  ;;  %v13024_v48 = vadd.f32 %v13005_v18, %v12931_v5 }
 0x595   :  { %v7808_v31 = vpop.f32.mrf.mxu1  ;;  %v13028_v0 = vadd.f32 %v12965_v1, %v12919_v40  ;;  %v13031_v2 = vadd.f32 %v13005_v18, %v7565_v25  ;;  %v13036_v17 = vadd.f32 %v13005_v18, %v7571_v59  ;;  %v13041_v56 = vadd.f32 %v13005_v18, %v7551_v36 }
 0x596   :  { %14648 = vst [vmem:[#allocation141_spill] sm:$0xff] %v12987_v12  ;;  %v8545_v57 = vrot.slane %v8531_v29, %v12953_v49  ;;  %7921 = vrot.lane.b32.xlu1 %v12991_v10, %s9616_s5  ;;  %v8549_v47 = vrot.slane %v8538_v16, %v12958_v3  ;;  %7919 = vrot.lane.b32.xlu0 %v12996_v61, %s9616_s5  ;;  %v13880_v16 = vrot.slane %v12991_v10, 7 }
 0x597   :  { %v9372_v60 = vpop.f32.mrf.mxu1  ;;  %v13045_v5 = vadd.f32 %v13005_v18, %v12937_v8  ;;  %v7983_v40 = vrot.slane %v13031_v2, 1  ;;  %v13052_v25 = vadd.f32 %v12978_v19, %v12941_v35  ;;  %v7984_v52 = vrot.slane %v13036_v17, 1 }
 0x598   :  { %v13008_v55 = vrot.slane %v8545_v57, %v12958_v3  ;;  %v13058_v36 = vadd.f32 %v12978_v19, %v7557_v30  ;;  %v13062_v8 = vadd.f32 %v12978_v19, %v12945_v43  ;;  %v13065_v34 = vadd.f32 %v12978_v19, %v7563_v50 }
 0x599   :  { %14649 = vst [vmem:[#allocation150_spill] sm:$0xff] %v13052_v25  ;;  %v13068_v29 = vadd.f32 %v13005_v18, %v7561_v58  ;;  %v13072_v35 = vadd.f32 %v13005_v18, %v12949_v6  ;;  %v13077_v30 = vsel %vm7999_vm9, %v7983_v40, 0.0  ;;  %v13082_v43 = vsel %vm7999_vm9, %v7984_v52, 0.0 }
 0x59a   :  { %7925 = vrot.lane.b32.xlu1 %v13012_v63, %s9616_s5  ;;  %7923 = vrot.lane.b32.xlu0 %v13016_v45, %s9616_s5  ;;  %14650 = vst [vmem:[#allocation134_spill] sm:$0xff] %v13058_v36  ;;  %14651 = vst [vmem:[#allocation136_spill] sm:$0xff] %v13062_v8  ;;  %v7873_v6 = vrot.slane %v12971_v39, 7  ;;  %v13882_v58 = vrot.slane %v12975_v54, 7  ;;  %v8185_v50 = vrot.slane %v12962_v62, %v12953_v49  ;;  %v13881_v60 = vrot.slane %v12996_v61, 7 }
 0x59b   :  { %14652 = vst [vmem:[#allocation154_spill] sm:$0xff] %v13065_v34  ;;  %v8084_v31 = vadd.f32 %v12965_v1, %v12925_v9  ;;  %v13103_v57 = vadd.f32 %v12978_v19, %v12935_v51  ;;  %v7876_v62 = vrot.slane %v13016_v45, 7  ;;  %v13883_v9 = vrot.slane %v13012_v63, 7 }
 0x59c   :  { %v13110_v49 = vrot.slane %v8185_v50, %v12958_v3  ;;  %v7878_v51 = vrot.slane %v13028_v0, 7  ;;  %v8556_v59 = vadd.f32 %v8549_v47, %v12899_v32  ;;  %v8557_v40 = vadd.f32 %v12887_v26, %v8549_v47 }
 0x59d   :  { %14653 = vst [vmem:[#allocation25_spill] sm:$0xff] %v13103_v57  ;;  %v8088_v1 = vrot.slane %v8084_v31, 7  ;;  %v8558_v52 = vadd.f32 %v12893_v28, %v8549_v47  ;;  %v8559_v3 = vadd.f32 %v8549_v47, %v12911_v33  ;;  %v8560_v50 = vadd.f32 %v8549_v47, %v12923_v20 }
 0x59e   :  { %7929 = vrot.lane.b32.xlu1 %v13024_v48, %s9616_s5  ;;  %7927 = vrot.lane.b32.xlu0 %v13028_v0, %s9616_s5  ;;  %v8562_v31 = vadd.f32 %v12917_v38, %v8549_v47  ;;  %v8563_v32 = vadd.f32 %v13008_v55, %v12939_v23 }
 0x59f   :  { %v8586_v26 = vrot.slane %v8558_v52, 1  ;;  %v8587_v28 = vrot.slane %v8559_v3, 1  ;;  %v8588_v33 = vrot.slane %v8560_v50, 1  ;;  %v8565_v3 = vadd.f32 %v12933_v24, %v13008_v55 }
 0x5a0   :  { %v8566_v50 = vadd.f32 %v13008_v55, %v12947_v41  ;;  %v13179_v24 = vadd.f32 %v13110_v49, %v12891_v21 }
 0x5a1   :  { %v13140_v38 = vsel %vm7999_vm9, %v8586_v26, 0.0  ;;  %v13143_v23 = vsel %vm7999_vm9, %v8587_v28, 0.0  ;;  %v8593_v28 = vrot.slane %v8565_v3, 1  ;;  %v13217_v3 = vadd.f32 %v13110_v49, %v12921_v42 }
 0x5a2   :  { %7933 = vrot.lane.b32.xlu1 %v13041_v56, %s9616_s5  ;;  %7931 = vrot.lane.b32.xlu0 %v13045_v5, %s9616_s5  ;;  %v8594_v41 = vrot.slane %v8566_v50, 1  ;;  %v13221_v50 = vadd.f32 %v13110_v49, %v12915_v15  ;;  %v7974_v42 = vrot.slane %v12991_v10, 1  ;;  %v7971_v15 = vrot.slane %v12975_v54, 1 }
 0x5a4   :  { %v13192_v21 = vsel %vm7999_vm9, %v8594_v41, 0.0 }
 0x5a5   :  { %14657 = vst [vmem:[#allocation29_spill] sm:$0xff] %v13192_v21 }
 0x5a6   :  { %7937 = vrot.lane.b32.xlu1 %v13068_v29, %s9616_s5  ;;  %7935 = vrot.lane.b32.xlu0 %v13072_v35, %s9616_s5 }
 0x5aa   :  { %7941 = vrot.lane.b32.xlu1 %v13036_v17, %s9616_s5  ;;  %7939 = vrot.lane.b32.xlu0 %v13031_v2, %s9616_s5 }
 0x5ae   :  { %8092 = vrot.lane.b32.xlu1 %v7873_v6, %s9610_s30  ;;  %8090 = vrot.lane.b32.xlu0 %v13882_v58, %s9610_s30  ;;  %v8585_v58 = vrot.slane %v8557_v40, 1  ;;  %v8591_v40 = vrot.slane %v8563_v32, 1  ;;  %v8568_v32 = vadd.f32 %v12943_v7, %v13008_v55  ;;  %v13187_v7 = vsel %vm7999_vm9, %v8593_v28, 0.0 }
 0x5af   :  { %14656 = vst [vmem:[#allocation156_spill] sm:$0xff] %v13187_v7 }
 0x5b2   :  { %8096 = vrot.lane.b32.xlu1 %v13880_v16, %s9610_s30  ;;  %8094 = vrot.lane.b32.xlu0 %v13881_v60, %s9610_s30  ;;  %v8561_v16 = vadd.f32 %v12905_v27, %v8549_v47  ;;  %v8584_v60 = vrot.slane %v8556_v59, 1  ;;  %v8590_v59 = vrot.slane %v8562_v31, 1  ;;  %v13146_v47 = vsel %vm7999_vm9, %v8588_v33, 0.0 }
 0x5b3   :  { %v8569_v31 = vadd.f32 %v12951_v22, %v13008_v55 }
 0x5b4   :  { %v8589_v20 = vrot.slane %v8561_v16, 1  ;;  %v13134_v27 = vsel %vm7999_vm9, %v8584_v60, 0.0  ;;  %v13153_v16 = vsel %vm7999_vm9, %v8590_v59, 0.0  ;;  %v8564_v60 = vadd.f32 %v12927_v46, %v13008_v55 }
 0x5b5   :  { %v13175_v46 = vadd.f32 %v13110_v49, %v12897_v13 }
 0x5b6   :  { %8100 = vrot.lane.b32.xlu1 %v13883_v9, %s9610_s30  ;;  %8098 = vrot.lane.b32.xlu0 %v7876_v62, %s9610_s30  ;;  %v13137_v9 = vsel %vm7999_vm9, %v8585_v58, 0.0  ;;  %v13149_v52 = vsel %vm7999_vm9, %v8589_v20, 0.0  ;;  %v13156_v58 = vsel %vm7999_vm9, %v8591_v40, 0.0  ;;  %v8592_v26 = vrot.slane %v8564_v60, 1 }
 0x5b7   :  { %14654 = vst [vmem:[#allocation31_spill] sm:$0xff] %v13156_v58  ;;  %v8597_v20 = vrot.slane %v8569_v31, 1  ;;  %v13205_v40 = vadd.f32 %v13110_v49, %v12909_v14  ;;  %v13209_v60 = vadd.f32 %v13110_v49, %v12903_v44  ;;  %v7972_v14 = vrot.slane %v12971_v39, 1 }
 0x5b8   :  { %v13184_v22 = vsel %vm7999_vm9, %v8592_v26, 0.0  ;;  %v8003_v31 = vsel %vm7999_vm9, %v7974_v42, 0.0  ;;  %v8000_v26 = vsel %vm7999_vm9, %v7971_v15, 0.0  ;;  %v13884_v15 = vrot.slane %v13031_v2, 7 }
 0x5b9   :  { %14655 = vst [vmem:[#allocation33_spill] sm:$0xff] %v13184_v22  ;;  %v8001_v44 = vsel %vm7999_vm9, %v7972_v14, 0.0  ;;  %v7977_v14 = vrot.slane %v13028_v0, 1  ;;  %v13332_v39 = vadd.f32 %v13110_v49, %v12889_v37  ;;  %v14665_v0 = vrot.slane %v13041_v56, 7 }
 0x5ba   :  { %8104 = vrot.lane.b32.xlu1 %v8088_v1, %s9610_s30  ;;  %8102 = vrot.lane.b32.xlu0 %v7878_v51, %s9610_s30  ;;  %v8567_v1 = vadd.f32 %v13008_v55, %v12955_v11  ;;  %v8596_v11 = vrot.slane %v8568_v32, 1  ;;  %v13198_v55 = vsel %vm7999_vm9, %v8597_v20, 0.0  ;;  %v7976_v32 = vrot.slane %v13012_v63, 1 }
 0x5bb   :  { %14659 = vst [vmem:[#allocation119_spill] sm:$0xff] %v13198_v55  ;;  %v13888_v20 = vrot.slane %v13045_v5, 7  ;;  %v8006_v42 = vsel %vm7999_vm9, %v7977_v14, 0.0  ;;  %v8380_v14 = vrot.slane %v13175_v46, 7  ;;  %v8251_v37 = vrot.slane %v13332_v39, 1 }
 0x5bc   :  { %v8595_v33 = vrot.slane %v8567_v1, 1  ;;  %v13201_v59 = vsel %vm7999_vm9, %v8596_v11, 0.0  ;;  %v13231_v1 = vadd.f32 %v13110_v49, %v12929_v4  ;;  %v7973_v4 = vrot.slane %v12996_v61, 1 }
 0x5bd   :  { %14660 = vst [vmem:[#allocation145_spill] sm:$0xff] %v13201_v59  ;;  %v8005_v28 = vsel %vm7999_vm9, %v7976_v32, 0.0  ;;  %v8379_v32 = vrot.slane %v13179_v24, 7 }
 0x5be   :  { %8467 = vrot.lane.b32.xlu1 %v13175_v46, %s9610_s30  ;;  %8465 = vrot.lane.b32.xlu0 %v13179_v24, %s9610_s30  ;;  %v13195_v13 = vsel %vm7999_vm9, %v8595_v33, 0.0  ;;  %v8002_v41 = vsel %vm7999_vm9, %v7973_v4, 0.0  ;;  %v7975_v33 = vrot.slane %v13016_v45, 1  ;;  %v8381_v4 = vrot.slane %v13209_v60, 7 }
 0x5bf   :  { %14658 = vst [vmem:[#allocation42_spill] sm:$0xff] %v13195_v13 }
 0x5c0   :  { %v8004_v11 = vsel %vm7999_vm9, %v7975_v33, 0.0  ;;  %v13885_v33 = vrot.slane %v13036_v17, 7 }
 0x5c2   :  { %8471 = vrot.lane.b32.xlu1 %v13205_v40, %s9610_s30  ;;  %8469 = vrot.lane.b32.xlu0 %v13209_v60, %s9610_s30 }
 0x5c6   :  { %8475 = vrot.lane.b32.xlu1 %v13217_v3, %s9610_s30  ;;  %8473 = vrot.lane.b32.xlu0 %v13221_v50, %s9610_s30 }
 0x5ca   :  { %8030 = vrot.lane.b32.xlu1 %v8001_v44, %s9615_s1  ;;  %8477 = vrot.lane.b32.xlu0 %v13231_v1, %s9610_s30  ;;  %v13886_v44 = vrot.slane %v13072_v35, 7 }
 0x5ce   :  { %8034 = vrot.lane.b32.xlu1 %v8003_v31, %s9615_s1  ;;  %8028 = vrot.lane.b32.xlu0 %v8000_v26, %s9615_s1  ;;  %v7879_v31 = vrot.slane %v13024_v48, 7  ;;  %v13889_v26 = vrot.slane %v13041_v56, 7 }
 0x5d0   :  { %v7908_v45 = vsel %vm7900_vm10, 0.0, %v7879_v31 }
 0x5d2   :  { %8038 = vrot.lane.b32.xlu1 %v8005_v28, %s9615_s1  ;;  %8032 = vrot.lane.b32.xlu0 %v8002_v41, %s9615_s1  ;;  %v13887_v28 = vrot.slane %v13068_v29, 7  ;;  %v8383_v41 = vrot.slane %v13221_v50, 7 }
 0x5d6   :  { %8108 = vrot.lane.b32.xlu1 %v13888_v20, %s9610_s30  ;;  %8036 = vrot.lane.b32.xlu0 %v8004_v11, %s9615_s1  ;;  %v8385_v11 = vrot.slane %v13231_v1, 7 }
 0x5da   :  { %8112 = vrot.lane.b32.xlu1 %v13886_v44, %s9610_s30  ;;  %8040 = vrot.lane.b32.xlu0 %v8006_v42, %s9615_s1  ;;  %v8382_v42 = vrot.slane %v13205_v40, 7 }
 0x5de   :  { %8116 = vrot.lane.b32.xlu1 %v13884_v15, %s9610_s30  ;;  %8106 = vrot.lane.b32.xlu0 %v7879_v31, %s9610_s30 }
 0x5e2   :  { %8393 = vrot.lane.b32.xlu1 %v8379_v32, %s9615_s1  ;;  %8110 = vrot.lane.b32.xlu0 %v13889_v26, %s9610_s30  ;;  %v8384_v32 = vrot.slane %v13217_v3, 7 }
 0x5e6   :  { %8397 = vrot.lane.b32.xlu1 %v8381_v4, %s9615_s1  ;;  %8114 = vrot.lane.b32.xlu0 %v13887_v28, %s9610_s30  ;;  %v7978_v4 = vrot.slane %v13024_v48, 1  ;;  %v8255_v48 = vrot.slane %v13205_v40, 1 }
 0x5ea   :  { %8401 = vrot.lane.b32.xlu1 %v8383_v41, %s9615_s1  ;;  %8118 = vrot.lane.b32.xlu0 %v13885_v33, %s9610_s30  ;;  %v8007_v41 = vsel %vm7999_vm9, %v7978_v4, 0.0  ;;  %v7981_v4 = vrot.slane %v13072_v35, 1 }
 0x5ee   :  { %8405 = vrot.lane.b32.xlu1 %v8385_v11, %s9615_s1  ;;  %8395 = vrot.lane.b32.xlu0 %v8380_v14, %s9615_s1  ;;  %v7980_v11 = vrot.slane %v13041_v56, 1  ;;  %v7979_v14 = vrot.slane %v13045_v5, 1  ;;  %v8257_v56 = vrot.slane %v13217_v3, 1 }
 0x5f0   :  { %v8008_v15 = vsel %vm7999_vm9, %v7979_v14, 0.0 }
 0x5f2   :  { %8479 = vrot.lane.b32.xlu1 %v13052_v25, %s9610_s30  ;;  %8399 = vrot.lane.b32.xlu0 %v8382_v42, %s9615_s1  ;;  %v8009_v42 = vsel %vm7999_vm9, %v7980_v11, 0.0  ;;  %v14661_v11 = vrot.slane %v12975_v54, 7 }
 0x5f4   :  { %v7901_v20 = vsel %vm7900_vm10, 0.0, %v14661_v11 }
 0x5f6   :  { %8483 = vrot.lane.b32.xlu1 %v13058_v36, %s9610_s30  ;;  %8403 = vrot.lane.b32.xlu0 %v8384_v32, %s9615_s1  ;;  %v7982_v32 = vrot.slane %v13068_v29, 1 }
 0x5f8   :  { %v8011_v14 = vsel %vm7999_vm9, %v7982_v32, 0.0 }
 0x5fa   :  { %8487 = vrot.lane.b32.xlu1 %v12987_v12, %s9610_s30  ;;  %8481 = vrot.lane.b32.xlu0 %v13062_v8, %s9610_s30 }
 0x5fe   :  { %8042 = vrot.lane.b32.xlu1 %v8007_v41, %s9615_s1  ;;  %8485 = vrot.lane.b32.xlu0 %v13065_v34, %s9610_s30  ;;  %v7902_v41 = vsel %vm7900_vm10, 0.0, %v7873_v6  ;;  %v14662_v6 = vrot.slane %v12991_v10, 7  ;;  %v14664_v10 = vrot.slane %v13012_v63, 7  ;;  %v8253_v63 = vrot.slane %v13175_v46, 1 }
 0x600   :  { %v7904_v54 = vsel %vm7900_vm10, 0.0, %v14662_v6  ;;  %v7906_v49 = vsel %vm7900_vm10, 0.0, %v14664_v10  ;;  %v8285_v10 = vsel %vm7999_vm9, %v8253_v63, 0.0  ;;  %v8287_v63 = vsel %vm7999_vm9, %v8255_v48, 0.0 }
 0x602   :  { %8046 = vrot.lane.b32.xlu1 %v8009_v42, %s9615_s1  ;;  %8044 = vrot.lane.b32.xlu0 %v8008_v15, %s9615_s1  ;;  %v8010_v42 = vsel %vm7999_vm9, %v7981_v4, 0.0  ;;  %v8252_v4 = vrot.slane %v13179_v24, 1 }
 0x604   :  { %v7918_v33 = vpop.permute.xlu1 %7917  ;;  %v7916_v28 = vpop.permute.xlu0 %7915  ;;  %v8284_v6 = vsel %vm7999_vm9, %v8252_v4, 0.0  ;;  %v8256_v4 = vrot.slane %v13221_v50, 1 }
 0x605   :  { %v13320_v44 = vadd.f32 %v7918_v33, %v7902_v41  ;;  %v13326_v26 = vadd.f32 %v7916_v28, %v7901_v20  ;;  %v14663_v20 = vrot.slane %v12996_v61, 7 }
 0x606   :  { %8050 = vrot.lane.b32.xlu1 %v8011_v14, %s9615_s1  ;;  %8048 = vrot.lane.b32.xlu0 %v8010_v42, %s9615_s1  ;;  %v7905_v14 = vsel %vm7900_vm10, 0.0, %v7876_v62  ;;  %v7907_v62 = vsel %vm7900_vm10, 0.0, %v7878_v51  ;;  %v7910_v51 = vsel %vm7900_vm10, 0.0, %v14665_v0  ;;  %v8289_v0 = vsel %vm7999_vm9, %v8257_v56, 0.0 }
 0x607   :  { %v7903_v28 = vsel %vm7900_vm10, 0.0, %v14663_v20 }
 0x608   :  { %v7922_v15 = vpop.permute.xlu1 %7921  ;;  %v7920_v32 = vpop.permute.xlu0 %7919 }
 0x609   :  { %v13338_v33 = vadd.f32 %v7922_v15, %v7904_v54  ;;  %v13344_v41 = vadd.f32 %v7920_v32, %v7903_v28 }
 0x60a   :  { %8054 = vrot.lane.b32.xlu1 %v13082_v43, %s9615_s1  ;;  %8052 = vrot.lane.b32.xlu0 %v13077_v30, %s9615_s1  ;;  %v8254_v43 = vrot.slane %v13209_v60, 1  ;;  %v8283_v30 = vsel %vm7999_vm9, %v8251_v37, 0.0 }
 0x60c   :  { %v7926_v61 = vpop.permute.xlu1 %7925  ;;  %v7924_v42 = vpop.permute.xlu0 %7923  ;;  %v8286_v32 = vsel %vm7999_vm9, %v8254_v43, 0.0  ;;  %v8258_v43 = vrot.slane %v13231_v1, 1 }
 0x60d   :  { %v13354_v11 = vadd.f32 %v7926_v61, %v7906_v49  ;;  %v13361_v54 = vadd.f32 %v7924_v42, %v7905_v14  ;;  %v14666_v61 = vrot.slane %v13045_v5, 7  ;;  %v14667_v5 = vrot.slane %v13068_v29, 7 }
 0x60e   :  { %8317 = vrot.lane.b32.xlu1 %v8284_v6, %s9616_s5  ;;  %8315 = vrot.lane.b32.xlu0 %v8283_v30, %s9616_s5  ;;  %v8288_v6 = vsel %vm7999_vm9, %v8256_v4, 0.0  ;;  %v14669_v29 = vrot.slane %v13036_v17, 7 }
 0x60f   :  { %v7909_v14 = vsel %vm7900_vm10, 0.0, %v14666_v61  ;;  %v14670_v61 = vrot.slane %v13031_v2, 7  ;;  %v8389_v2 = vrot.slane %v13065_v34, 7 }
 0x610   :  { %v7930_v15 = vpop.permute.xlu1 %7929  ;;  %v7928_v20 = vpop.permute.xlu0 %7927 }
 0x611   :  { %v13373_v28 = vadd.f32 %v7930_v15, %v7908_v45  ;;  %v13377_v37 = vadd.f32 %v7928_v20, %v7907_v62  ;;  %v7912_v15 = vsel %vm7900_vm10, 0.0, %v14667_v5  ;;  %v14668_v62 = vrot.slane %v13072_v35, 7 }
 0x612   :  { %8321 = vrot.lane.b32.xlu1 %v8286_v32, %s9616_s5  ;;  %8319 = vrot.lane.b32.xlu0 %v8285_v10, %s9616_s5  ;;  %v8290_v10 = vsel %vm7999_vm9, %v8258_v43, 0.0 }
 0x613   :  { %v7911_v20 = vsel %vm7900_vm10, 0.0, %v14668_v62  ;;  %v8388_v62 = vrot.slane %v13058_v36, 7 }
 0x614   :  { %v7934_v31 = vpop.permute.xlu1 %7933  ;;  %v7932_v49 = vpop.permute.xlu0 %7931 }
 0x615   :  { %v13389_v42 = vadd.f32 %v7934_v31, %v7910_v51  ;;  %v13393_v30 = vadd.f32 %v7932_v49, %v7909_v14  ;;  %v7914_v51 = vsel %vm7900_vm10, 0.0, %v14669_v29  ;;  %v8387_v31 = vrot.slane %v13062_v8, 7  ;;  %v7573_v49 = vpop.f32.mrf.mxu0 }
 0x616   :  { %8325 = vrot.lane.b32.xlu1 %v8288_v6, %s9616_s5  ;;  %8323 = vrot.lane.b32.xlu0 %v8287_v63, %s9616_s5  ;;  %v7913_v14 = vsel %vm7900_vm10, 0.0, %v14670_v61  ;;  %v8386_v63 = vrot.slane %v13052_v25, 7  ;;  %v13428_v17 = vadd.f32 %v12978_v19, %v7573_v49  ;;  %v8390_v29 = vrot.slane %v12987_v12, 7 }
 0x617   :  { %v8260_v61 = vrot.slane %v13052_v25, 1 }
 0x618   :  { %v7938_v45 = vpop.permute.xlu1 %7937  ;;  %v7936_v32 = vpop.permute.xlu0 %7935  ;;  %14672 = vst [vmem:[#allocation45_spill] sm:$0xff] %v13428_v17 }
 0x619   :  { %v13405_v4 = vadd.f32 %v7938_v45, %v7912_v15  ;;  %v13408_v48 = vadd.f32 %v7936_v32, %v7911_v20  ;;  %v7575_v15 = vpop.f32.mrf.mxu0 }
 0x61a   :  { %8329 = vrot.lane.b32.xlu1 %v8290_v10, %s9616_s5  ;;  %8327 = vrot.lane.b32.xlu0 %v8289_v0, %s9616_s5  ;;  %v8085_v20 = vadd.f32 %v13005_v18, %v7575_v15  ;;  %v8391_v10 = vrot.slane %v13428_v17, 7  ;;  %v8262_v15 = vrot.slane %v13058_v36, 1 }
 0x61c   :  { %v7942_v35 = vpop.permute.xlu1 %7941  ;;  %v7940_v6 = vpop.permute.xlu0 %7939 }
 0x61d   :  { %v13420_v43 = vadd.f32 %v7942_v35, %v7914_v51  ;;  %v13423_v56 = vadd.f32 %v7940_v6, %v7913_v14  ;;  %v8259_v51 = vrot.slane %v13103_v57, 1  ;;  %v8089_v35 = vrot.slane %v8085_v20, 7 }
 0x61e   :  { %8409 = vrot.lane.b32.xlu1 %v8387_v31, %s9615_s1  ;;  %8407 = vrot.lane.b32.xlu0 %v8386_v63, %s9615_s1  ;;  %v8261_v14 = vrot.slane %v13062_v8, 1 }
 0x61f   :  { %14671 = vst [vmem:[#allocation82_spill] sm:$0xff] %v13420_v43  ;;  %v8291_v18 = vsel %vm7999_vm9, %v8259_v51, 0.0 }
 0x620   :  { %v13430_v5 = vpop.permute.xlu1 %8092  ;;  %v13433_v45 = vpop.permute.xlu0 %8090  ;;  %v8293_v20 = vsel %vm7999_vm9, %v8261_v14, 0.0  ;;  %v8265_v14 = vrot.slane %v13428_v17, 1 }
 0x622   :  { %8413 = vrot.lane.b32.xlu1 %v8389_v2, %s9615_s1  ;;  %8411 = vrot.lane.b32.xlu0 %v8388_v62, %s9615_s1  ;;  %v8292_v2 = vsel %vm7999_vm9, %v8260_v61, 0.0  ;;  %v7577_v62 = vpop.f32.mrf.mxu0  ;;  %v8294_v61 = vsel %vm7999_vm9, %v8262_v15, 0.0  ;;  %v8297_v15 = vsel %vm7999_vm9, %v8265_v14, 0.0 }
 0x623   :  { %v13462_v51 = vadd.f32 %v12978_v19, %v7577_v62 }
 0x624   :  { %v13439_v32 = vpop.permute.xlu1 %8096  ;;  %v8095_v0 = vpop.permute.xlu0 %8094 }
 0x625   :  { %14673 = vst [vmem:[#allocation161_spill] sm:$0xff] %v13462_v51  ;;  %v8266_v62 = vrot.slane %v13462_v51, 1  ;;  %v8392_v55 = vrot.slane %v13462_v51, 7  ;;  %v8140_v14 = vsel %vm7900_vm10, 0.0, %v8095_v0 }
 0x626   :  { %8417 = vrot.lane.b32.xlu1 %v8391_v10, %s9615_s1  ;;  %8415 = vrot.lane.b32.xlu0 %v8390_v29, %s9615_s1  ;;  %v8263_v10 = vrot.slane %v13065_v34, 1 }
 0x628   :  { %v13446_v31 = vpop.permute.xlu1 %8100  ;;  %v8099_v49 = vpop.permute.xlu0 %8098 }
 0x62a   :  { %8120 = vrot.lane.b32.xlu1 %v8089_v35, %s9610_s30  ;;  %8331 = vrot.lane.b32.xlu0 %v8291_v18, %s9616_s5  ;;  %v8264_v18 = vrot.slane %v12987_v12, 1 }
 0x62c   :  { %v8105_v6 = vpop.permute.xlu1 %8104  ;;  %v8103_v63 = vpop.permute.xlu0 %8102  ;;  %v8296_v19 = vsel %vm7999_vm9, %v8264_v18, 0.0 }
 0x62e   :  { %8333 = vrot.lane.b32.xlu1 %v8292_v2, %s9616_s5  ;;  %8335 = vrot.lane.b32.xlu0 %v8293_v20, %s9616_s5  ;;  %v8295_v2 = vsel %vm7999_vm9, %v8263_v10, 0.0 }
 0x630   :  { %v13459_v29 = vpop.permute.xlu1 %8467  ;;  %v13464_v35 = vpop.permute.xlu0 %8465 }
 0x632   :  { %8337 = vrot.lane.b32.xlu1 %v8294_v61, %s9616_s5  ;;  %8339 = vrot.lane.b32.xlu0 %v8295_v2, %s9616_s5  ;;  %v8298_v2 = vsel %vm7999_vm9, %v8266_v62, 0.0 }
 0x634   :  { %v13472_v20 = vpop.permute.xlu1 %8471  ;;  %v13474_v59 = vpop.permute.xlu0 %8469 }
 0x636   :  { %8341 = vrot.lane.b32.xlu1 %v8296_v19, %s9616_s5  ;;  %8343 = vrot.lane.b32.xlu0 %v8297_v15, %s9616_s5 }
 0x638   :  { %v13481_v61 = vpop.permute.xlu1 %8475  ;;  %v13483_v10 = vpop.permute.xlu0 %8473 }
 0x63a   :  { %8345 = vrot.lane.b32.xlu1 %v8298_v2, %s9616_s5  ;;  %8419 = vrot.lane.b32.xlu0 %v8392_v55, %s9615_s1  ;;  %v8142_v55 = vsel %vm7900_vm10, 0.0, %v8099_v49 }
 0x63c   :  { %v8031_v18 = vpop.permute.xlu1 %8030  ;;  %v13490_v19 = vpop.permute.xlu0 %8477 }
 0x63d   :  { %v8071_v13 = vadd.f32 %v8031_v18, %v13320_v44  ;;  %v8139_v18 = vsel %vm7900_vm10, 0.0, %v13430_v5 }
 0x63e   :  { %8491 = vrot.lane.b32.xlu1 %v13462_v51, %s9610_s30  ;;  %8489 = vrot.lane.b32.xlu0 %v13428_v17, %s9610_s30  ;;  %v8144_v17 = vsel %vm7900_vm10, 0.0, %v8103_v63  ;;  %s8686_s30 = sshll.u32 %s9620_s6, 4  ;;  %s8687_s30 = int_to_ptr.vmem [resolvable:$true] %s8686_s30 }
 0x63f   :  { %v13495_v15 = vadd.f32 %v8140_v14, %v8071_v13  ;;  %s9573_s1 = scalar_lea.vmem %s8687_s30, 2048  ;;  %p9578_p8 = scmp.lt.s32.totalorder %s8687_s30, %s8687_s30 }
 0x640   :  { %v8035_v62 = vpop.permute.xlu1 %8034  ;;  %v8029_v21 = vpop.permute.xlu0 %8028  ;;  %p9574_p7 = scmp.ne.s32.totalorder %s8687_s30, %s9573_s1  ;;  %p9579_p9 = scmp.lt.s32.totalorder %s9573_s1, %s9573_s1 }
 0x641   :  { %v8073_v2 = vadd.f32 %v8035_v62, %v13338_v33  ;;  %v8070_v44 = vadd.f32 %v8029_v21, %v13326_v26  ;;  %v8141_v33 = vsel %vm7900_vm10, 0.0, %v13439_v32 }
 0x642   :  { %p9580_p10 = por %p9579_p9, %p9578_p8 }
 0x643   :  { %v13504_v0 = vadd.f32 %v8142_v55, %v8073_v2  ;;  %v8155_v12 = vadd.f32 %v8139_v18, %v8070_v44  ;;  %v8143_v2 = vsel %vm7900_vm10, 0.0, %v13446_v31  ;;  %v8145_v55 = vsel %vm7900_vm10, 0.0, %v8105_v6 }
 0x644   :  { %v8039_v51 = vpop.permute.xlu1 %8038  ;;  %v8033_v14 = vpop.permute.xlu0 %8032  ;;  %p9581_p11 = pnand %p9580_p10, %p9574_p7 }
 0x645   :  { %v8075_v13 = vadd.f32 %v8039_v51, %v13354_v11  ;;  %v8072_v7 = vadd.f32 %v8033_v14, %v13344_v41 }
 0x647   :  { %v13511_v49 = vadd.f32 %v8144_v17, %v8075_v13  ;;  %v13513_v21 = vadd.f32 %v8141_v33, %v8072_v7 }
 0x648   :  { %v8109_v26 = vpop.permute.xlu1 %8108  ;;  %v8037_v5 = vpop.permute.xlu0 %8036 }
 0x649   :  { %v8074_v62 = vadd.f32 %v8037_v5, %v13361_v54  ;;  %v8147_v34 = vsel %vm7900_vm10, 0.0, %v8109_v26 }
 0x64b   :  { %v13518_v11 = vadd.f32 %v8143_v2, %v8074_v62 }
 0x64c   :  { %v8113_v51 = vpop.permute.xlu1 %8112  ;;  %v8041_v63 = vpop.permute.xlu0 %8040 }
 0x64d   :  { %v8076_v41 = vadd.f32 %v8041_v63, %v13377_v37 }
 0x64f   :  { %v13522_v32 = vadd.f32 %v8145_v55, %v8076_v41 }
 0x650   :  { %v8117_v17 = vpop.permute.xlu1 %8116  ;;  %v13524_v7 = vpop.permute.xlu0 %8106 }
 0x654   :  { %v8394_v44 = vpop.permute.xlu1 %8393  ;;  %v8111_v18 = vpop.permute.xlu0 %8110 }
 0x658   :  { %v8398_v13 = vpop.permute.xlu1 %8397  ;;  %v8115_v54 = vpop.permute.xlu0 %8114 }
 0x65c   :  { %v13526_v14 = vpop.permute.xlu1 %8401  ;;  %v8119_v31 = vpop.permute.xlu0 %8118 }
 0x660   :  { %v13528_v33 = vpop.permute.xlu1 %8405  ;;  %v8396_v5 = vpop.permute.xlu0 %8395 }
 0x664   :  { %v13530_v62 = vpop.permute.xlu1 %8479  ;;  %v8400_v37 = vpop.permute.xlu0 %8399 }
 0x665   :  { %14674 = vst [vmem:[#allocation135_spill] sm:$0xff] %v13530_v62 }
 0x668   :  { %v13532_v2 = vpop.permute.xlu1 %8483  ;;  %v8404_v6 = vpop.permute.xlu0 %8403 }
 0x669   :  { %14675 = vst [vmem:[#allocation94_spill] sm:$0xff] %v13532_v2  ;;  %v8149_v2 = vsel %vm7900_vm10, 0.0, %v8113_v51 }
 0x66c   :  { %v13534_v63 = vpop.permute.xlu1 %8487  ;;  %v13536_v41 = vpop.permute.xlu0 %8481 }
 0x66d   :  { %14676 = vst [vmem:[#allocation175_spill] sm:$0xff] %v13534_v63  ;;  %14677 = vst [vmem:[#allocation40_spill] sm:$0xff] %v13536_v41  ;;  %v8148_v63 = vsel %vm7900_vm10, 0.0, %v8111_v18 }
 0x670   :  { %v8043_v55 = vpop.permute.xlu1 %8042  ;;  %v13538_v22 = vpop.permute.xlu0 %8485 }
 0x671   :  { %14678 = vst [vmem:[#allocation23_spill] sm:$0xff] %v13538_v22  ;;  %v8077_v43 = vadd.f32 %v8043_v55, %v13373_v28 }
 0x673   :  { %v13542_v58 = vadd.f32 %v8147_v34, %v8077_v43  ;;  %v8151_v34 = vsel %vm7900_vm10, 0.0, %v8117_v17 }
 0x674   :  { %v8047_v36 = vpop.permute.xlu1 %8046  ;;  %v8045_v8 = vpop.permute.xlu0 %8044 }
 0x675   :  { %v8079_v62 = vadd.f32 %v8047_v36, %v13389_v42  ;;  %v8078_v25 = vadd.f32 %v8045_v8, %v13393_v30  ;;  %v8150_v36 = vsel %vm7900_vm10, 0.0, %v8115_v54 }
 0x677   :  { %v13548_v41 = vadd.f32 %v8149_v2, %v8079_v62  ;;  %v13550_v57 = vadd.f32 %v8148_v63, %v8078_v25  ;;  %v8138_v25 = vsel %vm7900_vm10, 0.0, %v13433_v45  ;;  %v8436_v63 = vsel %vm7900_vm10, 0.0, %v8396_v5 }
 0x678   :  { %v8051_v22 = vpop.permute.xlu1 %8050  ;;  %v8049_v28 = vpop.permute.xlu0 %8048 }
 0x679   :  { %v8081_v26 = vadd.f32 %v8051_v22, %v13405_v4  ;;  %v8080_v43 = vadd.f32 %v8049_v28, %v13408_v48  ;;  %v8152_v22 = vsel %vm7900_vm10, 0.0, %v8119_v31  ;;  %v8220_v4 = vadd.f32 %v13179_v24, %v8155_v12 }
 0x67a   :  { %v8219_v48 = vadd.f32 %v13332_v39, %v8138_v25  ;;  %v8435_v28 = vsel %vm7900_vm10, 0.0, %v8394_v44  ;;  %v8221_v12 = vadd.f32 %v13175_v46, %v13495_v15  ;;  %v8437_v25 = vsel %vm7900_vm10, 0.0, %v8398_v13 }
 0x67b   :  { %v13556_v42 = vadd.f32 %v8151_v34, %v8081_v26  ;;  %v13558_v51 = vadd.f32 %v8150_v36, %v8080_v43  ;;  %v8438_v43 = vsel %vm7900_vm10, 0.0, %v8400_v37  ;;  %v13578_v36 = vld [vmem:[#allocation13] ss:$0 sm:$0xff]  ;;  %v8224_v46 = vadd.f32 %v13221_v50, %v13518_v11 }
 0x67c   :  { %v13560_v8 = vpop.permute.xlu1 %8054  ;;  %v8053_v30 = vpop.permute.xlu0 %8052  ;;  %v8440_v13 = vsel %vm7900_vm10, 0.0, %v8404_v6 }
 0x67d   :  { %v8082_v18 = vadd.f32 %v8053_v30, %v13423_v56  ;;  %v8222_v56 = vadd.f32 %v13209_v60, %v13513_v21  ;;  %v8223_v30 = vadd.f32 %v13205_v40, %v13504_v0 }
 0x67f   :  { %v13568_v17 = vadd.f32 %v8152_v22, %v8082_v18 }
 0x680   :  { %v8318_v54 = vpop.permute.xlu1 %8317  ;;  %v8316_v62 = vpop.permute.xlu0 %8315 }
 0x681   :  { %v8364_v2 = vadd.f32 %v8318_v54, %v8220_v4  ;;  %v8363_v55 = vadd.f32 %v8316_v62, %v8219_v48 }
 0x683   :  { %v8450_v45 = vadd.f32 %v8436_v63, %v8364_v2  ;;  %v8449_v26 = vadd.f32 %v8435_v28, %v8363_v55 }
 0x684   :  { %v8322_v24 = vpop.permute.xlu1 %8321  ;;  %v8320_v31 = vpop.permute.xlu0 %8319 }
 0x685   :  { %v8508_v39 = vadd.f32 %v13459_v29, %v8450_v45  ;;  %v8366_v34 = vadd.f32 %v8322_v24, %v8222_v56  ;;  %v8507_v5 = vadd.f32 %v13464_v35, %v8449_v26  ;;  %v8365_v44 = vadd.f32 %v8320_v31, %v8221_v12 }
 0x686   :  { %v8146_v31 = vsel %vm7900_vm10, 0.0, %v13524_v7 }
 0x687   :  { %v8627_v60 = vadd.f32 %v13137_v9, %v8508_v39  ;;  %v8452_v21 = vadd.f32 %v8438_v43, %v8366_v34  ;;  %v8626_v15 = vadd.f32 %v13134_v27, %v8507_v5  ;;  %v8451_v29 = vadd.f32 %v8437_v25, %v8365_v44 }
 0x688   :  { %v8326_v37 = vpop.permute.xlu1 %8325  ;;  %v8324_v22 = vpop.permute.xlu0 %8323  ;;  %v8439_v27 = vsel %vm7900_vm10, 0.0, %v13526_v14 }
 0x689   :  { %v8650_v18 = vadd.f32 %v13578_v36, %v8627_v60  ;;  %v8510_v35 = vadd.f32 %v13472_v20, %v8452_v21  ;;  %v8368_v4 = vadd.f32 %v8326_v37, %v8224_v46  ;;  %v8649_v9 = vadd.f32 %v13578_v36, %v8626_v15 }
 0x68a   :  { %v8509_v48 = vadd.f32 %v13474_v59, %v8451_v29  ;;  %v8367_v50 = vadd.f32 %v8324_v22, %v8223_v30  ;;  %v8226_v20 = vadd.f32 %v13231_v1, %v13522_v32  ;;  %v8225_v59 = vadd.f32 %v13217_v3, %v13511_v49  ;;  %v14681_v29 = vld [vmem:[#allocation136_spill] sm:$0xff] }
 0x68b   :  { %8666 = vst.msk [vmem:[#allocation14 + $0x8] sm:$0xff] %vm7186_vm5, %v8650_v18  ;;  %v8629_v40 = vadd.f32 %v13143_v23, %v8510_v35  ;;  %v8454_v0 = vadd.f32 %v8440_v13, %v8368_v4  ;;  %8665 = vst.msk [vmem:[#allocation14] sm:$0xff] %vm7186_vm5, %v8649_v9  ;;  %v8441_v32 = vsel %vm7900_vm10, 0.0, %v13528_v33  ;;  %v8229_v30 = vadd.f32 %v14681_v29, %v13550_v57  ;;  %v14682_v35 = vld [vmem:[#allocation135_spill] sm:$0xff]  ;;  %v14685_v57 = vld [vmem:[#allocation154_spill] sm:$0xff] }
 0x68c   :  { %v8628_v11 = vadd.f32 %v13140_v38, %v8509_v48  ;;  %v8453_v6 = vadd.f32 %v8439_v27, %v8367_v50  ;;  %v8330_v54 = vpop.permute.xlu1 %8329  ;;  %v8328_v2 = vpop.permute.xlu0 %8327  ;;  %v14683_v48 = vld [vmem:[#allocation134_spill] sm:$0xff]  ;;  %v14684_v27 = vld [vmem:[#allocation31_spill] sm:$0xff] }
 0x68d   :  { %v8652_v62 = vadd.f32 %v13578_v36, %v8629_v40  ;;  %v8512_v14 = vadd.f32 %v13481_v61, %v8454_v0  ;;  %v8370_v63 = vadd.f32 %v8330_v54, %v8226_v20  ;;  %v8369_v1 = vadd.f32 %v8328_v2, %v8225_v59  ;;  %v14687_v54 = vld [vmem:[#allocation40_spill] sm:$0xff] }
 0x68e   :  { %v8651_v23 = vadd.f32 %v13578_v36, %v8628_v11  ;;  %v8511_v55 = vadd.f32 %v13483_v10, %v8453_v6  ;;  %v8230_v50 = vadd.f32 %v14683_v48, %v13548_v41  ;;  %v8231_v11 = vadd.f32 %v14685_v57, %v13558_v51  ;;  %v14686_v6 = vld [vmem:[#allocation82_spill] sm:$0xff] }
 0x68f   :  { %8668 = vst.msk [vmem:[#allocation14 + $0x18] sm:$0xff] %vm7186_vm5, %v8652_v62  ;;  %v8631_v38 = vadd.f32 %v13149_v52, %v8512_v14  ;;  %v8514_v3 = vadd.f32 %v8370_v63, %v14482_v53  ;;  %v8455_v49 = vadd.f32 %v8441_v32, %v8369_v1  ;;  %v8083_v59 = vadd.f32 %v13560_v8, %v14686_v6  ;;  %v14690_v8 = vld [vmem:[#allocation156_spill] sm:$0xff] }
 0x690   :  { %8667 = vst.msk [vmem:[#allocation14 + $0x10] sm:$0xff] %vm7186_vm5, %v8651_v23  ;;  %v8630_v61 = vadd.f32 %v13146_v47, %v8511_v55  ;;  %v8410_v28 = vpop.permute.xlu1 %8409  ;;  %v8408_v56 = vpop.permute.xlu0 %8407  ;;  %v14688_v23 = vld [vmem:[#allocation94_spill] sm:$0xff] }
 0x691   :  { %v8654_v45 = vadd.f32 %v13578_v36, %v8631_v38  ;;  %v8656_v10 = vadd.f32 %v13578_v36, %v8514_v3  ;;  %v8513_v33 = vadd.f32 %v13490_v19, %v8455_v49  ;;  %v14679_v19 = vld [vmem:[#allocation25_spill] sm:$0xff]  ;;  %v8442_v60 = vsel %vm7900_vm10, 0.0, %v8408_v56  ;;  %v14691_v56 = vld [vmem:[#allocation23_spill] sm:$0xff] }
 0x692   :  { %v8653_v26 = vadd.f32 %v13578_v36, %v8630_v61  ;;  %v8227_v43 = vadd.f32 %v14679_v19, %v8146_v31  ;;  %v8443_v7 = vsel %vm7900_vm10, 0.0, %v8410_v28  ;;  %v14689_v3 = vld [vmem:[#allocation33_spill] sm:$0xff] }
 0x693   :  { %8670 = vst.msk [vmem:[#allocation14 + $0x28] sm:$0xff] %vm7186_vm5, %v8654_v45  ;;  %8672 = vst.msk [vmem:[#allocation14 + $0x38] sm:$0xff] %vm7186_vm5, %v8656_v10  ;;  %v8632_v52 = vadd.f32 %v13153_v16, %v8513_v33  ;;  %v14680_v16 = vld [vmem:[#allocation150_spill] sm:$0xff] }
 0x694   :  { %8669 = vst.msk [vmem:[#allocation14 + $0x20] sm:$0xff] %vm7186_vm5, %v8653_v26  ;;  %v8414_v47 = vpop.permute.xlu1 %8413  ;;  %v8412_v12 = vpop.permute.xlu0 %8411  ;;  %v8228_v21 = vadd.f32 %v14680_v16, %v13542_v58 }
 0x695   :  { %v8655_v24 = vadd.f32 %v13578_v36, %v8632_v52  ;;  %v8444_v13 = vsel %vm7900_vm10, 0.0, %v8412_v12  ;;  %v8445_v63 = vsel %vm7900_vm10, 0.0, %v8414_v47  ;;  %v14692_v47 = vld [vmem:[#allocation175_spill] sm:$0xff] }
 0x697   :  { %8671 = vst.msk [vmem:[#allocation14 + $0x30] sm:$0xff] %vm7186_vm5, %v8655_v24  ;;  %v14693_v24 = vld [vmem:[#allocation141_spill] sm:$0xff] }
 0x698   :  { %v8418_v39 = vpop.permute.xlu1 %8417  ;;  %v8416_v34 = vpop.permute.xlu0 %8415  ;;  %v8232_v31 = vadd.f32 %v14693_v24, %v13556_v42 }
 0x699   :  { %v8446_v32 = vsel %vm7900_vm10, 0.0, %v8416_v34  ;;  %v14694_v34 = vld [vmem:[#allocation29_spill] sm:$0xff] }
 0x69c   :  { %v8121_v5 = vpop.permute.xlu1 %8120  ;;  %v8332_v44 = vpop.permute.xlu0 %8331 }
 0x69d   :  { %v8371_v25 = vadd.f32 %v8332_v44, %v8227_v43  ;;  %v8153_v58 = vsel %vm7900_vm10, 0.0, %v8121_v5  ;;  %v14695_v43 = vld [vmem:[#allocation45_spill] sm:$0xff] }
 0x69e   :  { %v8169_v38 = vadd.f32 %v8153_v58, %v8083_v59  ;;  %v8233_v5 = vadd.f32 %v14695_v43, %v13568_v17  ;;  %v14696_v44 = vld [vmem:[#allocation161_spill] sm:$0xff]  ;;  %v14698_v58 = vld [vmem:[#allocation119_spill] sm:$0xff] }
 0x69f   :  { %v8457_v46 = vadd.f32 %v8442_v60, %v8371_v25  ;;  %v14697_v60 = vld [vmem:[#allocation42_spill] sm:$0xff] }
 0x6a0   :  { %v8334_v15 = vpop.permute.xlu1 %8333  ;;  %v8336_v18 = vpop.permute.xlu0 %8335  ;;  %v8234_v25 = vadd.f32 %v14696_v44, %v8169_v38 }
 0x6a1   :  { %v8372_v37 = vadd.f32 %v8334_v15, %v8228_v21  ;;  %v8515_v22 = vadd.f32 %v14682_v35, %v8457_v46  ;;  %v8373_v4 = vadd.f32 %v8336_v18, %v8229_v30 }
 0x6a3   :  { %v8458_v9 = vadd.f32 %v8443_v7, %v8372_v37  ;;  %v8634_v40 = vadd.f32 %v14684_v27, %v8515_v22  ;;  %v8459_v0 = vadd.f32 %v8444_v13, %v8373_v4  ;;  %v8447_v7 = vsel %vm7900_vm10, 0.0, %v8418_v39  ;;  %v14699_v39 = vld [vmem:[#allocation145_spill] sm:$0xff] }
 0x6a4   :  { %v8338_v20 = vpop.permute.xlu1 %8337  ;;  %v8340_v2 = vpop.permute.xlu0 %8339 }
 0x6a5   :  { %v8516_v62 = vadd.f32 %v14687_v54, %v8458_v9  ;;  %v8374_v14 = vadd.f32 %v8338_v20, %v8230_v50  ;;  %v8657_v41 = vadd.f32 %v13578_v36, %v8634_v40  ;;  %v8517_v55 = vadd.f32 %v14688_v23, %v8459_v0 }
 0x6a6   :  { %v8375_v1 = vadd.f32 %v8340_v2, %v8231_v11 }
 0x6a7   :  { %v8635_v61 = vadd.f32 %v14689_v3, %v8516_v62  ;;  %v8460_v51 = vadd.f32 %v8445_v63, %v8374_v14  ;;  %8673 = vst.msk [vmem:[#allocation14 + $0x40] sm:$0xff] %vm7186_vm5, %v8657_v41  ;;  %v8636_v49 = vadd.f32 %v14690_v8, %v8517_v55 }
 0x6a8   :  { %v8461_v28 = vadd.f32 %v8446_v32, %v8375_v1  ;;  %v8342_v45 = vpop.permute.xlu1 %8341  ;;  %v8344_v33 = vpop.permute.xlu0 %8343 }
 0x6a9   :  { %v8658_v10 = vadd.f32 %v13578_v36, %v8635_v61  ;;  %v8518_v26 = vadd.f32 %v14691_v56, %v8460_v51  ;;  %v8659_v52 = vadd.f32 %v13578_v36, %v8636_v49  ;;  %v8376_v21 = vadd.f32 %v8342_v45, %v8232_v31 }
 0x6aa   :  { %v8519_v12 = vadd.f32 %v14692_v47, %v8461_v28  ;;  %v8377_v29 = vadd.f32 %v8344_v33, %v8233_v5 }
 0x6ab   :  { %8674 = vst.msk [vmem:[#allocation14 + $0x48] sm:$0xff] %vm7186_vm5, %v8658_v10  ;;  %v8637_v19 = vadd.f32 %v14694_v34, %v8518_v26  ;;  %8675 = vst.msk [vmem:[#allocation14 + $0x50] sm:$0xff] %vm7186_vm5, %v8659_v52  ;;  %v8462_v4 = vadd.f32 %v8447_v7, %v8376_v21 }
 0x6ac   :  { %v8638_v16 = vadd.f32 %v14697_v60, %v8519_v12  ;;  %v8346_v46 = vpop.permute.xlu1 %8345  ;;  %v8420_v42 = vpop.permute.xlu0 %8419 }
 0x6ad   :  { %v8660_v15 = vadd.f32 %v13578_v36, %v8637_v19  ;;  %v8378_v30 = vadd.f32 %v8346_v46, %v8234_v25  ;;  %v8448_v18 = vsel %vm7900_vm10, 0.0, %v8420_v42 }
 0x6ae   :  { %v8661_v37 = vadd.f32 %v13578_v36, %v8638_v16  ;;  %v8463_v35 = vadd.f32 %v8448_v18, %v8377_v29 }
 0x6af   :  { %8676 = vst.msk [vmem:[#allocation14 + $0x58] sm:$0xff] %vm7186_vm5, %v8660_v15  ;;  %v8522_v17 = vadd.f32 %v8378_v30, %v14482_v53 }
 0x6b0   :  { %8677 = vst.msk [vmem:[#allocation14 + $0x60] sm:$0xff] %vm7186_vm5, %v8661_v37  ;;  %v8492_v22 = vpop.permute.xlu1 %8491  ;;  %v8490_v48 = vpop.permute.xlu0 %8489 }
 0x6b1   :  { %v8664_v13 = vadd.f32 %v13578_v36, %v8522_v17  ;;  %v8521_v9 = vadd.f32 %v8492_v22, %v8463_v35  ;;  %v8520_v50 = vadd.f32 %v8490_v48, %v8462_v4 }
 0x6b3   :  { %8680 = vst.msk [vmem:[#allocation14 + $0x78] sm:$0xff] %vm7186_vm5, %v8664_v13  ;;  %v8640_v27 = vadd.f32 %v14698_v58, %v8521_v9  ;;  %v8639_v40 = vadd.f32 %v14699_v39, %v8520_v50 }
 0x6b5   :  { %v8663_v53 = vadd.f32 %v13578_v36, %v8640_v27  ;;  %v8662_v0 = vadd.f32 %v13578_v36, %v8639_v40 }
 0x6b7   :  { %8679 = vst.msk [vmem:[#allocation14 + $0x70] sm:$0xff] %vm7186_vm5, %v8663_v53  ;;  %8678 = vst.msk [vmem:[#allocation14 + $0x68] sm:$0xff] %vm7186_vm5, %v8662_v0 }
 0x6b8   :  { %9584 = shalt.err (!%p9581_p11)
}
 0x6b9   :  { %s9621_s5 = smov 128   ;;  %s9622_s22 = smov 8  }
 0x6ba   :  { %8692 = dma.vmem_to_hbm [thread:$0]  %s8687_s30, 2048, %s13691_s9, [#allocation4], %s9621_s5, %s9621_s5, %s9622_s22  }
 0x6bb   :  { %9601 = dma.done.wait [#allocation4], 2048  }
 0x6bc   :  { %9602 = vsyncadd [#allocation4], 4294965248 }
 0x6bd   :  { %8696 = vsyncpa [#allocation3], 1 }
 0x6be   :  { %8697 = vsyncpa [#allocation6], 1 }
 0x6bf   :  { %8698 = vsyncpa [#allocation9], 1 }
 0x6c0   :  { %8699 = vsyncpa [#allocation12], 1 }
 0x6c1   :  { %8700 = vsyncpa [#allocation4], 1 }

</bundles_post_ra>
